<compile_context>
chip_gen: v5e
topology: v5e:2x2
jax: 0.10.0
libtpu: 0.0.40
codegen_flags: <defaults>
</compile_context>

<pallas_src>
import functools

import jax
import jax.numpy as jnp
import numpy as np
from jax.experimental import pallas as pl
from jax.experimental.pallas import tpu as pltpu

POS_FREQS = 10
DIR_FREQS = 4
HIDDEN = 256
HALF = 128
POS_IN = 3 * (1 + 2 * POS_FREQS)   # 63
DIR_IN = 3 * (1 + 2 * DIR_FREQS)   # 27
POS_PAD = 64                       # lane-padded position encoding width
OUT_PAD = 128                      # lane-dense padded output (rgb lanes 0..2, sigma lane 3)


def _round_up(x, m):
    return (x + m - 1) // m * m


def _pick_tile(n, tile_m):
    """Tile for the ray axis: cap at tile_m, pad small N to 128, and prefer
    >= 2 grid steps so v7x megacore can split the grid across both TCs."""
    if _round_up(n, 128) <= 128:
        return 128
    half = _round_up((n + 1) // 2, 128)
    return min(tile_m, half)


# ----------------------------------------------------------------------------
# Positional encoding (glue, plain JAX — elementwise, not the hot path)
# ----------------------------------------------------------------------------
def positional_encoding(x, num_freqs):
    # order matches the PyTorch module: [x, sin(x*f0), cos(x*f0), sin(x*f1), ...]
    freqs = (2.0 ** np.arange(num_freqs, dtype=np.float32)) * np.pi
    out = [x]
    for f in freqs:
        out.append(jnp.sin(x * f))
        out.append(jnp.cos(x * f))
    return jnp.concatenate(out, axis=-1)


# ----------------------------------------------------------------------------
# Pallas kernel: full NeRF MLP for one tile of rays (bf16 MXU, f32 accum)
# ----------------------------------------------------------------------------
def nerf_mlp_kernel(x_ref, dc_ref, w_sq, w_x, b_body, w_ds, b_ds,
                    wd2, bd2, wr, br, out_ref):
    f32 = jnp.float32
    x = x_ref[...]                              # (TM, 64) bf16, lane 63 zero-padded

    def dot(a, w):
        return jnp.dot(a, w, preferred_element_type=f32)

    def act(z):
        # relu/bias stay f32 (VPU-friendly on v5e); cast to bf16 only for the MXU
        return jax.nn.relu(z).astype(jnp.bfloat16)

    # body MLP with skip connections (skips split into aligned K=256 + K=64 matmuls)
    h = act(dot(x, w_x[0]) + b_body[0:1])                       # layer 1
    h = act(dot(h, w_sq[0]) + b_body[1:2])                      # layer 2
    h = act(dot(h, w_sq[1]) + dot(x, w_x[1]) + b_body[2:3])     # layer 3 (skip)
    h = act(dot(h, w_sq[2]) + b_body[3:4])                      # layer 4
    h = act(dot(h, w_sq[3]) + dot(x, w_x[2]) + b_body[4:5])     # layer 5 (skip)
    h = act(dot(h, w_sq[4]) + b_body[5:6])                      # layer 6
    h = act(dot(h, w_sq[5]) + dot(x, w_x[3]) + b_body[6:7])     # layer 7 (skip)
    h = act(dot(h, w_sq[6]) + b_body[7:8])                      # layer 8

    # fused dir-layer-1 (h slab) + sigma head: one 256-wide MXU pass.
    # lanes 0..127 = wd1h, lane 131 = sigma column.
    z = dot(h, w_ds[...]) + b_ds[...]                           # (TM, 256) f32
    sigma_full = z[:, HALF:]                                    # (TM, 128), sigma at lane 3
    hd = act(z[:, :HALF] + dc_ref[...].astype(f32))             # + precomputed d @ wd1d
    hd = act(dot(hd, wd2[...]) + bd2[...])                      # dir layer 2
    rgb_full = jax.nn.sigmoid(dot(hd, wr[...]) + br[...])       # (TM, 128), rgb lanes 0..2

    # NOTE: must remain a select — rgb_full's padded lanes are sigmoid(0)=0.5, not 0.
    lane = jax.lax.broadcasted_iota(jnp.int32, rgb_full.shape, 1)
    out_ref[...] = jnp.where(lane < 3, rgb_full, sigma_full).astype(out_ref.dtype)


# ----------------------------------------------------------------------------
# Wrapper: padding, BlockSpecs, pallas_call
# ----------------------------------------------------------------------------
KERNEL_PARAMS = ("w_sq", "w_x", "b_body", "w_ds", "b_ds", "wd2", "bd2", "wr", "br")


@functools.partial(jax.jit, static_argnames=("tile_m",))
def nerf_forward(points, view_dirs, packed, *, tile_m=2048):
    """points, view_dirs: (N, 3) float32.  Returns (N, 4) = (rgb, sigma)."""
    n = points.shape[0]

    x_enc = positional_encoding(points, POS_FREQS)        # (N, 63) f32
    d_enc = positional_encoding(view_dirs, DIR_FREQS)     # (N, 27) f32
    # Hoisted K=27 dir matmul: fuses with the encoding in XLA, removes the
    # lowest-utilization MXU pass from the kernel.
    dc = d_enc @ packed["wd1d"]                            # (N, 128) f32

    tm = _pick_tile(n, tile_m)
    n_pad = _round_up(n, tm)

    x_enc = jnp.pad(x_enc, ((0, n_pad - n), (0, POS_PAD - POS_IN))).astype(jnp.bfloat16)
    dc = jnp.pad(dc, ((0, n_pad - n), (0, 0))).astype(jnp.bfloat16)

    grid = (n_pad // tm,)
    weights = [packed[k] for k in KERNEL_PARAMS]

    def resident(arr):
        # weights/biases resident in VMEM, same block every grid step
        nd = arr.ndim
        return pl.BlockSpec(arr.shape, lambda i, _nd=nd: (0,) * _nd)

    in_specs = ([pl.BlockSpec((tm, POS_PAD), lambda i: (i, 0)),
                 pl.BlockSpec((tm, HALF), lambda i: (i, 0))]
                + [resident(w) for w in weights])

    out = pl.pallas_call(
        nerf_mlp_kernel,
        out_shape=jax.ShapeDtypeStruct((n_pad, OUT_PAD), jnp.bfloat16),
        grid_spec=pltpu.PrefetchScalarGridSpec(
            num_scalar_prefetch=0,
            grid=grid,
            in_specs=in_specs,
            out_specs=pl.BlockSpec((tm, OUT_PAD), lambda i: (i, 0)),
        ),
        compiler_params=pltpu.CompilerParams(
            dimension_semantics=("parallel",),       # ray tiles independent -> megacore
            vmem_limit_bytes=48 * 1024 * 1024,       # headroom for the 2048-ray tile
        ),
    )(x_enc, dc, *weights)

    return out[:n, :4].astype(jnp.float32)


# ----------------------------------------------------------------------------
# Parameter packing: split skips, fuse sigma head into dir layer 1, pad, stack
# ----------------------------------------------------------------------------
def pack_params(p):
    bf16 = jnp.bfloat16
    f32 = jnp.float32

    def pad_rows(w, rows):
        return jnp.pad(w, ((0, rows - w.shape[0]), (0, 0)))

    # x-slab weights: layer1 + the x slices of the skip layers, padded 63->64
    w_x = jnp.stack([
        pad_rows(p["w1"], POS_PAD),
        pad_rows(p["w3"][HIDDEN:], POS_PAD),
        pad_rows(p["w5"][HIDDEN:], POS_PAD),
        pad_rows(p["w7"][HIDDEN:], POS_PAD),
    ]).astype(bf16)                                                  # (4, 64, 256)

    # square (256,256) weights: layer2, h-slab 3, 4, h-slab 5, 6, h-slab 7, 8
    w_sq = jnp.stack([
        p["w2"], p["w3"][:HIDDEN], p["w4"], p["w5"][:HIDDEN],
        p["w6"], p["w7"][:HIDDEN], p["w8"],
    ]).astype(bf16)                                                  # (7, 256, 256)

    b_body = jnp.concatenate(
        [p["b" + s] for s in ("1", "2", "3", "4", "5", "6", "7", "8")],
        axis=0).astype(f32)                                          # (8, 256)

    # fused dir-layer-1 h-slab + sigma head: lanes 0..127 = wd1h, lane 131 = ws
    w_ds = (jnp.zeros((HIDDEN, 2 * HALF), f32)
            .at[:, :HALF].set(p["wd1"][:HIDDEN])
            .at[:, HALF + 3:HALF + 4].set(p["ws"])).astype(bf16)     # (256, 256)
    b_ds = (jnp.zeros((1, 2 * HALF), f32)
            .at[:, :HALF].set(p["bd1"])
            .at[:, HALF + 3:HALF + 4].set(p["bs"]))                  # (1, 256)

    # d-slab of dir layer 1 stays f32: used by the XLA glue matmul, not the kernel
    wd1d = p["wd1"][HIDDEN:].astype(f32)                             # (27, 128)

    wd2 = p["wd2"].astype(bf16)                                      # (128, 128)
    bd2 = p["bd2"].astype(f32)                                       # (1, 128)

    # rgb head padded to a full 128-lane slab (rgb -> lanes 0..2)
    wr = jnp.zeros((HALF, HALF), f32).at[:, :3].set(p["wr"]).astype(bf16)
    br = jnp.zeros((1, HALF), f32).at[:, :3].set(p["br"])

    return dict(w_sq=w_sq, w_x=w_x, b_body=b_body, w_ds=w_ds, b_ds=b_ds,
                wd2=wd2, bd2=bd2, wr=wr, br=br, wd1d=wd1d)


# ----------------------------------------------------------------------------
# Deterministic parameter init (PyTorch Linear-style uniform ±1/sqrt(fan_in))
# ----------------------------------------------------------------------------
def init_params(key):
    dims = {
        "1": (POS_IN, HIDDEN),
        "2": (HIDDEN, HIDDEN),
        "3": (HIDDEN + POS_IN, HIDDEN),
        "4": (HIDDEN, HIDDEN),
        "5": (HIDDEN + POS_IN, HIDDEN),
        "6": (HIDDEN, HIDDEN),
        "7": (HIDDEN + POS_IN, HIDDEN),
        "8": (HIDDEN, HIDDEN),
        "s": (HIDDEN, 1),
        "d1": (HIDDEN + DIR_IN, HIDDEN // 2),
        "d2": (HIDDEN // 2, HIDDEN // 2),
        "r": (HIDDEN // 2, 3),
    }
    params = {}
    keys = jax.random.split(key, 2 * len(dims))
    for i, (name, (fan_in, fan_out)) in enumerate(dims.items()):
        bound = 1.0 / np.sqrt(fan_in)
        params["w" + name] = jax.random.uniform(
            keys[2 * i], (fan_in, fan_out), jnp.float32, -bound, bound)
        # biases kept 2-D (1, out) so they stack/broadcast cleanly in VMEM
        params["b" + name] = jax.random.uniform(
            keys[2 * i + 1], (1, fan_out), jnp.float32, -bound, bound)
    return params


# ----------------------------------------------------------------------------
# Pure-JAX reference (f32, unsplit weights) for a sanity check
# ----------------------------------------------------------------------------
def nerf_forward_ref(points, view_dirs, p):
    x = positional_encoding(points, POS_FREQS)
    d = positional_encoding(view_dirs, DIR_FREQS)
    relu = jax.nn.relu
    h = relu(x @ p["w1"] + p["b1"])
    h = relu(h @ p["w2"] + p["b2"])
    h = relu(jnp.concatenate([h, x], -1) @ p["w3"] + p["b3"])
    h = relu(h @ p["w4"] + p["b4"])
    h = relu(jnp.concatenate([h, x], -1) @ p["w5"] + p["b5"])
    h = relu(h @ p["w6"] + p["b6"])
    h = relu(jnp.concatenate([h, x], -1) @ p["w7"] + p["b7"])
    h = relu(h @ p["w8"] + p["b8"])
    sigma = h @ p["ws"] + p["bs"]
    hd = relu(jnp.concatenate([h, d], -1) @ p["wd1"] + p["bd1"])
    hd = relu(hd @ p["wd2"] + p["bd2"])
    rgb = jax.nn.sigmoid(hd @ p["wr"] + p["br"])
    return jnp.concatenate([rgb, sigma], -1)


if __name__ == "__main__":
    key = jax.random.PRNGKey(0)
    k_pts, k_dirs, k_params = jax.random.split(key, 3)

    params = init_params(k_params)
    packed = pack_params(params)

    # n=300: exercises the small-batch clamp (2 tiles of 256, pad/slice path).
    # n=4500: exercises the default 2048-ray tile.
    for n in (300, 4500):
        points = jax.random.normal(jax.random.fold_in(k_pts, n), (n, 3), jnp.float32)
        view_dirs = jax.random.normal(jax.random.fold_in(k_dirs, n), (n, 3), jnp.float32)
        view_dirs = view_dirs / jnp.linalg.norm(view_dirs, axis=-1, keepdims=True)

        out = jax.block_until_ready(nerf_forward(points, view_dirs, packed))
        ref = jax.block_until_ready(nerf_forward_ref(points, view_dirs, params))

        assert out.shape == (n, 4), out.shape
        assert bool(jnp.all(jnp.isfinite(out)))
        max_err = float(jnp.max(jnp.abs(out - ref)))
        assert bool(jnp.allclose(out, ref, rtol=5e-2, atol=5e-2)), \
            f"n={n}: mismatch vs JAX reference (max abs err {max_err})"

    print("KERNEL_OK")
</pallas_src>

<mosaic_0001>
module attributes {stable_mosaic.version = 11 : i64} {
  func.func @nerf_mlp_kernel(%arg0: i32, %arg1: memref<256x64xbf16, #tpu.memory_space<vmem>>, %arg2: memref<256x128xbf16, #tpu.memory_space<vmem>>, %arg3: memref<7x256x256xbf16, #tpu.memory_space<vmem>>, %arg4: memref<4x64x256xbf16, #tpu.memory_space<vmem>>, %arg5: memref<8x256xf32, #tpu.memory_space<vmem>>, %arg6: memref<256x256xbf16, #tpu.memory_space<vmem>>, %arg7: memref<1x256xf32, #tpu.memory_space<vmem>>, %arg8: memref<128x128xbf16, #tpu.memory_space<vmem>>, %arg9: memref<1x128xf32, #tpu.memory_space<vmem>>, %arg10: memref<128x128xbf16, #tpu.memory_space<vmem>>, %arg11: memref<1x128xf32, #tpu.memory_space<vmem>>, %arg12: memref<256x128xbf16, #tpu.memory_space<vmem>>) attributes {dimension_semantics = [#tpu.dimension_semantics<parallel>], iteration_bounds = array<i64: 2>, scalar_prefetch = 0 : i64, scratch_operands = 0 : i64, tpu.core_type = #tpu.core_type<tc>, window_params = [{transform_indices = @transform_0, window_bounds = array<i64: 256, 64>}, {transform_indices = @transform_1, window_bounds = array<i64: 256, 128>}, {pipeline_mode = #tpu.pipeline_mode<synchronous>, transform_indices = @transform_2, window_bounds = array<i64: 7, 256, 256>}, {pipeline_mode = #tpu.pipeline_mode<synchronous>, transform_indices = @transform_3, window_bounds = array<i64: 4, 64, 256>}, {pipeline_mode = #tpu.pipeline_mode<synchronous>, transform_indices = @transform_4, window_bounds = array<i64: 8, 256>}, {pipeline_mode = #tpu.pipeline_mode<synchronous>, transform_indices = @transform_5, window_bounds = array<i64: 256, 256>}, {pipeline_mode = #tpu.pipeline_mode<synchronous>, transform_indices = @transform_6, window_bounds = array<i64: 1, 256>}, {pipeline_mode = #tpu.pipeline_mode<synchronous>, transform_indices = @transform_7, window_bounds = array<i64: 128, 128>}, {pipeline_mode = #tpu.pipeline_mode<synchronous>, transform_indices = @transform_8, window_bounds = array<i64: 1, 128>}, {pipeline_mode = #tpu.pipeline_mode<synchronous>, transform_indices = @transform_9, window_bounds = array<i64: 128, 128>}, {pipeline_mode = #tpu.pipeline_mode<synchronous>, transform_indices = @transform_10, window_bounds = array<i64: 1, 128>}, {transform_indices = @transform_11, window_bounds = array<i64: 256, 128>}]} {
    %c0 = arith.constant 0 : index
    %c0_0 = arith.constant 0 : index
    %0 = vector.load %arg1[%c0, %c0_0] : memref<256x64xbf16, #tpu.memory_space<vmem>>, vector<256x64xbf16>
    %c0_1 = arith.constant 0 : index
    %c0_2 = arith.constant 0 : index
    %c0_3 = arith.constant 0 : index
    %1 = vector.load %arg4[%c0_1, %c0_2, %c0_3] : memref<4x64x256xbf16, #tpu.memory_space<vmem>>, vector<1x64x256xbf16>
    %2 = vector.shape_cast %1 : vector<1x64x256xbf16> to vector<64x256xbf16>
    %cst = arith.constant dense<0.000000e+00> : vector<256x256xf32>
    %3 = tpu.matmul %0, %2, %cst {dimension_numbers = #tpu.dot_dimension_numbers<[1], [0], [0], [1], [0, 0, 1, 1], [], []>} : vector<256x64xbf16>, vector<64x256xbf16>, vector<256x256xf32> -> vector<256x256xf32>
    %c0_4 = arith.constant 0 : index
    %c0_5 = arith.constant 0 : index
    %4 = vector.load %arg5[%c0_4, %c0_5] : memref<8x256xf32, #tpu.memory_space<vmem>>, vector<1x256xf32>
    %5 = vector.broadcast %4 : vector<1x256xf32> to vector<256x256xf32>
    %6 = arith.addf %3, %5 : vector<256x256xf32>
    %cst_6 = arith.constant 0.000000e+00 : f32
    %7 = vector.broadcast %cst_6 : f32 to vector<256x256xf32>
    %8 = arith.maximumf %6, %7 : vector<256x256xf32>
    %9 = arith.truncf %8 : vector<256x256xf32> to vector<256x256xbf16>
    %c0_7 = arith.constant 0 : index
    %c0_8 = arith.constant 0 : index
    %c0_9 = arith.constant 0 : index
    %10 = vector.load %arg3[%c0_7, %c0_8, %c0_9] : memref<7x256x256xbf16, #tpu.memory_space<vmem>>, vector<1x256x256xbf16>
    %11 = vector.shape_cast %10 : vector<1x256x256xbf16> to vector<256x256xbf16>
    %cst_10 = arith.constant dense<0.000000e+00> : vector<256x256xf32>
    %12 = tpu.matmul %9, %11, %cst_10 {dimension_numbers = #tpu.dot_dimension_numbers<[1], [0], [0], [1], [0, 0, 1, 1], [], []>} : vector<256x256xbf16>, vector<256x256xbf16>, vector<256x256xf32> -> vector<256x256xf32>
    %c1 = arith.constant 1 : index
    %c0_11 = arith.constant 0 : index
    %13 = vector.load %arg5[%c1, %c0_11] : memref<8x256xf32, #tpu.memory_space<vmem>>, vector<1x256xf32>
    %14 = vector.broadcast %13 : vector<1x256xf32> to vector<256x256xf32>
    %15 = arith.addf %12, %14 : vector<256x256xf32>
    %cst_12 = arith.constant 0.000000e+00 : f32
    %16 = vector.broadcast %cst_12 : f32 to vector<256x256xf32>
    %17 = arith.maximumf %15, %16 : vector<256x256xf32>
    %18 = arith.truncf %17 : vector<256x256xf32> to vector<256x256xbf16>
    %c1_13 = arith.constant 1 : index
    %c0_14 = arith.constant 0 : index
    %c0_15 = arith.constant 0 : index
    %19 = vector.load %arg3[%c1_13, %c0_14, %c0_15] : memref<7x256x256xbf16, #tpu.memory_space<vmem>>, vector<1x256x256xbf16>
    %20 = vector.shape_cast %19 : vector<1x256x256xbf16> to vector<256x256xbf16>
    %cst_16 = arith.constant dense<0.000000e+00> : vector<256x256xf32>
    %21 = tpu.matmul %18, %20, %cst_16 {dimension_numbers = #tpu.dot_dimension_numbers<[1], [0], [0], [1], [0, 0, 1, 1], [], []>} : vector<256x256xbf16>, vector<256x256xbf16>, vector<256x256xf32> -> vector<256x256xf32>
    %c1_17 = arith.constant 1 : index
    %c0_18 = arith.constant 0 : index
    %c0_19 = arith.constant 0 : index
    %22 = vector.load %arg4[%c1_17, %c0_18, %c0_19] : memref<4x64x256xbf16, #tpu.memory_space<vmem>>, vector<1x64x256xbf16>
    %23 = vector.shape_cast %22 : vector<1x64x256xbf16> to vector<64x256xbf16>
    %cst_20 = arith.constant dense<0.000000e+00> : vector<256x256xf32>
    %24 = tpu.matmul %0, %23, %cst_20 {dimension_numbers = #tpu.dot_dimension_numbers<[1], [0], [0], [1], [0, 0, 1, 1], [], []>} : vector<256x64xbf16>, vector<64x256xbf16>, vector<256x256xf32> -> vector<256x256xf32>
    %25 = arith.addf %21, %24 : vector<256x256xf32>
    %c2 = arith.constant 2 : index
    %c0_21 = arith.constant 0 : index
    %26 = vector.load %arg5[%c2, %c0_21] : memref<8x256xf32, #tpu.memory_space<vmem>>, vector<1x256xf32>
    %27 = vector.broadcast %26 : vector<1x256xf32> to vector<256x256xf32>
    %28 = arith.addf %25, %27 : vector<256x256xf32>
    %cst_22 = arith.constant 0.000000e+00 : f32
    %29 = vector.broadcast %cst_22 : f32 to vector<256x256xf32>
    %30 = arith.maximumf %28, %29 : vector<256x256xf32>
    %31 = arith.truncf %30 : vector<256x256xf32> to vector<256x256xbf16>
    %c2_23 = arith.constant 2 : index
    %c0_24 = arith.constant 0 : index
    %c0_25 = arith.constant 0 : index
    %32 = vector.load %arg3[%c2_23, %c0_24, %c0_25] : memref<7x256x256xbf16, #tpu.memory_space<vmem>>, vector<1x256x256xbf16>
    %33 = vector.shape_cast %32 : vector<1x256x256xbf16> to vector<256x256xbf16>
    %cst_26 = arith.constant dense<0.000000e+00> : vector<256x256xf32>
    %34 = tpu.matmul %31, %33, %cst_26 {dimension_numbers = #tpu.dot_dimension_numbers<[1], [0], [0], [1], [0, 0, 1, 1], [], []>} : vector<256x256xbf16>, vector<256x256xbf16>, vector<256x256xf32> -> vector<256x256xf32>
    %c3 = arith.constant 3 : index
    %c0_27 = arith.constant 0 : index
    %35 = vector.load %arg5[%c3, %c0_27] : memref<8x256xf32, #tpu.memory_space<vmem>>, vector<1x256xf32>
    %36 = vector.broadcast %35 : vector<1x256xf32> to vector<256x256xf32>
    %37 = arith.addf %34, %36 : vector<256x256xf32>
    %cst_28 = arith.constant 0.000000e+00 : f32
    %38 = vector.broadcast %cst_28 : f32 to vector<256x256xf32>
    %39 = arith.maximumf %37, %38 : vector<256x256xf32>
    %40 = arith.truncf %39 : vector<256x256xf32> to vector<256x256xbf16>
    %c3_29 = arith.constant 3 : index
    %c0_30 = arith.constant 0 : index
    %c0_31 = arith.constant 0 : index
    %41 = vector.load %arg3[%c3_29, %c0_30, %c0_31] : memref<7x256x256xbf16, #tpu.memory_space<vmem>>, vector<1x256x256xbf16>
    %42 = vector.shape_cast %41 : vector<1x256x256xbf16> to vector<256x256xbf16>
    %cst_32 = arith.constant dense<0.000000e+00> : vector<256x256xf32>
    %43 = tpu.matmul %40, %42, %cst_32 {dimension_numbers = #tpu.dot_dimension_numbers<[1], [0], [0], [1], [0, 0, 1, 1], [], []>} : vector<256x256xbf16>, vector<256x256xbf16>, vector<256x256xf32> -> vector<256x256xf32>
    %c2_33 = arith.constant 2 : index
    %c0_34 = arith.constant 0 : index
    %c0_35 = arith.constant 0 : index
    %44 = vector.load %arg4[%c2_33, %c0_34, %c0_35] : memref<4x64x256xbf16, #tpu.memory_space<vmem>>, vector<1x64x256xbf16>
    %45 = vector.shape_cast %44 : vector<1x64x256xbf16> to vector<64x256xbf16>
    %cst_36 = arith.constant dense<0.000000e+00> : vector<256x256xf32>
    %46 = tpu.matmul %0, %45, %cst_36 {dimension_numbers = #tpu.dot_dimension_numbers<[1], [0], [0], [1], [0, 0, 1, 1], [], []>} : vector<256x64xbf16>, vector<64x256xbf16>, vector<256x256xf32> -> vector<256x256xf32>
    %47 = arith.addf %43, %46 : vector<256x256xf32>
    %c4 = arith.constant 4 : index
    %c0_37 = arith.constant 0 : index
    %48 = vector.load %arg5[%c4, %c0_37] : memref<8x256xf32, #tpu.memory_space<vmem>>, vector<1x256xf32>
    %49 = vector.broadcast %48 : vector<1x256xf32> to vector<256x256xf32>
    %50 = arith.addf %47, %49 : vector<256x256xf32>
    %cst_38 = arith.constant 0.000000e+00 : f32
    %51 = vector.broadcast %cst_38 : f32 to vector<256x256xf32>
    %52 = arith.maximumf %50, %51 : vector<256x256xf32>
    %53 = arith.truncf %52 : vector<256x256xf32> to vector<256x256xbf16>
    %c4_39 = arith.constant 4 : index
    %c0_40 = arith.constant 0 : index
    %c0_41 = arith.constant 0 : index
    %54 = vector.load %arg3[%c4_39, %c0_40, %c0_41] : memref<7x256x256xbf16, #tpu.memory_space<vmem>>, vector<1x256x256xbf16>
    %55 = vector.shape_cast %54 : vector<1x256x256xbf16> to vector<256x256xbf16>
    %cst_42 = arith.constant dense<0.000000e+00> : vector<256x256xf32>
    %56 = tpu.matmul %53, %55, %cst_42 {dimension_numbers = #tpu.dot_dimension_numbers<[1], [0], [0], [1], [0, 0, 1, 1], [], []>} : vector<256x256xbf16>, vector<256x256xbf16>, vector<256x256xf32> -> vector<256x256xf32>
    %c5 = arith.constant 5 : index
    %c0_43 = arith.constant 0 : index
    %57 = vector.load %arg5[%c5, %c0_43] : memref<8x256xf32, #tpu.memory_space<vmem>>, vector<1x256xf32>
    %58 = vector.broadcast %57 : vector<1x256xf32> to vector<256x256xf32>
    %59 = arith.addf %56, %58 : vector<256x256xf32>
    %cst_44 = arith.constant 0.000000e+00 : f32
    %60 = vector.broadcast %cst_44 : f32 to vector<256x256xf32>
    %61 = arith.maximumf %59, %60 : vector<256x256xf32>
    %62 = arith.truncf %61 : vector<256x256xf32> to vector<256x256xbf16>
    %c5_45 = arith.constant 5 : index
    %c0_46 = arith.constant 0 : index
    %c0_47 = arith.constant 0 : index
    %63 = vector.load %arg3[%c5_45, %c0_46, %c0_47] : memref<7x256x256xbf16, #tpu.memory_space<vmem>>, vector<1x256x256xbf16>
    %64 = vector.shape_cast %63 : vector<1x256x256xbf16> to vector<256x256xbf16>
    %cst_48 = arith.constant dense<0.000000e+00> : vector<256x256xf32>
    %65 = tpu.matmul %62, %64, %cst_48 {dimension_numbers = #tpu.dot_dimension_numbers<[1], [0], [0], [1], [0, 0, 1, 1], [], []>} : vector<256x256xbf16>, vector<256x256xbf16>, vector<256x256xf32> -> vector<256x256xf32>
    %c3_49 = arith.constant 3 : index
    %c0_50 = arith.constant 0 : index
    %c0_51 = arith.constant 0 : index
    %66 = vector.load %arg4[%c3_49, %c0_50, %c0_51] : memref<4x64x256xbf16, #tpu.memory_space<vmem>>, vector<1x64x256xbf16>
    %67 = vector.shape_cast %66 : vector<1x64x256xbf16> to vector<64x256xbf16>
    %cst_52 = arith.constant dense<0.000000e+00> : vector<256x256xf32>
    %68 = tpu.matmul %0, %67, %cst_52 {dimension_numbers = #tpu.dot_dimension_numbers<[1], [0], [0], [1], [0, 0, 1, 1], [], []>} : vector<256x64xbf16>, vector<64x256xbf16>, vector<256x256xf32> -> vector<256x256xf32>
    %69 = arith.addf %65, %68 : vector<256x256xf32>
    %c6 = arith.constant 6 : index
    %c0_53 = arith.constant 0 : index
    %70 = vector.load %arg5[%c6, %c0_53] : memref<8x256xf32, #tpu.memory_space<vmem>>, vector<1x256xf32>
    %71 = vector.broadcast %70 : vector<1x256xf32> to vector<256x256xf32>
    %72 = arith.addf %69, %71 : vector<256x256xf32>
    %cst_54 = arith.constant 0.000000e+00 : f32
    %73 = vector.broadcast %cst_54 : f32 to vector<256x256xf32>
    %74 = arith.maximumf %72, %73 : vector<256x256xf32>
    %75 = arith.truncf %74 : vector<256x256xf32> to vector<256x256xbf16>
    %c6_55 = arith.constant 6 : index
    %c0_56 = arith.constant 0 : index
    %c0_57 = arith.constant 0 : index
    %76 = vector.load %arg3[%c6_55, %c0_56, %c0_57] : memref<7x256x256xbf16, #tpu.memory_space<vmem>>, vector<1x256x256xbf16>
    %77 = vector.shape_cast %76 : vector<1x256x256xbf16> to vector<256x256xbf16>
    %cst_58 = arith.constant dense<0.000000e+00> : vector<256x256xf32>
    %78 = tpu.matmul %75, %77, %cst_58 {dimension_numbers = #tpu.dot_dimension_numbers<[1], [0], [0], [1], [0, 0, 1, 1], [], []>} : vector<256x256xbf16>, vector<256x256xbf16>, vector<256x256xf32> -> vector<256x256xf32>
    %c7 = arith.constant 7 : index
    %c0_59 = arith.constant 0 : index
    %79 = vector.load %arg5[%c7, %c0_59] : memref<8x256xf32, #tpu.memory_space<vmem>>, vector<1x256xf32>
    %80 = vector.broadcast %79 : vector<1x256xf32> to vector<256x256xf32>
    %81 = arith.addf %78, %80 : vector<256x256xf32>
    %cst_60 = arith.constant 0.000000e+00 : f32
    %82 = vector.broadcast %cst_60 : f32 to vector<256x256xf32>
    %83 = arith.maximumf %81, %82 : vector<256x256xf32>
    %84 = arith.truncf %83 : vector<256x256xf32> to vector<256x256xbf16>
    %c0_61 = arith.constant 0 : index
    %c0_62 = arith.constant 0 : index
    %85 = vector.load %arg6[%c0_61, %c0_62] : memref<256x256xbf16, #tpu.memory_space<vmem>>, vector<256x256xbf16>
    %cst_63 = arith.constant dense<0.000000e+00> : vector<256x256xf32>
    %86 = tpu.matmul %84, %85, %cst_63 {dimension_numbers = #tpu.dot_dimension_numbers<[1], [0], [0], [1], [0, 0, 1, 1], [], []>} : vector<256x256xbf16>, vector<256x256xbf16>, vector<256x256xf32> -> vector<256x256xf32>
    %c0_64 = arith.constant 0 : index
    %c0_65 = arith.constant 0 : index
    %87 = vector.load %arg7[%c0_64, %c0_65] : memref<1x256xf32, #tpu.memory_space<vmem>>, vector<1x256xf32>
    %88 = vector.broadcast %87 : vector<1x256xf32> to vector<256x256xf32>
    %89 = arith.addf %86, %88 : vector<256x256xf32>
    %90 = vector.extract_strided_slice %89 {offsets = [0, 128], sizes = [256, 128], strides = [1, 1]} : vector<256x256xf32> to vector<256x128xf32>
    %91 = vector.extract_strided_slice %89 {offsets = [0, 0], sizes = [256, 128], strides = [1, 1]} : vector<256x256xf32> to vector<256x128xf32>
    %c0_66 = arith.constant 0 : index
    %c0_67 = arith.constant 0 : index
    %92 = vector.load %arg2[%c0_66, %c0_67] : memref<256x128xbf16, #tpu.memory_space<vmem>>, vector<256x128xbf16>
    %93 = arith.extf %92 : vector<256x128xbf16> to vector<256x128xf32>
    %94 = arith.addf %91, %93 : vector<256x128xf32>
    %cst_68 = arith.constant 0.000000e+00 : f32
    %95 = vector.broadcast %cst_68 : f32 to vector<256x128xf32>
    %96 = arith.maximumf %94, %95 : vector<256x128xf32>
    %97 = arith.truncf %96 : vector<256x128xf32> to vector<256x128xbf16>
    %c0_69 = arith.constant 0 : index
    %c0_70 = arith.constant 0 : index
    %98 = vector.load %arg8[%c0_69, %c0_70] : memref<128x128xbf16, #tpu.memory_space<vmem>>, vector<128x128xbf16>
    %cst_71 = arith.constant dense<0.000000e+00> : vector<256x128xf32>
    %99 = tpu.matmul %97, %98, %cst_71 {dimension_numbers = #tpu.dot_dimension_numbers<[1], [0], [0], [1], [0, 0, 1, 1], [], []>} : vector<256x128xbf16>, vector<128x128xbf16>, vector<256x128xf32> -> vector<256x128xf32>
    %c0_72 = arith.constant 0 : index
    %c0_73 = arith.constant 0 : index
    %100 = vector.load %arg9[%c0_72, %c0_73] : memref<1x128xf32, #tpu.memory_space<vmem>>, vector<1x128xf32>
    %101 = vector.broadcast %100 : vector<1x128xf32> to vector<256x128xf32>
    %102 = arith.addf %99, %101 : vector<256x128xf32>
    %cst_74 = arith.constant 0.000000e+00 : f32
    %103 = vector.broadcast %cst_74 : f32 to vector<256x128xf32>
    %104 = arith.maximumf %102, %103 : vector<256x128xf32>
    %105 = arith.truncf %104 : vector<256x128xf32> to vector<256x128xbf16>
    %c0_75 = arith.constant 0 : index
    %c0_76 = arith.constant 0 : index
    %106 = vector.load %arg10[%c0_75, %c0_76] : memref<128x128xbf16, #tpu.memory_space<vmem>>, vector<128x128xbf16>
    %cst_77 = arith.constant dense<0.000000e+00> : vector<256x128xf32>
    %107 = tpu.matmul %105, %106, %cst_77 {dimension_numbers = #tpu.dot_dimension_numbers<[1], [0], [0], [1], [0, 0, 1, 1], [], []>} : vector<256x128xbf16>, vector<128x128xbf16>, vector<256x128xf32> -> vector<256x128xf32>
    %c0_78 = arith.constant 0 : index
    %c0_79 = arith.constant 0 : index
    %108 = vector.load %arg11[%c0_78, %c0_79] : memref<1x128xf32, #tpu.memory_space<vmem>>, vector<1x128xf32>
    %109 = vector.broadcast %108 : vector<1x128xf32> to vector<256x128xf32>
    %110 = arith.addf %107, %109 : vector<256x128xf32>
    %111 = arith.negf %110 : vector<256x128xf32>
    %112 = math.exp %111 : vector<256x128xf32>
    %cst_80 = arith.constant 1.000000e+00 : f32
    %113 = vector.broadcast %cst_80 : f32 to vector<256x128xf32>
    %114 = arith.addf %113, %112 : vector<256x128xf32>
    %115 = arith.divf %113, %114 : vector<256x128xf32>
    %116 = tpu.iota {dimensions = array<i32: 1>} : vector<256x128xi32>
    %c3_i32 = arith.constant 3 : i32
    %117 = vector.broadcast %c3_i32 : i32 to vector<256x128xi32>
    %118 = arith.cmpi slt, %116, %117 : vector<256x128xi32>
    %119 = arith.select %118, %115, %90 : vector<256x128xi1>, vector<256x128xf32>
    %120 = arith.truncf %119 : vector<256x128xf32> to vector<256x128xbf16>
    %c0_81 = arith.constant 0 : index
    %c0_82 = arith.constant 0 : index
    %121 = vector.load %arg12[%c0_81, %c0_82] : memref<256x128xbf16, #tpu.memory_space<vmem>>, vector<256x128xbf16>
    tpu.vector_store %arg12[%c0_81, %c0_82], %120 {strides = array<i32>} : memref<256x128xbf16, #tpu.memory_space<vmem>>, vector<256x128xbf16>,
    return
  }
  func.func @transform_0(%arg0: i32) -> (i32, i32) {
    %c0_i32 = arith.constant 0 : i32
    %c0_i32_0 = arith.constant 0 : i32
    return %arg0, %c0_i32 : i32, i32
  }
  func.func @transform_1(%arg0: i32) -> (i32, i32) {
    %c0_i32 = arith.constant 0 : i32
    %c0_i32_0 = arith.constant 0 : i32
    return %arg0, %c0_i32 : i32, i32
  }
  func.func @transform_2(%arg0: i32) -> (i32, i32, i32) {
    %c0_i32 = arith.constant 0 : i32
    %c0_i32_0 = arith.constant 0 : i32
    %c0_i32_1 = arith.constant 0 : i32
    %c0_i32_2 = arith.constant 0 : i32
    return %c0_i32, %c0_i32_0, %c0_i32_1 : i32, i32, i32
  }
  func.func @transform_3(%arg0: i32) -> (i32, i32, i32) {
    %c0_i32 = arith.constant 0 : i32
    %c0_i32_0 = arith.constant 0 : i32
    %c0_i32_1 = arith.constant 0 : i32
    %c0_i32_2 = arith.constant 0 : i32
    return %c0_i32, %c0_i32_0, %c0_i32_1 : i32, i32, i32
  }
  func.func @transform_4(%arg0: i32) -> (i32, i32) {
    %c0_i32 = arith.constant 0 : i32
    %c0_i32_0 = arith.constant 0 : i32
    %c0_i32_1 = arith.constant 0 : i32
    return %c0_i32, %c0_i32_0 : i32, i32
  }
  func.func @transform_5(%arg0: i32) -> (i32, i32) {
    %c0_i32 = arith.constant 0 : i32
    %c0_i32_0 = arith.constant 0 : i32
    %c0_i32_1 = arith.constant 0 : i32
    return %c0_i32, %c0_i32_0 : i32, i32
  }
  func.func @transform_6(%arg0: i32) -> (i32, i32) {
    %c0_i32 = arith.constant 0 : i32
    %c0_i32_0 = arith.constant 0 : i32
    %c0_i32_1 = arith.constant 0 : i32
    return %c0_i32, %c0_i32_0 : i32, i32
  }
  func.func @transform_7(%arg0: i32) -> (i32, i32) {
    %c0_i32 = arith.constant 0 : i32
    %c0_i32_0 = arith.constant 0 : i32
    %c0_i32_1 = arith.constant 0 : i32
    return %c0_i32, %c0_i32_0 : i32, i32
  }
  func.func @transform_8(%arg0: i32) -> (i32, i32) {
    %c0_i32 = arith.constant 0 : i32
    %c0_i32_0 = arith.constant 0 : i32
    %c0_i32_1 = arith.constant 0 : i32
    return %c0_i32, %c0_i32_0 : i32, i32
  }
  func.func @transform_9(%arg0: i32) -> (i32, i32) {
    %c0_i32 = arith.constant 0 : i32
    %c0_i32_0 = arith.constant 0 : i32
    %c0_i32_1 = arith.constant 0 : i32
    return %c0_i32, %c0_i32_0 : i32, i32
  }
  func.func @transform_10(%arg0: i32) -> (i32, i32) {
    %c0_i32 = arith.constant 0 : i32
    %c0_i32_0 = arith.constant 0 : i32
    %c0_i32_1 = arith.constant 0 : i32
    return %c0_i32, %c0_i32_0 : i32, i32
  }
  func.func @transform_11(%arg0: i32) -> (i32, i32) {
    %c0_i32 = arith.constant 0 : i32
    %c0_i32_0 = arith.constant 0 : i32
    return %arg0, %c0_i32 : i32, i32
  }
}

</mosaic_0001>

<bundles_post_ra>
// kernel: nerf_forward.1
= control target key start
LH: loop header
LB: loop body
LE: loop exit
PB: predicated region body
PF: predicated region fallthrough
CT: control target
= control target key end

     0   :  { %s10615_s17 = smov 0   ;;  %s16849_s0 = inlined_call_operand.vmem [shape: bf16[512,64], index: 0, kind: input, shape index: {}]   ;;  %s16850_s1 = inlined_call_operand.vmem [shape: bf16[512,128], index: 1, kind: input, shape index: {}]   ;;  %s16851_s2 = inlined_call_operand.vmem [shape: bf16[7,256,256], index: 2, kind: input, shape index: {}]   ;;  %s16852_s3 = inlined_call_operand.vmem [shape: bf16[4,64,256], index: 3, kind: input, shape index: {}]   ;;  %s16853_s4 = inlined_call_operand.vmem [shape: f32[8,256], index: 4, kind: input, shape index: {}]   ;;  %s16854_s5 = inlined_call_operand.vmem [shape: bf16[256,256], index: 5, kind: input, shape index: {}]   ;;  %s16855_s6 = inlined_call_operand.vmem [shape: f32[1,256], index: 6, kind: input, shape index: {}]   ;;  %s16856_s7 = inlined_call_operand.vmem [shape: bf16[128,128], index: 7, kind: input, shape index: {}]   ;;  %s16857_s8 = inlined_call_operand.vmem [shape: f32[1,128], index: 8, kind: input, shape index: {}]   ;;  %s16858_s9 = inlined_call_operand.vmem [shape: bf16[128,128], index: 9, kind: input, shape index: {}]   ;;  %s16859_s10 = inlined_call_operand.vmem [shape: f32[1,128], index: 10, kind: input, shape index: {}]   ;;  %s16860_s11 = inlined_call_operand.vmem [shape: bf16[512,128], index: 11, kind: output, shape index: {}]  }
   0x1 LB: > { %s8173_s18 = sadd.s32 4294967295, %s10553_s17   ;;  %p8177_p0 = scmp.ge.s32.totalorder %s10553_s17, 1  ;;  %s10553_s17 = sphi %s10615_s17, %s21_s17  }
   0x2   : > { %p349_p1 = scmp.lt.s32.totalorder %s10553_s17, 3 }
   0x4   : > { %p350_p2 = pnand %p8177_p0, %p349_p1 }
   0x6   : > { %353 = sbr.rel (%p350_p2) target bundleno = 3107 (0xc23), region = 64 }
   0xb   : > { %v8274_v0 = vld [vmem:[%s16852_s3 + $0x30] sm:$0xf]  ;;  %v9872_v1 = vld [vmem:[%s16852_s3 + $0x34] sm:$0xf0]  ;;  %v9871_v2 = vld [vmem:[%s16852_s3 + $0x34] sm:$0xf] }
   0xc   : > { %v8275_v3 = vor.u32 %v9872_v1, %v8274_v0  ;;  %v8276_v4 = vld [vmem:[%s16852_s3 + $0x38] sm:$0xf0]  ;;  %v8266_v5 = vld [vmem:[%s16852_s3 + $0x20] sm:$0xf]  ;;  %v9870_v6 = vld [vmem:[%s16852_s3 + $0x24] sm:$0xf0] }
   0xd   : > { %v8279_v7 = vor.u32 %v9871_v2, %v8276_v4  ;;  %v9869_v8 = vld [vmem:[%s16852_s3 + $0x24] sm:$0xf]  ;;  %v8268_v9 = vld [vmem:[%s16852_s3 + $0x28] sm:$0xf0]  ;;  %v8267_v10 = vor.u32 %v9870_v6, %v8266_v5  ;;  %v8258_v12 = vld [vmem:[%s16852_s3 + $0x10] sm:$0xf] }
   0xe   : > { %632 = vmatpush.bf16.msra.mxu0 %v8275_v3  ;;  %10343 = vmatpush.bf16.msra.mxu2 %v8275_v3  ;;  %v8271_v11 = vor.u32 %v9869_v8, %v8268_v9  ;;  %v9868_v13 = vld [vmem:[%s16852_s3 + $0x14] sm:$0xf0]  ;;  %v9867_v14 = vld [vmem:[%s16852_s3 + $0x14] sm:$0xf]  ;;  %v8260_v15 = vld [vmem:[%s16852_s3 + $0x18] sm:$0xf0] }
   0xf   : > { %721 = vmatpush.bf16.msra.mxu1 %v8279_v7  ;;  %10347 = vmatpush.bf16.msra.mxu3 %v8279_v7  ;;  %s8178_s26 = sshll.u32 %s8173_s18, 5  ;;  %v8259_v16 = vor.u32 %v9868_v13, %v8258_v12  ;;  %v8250_v17 = vld [vmem:[%s16852_s3] sm:$0xf]  ;;  %v8263_v18 = vor.u32 %v9867_v14, %v8260_v15  ;;  %v9866_v19 = vld [vmem:[%s16852_s3 + $0x4] sm:$0xf0]  ;;  %vm579_vm0 = vcmask 523264  }
  0x10   : > { %p395_p3 = scmp.lt.s32.totalorder %s8178_s26, 63  ;;  %v9865_v20 = vld [vmem:[%s16852_s3 + $0x4] sm:$0xf]  ;;  %v8252_v21 = vld [vmem:[%s16852_s3 + $0x8] sm:$0xf0]  ;;  %v8251_v26 = vor.u32 %v9866_v19, %v8250_v17 }
  0x11   : > { %v8371_v22 = vld [vmem:[%s16851_s2 + $0x70] sm:$0xf]  ;;  %v9888_v23 = vld [vmem:[%s16851_s2 + $0x74] sm:$0xf0]  ;;  %v8255_v27 = vor.u32 %v9865_v20, %v8252_v21  ;;  %v8363_v33 = vld [vmem:[%s16851_s2 + $0x60] sm:$0xf] }
  0x12   : > { %633 = vmatpush.bf16.msra.mxu0 %v8267_v10  ;;  %10344 = vmatpush.bf16.msra.mxu2 %v8267_v10  ;;  %s17263_s26 = smov (!%p395_p3, %s8178_s26), 63  ;;  %v8435_v24 = vld [vmem:[%s16851_s2 + $0xf0] sm:$0xf]  ;;  %v9904_v25 = vld [vmem:[%s16851_s2 + $0xf4] sm:$0xf0]  ;;  %v8372_v28 = vor.u32 %v9888_v23, %v8371_v22 }
  0x13   : > { %722 = vmatpush.bf16.msra.mxu1 %v8271_v11  ;;  %10348 = vmatpush.bf16.msra.mxu3 %v8271_v11  ;;  %s10677_s21 = sshll.u32 %s17263_s26, 2  ;;  %v8436_v29 = vor.u32 %v9904_v25, %v8435_v24  ;;  %v9886_v34 = vld [vmem:[%s16851_s2 + $0x64] sm:$0xf0]  ;;  %v8427_v36 = vld [vmem:[%s16851_s2 + $0xe0] sm:$0xf] }
  0x14   : > { %s10689_s29 = scalar_lea.vmem %s16849_s0, %s10677_s21  ;;  %v8364_v35 = vor.u32 %v9886_v34, %v8363_v33  ;;  %v9902_v37 = vld [vmem:[%s16851_s2 + $0xe4] sm:$0xf0]  ;;  %v8355_v41 = vld [vmem:[%s16851_s2 + $0x50] sm:$0xf]  ;;  %v9884_v42 = vld [vmem:[%s16851_s2 + $0x54] sm:$0xf0]  ;;  %s16074_s16 = scalar_lea.vmem %s16850_s1, %s10677_s21 }
  0x15   : > { %v9849_v30 = vld [vmem:[%s10689_s29] sm:$0xff]  ;;  %v9858_v31 = vld [vmem:[%s10689_s29 + $0x48] sm:$0xff]  ;;  %v8428_v38 = vor.u32 %v9902_v37, %v8427_v36  ;;  %v9859_v40 = vld [vmem:[%s10689_s29 + $0x50] sm:$0xff]  ;;  %v8356_v43 = vor.u32 %v9884_v42, %v8355_v41  ;;  %s16364_s13 = scalar_lea.vmem %s16860_s11, %s10677_s21 }
  0x16   : > { %634 = vmatpush.bf16.msra.mxu0 %v8259_v16  ;;  %10345 = vmatpush.bf16.msra.mxu2 %v8259_v16  ;;  %v10694_v32 = vld [vmem:[%s10689_s29 + $0x40] sm:$0xff]  ;;  %v9850_v39 = vld [vmem:[%s10689_s29 + $0x8] sm:$0xff]  ;;  %v8419_v44 = vld [vmem:[%s16851_s2 + $0xd0] sm:$0xf] }
  0x17   : > { %723 = vmatpush.bf16.msra.mxu1 %v8263_v18  ;;  %10349 = vmatpush.bf16.msra.mxu3 %v8263_v18  ;;  %v9900_v45 = vld [vmem:[%s16851_s2 + $0xd4] sm:$0xf0]  ;;  %v9851_v47 = vld [vmem:[%s10689_s29 + $0x10] sm:$0xff]  ;;  %v8347_v49 = vld [vmem:[%s16851_s2 + $0x40] sm:$0xf] }
  0x18   : > { %v8420_v46 = vor.u32 %v9900_v45, %v8419_v44  ;;  %v9860_v48 = vld [vmem:[%s10689_s29 + $0x58] sm:$0xff]  ;;  %v9882_v50 = vld [vmem:[%s16851_s2 + $0x44] sm:$0xf0]  ;;  %v8411_v52 = vld [vmem:[%s16851_s2 + $0xc0] sm:$0xf] }
  0x19   : > { %v8348_v51 = vor.u32 %v9882_v50, %v8347_v49  ;;  %v9898_v53 = vld [vmem:[%s16851_s2 + $0xc4] sm:$0xf0]  ;;  %v9852_v55 = vld [vmem:[%s10689_s29 + $0x18] sm:$0xff]  ;;  %v9861_v56 = vld [vmem:[%s10689_s29 + $0x60] sm:$0xff] }
  0x1a   : > { %635 = vmatpush.bf16.msra.mxu0 %v8251_v26  ;;  %10346 = vmatpush.bf16.msra.mxu2 %v8251_v26  ;;  %v8412_v54 = vor.u32 %v9898_v53, %v8411_v52  ;;  %v8339_v57 = vld [vmem:[%s16851_s2 + $0x30] sm:$0xf]  ;;  %v9880_v58 = vld [vmem:[%s16851_s2 + $0x34] sm:$0xf0]  ;;  %v9853_v63 = vld [vmem:[%s10689_s29 + $0x20] sm:$0xff] }
  0x1b   : > { %724 = vmatpush.bf16.msra.mxu1 %v8255_v27  ;;  %10350 = vmatpush.bf16.msra.mxu3 %v8255_v27  ;;  %v8340_v59 = vor.u32 %v9880_v58, %v8339_v57  ;;  %v8403_v60 = vld [vmem:[%s16851_s2 + $0xb0] sm:$0xf]  ;;  %v9896_v61 = vld [vmem:[%s16851_s2 + $0xb4] sm:$0xf0]  ;;  %v9862_v0 = vld [vmem:[%s10689_s29 + $0x68] sm:$0xff] }
  0x1c   : > { %v8404_v62 = vor.u32 %v9896_v61, %v8403_v60  ;;  %v8331_v1 = vld [vmem:[%s16851_s2 + $0x20] sm:$0xf]  ;;  %v9878_v2 = vld [vmem:[%s16851_s2 + $0x24] sm:$0xf0]  ;;  %v9887_v3 = vld [vmem:[%s16851_s2 + $0x74] sm:$0xf] }
  0x1d   : > { %8280 = vmatmul.msk.bf16.vlgmr.msra.gmra.mxu0 %vm579_vm0, %v9849_v30  ;;  %8289 = vmatmul.msk.bf16.vlgmr.msra.gmra.mxu2 %vm579_vm0, %v9858_v31  ;;  %v8332_v4 = vor.u32 %v9878_v2, %v8331_v1  ;;  %v8373_v5 = vld [vmem:[%s16851_s2 + $0x78] sm:$0xf0]  ;;  %v9903_v6 = vld [vmem:[%s16851_s2 + $0xf4] sm:$0xf]  ;;  %v8395_v9 = vld [vmem:[%s16851_s2 + $0xa0] sm:$0xf] }
  0x1e   : > { %1101 = vmatpush.bf16.msrb.mxu2 %v8372_v28  ;;  %8296 = vmatmul.msk.bf16.vlgmr.msra.gmra.mxu1 %vm579_vm0, %v9849_v30  ;;  %v10788_v7 = vor.u32 %v9887_v3, %v8373_v5  ;;  %v8437_v8 = vld [vmem:[%s16851_s2 + $0xf8] sm:$0xf0]  ;;  %v9894_v10 = vld [vmem:[%s16851_s2 + $0xa4] sm:$0xf0]  ;;  %v9863_v14 = vld [vmem:[%s10689_s29 + $0x70] sm:$0xff] }
  0x1f   : > { %1190 = vmatpush.bf16.msrb.mxu3 %v8436_v29  ;;  %v8440_v11 = vor.u32 %v9903_v6, %v8437_v8  ;;  %v8396_v12 = vor.u32 %v9894_v10, %v8395_v9  ;;  %v9854_v13 = vld [vmem:[%s10689_s29 + $0x28] sm:$0xff]  ;;  %v9901_v15 = vld [vmem:[%s16851_s2 + $0xe4] sm:$0xf]  ;;  %v8323_v18 = vld [vmem:[%s16851_s2 + $0x10] sm:$0xf] }
  0x20   : > { %8304 = vmatmul.msk.bf16.vlgmr.msra.gmra.mxu3 %vm579_vm0, %v10694_v32  ;;  %1279 = vmatpush.bf16.msrb.mxu0 %v10788_v7  ;;  %v8429_v16 = vld [vmem:[%s16851_s2 + $0xe8] sm:$0xf0]  ;;  %v9876_v19 = vld [vmem:[%s16851_s2 + $0x14] sm:$0xf0]  ;;  %v9885_v21 = vld [vmem:[%s16851_s2 + $0x64] sm:$0xf] }
  0x21   : > { %1368 = vmatpush.bf16.msrb.mxu1 %v8440_v11  ;;  %v8432_v17 = vor.u32 %v9901_v15, %v8429_v16  ;;  %v8324_v20 = vor.u32 %v9876_v19, %v8323_v18  ;;  %v8365_v22 = vld [vmem:[%s16851_s2 + $0x68] sm:$0xf0]  ;;  %v9899_v23 = vld [vmem:[%s16851_s2 + $0xd4] sm:$0xf]  ;;  %v8421_v25 = vld [vmem:[%s16851_s2 + $0xd8] sm:$0xf0] }
  0x22   : > { %1102 = vmatpush.bf16.msrb.mxu2 %v8364_v35  ;;  %v8368_v24 = vor.u32 %v9885_v21, %v8365_v22  ;;  %v9883_v26 = vld [vmem:[%s16851_s2 + $0x54] sm:$0xf]  ;;  %v8357_v27 = vld [vmem:[%s16851_s2 + $0x58] sm:$0xf0]  ;;  %v8424_v28 = vor.u32 %v9899_v23, %v8421_v25  ;;  %v9897_v29 = vld [vmem:[%s16851_s2 + $0xc4] sm:$0xf] }
  0x23   : > { %1191 = vmatpush.bf16.msrb.mxu3 %v8428_v38  ;;  %v8413_v30 = vld [vmem:[%s16851_s2 + $0xc8] sm:$0xf0]  ;;  %v9881_v34 = vld [vmem:[%s16851_s2 + $0x44] sm:$0xf]  ;;  %v9895_v36 = vld [vmem:[%s16851_s2 + $0xb4] sm:$0xf] }
  0x24   : > { %1280 = vmatpush.bf16.msrb.mxu0 %v8368_v24  ;;  %v8416_v33 = vor.u32 %v9897_v29, %v8413_v30  ;;  %v8349_v35 = vld [vmem:[%s16851_s2 + $0x48] sm:$0xf0]  ;;  %v9855_v37 = vld [vmem:[%s10689_s29 + $0x30] sm:$0xff]  ;;  %v9864_v38 = vld [vmem:[%s10689_s29 + $0x78] sm:$0xff] }
  0x25   : > { %1369 = vmatpush.bf16.msrb.mxu1 %v8432_v17  ;;  %v9879_v42 = vld [vmem:[%s16851_s2 + $0x34] sm:$0xf]  ;;  %v9893_v44 = vld [vmem:[%s16851_s2 + $0xa4] sm:$0xf]  ;;  %v8387_v49 = vld [vmem:[%s16851_s2 + $0x90] sm:$0xf] }
  0x26   : > { %1103 = vmatpush.bf16.msrb.mxu2 %v8356_v43  ;;  %v8341_v43 = vld [vmem:[%s16851_s2 + $0x38] sm:$0xf0]  ;;  %v9892_v52 = vld [vmem:[%s16851_s2 + $0x94] sm:$0xf0]  ;;  %v8379_v60 = vld [vmem:[%s16851_s2 + $0x80] sm:$0xf] }
  0x27   : > { %1192 = vmatpush.bf16.msrb.mxu3 %v8420_v46  ;;  %v8344_v45 = vor.u32 %v9879_v42, %v8341_v43  ;;  %v8397_v46 = vld [vmem:[%s16851_s2 + $0xa8] sm:$0xf0]  ;;  %v8388_v53 = vor.u32 %v9892_v52, %v8387_v49  ;;  %v8389_v58 = vld [vmem:[%s16851_s2 + $0x98] sm:$0xf0]  ;;  %v9890_v61 = vld [vmem:[%s16851_s2 + $0x84] sm:$0xf0] }
  0x28   : > { %v8400_v50 = vor.u32 %v9893_v44, %v8397_v46  ;;  %v9889_v1 = vld [vmem:[%s16851_s2 + $0x84] sm:$0xf]  ;;  %v8381_v2 = vld [vmem:[%s16851_s2 + $0x88] sm:$0xf0]  ;;  %v8509_v15 = vld [vmem:[%s16852_s3 + $0x78] sm:$0xf0] }
  0x29   : > { %1370 = vmatpush.bf16.msrb.mxu1 %v8424_v28  ;;  %v9873_v5 = vld [vmem:[%s16851_s2 + $0x4] sm:$0xf]  ;;  %v8317_v6 = vld [vmem:[%s16851_s2 + $0x8] sm:$0xf0] }
  0x2a   : > { %1104 = vmatpush.bf16.msrb.mxu2 %v8348_v51  ;;  %v8320_v8 = vor.u32 %v9873_v5, %v8317_v6  ;;  %v453_v9 = vld [vmem:[%s16853_s4] ss:$8 sm:$0x3] }
  0x2b   : > { %1193 = vmatpush.bf16.msrb.mxu3 %v8412_v54  ;;  %v9877_v54 = vld [vmem:[%s16851_s2 + $0x24] sm:$0xf] }
  0x2d   : > { %8281 = vmatmul.msk.bf16.gmra.mxu0 %vm579_vm0, %v9850_v39  ;;  %8290 = vmatmul.msk.bf16.gmra.mxu2 %vm579_vm0, %v9859_v40 }
  0x2e   : > { %8297 = vmatmul.msk.bf16.gmra.mxu1 %vm579_vm0, %v9850_v39  ;;  %1105 = vmatpush.bf16.msrb.mxu2 %v8340_v59  ;;  %v8352_v39 = vor.u32 %v9881_v34, %v8349_v35 }
  0x2f   : > { %1194 = vmatpush.bf16.msrb.mxu3 %v8404_v62  ;;  %1371 = vmatpush.bf16.msrb.mxu1 %v8416_v33  ;;  %v9875_v62 = vld [vmem:[%s16851_s2 + $0x14] sm:$0xf] }
  0x30   : > { %8305 = vmatmul.msk.bf16.gmra.mxu3 %vm579_vm0, %v9858_v31  ;;  %v8360_v31 = vor.u32 %v9883_v26, %v8357_v27 }
  0x32   : > { %1106 = vmatpush.bf16.msrb.mxu2 %v8332_v4  ;;  %1281 = vmatpush.bf16.msrb.mxu0 %v8360_v31  ;;  %v8384_v4 = vor.u32 %v9889_v1, %v8381_v2 }
  0x33   : > { %1195 = vmatpush.bf16.msrb.mxu3 %v8396_v12  ;;  %v10928_v12 = vperm.slane %v453_v9, 1 }
  0x36   : > { %1107 = vmatpush.bf16.msrb.mxu2 %v8324_v20  ;;  %1282 = vmatpush.bf16.msrb.mxu0 %v8352_v39 }
  0x37   : > { %1196 = vmatpush.bf16.msrb.mxu3 %v8388_v53 }
  0x3a   : > { %1283 = vmatpush.bf16.msrb.mxu0 %v8344_v45 }
  0x3d   : > { %8282 = vmatmul.msk.bf16.gmra.mxu0 %vm579_vm0, %v9851_v47  ;;  %8291 = vmatmul.msk.bf16.gmra.mxu2 %vm579_vm0, %v9860_v48 }
  0x3e   : > { %8298 = vmatmul.msk.bf16.gmra.mxu1 %vm579_vm0, %v9851_v47  ;;  %v8315_v47 = vld [vmem:[%s16851_s2] sm:$0xf] }
  0x40   : > { %8306 = vmatmul.msk.bf16.gmra.mxu3 %vm579_vm0, %v9859_v40  ;;  %v8405_v40 = vld [vmem:[%s16851_s2 + $0xb8] sm:$0xf0] }
  0x41   : > { %v8408_v41 = vor.u32 %v9895_v36, %v8405_v40 }
  0x43   : > { %1372 = vmatpush.bf16.msrb.mxu1 %v8408_v41 }
  0x47   : > { %1373 = vmatpush.bf16.msrb.mxu1 %v8400_v50 }
  0x4d   : > { %8283 = vmatmul.msk.bf16.gmra.mxu0 %vm579_vm0, %v9852_v55  ;;  %8292 = vmatmul.msk.bf16.gmra.mxu2 %vm579_vm0, %v9861_v56 }
  0x4e   : > { %8299 = vmatmul.msk.bf16.gmra.mxu1 %vm579_vm0, %v9852_v55  ;;  %v8333_v55 = vld [vmem:[%s16851_s2 + $0x28] sm:$0xf0] }
  0x4f   : > { %v8336_v57 = vor.u32 %v9877_v54, %v8333_v55 }
  0x50   : > { %8307 = vmatmul.msk.bf16.gmra.mxu3 %vm579_vm0, %v9860_v48  ;;  %v9874_v48 = vld [vmem:[%s16851_s2 + $0x4] sm:$0xf0] }
  0x51   : > { %v8316_v51 = vor.u32 %v9874_v48, %v8315_v47  ;;  %1284 = vmatpush.bf16.msrb.mxu0 %v8336_v57 }
  0x53   : > { %1108 = vmatpush.bf16.msrb.mxu2 %v8316_v51 }
  0x57   : > { %10351 = vmatpush.bf16.msra.mxu2 %v10788_v7  ;;  %v9856_v7 = vld [vmem:[%s10689_s29 + $0x38] sm:$0xff] }
  0x5b   : > { %10352 = vmatpush.bf16.msra.mxu2 %v8368_v24 }
  0x5d   : > { %8284 = vmatmul.msk.bf16.gmra.mxu0 %vm579_vm0, %v9853_v63  ;;  %8293 = vmatmul.msk.bf16.gmra.mxu2 %vm579_vm0, %v9862_v0 }
  0x5e   : > { %8300 = vmatmul.msk.bf16.gmra.mxu1 %vm579_vm0, %v9853_v63  ;;  %v8380_v63 = vor.u32 %v9890_v61, %v8379_v60 }
  0x5f   : > { %10353 = vmatpush.bf16.msra.mxu2 %v8360_v31 }
  0x60   : > { %8308 = vmatmul.msk.bf16.gmra.mxu3 %vm579_vm0, %v9861_v56  ;;  %v9891_v56 = vld [vmem:[%s16851_s2 + $0x94] sm:$0xf] }
  0x61   : > { %v8392_v59 = vor.u32 %v9891_v56, %v8389_v58  ;;  %1197 = vmatpush.bf16.msrb.mxu3 %v8380_v63 }
  0x63   : > { %1374 = vmatpush.bf16.msrb.mxu1 %v8392_v59  ;;  %10354 = vmatpush.bf16.msra.mxu2 %v8352_v39 }
  0x67   : > { %1375 = vmatpush.bf16.msrb.mxu1 %v8384_v4  ;;  %10355 = vmatpush.bf16.msra.mxu2 %v8344_v45 }
  0x6b   : > { %10356 = vmatpush.bf16.msra.mxu2 %v8336_v57 }
  0x6d   : > { %8285 = vmatmul.msk.bf16.gmra.mxu0 %vm579_vm0, %v9854_v13  ;;  %8294 = vmatmul.msk.bf16.gmra.mxu2 %vm579_vm0, %v9863_v14 }
  0x6e   : > { %8301 = vmatmul.msk.bf16.gmra.mxu1 %vm579_vm0, %v9854_v13  ;;  %v10930_v13 = vperm.slane %v453_v9, 0 }
  0x70   : > { %8309 = vmatmul.msk.bf16.gmra.mxu3 %vm579_vm0, %v9862_v0  ;;  %v8325_v0 = vld [vmem:[%s16851_s2 + $0x18] sm:$0xf0] }
  0x71   : > { %v8328_v3 = vor.u32 %v9875_v62, %v8325_v0 }
  0x73   : > { %1285 = vmatpush.bf16.msrb.mxu0 %v8328_v3  ;;  %10357 = vmatpush.bf16.msra.mxu2 %v8328_v3 }
  0x77   : > { %1286 = vmatpush.bf16.msrb.mxu0 %v8320_v8  ;;  %10358 = vmatpush.bf16.msra.mxu2 %v8320_v8 }
  0x7d   : > { %8286 = vmatmul.msk.bf16.gmra.mxu0 %vm579_vm0, %v9855_v37  ;;  %8295 = vmatmul.msk.bf16.gmra.mxu2 %vm579_vm0, %v9864_v38 }
  0x7e   : > { %8302 = vmatmul.msk.bf16.gmra.mxu1 %vm579_vm0, %v9855_v37 }
  0x80   : > { %8310 = vmatmul.msk.bf16.gmra.mxu3 %vm579_vm0, %v9863_v14  ;;  %v9943_v14 = vld [vmem:[%s16852_s3 + $0x74] sm:$0xf] }
  0x81   : > { %v8512_v16 = vor.u32 %v9943_v14, %v8509_v15 }
  0x83   : > { %1728 = vmatpush.bf16.msra.mxu3 %v8512_v16 }
  0x8d   : > { %8287 = vmatmul.msk.bf16.gmra.mxu0 %vm579_vm0, %v9856_v7 }
  0x8e   : > { %8303 = vmatmul.msk.bf16.gmra.mxu1 %vm579_vm0, %v9856_v7 }
  0x90   : > { %8311 = vmatmul.msk.bf16.gmra.mxu3 %vm579_vm0, %v9864_v38 }
  0x9a   : > { %v637_v10 = vpop.f32.mrf.mxu0 }
  0x9b   : > { %v726_v11 = vpop.f32.mrf.mxu1  ;;  %v638_v18 = vadd.f32 %v637_v10, %v10930_v13 }
  0x9c   : > { %v727_v17 = vadd.f32 %v726_v11, %v10928_v12 }
  0x9d   : > { %8288 = vmatmul.msk.bf16.gmra.mxu0 %vm579_vm0, %v10694_v32  ;;  %v806_v25 = vmax.f32 %v638_v18, 0.0 }
  0x9e   : > { %v807_v23 = vmax.f32 %v727_v17, 0.0 }
  0xa0   : > { %v10942_v21 = vpop.f32.mrf.mxu2 }
  0xa2   : > { %v639_v20 = vpop.f32.mrf.mxu0 }
  0xa3   : > { %v766_v19 = vpop.f32.mrf.mxu3  ;;  %v640_v32 = vadd.f32 %v639_v20, %v10930_v13  ;;  %v728_v22 = vpop.f32.mrf.mxu1 }
  0xa4   : > { %v729_v24 = vadd.f32 %v728_v22, %v10928_v12  ;;  %v767_v28 = vadd.f32 %v766_v19, %v10928_v12 }
  0xa5   : > { %v808_v26 = vmax.f32 %v640_v32, 0.0 }
  0xa6   : > { %v809_v27 = vmax.f32 %v729_v24, 0.0  ;;  %v839_v34 = vmax.f32 %v767_v28, 0.0 }
  0xa7   : > { %v870_v29 = vpack.c.bf16 %v808_v26, %v806_v25 }
  0xa8   : > { %v871_v30 = vpack.c.bf16 %v809_v27, %v807_v23  ;;  %v10948_v38 = vpop.f32.mrf.mxu2 }
  0xa9   : > { %1109 = vmatmul.bf16.vlgmr.msrb.gmra.mxu2 %v870_v29 }
  0xaa   : > { %1198 = vmatmul.bf16.vlgmr.msrb.gmra.mxu3 %v871_v30  ;;  %1376 = vmatmul.bf16.vlgmr.msrb.gmra.mxu1 %v871_v30  ;;  %v642_v33 = vpop.f32.mrf.mxu0 }
  0xab   : > { %v768_v31 = vpop.f32.mrf.mxu3  ;;  %v731_v36 = vpop.f32.mrf.mxu1  ;;  %v643_v41 = vadd.f32 %v642_v33, %v10930_v13 }
  0xac   : > { %v769_v35 = vadd.f32 %v768_v31, %v10928_v12  ;;  %v732_v40 = vadd.f32 %v731_v36, %v10928_v12 }
  0xad   : > { %1287 = vmatmul.bf16.vlgmr.msrb.gmra.mxu0 %v870_v29  ;;  %v810_v48 = vmax.f32 %v643_v41, 0.0 }
  0xae   : > { %v841_v37 = vmax.f32 %v769_v35, 0.0  ;;  %v811_v46 = vmax.f32 %v732_v40, 0.0 }
  0xb0   : > { %v10950_v39 = vpack.c.bf16 %v841_v37, %v839_v34  ;;  %v10957_v52 = vpop.f32.mrf.mxu2 }
  0xb2   : > { %v644_v43 = vpop.f32.mrf.mxu0 }
  0xb3   : > { %v771_v42 = vpop.f32.mrf.mxu3  ;;  %v645_v44 = vadd.f32 %v644_v43, %v10930_v13  ;;  %v733_v45 = vpop.f32.mrf.mxu1 }
  0xb4   : > { %v734_v47 = vadd.f32 %v733_v45, %v10928_v12  ;;  %v772_v51 = vadd.f32 %v771_v42, %v10928_v12 }
  0xb5   : > { %v812_v49 = vmax.f32 %v645_v44, 0.0 }
  0xb6   : > { %v813_v50 = vmax.f32 %v734_v47, 0.0  ;;  %v843_v57 = vmax.f32 %v772_v51, 0.0 }
  0xb7   : > { %v872_v53 = vpack.c.bf16 %v812_v49, %v810_v48  ;;  %v9941_v48 = vld [vmem:[%s16852_s3 + $0x64] sm:$0xf]  ;;  %v8501_v49 = vld [vmem:[%s16852_s3 + $0x68] sm:$0xf0] }
  0xb8   : > { %v873_v54 = vpack.c.bf16 %v813_v50, %v811_v46  ;;  %v10963_v63 = vpop.f32.mrf.mxu2  ;;  %v8504_v51 = vor.u32 %v9941_v48, %v8501_v49 }
  0xb9   : > { %1114 = vmatmul.bf16.gmra.mxu2 %v872_v53 }
  0xba   : > { %1203 = vmatmul.bf16.gmra.mxu3 %v873_v54  ;;  %1381 = vmatmul.bf16.gmra.mxu1 %v873_v54  ;;  %v647_v56 = vpop.f32.mrf.mxu0 }
  0xbb   : > { %v773_v55 = vpop.f32.mrf.mxu3  ;;  %v736_v59 = vpop.f32.mrf.mxu1  ;;  %v648_v0 = vadd.f32 %v647_v56, %v10930_v13  ;;  %1729 = vmatpush.bf16.msra.mxu3 %v8504_v51 }
  0xbc   : > { %v774_v58 = vadd.f32 %v773_v55, %v10928_v12  ;;  %v737_v62 = vadd.f32 %v736_v59, %v10928_v12 }
  0xbd   : > { %1292 = vmatmul.bf16.gmra.mxu0 %v872_v53  ;;  %v814_v7 = vmax.f32 %v648_v0, 0.0 }
  0xbe   : > { %v845_v60 = vmax.f32 %v774_v58, 0.0  ;;  %v815_v5 = vmax.f32 %v737_v62, 0.0 }
  0xc0   : > { %v10960_v61 = vpack.c.bf16 %v845_v60, %v843_v57  ;;  %v10969_v18 = vpop.f32.mrf.mxu2 }
  0xc2   : > { %v649_v2 = vpop.f32.mrf.mxu0 }
  0xc3   : > { %v776_v1 = vpop.f32.mrf.mxu3  ;;  %v650_v3 = vadd.f32 %v649_v2, %v10930_v13  ;;  %v738_v4 = vpop.f32.mrf.mxu1 }
  0xc4   : > { %v739_v6 = vadd.f32 %v738_v4, %v10928_v12  ;;  %v777_v10 = vadd.f32 %v776_v1, %v10928_v12 }
  0xc5   : > { %v816_v8 = vmax.f32 %v650_v3, 0.0 }
  0xc6   : > { %v817_v9 = vmax.f32 %v739_v6, 0.0  ;;  %v847_v17 = vmax.f32 %v777_v10, 0.0 }
  0xc7   : > { %v874_v11 = vpack.c.bf16 %v816_v8, %v814_v7 }
  0xc8   : > { %v875_v14 = vpack.c.bf16 %v817_v9, %v815_v5  ;;  %v10978_v31 = vpop.f32.mrf.mxu2 }
  0xc9   : > { %1119 = vmatmul.bf16.gmra.mxu2 %v874_v11 }
  0xca   : > { %1208 = vmatmul.bf16.gmra.mxu3 %v875_v14  ;;  %1386 = vmatmul.bf16.gmra.mxu1 %v875_v14  ;;  %v652_v16 = vpop.f32.mrf.mxu0  ;;  %v8603_v14 = vld [vmem:[%s16851_s2 + $0x170] sm:$0xf] }
  0xcb   : > { %v778_v15 = vpop.f32.mrf.mxu3  ;;  %v741_v20 = vpop.f32.mrf.mxu1  ;;  %v653_v24 = vadd.f32 %v652_v16, %v10930_v13 }
  0xcc   : > { %v779_v19 = vadd.f32 %v778_v15, %v10928_v12  ;;  %v742_v23 = vadd.f32 %v741_v20, %v10928_v12  ;;  %v9920_v15 = vld [vmem:[%s16851_s2 + $0x174] sm:$0xf0] }
  0xcd   : > { %1297 = vmatmul.bf16.gmra.mxu0 %v874_v11  ;;  %v818_v33 = vmax.f32 %v653_v24, 0.0 }
  0xce   : > { %v849_v32 = vmax.f32 %v779_v19, 0.0  ;;  %v819_v29 = vmax.f32 %v742_v23, 0.0 }
  0xd0   : > { %v10972_v22 = vpack.c.bf16 %v849_v32, %v847_v17  ;;  %v10982_v47 = vpop.f32.mrf.mxu2  ;;  %v8604_v17 = vor.u32 %v9920_v15, %v8603_v14 }
  0xd2   : > { %v654_v26 = vpop.f32.mrf.mxu0  ;;  %1973 = vmatpush.bf16.msra.mxu0 %v8604_v17 }
  0xd3   : > { %v781_v25 = vpop.f32.mrf.mxu3  ;;  %v655_v27 = vadd.f32 %v654_v26, %v10930_v13  ;;  %v743_v28 = vpop.f32.mrf.mxu1 }
  0xd4   : > { %v744_v30 = vadd.f32 %v743_v28, %v10928_v12  ;;  %v782_v36 = vadd.f32 %v781_v25, %v10928_v12 }
  0xd5   : > { %v820_v34 = vmax.f32 %v655_v27, 0.0 }
  0xd6   : > { %v821_v35 = vmax.f32 %v744_v30, 0.0  ;;  %v851_v43 = vmax.f32 %v782_v36, 0.0 }
  0xd7   : > { %v876_v37 = vpack.c.bf16 %v820_v34, %v818_v33 }
  0xd8   : > { %v877_v40 = vpack.c.bf16 %v821_v35, %v819_v29  ;;  %v10997_v5 = vpop.f32.mrf.mxu2 }
  0xd9   : > { %1124 = vmatmul.bf16.gmra.mxu2 %v876_v37 }
  0xda   : > { %1213 = vmatmul.bf16.gmra.mxu3 %v877_v40  ;;  %1391 = vmatmul.bf16.gmra.mxu1 %v877_v40  ;;  %v657_v42 = vpop.f32.mrf.mxu0 }
  0xdb   : > { %v783_v41 = vpop.f32.mrf.mxu3  ;;  %v746_v45 = vpop.f32.mrf.mxu1  ;;  %v658_v54 = vadd.f32 %v657_v42, %v10930_v13 }
  0xdc   : > { %v784_v44 = vadd.f32 %v783_v41, %v10928_v12  ;;  %v747_v53 = vadd.f32 %v746_v45, %v10928_v12 }
  0xdd   : > { %1302 = vmatmul.bf16.gmra.mxu0 %v876_v37  ;;  %v822_v62 = vmax.f32 %v658_v54, 0.0 }
  0xde   : > { %v853_v46 = vmax.f32 %v784_v44, 0.0  ;;  %v823_v59 = vmax.f32 %v747_v53, 0.0 }
  0xe0   : > { %v10990_v50 = vpack.c.bf16 %v853_v46, %v851_v43  ;;  %v11010_v24 = vpop.f32.mrf.mxu2 }
  0xe2   : > { %v659_v56 = vpop.f32.mrf.mxu0 }
  0xe3   : > { %v786_v55 = vpop.f32.mrf.mxu3  ;;  %v660_v57 = vadd.f32 %v659_v56, %v10930_v13  ;;  %v748_v58 = vpop.f32.mrf.mxu1 }
  0xe4   : > { %v749_v60 = vadd.f32 %v748_v58, %v10928_v12  ;;  %v787_v2 = vadd.f32 %v786_v55, %v10928_v12 }
  0xe5   : > { %v824_v0 = vmax.f32 %v660_v57, 0.0 }
  0xe6   : > { %v825_v1 = vmax.f32 %v749_v60, 0.0  ;;  %v855_v8 = vmax.f32 %v787_v2, 0.0 }
  0xe7   : > { %v878_v3 = vpack.c.bf16 %v824_v0, %v822_v62 }
  0xe8   : > { %v879_v4 = vpack.c.bf16 %v825_v1, %v823_v59  ;;  %v11016_v44 = vpop.f32.mrf.mxu2 }
  0xe9   : > { %1129 = vmatmul.bf16.gmra.mxu2 %v878_v3 }
  0xea   : > { %1218 = vmatmul.bf16.gmra.mxu3 %v879_v4  ;;  %1396 = vmatmul.bf16.gmra.mxu1 %v879_v4  ;;  %v662_v7 = vpop.f32.mrf.mxu0 }
  0xeb   : > { %v788_v6 = vpop.f32.mrf.mxu3  ;;  %v751_v10 = vpop.f32.mrf.mxu1  ;;  %v663_v20 = vadd.f32 %v662_v7, %v10930_v13 }
  0xec   : > { %v789_v9 = vadd.f32 %v788_v6, %v10928_v12  ;;  %v752_v19 = vadd.f32 %v751_v10, %v10928_v12 }
  0xed   : > { %1307 = vmatmul.bf16.gmra.mxu0 %v878_v3  ;;  %v826_v29 = vmax.f32 %v663_v20, 0.0  ;;  %v9918_v20 = vld [vmem:[%s16851_s2 + $0x164] sm:$0xf0] }
  0xee   : > { %v857_v11 = vmax.f32 %v789_v9, 0.0  ;;  %v827_v27 = vmax.f32 %v752_v19, 0.0  ;;  %v8595_v19 = vld [vmem:[%s16851_s2 + $0x160] sm:$0xf] }
  0xf0   : > { %v11006_v16 = vpack.c.bf16 %v857_v11, %v855_v8  ;;  %v11024_v62 = vpop.f32.mrf.mxu2 }
  0xf2   : > { %v664_v23 = vpop.f32.mrf.mxu0 }
  0xf3   : > { %v791_v32 = vpop.f32.mrf.mxu3  ;;  %v665_v25 = vadd.f32 %v664_v23, %v10930_v13  ;;  %v753_v26 = vpop.f32.mrf.mxu1  ;;  %v8596_v23 = vor.u32 %v9918_v20, %v8595_v19  ;;  %v8667_v19 = vld [vmem:[%s16851_s2 + $0x1f0] sm:$0xf] }
  0xf4   : > { %v754_v28 = vadd.f32 %v753_v26, %v10928_v12  ;;  %v792_v34 = vadd.f32 %v791_v32, %v10928_v12 }
  0xf5   : > { %v828_v30 = vmax.f32 %v665_v25, 0.0  ;;  %1974 = vmatpush.bf16.msra.mxu0 %v8596_v23 }
  0xf6   : > { %v829_v33 = vmax.f32 %v754_v28, 0.0  ;;  %v859_v41 = vmax.f32 %v792_v34, 0.0 }
  0xf7   : > { %v880_v35 = vpack.c.bf16 %v828_v30, %v826_v29 }
  0xf8   : > { %v881_v36 = vpack.c.bf16 %v829_v33, %v827_v27  ;;  %v11031_v14 = vpop.f32.mrf.mxu2 }
  0xf9   : > { %1134 = vmatmul.bf16.gmra.mxu2 %v880_v35 }
  0xfa   : > { %1223 = vmatmul.bf16.gmra.mxu3 %v881_v36  ;;  %1401 = vmatmul.bf16.gmra.mxu1 %v881_v36  ;;  %v667_v40 = vpop.f32.mrf.mxu0 }
  0xfb   : > { %v793_v37 = vpop.f32.mrf.mxu3  ;;  %v756_v43 = vpop.f32.mrf.mxu1  ;;  %v668_v49 = vadd.f32 %v667_v40, %v10930_v13 }
  0xfc   : > { %v794_v42 = vadd.f32 %v793_v37, %v10928_v12  ;;  %v757_v48 = vadd.f32 %v756_v43, %v10928_v12 }
  0xfd   : > { %1312 = vmatmul.bf16.gmra.mxu0 %v880_v35  ;;  %v830_v58 = vmax.f32 %v668_v49, 0.0  ;;  %v9939_v49 = vld [vmem:[%s16852_s3 + $0x54] sm:$0xf] }
  0xfe   : > { %v861_v45 = vmax.f32 %v794_v42, 0.0  ;;  %v831_v56 = vmax.f32 %v757_v48, 0.0 }
 0x100   : > { %v11018_v46 = vpack.c.bf16 %v861_v45, %v859_v41  ;;  %v11043_v40 = vpop.f32.mrf.mxu2 }
 0x102   : > { %v669_v53 = vpop.f32.mrf.mxu0 }
 0x103   : > { %v796_v51 = vpop.f32.mrf.mxu3  ;;  %v670_v54 = vadd.f32 %v669_v53, %v10930_v13  ;;  %v758_v55 = vpop.f32.mrf.mxu1 }
 0x104   : > { %v759_v57 = vadd.f32 %v758_v55, %v10928_v12  ;;  %v797_v0 = vadd.f32 %v796_v51, %v10928_v12  ;;  %v8493_v51 = vld [vmem:[%s16852_s3 + $0x58] sm:$0xf0] }
 0x105   : > { %v832_v59 = vmax.f32 %v670_v54, 0.0  ;;  %v8496_v53 = vor.u32 %v9939_v49, %v8493_v51 }
 0x106   : > { %v833_v60 = vmax.f32 %v759_v57, 0.0  ;;  %v863_v6 = vmax.f32 %v797_v0, 0.0  ;;  %v11063_v0 = vld [vmem:[%s16853_s4 + $0x1] ss:$8 sm:$0x3] }
 0x107   : > { %v882_v1 = vpack.c.bf16 %v832_v59, %v830_v58  ;;  %1730 = vmatpush.bf16.msra.mxu3 %v8496_v53 }
 0x108   : > { %v883_v2 = vpack.c.bf16 %v833_v60, %v831_v56 }
 0x109   : > { %1139 = vmatmul.bf16.gmra.mxu2 %v882_v1 }
 0x10a   : > { %1228 = vmatmul.bf16.gmra.mxu3 %v883_v2  ;;  %1406 = vmatmul.bf16.gmra.mxu1 %v883_v2  ;;  %v672_v4 = vpop.f32.mrf.mxu0 }
 0x10b   : > { %v798_v3 = vpop.f32.mrf.mxu3  ;;  %v761_v8 = vpop.f32.mrf.mxu1  ;;  %v673_v15 = vadd.f32 %v672_v4, %v10930_v13 }
 0x10c   : > { %v799_v7 = vadd.f32 %v798_v3, %v10928_v12  ;;  %v762_v11 = vadd.f32 %v761_v8, %v10928_v12  ;;  %v685_v8 = vadd.f32 %v10948_v38, %v10930_v13 }
 0x10d   : > { %1317 = vmatmul.bf16.gmra.mxu0 %v882_v1  ;;  %v834_v29 = vmax.f32 %v673_v15, 0.0  ;;  %v11066_v1 = vperm.slane %v11063_v0, 0  ;;  %v9916_v15 = vld [vmem:[%s16851_s2 + $0x154] sm:$0xf0] }
 0x10e   : > { %v865_v9 = vmax.f32 %v799_v7, 0.0  ;;  %v835_v27 = vmax.f32 %v762_v11, 0.0  ;;  %v683_v7 = vadd.f32 %v10942_v21, %v10930_v13  ;;  %v9936_v21 = vld [vmem:[%s16851_s2 + $0x1f4] sm:$0xf0]  ;;  %v844_v23 = vmax.f32 %v685_v8, 0.0 }
 0x10f   : > { %v8668_v20 = vor.u32 %v9936_v21, %v8667_v19  ;;  %v695_v19 = vadd.f32 %v10978_v31, %v10930_v13 }
 0x110   : > { %v11028_v10 = vpack.c.bf16 %v865_v9, %v863_v6 }
 0x111   : > { %2062 = vmatpush.bf16.msra.mxu1 %v8668_v20 }
 0x112   : > { %v674_v32 = vpop.f32.mrf.mxu0 }
 0x113   : > { %v801_v17 = vpop.f32.mrf.mxu3  ;;  %v675_v25 = vadd.f32 %v674_v32, %v10930_v13  ;;  %v763_v26 = vpop.f32.mrf.mxu1  ;;  %v842_v32 = vmax.f32 %v683_v7, 0.0  ;;  %v9914_v7 = vld [vmem:[%s16851_s2 + $0x144] sm:$0xf0] }
 0x114   : > { %v764_v28 = vadd.f32 %v763_v26, %v10928_v12  ;;  %v802_v34 = vadd.f32 %v801_v17, %v10928_v12 }
 0x115   : > { %v836_v30 = vmax.f32 %v675_v25, 0.0 }
 0x116   : > { %v837_v33 = vmax.f32 %v764_v28, 0.0  ;;  %v867_v42 = vmax.f32 %v802_v34, 0.0 }
 0x117   : > { %v884_v35 = vpack.c.bf16 %v836_v30, %v834_v29  ;;  %v888_v30 = vpack.c.bf16 %v844_v23, %v842_v32  ;;  %v8659_v32 = vld [vmem:[%s16851_s2 + $0x1e0] sm:$0xf]  ;;  %v9934_v23 = vld [vmem:[%s16851_s2 + $0x1e4] sm:$0xf0] }
 0x118   : > { %v885_v36 = vpack.c.bf16 %v837_v33, %v835_v27 }
 0x119   : > { %1144 = vmatmul.bf16.gmra.mxu2 %v884_v35 }
 0x11a   : > { %1233 = vmatmul.bf16.gmra.mxu3 %v885_v36  ;;  %1411 = vmatmul.bf16.gmra.mxu1 %v885_v36  ;;  %v677_v41 = vpop.f32.mrf.mxu0 }
 0x11b   : > { %v803_v37 = vpop.f32.mrf.mxu3  ;;  %v678_v54 = vadd.f32 %v677_v41, %v10930_v13 }
 0x11c   : > { %v804_v43 = vadd.f32 %v803_v37, %v10928_v12  ;;  %v11056_v12 = vpop.f32.mrf.mxu2 }
 0x11d   : > { %1322 = vmatmul.bf16.gmra.mxu0 %v884_v35  ;;  %v838_v57 = vmax.f32 %v678_v54, 0.0 }
 0x11e   : > { %v869_v45 = vmax.f32 %v804_v43, 0.0  ;;  %v688_v43 = vadd.f32 %v10957_v52, %v10930_v13 }
 0x120   : > { %v11046_v48 = vpack.c.bf16 %v869_v45, %v867_v42  ;;  %v690_v45 = vadd.f32 %v10963_v63, %v10930_v13 }
 0x122   : > { %v679_v55 = vpop.f32.mrf.mxu0  ;;  %v848_v54 = vmax.f32 %v690_v45, 0.0 }
 0x123   : > { %v680_v56 = vadd.f32 %v679_v55, %v10930_v13 }
 0x125   : > { %v840_v58 = vmax.f32 %v680_v56, 0.0 }
 0x127   : > { %v11058_v59 = vpop.f32.mrf.mxu1  ;;  %v886_v60 = vpack.c.bf16 %v840_v58, %v838_v57 }
 0x129   : > { %1149 = vmatmul.bf16.gmra.mxu2 %v886_v60 }
 0x12a   : > { %1238 = vmatmul.bf16.gmra.mxu3 %v10950_v39  ;;  %1416 = vmatmul.bf16.gmra.mxu1 %v10950_v39  ;;  %v11070_v2 = vpop.f32.mrf.mxu0  ;;  %v8587_v39 = vld [vmem:[%s16851_s2 + $0x150] sm:$0xf] }
 0x12b   : > { %v8588_v17 = vor.u32 %v9916_v15, %v8587_v39 }
 0x12c   : > { %v1110_v3 = vpop.f32.mrf.mxu2 }
 0x12d   : > { %v1111_v4 = vadd.f32 %v1110_v3, %v11066_v1  ;;  %v1199_v6 = vpop.f32.mrf.mxu3  ;;  %1327 = vmatmul.bf16.gmra.mxu0 %v886_v60 }
 0x12e   : > { %1975 = vmatpush.bf16.msra.mxu0 %v8588_v17 }
 0x12f   : > { %v1200_v9 = vadd.f32 %v1199_v6, %v1111_v4  ;;  %v11077_v11 = vpop.f32.mrf.mxu1  ;;  %v8579_v6 = vld [vmem:[%s16851_s2 + $0x140] sm:$0xf] }
 0x130   : > { %v8580_v8 = vor.u32 %v9914_v7, %v8579_v6 }
 0x131   : > { %v1457_v33 = vmax.f32 %v1200_v9, 0.0 }
 0x132   : > { %v11091_v38 = vpop.f32.mrf.mxu0  ;;  %1976 = vmatpush.bf16.msra.mxu0 %v8580_v8 }
 0x134   : > { %v1112_v25 = vpop.f32.mrf.mxu2 }
 0x135   : > { %v1113_v26 = vadd.f32 %v1112_v25, %v11066_v1  ;;  %v1201_v27 = vpop.f32.mrf.mxu3 }
 0x137   : > { %v1202_v28 = vadd.f32 %v1201_v27, %v1113_v26  ;;  %v11094_v29 = vpop.f32.mrf.mxu1  ;;  %v8660_v26 = vor.u32 %v9934_v23, %v8659_v32  ;;  %v9912_v32 = vld [vmem:[%s16851_s2 + $0x134] sm:$0xf0] }
 0x139   : > { %v1459_v34 = vmax.f32 %v1202_v28, 0.0  ;;  %1154 = vmatmul.bf16.gmra.mxu2 %v888_v30  ;;  %v852_v28 = vmax.f32 %v695_v19, 0.0  ;;  %2063 = vmatpush.bf16.msra.mxu1 %v8660_v26 }
 0x13a   : > { %1243 = vmatmul.bf16.gmra.mxu3 %v10960_v61  ;;  %1421 = vmatmul.bf16.gmra.mxu1 %v10960_v61  ;;  %v11098_v35 = vpop.f32.mrf.mxu0  ;;  %v846_v61 = vmax.f32 %v688_v43, 0.0 }
 0x13b   : > { %v11100_v36 = vpack.c.bf16 %v1459_v34, %v1457_v33 }
 0x13c   : > { %v1115_v37 = vpop.f32.mrf.mxu2  ;;  %v890_v3 = vpack.c.bf16 %v848_v54, %v846_v61 }
 0x13d   : > { %v1116_v41 = vadd.f32 %v1115_v37, %v11066_v1  ;;  %v1204_v42 = vpop.f32.mrf.mxu3  ;;  %1332 = vmatmul.bf16.gmra.mxu0 %v888_v30 }
 0x13f   : > { %v1205_v49 = vadd.f32 %v1204_v42, %v1116_v41  ;;  %v11107_v51 = vpop.f32.mrf.mxu1 }
 0x141   : > { %v1461_v4 = vmax.f32 %v1205_v49, 0.0 }
 0x142   : > { %v11109_v53 = vpop.f32.mrf.mxu0 }
 0x144   : > { %v1117_v55 = vpop.f32.mrf.mxu2 }
 0x145   : > { %v1118_v56 = vadd.f32 %v1117_v55, %v11066_v1  ;;  %v1206_v57 = vpop.f32.mrf.mxu3  ;;  %v698_v55 = vadd.f32 %v10982_v47, %v10930_v13 }
 0x147   : > { %v1207_v58 = vadd.f32 %v1206_v57, %v1118_v56  ;;  %v11112_v60 = vpop.f32.mrf.mxu1  ;;  %v700_v56 = vadd.f32 %v10997_v5, %v10930_v13  ;;  %v854_v6 = vmax.f32 %v698_v55, 0.0 }
 0x149   : > { %v1463_v52 = vmax.f32 %v1207_v58, 0.0  ;;  %1159 = vmatmul.bf16.gmra.mxu2 %v890_v3  ;;  %v856_v47 = vmax.f32 %v700_v56, 0.0 }
 0x14a   : > { %1248 = vmatmul.bf16.gmra.mxu3 %v10972_v22  ;;  %1426 = vmatmul.bf16.gmra.mxu1 %v10972_v22  ;;  %v11116_v63 = vpop.f32.mrf.mxu0  ;;  %v693_v22 = vadd.f32 %v10969_v18, %v10930_v13 }
 0x14b   : > { %v11124_v9 = vpack.c.bf16 %v1463_v52, %v1461_v4 }
 0x14c   : > { %v1120_v39 = vpop.f32.mrf.mxu2  ;;  %v850_v27 = vmax.f32 %v693_v22, 0.0 }
 0x14d   : > { %v1121_v15 = vadd.f32 %v1120_v39, %v11066_v1  ;;  %v1209_v17 = vpop.f32.mrf.mxu3  ;;  %1337 = vmatmul.bf16.gmra.mxu0 %v890_v3  ;;  %v8485_v3 = vld [vmem:[%s16852_s3 + $0x48] sm:$0xf0] }
 0x14e   : > { %v892_v37 = vpack.c.bf16 %v852_v28, %v850_v27 }
 0x14f   : > { %v1210_v21 = vadd.f32 %v1209_v17, %v1121_v15  ;;  %v11131_v20 = vpop.f32.mrf.mxu1  ;;  %v894_v17 = vpack.c.bf16 %v856_v47, %v854_v6 }
 0x151   : > { %v1465_v41 = vmax.f32 %v1210_v21, 0.0  ;;  %v8571_v21 = vld [vmem:[%s16851_s2 + $0x130] sm:$0xf] }
 0x152   : > { %v11139_v25 = vpop.f32.mrf.mxu0  ;;  %v8572_v26 = vor.u32 %v9912_v32, %v8571_v21  ;;  %v9906_v21 = vld [vmem:[%s16851_s2 + $0x104] sm:$0xf0]  ;;  %v8635_v32 = vld [vmem:[%s16851_s2 + $0x1b0] sm:$0xf] }
 0x154   : > { %v1122_v18 = vpop.f32.mrf.mxu2  ;;  %1977 = vmatpush.bf16.msra.mxu0 %v8572_v26 }
 0x155   : > { %v1123_v31 = vadd.f32 %v1122_v18, %v11066_v1  ;;  %v1211_v30 = vpop.f32.mrf.mxu3 }
 0x157   : > { %v1212_v33 = vadd.f32 %v1211_v30, %v1123_v31  ;;  %v11142_v34 = vpop.f32.mrf.mxu1  ;;  %v703_v30 = vadd.f32 %v11010_v24, %v10930_v13  ;;  %v9910_v24 = vld [vmem:[%s16851_s2 + $0x124] sm:$0xf0] }
 0x159   : > { %v1467_v42 = vmax.f32 %v1212_v33, 0.0  ;;  %1164 = vmatmul.bf16.gmra.mxu2 %v892_v37  ;;  %v705_v33 = vadd.f32 %v11016_v44, %v10930_v13  ;;  %v858_v55 = vmax.f32 %v703_v30, 0.0 }
 0x15a   : > { %1253 = vmatmul.bf16.gmra.mxu3 %v10990_v50  ;;  %1431 = vmatmul.bf16.gmra.mxu1 %v10990_v50  ;;  %v11146_v43 = vpop.f32.mrf.mxu0  ;;  %v9937_v50 = vld [vmem:[%s16852_s3 + $0x44] sm:$0xf] }
 0x15b   : > { %v11148_v45 = vpack.c.bf16 %v1467_v42, %v1465_v41  ;;  %v8488_v4 = vor.u32 %v9937_v50, %v8485_v3  ;;  %v9932_v42 = vld [vmem:[%s16851_s2 + $0x1d4] sm:$0xf0]  ;;  %v860_v56 = vmax.f32 %v705_v33, 0.0  ;;  %v8555_v50 = vld [vmem:[%s16851_s2 + $0x110] sm:$0xf] }
 0x15c   : > { %v1125_v49 = vpop.f32.mrf.mxu2  ;;  %v9908_v3 = vld [vmem:[%s16851_s2 + $0x114] sm:$0xf0] }
 0x15d   : > { %v1126_v61 = vadd.f32 %v1125_v49, %v11066_v1  ;;  %v1214_v54 = vpop.f32.mrf.mxu3  ;;  %1342 = vmatmul.bf16.gmra.mxu0 %v892_v37  ;;  %1731 = vmatpush.bf16.msra.mxu3 %v8488_v4  ;;  %v8563_v49 = vld [vmem:[%s16851_s2 + $0x120] sm:$0xf] }
 0x15e   : > { %v8643_v4 = vld [vmem:[%s16851_s2 + $0x1c0] sm:$0xf] }
 0x15f   : > { %v1215_v57 = vadd.f32 %v1214_v54, %v1126_v61  ;;  %v11155_v58 = vpop.f32.mrf.mxu1  ;;  %v8564_v54 = vor.u32 %v9910_v24, %v8563_v49  ;;  %v9926_v49 = vld [vmem:[%s16851_s2 + $0x1a4] sm:$0xf0] }
 0x161   : > { %v1469_v22 = vmax.f32 %v1215_v57, 0.0  ;;  %1978 = vmatpush.bf16.msra.mxu0 %v8564_v54  ;;  %v708_v54 = vadd.f32 %v11024_v62, %v10930_v13 }
 0x162   : > { %v11163_v52 = vpop.f32.mrf.mxu0 }
 0x164   : > { %v1127_v7 = vpop.f32.mrf.mxu2 }
 0x165   : > { %v1128_v5 = vadd.f32 %v1127_v7, %v11066_v1  ;;  %v1216_v8 = vpop.f32.mrf.mxu3  ;;  %v8556_v7 = vor.u32 %v9908_v3, %v8555_v50  ;;  %v8619_v50 = vld [vmem:[%s16851_s2 + $0x190] sm:$0xf]  ;;  %v9924_v3 = vld [vmem:[%s16851_s2 + $0x194] sm:$0xf0] }
 0x167   : > { %v1217_v39 = vadd.f32 %v1216_v8, %v1128_v5  ;;  %v11166_v15 = vpop.f32.mrf.mxu1  ;;  %v9930_v5 = vld [vmem:[%s16851_s2 + $0x1c4] sm:$0xf0]  ;;  %1979 = vmatpush.bf16.msra.mxu0 %v8556_v7 }
 0x168   : > { %v8644_v8 = vor.u32 %v9930_v5, %v8643_v4  ;;  %v8620_v4 = vor.u32 %v9924_v3, %v8619_v50  ;;  %v9922_v5 = vld [vmem:[%s16851_s2 + $0x184] sm:$0xf0] }
 0x169   : > { %v1471_v19 = vmax.f32 %v1217_v39, 0.0  ;;  %1169 = vmatmul.bf16.gmra.mxu2 %v894_v17 }
 0x16a   : > { %1258 = vmatmul.bf16.gmra.mxu3 %v11006_v16  ;;  %1436 = vmatmul.bf16.gmra.mxu1 %v11006_v16  ;;  %v11176_v23 = vpop.f32.mrf.mxu0  ;;  %v8651_v16 = vld [vmem:[%s16851_s2 + $0x1d0] sm:$0xf] }
 0x16b   : > { %v11178_v27 = vpack.c.bf16 %v1471_v19, %v1469_v22  ;;  %v8652_v61 = vor.u32 %v9932_v42, %v8651_v16  ;;  %v896_v22 = vpack.c.bf16 %v860_v56, %v858_v55  ;;  %v8547_v19 = vld [vmem:[%s16851_s2 + $0x100] sm:$0xf]  ;;  %v710_v55 = vadd.f32 %v11031_v14, %v10930_v13 }
 0x16c   : > { %v1130_v28 = vpop.f32.mrf.mxu2  ;;  %v8611_v14 = vld [vmem:[%s16851_s2 + $0x180] sm:$0xf] }
 0x16d   : > { %v1131_v18 = vadd.f32 %v1130_v28, %v11066_v1  ;;  %v1219_v31 = vpop.f32.mrf.mxu3  ;;  %1347 = vmatmul.bf16.gmra.mxu0 %v894_v17  ;;  %2064 = vmatpush.bf16.msra.mxu1 %v8652_v61  ;;  %v864_v62 = vmax.f32 %v710_v55, 0.0 }
 0x16f   : > { %v1220_v37 = vadd.f32 %v1219_v31, %v1131_v18  ;;  %v11185_v41 = vpop.f32.mrf.mxu1  ;;  %v8548_v18 = vor.u32 %v9906_v21, %v8547_v19  ;;  %v9928_v31 = vld [vmem:[%s16851_s2 + $0x1b4] sm:$0xf0] }
 0x170   : > { %v8636_v33 = vor.u32 %v9928_v31, %v8635_v32 }
 0x171   : > { %2065 = vmatpush.bf16.msra.mxu1 %v8644_v8  ;;  %v1473_v26 = vmax.f32 %v1220_v37, 0.0  ;;  %1980 = vmatpush.bf16.msra.mxu0 %v8548_v18  ;;  %v8627_v37 = vld [vmem:[%s16851_s2 + $0x1a0] sm:$0xf] }
 0x172   : > { %v11199_v44 = vpop.f32.mrf.mxu0 }
 0x174   : > { %v1132_v57 = vpop.f32.mrf.mxu2 }
 0x175   : > { %v1133_v6 = vadd.f32 %v1132_v57, %v11066_v1  ;;  %v1221_v47 = vpop.f32.mrf.mxu3  ;;  %2066 = vmatpush.bf16.msra.mxu1 %v8636_v33 }
 0x177   : > { %v1222_v39 = vadd.f32 %v1221_v47, %v1133_v6  ;;  %v11214_v17 = vpop.f32.mrf.mxu1  ;;  %v862_v47 = vmax.f32 %v708_v54, 0.0 }
 0x179   : > { %v1475_v28 = vmax.f32 %v1222_v39, 0.0  ;;  %1174 = vmatmul.bf16.gmra.mxu2 %v896_v22  ;;  %v898_v32 = vpack.c.bf16 %v864_v62, %v862_v47  ;;  %v9940_v47 = vld [vmem:[%s16852_s3 + $0x54] sm:$0xf0] }
 0x17a   : > { %1263 = vmatmul.bf16.gmra.mxu3 %v11018_v46  ;;  %1441 = vmatmul.bf16.gmra.mxu1 %v11018_v46  ;;  %v11230_v30 = vpop.f32.mrf.mxu0  ;;  %v8628_v46 = vor.u32 %v9926_v49, %v8627_v37 }
 0x17b   : > { %v11232_v16 = vpack.c.bf16 %v1475_v28, %v1473_v26  ;;  %v8507_v26 = vld [vmem:[%s16852_s3 + $0x70] sm:$0xf]  ;;  %v9944_v28 = vld [vmem:[%s16852_s3 + $0x74] sm:$0xf0] }
 0x17c   : > { %v1135_v42 = vpop.f32.mrf.mxu2  ;;  %2067 = vmatpush.bf16.msra.mxu1 %v8628_v46  ;;  %v8508_v33 = vor.u32 %v9944_v28, %v8507_v26 }
 0x17d   : > { %16910 = vst [vmem:[#allocation2_spill] sm:$0xff] %v11232_v16  ;;  %v1136_v61 = vadd.f32 %v1135_v42, %v11066_v1  ;;  %v1224_v24 = vpop.f32.mrf.mxu3  ;;  %1352 = vmatmul.bf16.gmra.mxu0 %v896_v22  ;;  %v8612_v22 = vor.u32 %v9922_v5, %v8611_v14 }
 0x17e   : > { %1639 = vmatpush.bf16.msrb.mxu2 %v8508_v33 }
 0x17f   : > { %v1225_v56 = vadd.f32 %v1224_v24, %v1136_v61  ;;  %v11245_v57 = vpop.f32.mrf.mxu1  ;;  %v8499_v61 = vld [vmem:[%s16852_s3 + $0x60] sm:$0xf]  ;;  %v9942_v24 = vld [vmem:[%s16852_s3 + $0x64] sm:$0xf0] }
 0x180   : > { %2068 = vmatpush.bf16.msra.mxu1 %v8620_v4  ;;  %v8500_v55 = vor.u32 %v9942_v24, %v8499_v61  ;;  %v8491_v4 = vld [vmem:[%s16852_s3 + $0x50] sm:$0xf] }
 0x181   : > { %v1477_v18 = vmax.f32 %v1225_v56, 0.0  ;;  %v715_v56 = vadd.f32 %v11056_v12, %v10930_v13  ;;  %v8492_v62 = vor.u32 %v9940_v47, %v8491_v4  ;;  %v9938_v12 = vld [vmem:[%s16852_s3 + $0x44] sm:$0xf0] }
 0x182   : > { %v11253_v6 = vpop.f32.mrf.mxu0  ;;  %1640 = vmatpush.bf16.msrb.mxu2 %v8500_v55 }
 0x184   : > { %v1137_v7 = vpop.f32.mrf.mxu2  ;;  %2069 = vmatpush.bf16.msra.mxu1 %v8612_v22 }
 0x185   : > { %v1138_v8 = vadd.f32 %v1137_v7, %v11066_v1  ;;  %v1226_v39 = vpop.f32.mrf.mxu3 }
 0x186   : > { %1641 = vmatpush.bf16.msrb.mxu2 %v8492_v62 }
 0x187   : > { %v1227_v19 = vadd.f32 %v1226_v39, %v1138_v8  ;;  %v11262_v21 = vpop.f32.mrf.mxu1 }
 0x189   : > { %v1479_v31 = vmax.f32 %v1227_v19, 0.0  ;;  %1179 = vmatmul.bf16.gmra.mxu2 %v898_v32 }
 0x18a   : > { %1268 = vmatmul.bf16.gmra.mxu3 %v11028_v10  ;;  %1446 = vmatmul.bf16.gmra.mxu1 %v11028_v10  ;;  %v11272_v42 = vpop.f32.mrf.mxu0  ;;  %v713_v10 = vadd.f32 %v11043_v40, %v10930_v13  ;;  %v868_v40 = vmax.f32 %v715_v56, 0.0  ;;  %v8483_v13 = vld [vmem:[%s16852_s3 + $0x40] sm:$0xf] }
 0x18b   : > { %v11274_v37 = vpack.c.bf16 %v1479_v31, %v1477_v18  ;;  %v8484_v22 = vor.u32 %v9938_v12, %v8483_v13  ;;  %v11307_v31 = vperm.slane %v11063_v0, 1 }
 0x18c   : > { %v1140_v49 = vpop.f32.mrf.mxu2  ;;  %v866_v14 = vmax.f32 %v713_v10, 0.0 }
 0x18d   : > { %16911 = vst [vmem:[#allocation3_spill] sm:$0xff] %v11274_v37  ;;  %v1141_v46 = vadd.f32 %v1140_v49, %v11066_v1  ;;  %v1229_v54 = vpop.f32.mrf.mxu3  ;;  %1357 = vmatmul.bf16.gmra.mxu0 %v898_v32  ;;  %1642 = vmatpush.bf16.msrb.mxu2 %v8484_v22  ;;  %v1291_v61 = vadd.f32 %v11091_v38, %v11307_v31  ;;  %v8669_v38 = vld [vmem:[%s16851_s2 + $0x1f8] sm:$0xf0] }
 0x18e   : > { %v900_v26 = vpack.c.bf16 %v868_v40, %v866_v14  ;;  %v1289_v0 = vadd.f32 %v11070_v2, %v11307_v31  ;;  %v9919_v14 = vld [vmem:[%s16851_s2 + $0x174] sm:$0xf]  ;;  %v8605_v40 = vld [vmem:[%s16851_s2 + $0x178] sm:$0xf0] }
 0x18f   : > { %v1230_v50 = vadd.f32 %v1229_v54, %v1141_v46  ;;  %v11287_v3 = vpop.f32.mrf.mxu1  ;;  %v1380_v56 = vadd.f32 %v11077_v11, %v1291_v61 }
 0x190   : > { %v1378_v4 = vadd.f32 %v11058_v59, %v1289_v0 }
 0x191   : > { %v1481_v28 = vmax.f32 %v1230_v50, 0.0  ;;  %v1460_v2 = vmax.f32 %v1380_v56, 0.0 }
 0x192   : > { %v11295_v7 = vpop.f32.mrf.mxu0  ;;  %v1458_v13 = vmax.f32 %v1378_v4, 0.0 }
 0x194   : > { %v1142_v5 = vpop.f32.mrf.mxu2 }
 0x195   : > { %v1143_v8 = vadd.f32 %v1142_v5, %v11066_v1  ;;  %v1231_v39 = vpop.f32.mrf.mxu3 }
 0x197   : > { %v1232_v19 = vadd.f32 %v1231_v39, %v1143_v8  ;;  %v11304_v32 = vpop.f32.mrf.mxu1  ;;  %v8608_v8 = vor.u32 %v9919_v14, %v8605_v40  ;;  %v11342_v39 = vpack.c.bf16 %v1460_v2, %v1458_v13 }
 0x199   : > { %v1483_v18 = vmax.f32 %v1232_v19, 0.0  ;;  %1184 = vmatmul.bf16.gmra.mxu2 %v900_v26 }
 0x19a   : > { %1273 = vmatmul.bf16.gmra.mxu3 %v11046_v48  ;;  %1451 = vmatmul.bf16.gmra.mxu1 %v11046_v48  ;;  %v11311_v33 = vpop.f32.mrf.mxu0  ;;  %v9935_v48 = vld [vmem:[%s16851_s2 + $0x1f4] sm:$0xf] }
 0x19b   : > { %v11313_v49 = vpack.c.bf16 %v1483_v18, %v1481_v28  ;;  %v8672_v50 = vor.u32 %v9935_v48, %v8669_v38  ;;  %v10497_v28 = vld [vmem:[%s10689_s29] sm:$0xff] }
 0x19c   : > { %v1145_v24 = vpop.f32.mrf.mxu2 }
 0x19d   : > { %16912 = vst [vmem:[#allocation4_spill] sm:$0xff] %v11313_v49  ;;  %v1146_v46 = vadd.f32 %v1145_v24, %v11066_v1  ;;  %v1234_v54 = vpop.f32.mrf.mxu3  ;;  %1981 = vmatmul.bf16.vlgmr.msra.gmra.mxu0 %v11100_v36  ;;  %2240 = vmatpush.bf16.msrb.mxu3 %v8672_v50  ;;  %v1296_v24 = vadd.f32 %v11109_v53, %v11307_v31 }
 0x19f   : > { %v1235_v55 = vadd.f32 %v1234_v54, %v1146_v46  ;;  %v11321_v10 = vpop.f32.mrf.mxu1  ;;  %v1385_v38 = vadd.f32 %v11107_v51, %v1296_v24  ;;  %v10498_v51 = vld [vmem:[%s10689_s29 + $0x8] sm:$0xff] }
 0x1a1   : > { %v1485_v22 = vmax.f32 %v1235_v55, 0.0  ;;  %v1464_v53 = vmax.f32 %v1385_v38, 0.0  ;;  %v9933_v38 = vld [vmem:[%s16851_s2 + $0x1e4] sm:$0xf] }
 0x1a2   : > { %v11331_v47 = vpop.f32.mrf.mxu0 }
 0x1a4   : > { %v1147_v62 = vpop.f32.mrf.mxu2 }
 0x1a5   : > { %v1148_v5 = vadd.f32 %v1147_v62, %v11066_v1  ;;  %v1236_v11 = vpop.f32.mrf.mxu3 }
 0x1a7   : > { %v1237_v12 = vadd.f32 %v1236_v11, %v1148_v5  ;;  %v11340_v59 = vpop.f32.mrf.mxu1 }
 0x1a9   : > { %v1487_v19 = vmax.f32 %v1237_v12, 0.0  ;;  %1362 = vmatmul.bf16.vlgmr.msra.gmra.mxu2 %v900_v26  ;;  %v1294_v26 = vadd.f32 %v11098_v35, %v11307_v31  ;;  %v9917_v12 = vld [vmem:[%s16851_s2 + $0x164] sm:$0xf] }
 0x1aa   : > { %8529 = vmatmul.msk.bf16.vlgmr.msra.gmra.mxu3 %vm579_vm0, %v10497_v28  ;;  %2070 = vmatmul.bf16.vlgmr.msra.gmra.mxu1 %v11342_v39  ;;  %v11347_v18 = vpop.f32.mrf.mxu0 }
 0x1ab   : > { %2151 = vmatpush.bf16.msra.mxu2 %v8608_v8  ;;  %v11349_v61 = vpack.c.bf16 %v1487_v19, %v1485_v22  ;;  %v1383_v56 = vadd.f32 %v11094_v29, %v1294_v26  ;;  %v8597_v8 = vld [vmem:[%s16851_s2 + $0x168] sm:$0xf0] }
 0x1ac   : > { %v1150_v46 = vpop.f32.mrf.mxu2  ;;  %v8600_v22 = vor.u32 %v9917_v12, %v8597_v8 }
 0x1ad   : > { %16913 = vst [vmem:[#allocation5_spill] sm:$0xff] %v11349_v61  ;;  %v1151_v54 = vadd.f32 %v1150_v46, %v11066_v1  ;;  %v1239_v0 = vpop.f32.mrf.mxu3  ;;  %1986 = vmatmul.bf16.gmra.mxu0 %v11124_v9  ;;  %v1462_v14 = vmax.f32 %v1383_v56, 0.0 }
 0x1af   : > { %v1240_v55 = vadd.f32 %v1239_v0, %v1151_v54  ;;  %v11357_v48 = vpop.f32.mrf.mxu1  ;;  %v11366_v35 = vpack.c.bf16 %v1464_v53, %v1462_v14  ;;  %2152 = vmatpush.bf16.msra.mxu2 %v8600_v22  ;;  %v1299_v0 = vadd.f32 %v11116_v63, %v11307_v31 }
 0x1b1   : > { %v1489_v11 = vmax.f32 %v1240_v55, 0.0 }
 0x1b2   : > { %v11361_v50 = vpop.f32.mrf.mxu0 }
 0x1b4   : > { %v1152_v4 = vpop.f32.mrf.mxu2 }
 0x1b5   : > { %v1153_v2 = vadd.f32 %v1152_v4, %v11066_v1  ;;  %v1241_v62 = vpop.f32.mrf.mxu3  ;;  %v1388_v4 = vadd.f32 %v11112_v60, %v1299_v0 }
 0x1b7   : > { %v1242_v40 = vadd.f32 %v1241_v62, %v1153_v2  ;;  %v11364_v5 = vpop.f32.mrf.mxu1 }
 0x1b9   : > { %v1491_v13 = vmax.f32 %v1242_v40, 0.0  ;;  %8513 = vmatmul.msk.bf16.vlgmr.msrb.gmra.mxu2 %vm579_vm0, %v10497_v28  ;;  %v1301_v28 = vadd.f32 %v11139_v25, %v11307_v31  ;;  %v8661_v25 = vld [vmem:[%s16851_s2 + $0x1e8] sm:$0xf0] }
 0x1ba   : > { %8530 = vmatmul.msk.bf16.gmra.mxu3 %vm579_vm0, %v10498_v51  ;;  %2075 = vmatmul.bf16.gmra.mxu1 %v11366_v35  ;;  %v11372_v29 = vpop.f32.mrf.mxu0  ;;  %v8664_v53 = vor.u32 %v9933_v38, %v8661_v25 }
 0x1bb   : > { %v11380_v19 = vpack.c.bf16 %v1491_v13, %v1489_v11  ;;  %v1390_v56 = vadd.f32 %v11131_v20, %v1301_v28  ;;  %v1466_v11 = vmax.f32 %v1388_v4, 0.0  ;;  %v10499_v28 = vld [vmem:[%s10689_s29 + $0x10] sm:$0xff] }
 0x1bc   : > { %v1155_v24 = vpop.f32.mrf.mxu2  ;;  %2241 = vmatpush.bf16.msrb.mxu3 %v8664_v53 }
 0x1bd   : > { %16914 = vst [vmem:[#allocation6_spill] sm:$0xff] %v11380_v19  ;;  %v1156_v46 = vadd.f32 %v1155_v24, %v11066_v1  ;;  %v1244_v54 = vpop.f32.mrf.mxu3  ;;  %1991 = vmatmul.bf16.gmra.mxu0 %v11148_v45  ;;  %v1468_v63 = vmax.f32 %v1390_v56, 0.0 }
 0x1bf   : > { %v1245_v26 = vadd.f32 %v1244_v54, %v1156_v46  ;;  %v11388_v55 = vpop.f32.mrf.mxu1  ;;  %v11403_v8 = vpack.c.bf16 %v1468_v63, %v1466_v11  ;;  %v1306_v46 = vadd.f32 %v11163_v52, %v11307_v31 }
 0x1c1   : > { %v1493_v22 = vmax.f32 %v1245_v26, 0.0  ;;  %v1395_v56 = vadd.f32 %v11155_v58, %v1306_v46  ;;  %v10500_v58 = vld [vmem:[%s10689_s29 + $0x18] sm:$0xff]  ;;  %v9915_v46 = vld [vmem:[%s16851_s2 + $0x154] sm:$0xf] }
 0x1c2   : > { %v11398_v2 = vpop.f32.mrf.mxu0 }
 0x1c3   : > { %v1472_v52 = vmax.f32 %v1395_v56, 0.0 }
 0x1c4   : > { %v1157_v62 = vpop.f32.mrf.mxu2 }
 0x1c5   : > { %v1158_v14 = vadd.f32 %v1157_v62, %v11066_v1  ;;  %v1246_v40 = vpop.f32.mrf.mxu3 }
 0x1c7   : > { %v1247_v13 = vadd.f32 %v1246_v40, %v1158_v14  ;;  %v11401_v12 = vpop.f32.mrf.mxu1 }
 0x1c9   : > { %v1495_v20 = vmax.f32 %v1247_v13, 0.0  ;;  %8514 = vmatmul.msk.bf16.gmra.mxu2 %vm579_vm0, %v10498_v51  ;;  %v1304_v51 = vadd.f32 %v11146_v43, %v11307_v31 }
 0x1ca   : > { %8531 = vmatmul.msk.bf16.gmra.mxu3 %vm579_vm0, %v10499_v28  ;;  %2080 = vmatmul.bf16.gmra.mxu1 %v11403_v8  ;;  %v11409_v60 = vpop.f32.mrf.mxu0 }
 0x1cb   : > { %v11411_v24 = vpack.c.bf16 %v1495_v20, %v1493_v22  ;;  %v1393_v53 = vadd.f32 %v11142_v34, %v1304_v51 }
 0x1cc   : > { %v1160_v54 = vpop.f32.mrf.mxu2 }
 0x1cd   : > { %16915 = vst [vmem:[#allocation7_spill] sm:$0xff] %v11411_v24  ;;  %v1161_v0 = vadd.f32 %v1160_v54, %v11066_v1  ;;  %v1249_v38 = vpop.f32.mrf.mxu3  ;;  %1996 = vmatmul.bf16.gmra.mxu0 %v11178_v27  ;;  %v1470_v40 = vmax.f32 %v1393_v53, 0.0  ;;  %v8589_v54 = vld [vmem:[%s16851_s2 + $0x158] sm:$0xf0]  ;;  %v1309_v53 = vadd.f32 %v11176_v23, %v11307_v31  ;;  %v9960_v23 = vld [vmem:[%s16851_s2 + $0x274] sm:$0xf0] }
 0x1cf   : > { %v1250_v26 = vadd.f32 %v1249_v38, %v1161_v0  ;;  %v11419_v25 = vpop.f32.mrf.mxu1  ;;  %v11428_v43 = vpack.c.bf16 %v1472_v52, %v1470_v40  ;;  %v8592_v0 = vor.u32 %v9915_v46, %v8589_v54 }
 0x1d1   : > { %v1497_v22 = vmax.f32 %v1250_v26, 0.0  ;;  %2153 = vmatpush.bf16.msra.mxu2 %v8592_v0 }
 0x1d2   : > { %v11423_v4 = vpop.f32.mrf.mxu0 }
 0x1d4   : > { %v1162_v63 = vpop.f32.mrf.mxu2 }
 0x1d5   : > { %v1163_v62 = vadd.f32 %v1162_v63, %v11066_v1  ;;  %v1251_v14 = vpop.f32.mrf.mxu3 }
 0x1d7   : > { %v1252_v11 = vadd.f32 %v1251_v14, %v1163_v62  ;;  %v11426_v13 = vpop.f32.mrf.mxu1  ;;  %v9931_v62 = vld [vmem:[%s16851_s2 + $0x1d4] sm:$0xf] }
 0x1d9   : > { %v1499_v20 = vmax.f32 %v1252_v11, 0.0  ;;  %8515 = vmatmul.msk.bf16.gmra.mxu2 %vm579_vm0, %v10499_v28  ;;  %v1311_v28 = vadd.f32 %v11199_v44, %v11307_v31  ;;  %v8653_v44 = vld [vmem:[%s16851_s2 + $0x1d8] sm:$0xf0]  ;;  %v8765_v11 = vld [vmem:[%s16851_s2 + $0x270] sm:$0xf] }
 0x1da   : > { %8532 = vmatmul.msk.bf16.gmra.mxu3 %vm579_vm0, %v10500_v58  ;;  %2085 = vmatmul.bf16.gmra.mxu1 %v11428_v43  ;;  %v11434_v34 = vpop.f32.mrf.mxu0  ;;  %v8656_v40 = vor.u32 %v9931_v62, %v8653_v44  ;;  %v8766_v46 = vor.u32 %v9960_v23, %v8765_v11 }
 0x1db   : > { %v11442_v38 = vpack.c.bf16 %v1499_v20, %v1497_v22  ;;  %v1400_v14 = vadd.f32 %v11185_v41, %v1311_v28  ;;  %v1398_v22 = vadd.f32 %v11166_v15, %v1309_v53  ;;  %v10501_v15 = vld [vmem:[%s10689_s29 + $0x20] sm:$0xff] }
 0x1dc   : > { %v1165_v51 = vpop.f32.mrf.mxu2  ;;  %2242 = vmatpush.bf16.msrb.mxu3 %v8656_v40  ;;  %2696 = vmatpush.bf16.msrb.mxu0 %v8766_v46  ;;  %v1316_v40 = vadd.f32 %v11253_v6, %v11307_v31 }
 0x1dd   : > { %16916 = vst [vmem:[#allocation8_spill] sm:$0xff] %v11442_v38  ;;  %v1166_v26 = vadd.f32 %v1165_v51, %v11066_v1  ;;  %v1254_v56 = vpop.f32.mrf.mxu3  ;;  %2001 = vmatmul.bf16.gmra.mxu0 %v11232_v16  ;;  %v1476_v54 = vmax.f32 %v1400_v14, 0.0  ;;  %v1474_v51 = vmax.f32 %v1398_v22, 0.0 }
 0x1df   : > { %v1255_v52 = vadd.f32 %v1254_v56, %v1166_v26  ;;  %v11450_v63 = vpop.f32.mrf.mxu1  ;;  %v11471_v62 = vpack.c.bf16 %v1476_v54, %v1474_v51  ;;  %v1405_v54 = vadd.f32 %v11245_v57, %v1316_v40  ;;  %v10502_v57 = vld [vmem:[%s10689_s29 + $0x28] sm:$0xff]  ;;  %v9913_v40 = vld [vmem:[%s16851_s2 + $0x144] sm:$0xf] }
 0x1e1   : > { %v1501_v44 = vmax.f32 %v1255_v52, 0.0  ;;  %v1480_v6 = vmax.f32 %v1405_v54, 0.0  ;;  %v8645_v54 = vld [vmem:[%s16851_s2 + $0x1c8] sm:$0xf0] }
 0x1e2   : > { %v11466_v20 = vpop.f32.mrf.mxu0 }
 0x1e4   : > { %v1167_v0 = vpop.f32.mrf.mxu2 }
 0x1e5   : > { %v1168_v41 = vadd.f32 %v1167_v0, %v11066_v1  ;;  %v1256_v28 = vpop.f32.mrf.mxu3 }
 0x1e7   : > { %v1257_v26 = vadd.f32 %v1256_v28, %v1168_v41  ;;  %v11469_v56 = vpop.f32.mrf.mxu1 }
 0x1e9   : > { %v1503_v16 = vmax.f32 %v1257_v26, 0.0  ;;  %8516 = vmatmul.msk.bf16.gmra.mxu2 %vm579_vm0, %v10500_v58  ;;  %v1314_v58 = vadd.f32 %v11230_v30, %v11307_v31 }
 0x1ea   : > { %8533 = vmatmul.msk.bf16.gmra.mxu3 %vm579_vm0, %v10501_v15  ;;  %2090 = vmatmul.bf16.gmra.mxu1 %v11471_v62  ;;  %v11477_v53 = vpop.f32.mrf.mxu0 }
 0x1eb   : > { %v11479_v14 = vpack.c.bf16 %v1503_v16, %v1501_v44  ;;  %v1403_v16 = vadd.f32 %v11214_v17, %v1314_v58  ;;  %v8581_v58 = vld [vmem:[%s16851_s2 + $0x148] sm:$0xf0] }
 0x1ec   : > { %v1170_v11 = vpop.f32.mrf.mxu2 }
 0x1ed   : > { %v1171_v23 = vadd.f32 %v1170_v11, %v11066_v1  ;;  %v1259_v22 = vpop.f32.mrf.mxu3  ;;  %2006 = vmatmul.bf16.gmra.mxu0 %v11274_v37  ;;  %v1478_v26 = vmax.f32 %v1403_v16, 0.0 }
 0x1ef   : > { %v1260_v52 = vadd.f32 %v1259_v22, %v1171_v23  ;;  %v11487_v46 = vpop.f32.mrf.mxu1  ;;  %v11496_v30 = vpack.c.bf16 %v1480_v6, %v1478_v26  ;;  %v1321_v6 = vadd.f32 %v11295_v7, %v11307_v31  ;;  %v8757_v7 = vld [vmem:[%s16851_s2 + $0x260] sm:$0xf] }
 0x1f1   : > { %16917 = vst [vmem:[#allocation9_spill] sm:$0xff] %v11496_v30  ;;  %v1505_v23 = vmax.f32 %v1260_v52, 0.0  ;;  %v9929_v52 = vld [vmem:[%s16851_s2 + $0x1c4] sm:$0xf] }
 0x1f2   : > { %v11491_v0 = vpop.f32.mrf.mxu0 }
 0x1f4   : > { %v1172_v41 = vpop.f32.mrf.mxu2 }
 0x1f5   : > { %v1173_v28 = vadd.f32 %v1172_v41, %v11066_v1  ;;  %v1261_v51 = vpop.f32.mrf.mxu3 }
 0x1f7   : > { %v1262_v44 = vadd.f32 %v1261_v51, %v1173_v28  ;;  %v11494_v11 = vpop.f32.mrf.mxu1  ;;  %v8648_v28 = vor.u32 %v9929_v52, %v8645_v54 }
 0x1f9   : > { %v1507_v22 = vmax.f32 %v1262_v44, 0.0  ;;  %8517 = vmatmul.msk.bf16.gmra.mxu2 %vm579_vm0, %v10501_v15  ;;  %v8584_v15 = vor.u32 %v9913_v40, %v8581_v58  ;;  %v1319_v44 = vadd.f32 %v11272_v42, %v11307_v31  ;;  %2243 = vmatpush.bf16.msrb.mxu3 %v8648_v28 }
 0x1fa   : > { %8534 = vmatmul.msk.bf16.gmra.mxu3 %vm579_vm0, %v10502_v57  ;;  %2095 = vmatmul.bf16.gmra.mxu1 %v11496_v30  ;;  %v11502_v17 = vpop.f32.mrf.mxu0 }
 0x1fb   : > { %v11516_v16 = vpack.c.bf16 %v1507_v22, %v1505_v23  ;;  %2154 = vmatpush.bf16.msra.mxu2 %v8584_v15  ;;  %v1410_v23 = vadd.f32 %v11287_v3, %v1321_v6  ;;  %v9958_v22 = vld [vmem:[%s16851_s2 + $0x264] sm:$0xf0]  ;;  %v1408_v52 = vadd.f32 %v11262_v21, %v1319_v44  ;;  %v10503_v21 = vld [vmem:[%s10689_s29 + $0x30] sm:$0xff] }
 0x1fc   : > { %v1175_v41 = vpop.f32.mrf.mxu2  ;;  %v8758_v42 = vor.u32 %v9958_v22, %v8757_v7  ;;  %v1326_v7 = vadd.f32 %v11331_v47, %v11307_v31 }
 0x1fd   : > { %v1176_v51 = vadd.f32 %v1175_v41, %v11066_v1  ;;  %v1264_v26 = vpop.f32.mrf.mxu3  ;;  %2011 = vmatmul.bf16.gmra.mxu0 %v11313_v49  ;;  %v1484_v54 = vmax.f32 %v1410_v23, 0.0  ;;  %v1482_v6 = vmax.f32 %v1408_v52, 0.0 }
 0x1fe   : > { %2697 = vmatpush.bf16.msrb.mxu0 %v8758_v42 }
 0x1ff   : > { %v1265_v40 = vadd.f32 %v1264_v26, %v1176_v51  ;;  %v11524_v58 = vpop.f32.mrf.mxu1  ;;  %v11539_v49 = vpack.c.bf16 %v1484_v54, %v1482_v6 }
 0x201   : > { %16918 = vst [vmem:[#allocation10_spill] sm:$0xff] %v11539_v49  ;;  %v1509_v37 = vmax.f32 %v1265_v40, 0.0 }
 0x202   : > { %v11534_v15 = vpop.f32.mrf.mxu0 }
 0x204   : > { %v1177_v41 = vpop.f32.mrf.mxu2 }
 0x205   : > { %v1178_v28 = vadd.f32 %v1177_v41, %v11066_v1  ;;  %v1266_v3 = vpop.f32.mrf.mxu3  ;;  %v1415_v41 = vadd.f32 %v11321_v10, %v1326_v7  ;;  %v9911_v10 = vld [vmem:[%s16851_s2 + $0x134] sm:$0xf]  ;;  %v8573_v7 = vld [vmem:[%s16851_s2 + $0x138] sm:$0xf0] }
 0x207   : > { %v1267_v51 = vadd.f32 %v1266_v3, %v1178_v28  ;;  %v11537_v26 = vpop.f32.mrf.mxu1  ;;  %v1488_v47 = vmax.f32 %v1415_v41, 0.0 }
 0x209   : > { %v1511_v30 = vmax.f32 %v1267_v51, 0.0  ;;  %8518 = vmatmul.msk.bf16.gmra.mxu2 %vm579_vm0, %v10502_v57  ;;  %v1324_v57 = vadd.f32 %v11311_v33, %v11307_v31 }
 0x20a   : > { %8535 = vmatmul.msk.bf16.gmra.mxu3 %vm579_vm0, %v10503_v21  ;;  %2100 = vmatmul.bf16.gmra.mxu1 %v11539_v49  ;;  %v11545_v44 = vpop.f32.mrf.mxu0 }
 0x20b   : > { %v11547_v23 = vpack.c.bf16 %v1511_v30, %v1509_v37  ;;  %v1413_v37 = vadd.f32 %v11304_v32, %v1324_v57  ;;  %v9927_v57 = vld [vmem:[%s16851_s2 + $0x1b4] sm:$0xf] }
 0x20c   : > { %v1180_v22 = vpop.f32.mrf.mxu2 }
 0x20d   : > { %v1181_v52 = vadd.f32 %v1180_v22, %v11066_v1  ;;  %v1269_v42 = vpop.f32.mrf.mxu3  ;;  %2016 = vmatmul.bf16.gmra.mxu0 %v11349_v61  ;;  %v1486_v51 = vmax.f32 %v1413_v37, 0.0  ;;  %v1331_v37 = vadd.f32 %v11361_v50, %v11307_v31  ;;  %v8749_v50 = vld [vmem:[%s16851_s2 + $0x250] sm:$0xf] }
 0x20f   : > { %v1270_v40 = vadd.f32 %v1269_v42, %v1181_v52  ;;  %v11555_v54 = vpop.f32.mrf.mxu1  ;;  %v11562_v49 = vpack.c.bf16 %v1488_v47, %v1486_v51  ;;  %v10504_v42 = vld [vmem:[%s10689_s29 + $0x38] sm:$0xff]  ;;  %v1329_v51 = vadd.f32 %v11347_v18, %v11307_v31 }
 0x211   : > { %v1513_v33 = vmax.f32 %v1270_v40, 0.0  ;;  %v8637_v40 = vld [vmem:[%s16851_s2 + $0x1b8] sm:$0xf0] }
 0x212   : > { %v11559_v30 = vpop.f32.mrf.mxu0 }
 0x214   : > { %v1182_v28 = vpop.f32.mrf.mxu2 }
 0x215   : > { %v1183_v3 = vadd.f32 %v1182_v28, %v11066_v1  ;;  %v1271_v6 = vpop.f32.mrf.mxu3  ;;  %v8640_v28 = vor.u32 %v9927_v57, %v8637_v40  ;;  %v9956_v57 = vld [vmem:[%s16851_s2 + $0x254] sm:$0xf0] }
 0x216   : > { %v8750_v40 = vor.u32 %v9956_v57, %v8749_v50 }
 0x217   : > { %v1272_v22 = vadd.f32 %v1271_v6, %v1183_v3  ;;  %v1452_v61 = vpop.f32.mrf.mxu1  ;;  %2244 = vmatpush.bf16.msrb.mxu3 %v8640_v28 }
 0x218   : > { %2698 = vmatpush.bf16.msrb.mxu0 %v8750_v40 }
 0x219   : > { %v1515_v52 = vmax.f32 %v1272_v22, 0.0  ;;  %8519 = vmatmul.msk.bf16.gmra.mxu2 %vm579_vm0, %v10503_v21  ;;  %v8576_v21 = vor.u32 %v9911_v10, %v8573_v7 }
 0x21a   : > { %8536 = vmatmul.msk.bf16.gmra.mxu3 %vm579_vm0, %v10504_v42  ;;  %2105 = vmatmul.bf16.gmra.mxu1 %v11562_v49  ;;  %v11568_v32 = vpop.f32.mrf.mxu0 }
 0x21b   : > { %v11582_v41 = vpack.c.bf16 %v1515_v52, %v1513_v33  ;;  %2155 = vmatpush.bf16.msra.mxu2 %v8576_v21  ;;  %v1420_v33 = vadd.f32 %v11357_v48, %v1331_v37  ;;  %v1418_v52 = vadd.f32 %v11340_v59, %v1329_v51 }
 0x21c   : > { %v1185_v47 = vpop.f32.mrf.mxu2 }
 0x21d   : > { %16919 = vst [vmem:[#allocation11_spill] sm:$0xff] %v11582_v41  ;;  %v1186_v3 = vadd.f32 %v1185_v47, %v11066_v1  ;;  %v1274_v6 = vpop.f32.mrf.mxu3  ;;  %2021 = vmatmul.bf16.gmra.mxu0 %v11380_v19  ;;  %v1492_v21 = vmax.f32 %v1420_v33, 0.0  ;;  %v1490_v48 = vmax.f32 %v1418_v52, 0.0  ;;  %v10505_v19 = vld [vmem:[%s10689_s29 + $0x40] sm:$0xff] }
 0x21f   : > { %v1275_v22 = vadd.f32 %v1274_v6, %v1186_v3  ;;  %v1454_v10 = vpop.f32.mrf.mxu1  ;;  %v11601_v3 = vpack.c.bf16 %v1492_v21, %v1490_v48  ;;  %v9976_v48 = vld [vmem:[%s16851_s2 + $0x2f4] sm:$0xf0] }
 0x221   : > { %v1517_v6 = vmax.f32 %v1275_v22, 0.0 }
 0x222   : > { %v11592_v7 = vpop.f32.mrf.mxu0 }
 0x224   : > { %v1187_v18 = vpop.f32.mrf.mxu2 }
 0x225   : > { %v1188_v47 = vadd.f32 %v1187_v18, %v11066_v1  ;;  %v1276_v28 = vpop.f32.mrf.mxu3  ;;  %v1336_v1 = vadd.f32 %v11398_v2, %v11307_v31  ;;  %v8829_v2 = vld [vmem:[%s16851_s2 + $0x2f0] sm:$0xf] }
 0x227   : > { %v1277_v59 = vadd.f32 %v1276_v28, %v1188_v47  ;;  %v2071_v37 = vpop.f32.mrf.mxu1  ;;  %v1425_v40 = vadd.f32 %v11388_v55, %v1336_v1 }
 0x229   : > { %v1519_v51 = vmax.f32 %v1277_v59, 0.0  ;;  %8520 = vmatmul.msk.bf16.gmra.mxu2 %vm579_vm0, %v10504_v42  ;;  %v1334_v42 = vadd.f32 %v11372_v29, %v11307_v31  ;;  %v1496_v59 = vmax.f32 %v1425_v40, 0.0  ;;  %v8830_v29 = vor.u32 %v9976_v48, %v8829_v2  ;;  %v8629_v2 = vld [vmem:[%s16851_s2 + $0x1a8] sm:$0xf0] }
 0x22a   : > { %8537 = vmatmul.msk.bf16.gmra.mxu3 %vm579_vm0, %v10505_v19  ;;  %2110 = vmatmul.bf16.gmra.mxu1 %v11601_v3  ;;  %v11607_v33 = vpop.f32.mrf.mxu0 }
 0x22b   : > { %v11609_v50 = vpack.c.bf16 %v1519_v51, %v1517_v6  ;;  %v1423_v47 = vadd.f32 %v11364_v5, %v1334_v42  ;;  %2785 = vmatpush.bf16.msrb.mxu1 %v8830_v29 }
 0x22c   : > { %v1363_v52 = vpop.f32.mrf.mxu2 }
 0x22d   : > { %16920 = vst [vmem:[#allocation12_spill] sm:$0xff] %v11609_v50  ;;  %v1364_v57 = vadd.f32 %v1363_v52, %v11307_v31  ;;  %v11614_v21 = vpop.f32.mrf.mxu3  ;;  %2026 = vmatmul.bf16.gmra.mxu0 %v11411_v24  ;;  %v1494_v55 = vmax.f32 %v1423_v47, 0.0  ;;  %v10506_v24 = vld [vmem:[%s10689_s29 + $0x48] sm:$0xff]  ;;  %v9909_v47 = vld [vmem:[%s16851_s2 + $0x124] sm:$0xf] }
 0x22f   : > { %v1453_v22 = vadd.f32 %v1452_v61, %v1364_v57  ;;  %v2073_v18 = vpop.f32.mrf.mxu1  ;;  %v11634_v52 = vpack.c.bf16 %v1496_v59, %v1494_v55  ;;  %v1341_v59 = vadd.f32 %v11423_v4, %v11307_v31  ;;  %v1339_v55 = vadd.f32 %v11409_v60, %v11307_v31  ;;  %v11668_v4 = vld [vmem:[%s16853_s4 + $0x2] ss:$8 sm:$0x3] }
 0x230   : > { %v8741_v60 = vld [vmem:[%s16851_s2 + $0x240] sm:$0xf] }
 0x231   : > { %v1518_v57 = vmax.f32 %v1453_v22, 0.0  ;;  %v9925_v22 = vld [vmem:[%s16851_s2 + $0x1a4] sm:$0xf] }
 0x232   : > { %v11621_v28 = vpop.f32.mrf.mxu0  ;;  %v8632_v29 = vor.u32 %v9925_v22, %v8629_v2 }
 0x234   : > { %v1365_v6 = vpop.f32.mrf.mxu2  ;;  %2245 = vmatpush.bf16.msrb.mxu3 %v8632_v29 }
 0x235   : > { %v1366_v61 = vadd.f32 %v1365_v6, %v11307_v31  ;;  %v11630_v51 = vpop.f32.mrf.mxu3 }
 0x236   : > { %16921 = vst [vmem:[#allocation13_spill] sm:$0xff] %v11630_v51  ;;  %v10507_v51 = vld [vmem:[%s10689_s29 + $0x50] sm:$0xff] }
 0x237   : > { %v1455_v5 = vadd.f32 %v1454_v10, %v1366_v61  ;;  %v11632_v1 = vpop.f32.mrf.mxu1  ;;  %v8565_v10 = vld [vmem:[%s16851_s2 + $0x128] sm:$0xf0] }
 0x239   : > { %v1520_v42 = vmax.f32 %v1455_v5, 0.0  ;;  %8521 = vmatmul.msk.bf16.gmra.mxu2 %vm579_vm0, %v10505_v19  ;;  %v8568_v19 = vor.u32 %v9909_v47, %v8565_v10 }
 0x23a   : > { %8538 = vmatmul.msk.bf16.gmra.mxu3 %vm579_vm0, %v10506_v24  ;;  %2115 = vmatmul.bf16.gmra.mxu1 %v11634_v52  ;;  %v11640_v40 = vpop.f32.mrf.mxu0 }
 0x23b   : > { %v11654_v48 = vpack.c.bf16 %v1520_v42, %v1518_v57  ;;  %2156 = vmatpush.bf16.msra.mxu2 %v8568_v19  ;;  %v1430_v57 = vadd.f32 %v11419_v25, %v1341_v59  ;;  %v1428_v42 = vadd.f32 %v11401_v12, %v1339_v55  ;;  %v11674_v19 = vperm.slane %v11668_v4, 0  ;;  %v9954_v25 = vld [vmem:[%s16851_s2 + $0x244] sm:$0xf0] }
 0x23c   : > { %v1644_v6 = vpop.f32.mrf.mxu2  ;;  %v8742_v59 = vor.u32 %v9954_v25, %v8741_v60 }
 0x23d   : > { %v11658_v61 = vpop.f32.mrf.mxu3  ;;  %2031 = vmatmul.bf16.gmra.mxu0 %v11442_v38  ;;  %v1983_v5 = vadd.f32 %v11568_v32, %v1644_v6  ;;  %v1500_v32 = vmax.f32 %v1430_v57, 0.0 }
 0x23e   : > { %16922 = vst [vmem:[#allocation14_spill] sm:$0xff] %v11658_v61  ;;  %2699 = vmatpush.bf16.msrb.mxu0 %v8742_v59 }
 0x23f   : > { %v2078_v47 = vpop.f32.mrf.mxu1  ;;  %v2072_v22 = vadd.f32 %v2071_v37, %v1983_v5  ;;  %v1498_v37 = vmax.f32 %v1428_v42, 0.0 }
 0x241   : > { %v2336_v29 = vadd.f32 %v11674_v19, %v2072_v22  ;;  %v11686_v38 = vpack.c.bf16 %v1500_v32, %v1498_v37  ;;  %v1346_v22 = vadd.f32 %v11466_v20, %v11307_v31  ;;  %v8821_v37 = vld [vmem:[%s16851_s2 + $0x2e0] sm:$0xf] }
 0x242   : > { %v11671_v10 = vpop.f32.mrf.mxu0 }
 0x243   : > { %v2400_v57 = vmax.f32 %v2336_v29, 0.0  ;;  %v1435_v59 = vadd.f32 %v11450_v63, %v1346_v22 }
 0x244   : > { %v1646_v2 = vpop.f32.mrf.mxu2 }
 0x245   : > { %v1985_v12 = vadd.f32 %v11592_v7, %v1646_v2  ;;  %v11683_v6 = vpop.f32.mrf.mxu3  ;;  %v1504_v29 = vmax.f32 %v1435_v59, 0.0  ;;  %v9907_v59 = vld [vmem:[%s16851_s2 + $0x114] sm:$0xf] }
 0x247   : > { %v2074_v55 = vadd.f32 %v2073_v18, %v1985_v12  ;;  %v2081_v5 = vpop.f32.mrf.mxu1 }
 0x249   : > { %v2338_v61 = vadd.f32 %v11674_v19, %v2074_v55  ;;  %8522 = vmatmul.msk.bf16.gmra.mxu2 %vm579_vm0, %v10506_v24  ;;  %v1344_v24 = vadd.f32 %v11434_v34, %v11307_v31  ;;  %v9974_v34 = vld [vmem:[%s16851_s2 + $0x2e4] sm:$0xf0] }
 0x24a   : > { %8539 = vmatmul.msk.bf16.gmra.mxu3 %vm579_vm0, %v10507_v51  ;;  %2120 = vmatmul.bf16.gmra.mxu1 %v11686_v38  ;;  %v11693_v7 = vpop.f32.mrf.mxu0  ;;  %v8822_v55 = vor.u32 %v9974_v34, %v8821_v37  ;;  %v8621_v37 = vld [vmem:[%s16851_s2 + $0x198] sm:$0xf0] }
 0x24b   : > { %v2402_v42 = vmax.f32 %v2338_v61, 0.0  ;;  %v1433_v61 = vadd.f32 %v11426_v13, %v1344_v24 }
 0x24c   : > { %v1649_v18 = vpop.f32.mrf.mxu2  ;;  %2786 = vmatpush.bf16.msrb.mxu1 %v8822_v55 }
 0x24d   : > { %v11697_v60 = vpack.c.bf16 %v2402_v42, %v2400_v57  ;;  %v11699_v25 = vpop.f32.mrf.mxu3  ;;  %2036 = vmatmul.bf16.gmra.mxu0 %v11479_v14  ;;  %v1988_v32 = vadd.f32 %v11607_v33, %v1649_v18  ;;  %v1502_v13 = vmax.f32 %v1433_v61, 0.0  ;;  %v9923_v61 = vld [vmem:[%s16851_s2 + $0x194] sm:$0xf] }
 0x24e   : > { %v8624_v55 = vor.u32 %v9923_v61, %v8621_v37 }
 0x24f   : > { %16923 = vst [vmem:[#allocation15_spill] sm:$0xff] %v11697_v60  ;;  %v2083_v2 = vpop.f32.mrf.mxu1  ;;  %v2077_v20 = vadd.f32 %v11632_v1, %v1988_v32  ;;  %v11722_v18 = vpack.c.bf16 %v1504_v29, %v1502_v13  ;;  %v10508_v32 = vld [vmem:[%s10689_s29 + $0x58] sm:$0xff]  ;;  %v1351_v29 = vadd.f32 %v11491_v0, %v11307_v31 }
 0x250   : > { %2246 = vmatpush.bf16.msrb.mxu3 %v8624_v55 }
 0x251   : > { %v2340_v1 = vadd.f32 %v11674_v19, %v2077_v20 }
 0x252   : > { %v11707_v12 = vpop.f32.mrf.mxu0 }
 0x254   : > { %v1651_v33 = vpop.f32.mrf.mxu2 }
 0x255   : > { %v1990_v63 = vadd.f32 %v11621_v28, %v1651_v33  ;;  %v11717_v57 = vpop.f32.mrf.mxu3 }
 0x257   : > { %v2079_v42 = vadd.f32 %v2078_v47, %v1990_v63  ;;  %v11720_v22 = vpop.f32.mrf.mxu1  ;;  %v8557_v47 = vld [vmem:[%s16851_s2 + $0x118] sm:$0xf0] }
 0x258   : > { %v8560_v20 = vor.u32 %v9907_v59, %v8557_v47 }
 0x259   : > { %v2342_v24 = vadd.f32 %v11674_v19, %v2079_v42  ;;  %8523 = vmatmul.msk.bf16.gmra.mxu2 %vm579_vm0, %v10507_v51  ;;  %v2404_v51 = vmax.f32 %v2340_v1, 0.0  ;;  %v1349_v1 = vadd.f32 %v11477_v53, %v11307_v31  ;;  %v9952_v53 = vld [vmem:[%s16851_s2 + $0x234] sm:$0xf0] }
 0x25a   : > { %8540 = vmatmul.msk.bf16.gmra.mxu3 %vm579_vm0, %v10508_v32  ;;  %2125 = vmatmul.bf16.gmra.mxu1 %v11722_v18  ;;  %v11729_v28 = vpop.f32.mrf.mxu0 }
 0x25b   : > { %v2406_v34 = vmax.f32 %v2342_v24, 0.0  ;;  %2157 = vmatpush.bf16.msra.mxu2 %v8560_v20  ;;  %v1440_v24 = vadd.f32 %v11487_v46, %v1351_v29  ;;  %v1438_v0 = vadd.f32 %v11469_v56, %v1349_v1 }
 0x25c   : > { %v1654_v33 = vpop.f32.mrf.mxu2 }
 0x25d   : > { %v11745_v63 = vpop.f32.mrf.mxu3  ;;  %2041 = vmatmul.bf16.gmra.mxu0 %v11516_v16  ;;  %v11748_v13 = vpack.c.bf16 %v2406_v34, %v2404_v51  ;;  %v1993_v42 = vadd.f32 %v11640_v40, %v1654_v33  ;;  %v8733_v51 = vld [vmem:[%s16851_s2 + $0x230] sm:$0xf]  ;;  %v1508_v20 = vmax.f32 %v1440_v24, 0.0  ;;  %v1506_v56 = vmax.f32 %v1438_v0, 0.0 }
 0x25e   : > { %v8734_v40 = vor.u32 %v9952_v53, %v8733_v51 }
 0x25f   : > { %16924 = vst [vmem:[#allocation16_spill] sm:$0xff] %v11748_v13  ;;  %v2088_v59 = vpop.f32.mrf.mxu1  ;;  %v2082_v61 = vadd.f32 %v2081_v5, %v1993_v42  ;;  %v11769_v55 = vpack.c.bf16 %v1508_v20, %v1506_v56  ;;  %v10509_v42 = vld [vmem:[%s10689_s29 + $0x60] sm:$0xff] }
 0x260   : > { %2700 = vmatpush.bf16.msrb.mxu0 %v8734_v40 }
 0x261   : > { %v2344_v5 = vadd.f32 %v11674_v19, %v2082_v61 }
 0x262   : > { %v11755_v47 = vpop.f32.mrf.mxu0 }
 0x263   : > { %v2408_v24 = vmax.f32 %v2344_v5, 0.0 }
 0x264   : > { %v1656_v37 = vpop.f32.mrf.mxu2 }
 0x265   : > { %v1995_v34 = vadd.f32 %v11671_v10, %v1656_v37  ;;  %v11764_v46 = vpop.f32.mrf.mxu3 }
 0x267   : > { %v2084_v29 = vadd.f32 %v2083_v2, %v1995_v34  ;;  %v11767_v33 = vpop.f32.mrf.mxu1  ;;  %v1356_v2 = vadd.f32 %v11534_v15, %v11307_v31  ;;  %v8725_v15 = vld [vmem:[%s16851_s2 + $0x220] sm:$0xf]  ;;  %v9950_v34 = vld [vmem:[%s16851_s2 + $0x224] sm:$0xf0] }
 0x268   : > { %v8726_v56 = vor.u32 %v9950_v34, %v8725_v15 }
 0x269   : > { %v2346_v1 = vadd.f32 %v11674_v19, %v2084_v29  ;;  %8524 = vmatmul.msk.bf16.gmra.mxu2 %vm579_vm0, %v10508_v32  ;;  %v1354_v32 = vadd.f32 %v11502_v17, %v11307_v31  ;;  %v1445_v40 = vadd.f32 %v11524_v58, %v1356_v2  ;;  %v9972_v58 = vld [vmem:[%s16851_s2 + $0x2d4] sm:$0xf0] }
 0x26a   : > { %8541 = vmatmul.msk.bf16.gmra.mxu3 %vm579_vm0, %v10509_v42  ;;  %2130 = vmatmul.bf16.gmra.mxu1 %v11769_v55  ;;  %v11776_v10 = vpop.f32.mrf.mxu0 }
 0x26b   : > { %v2410_v0 = vmax.f32 %v2346_v1, 0.0  ;;  %v1443_v5 = vadd.f32 %v11494_v11, %v1354_v32  ;;  %2701 = vmatpush.bf16.msrb.mxu0 %v8726_v56  ;;  %v1512_v1 = vmax.f32 %v1445_v40, 0.0  ;;  %v8717_v11 = vld [vmem:[%s16851_s2 + $0x210] sm:$0xf] }
 0x26c   : > { %v1659_v61 = vpop.f32.mrf.mxu2 }
 0x26d   : > { %v11780_v51 = vpop.f32.mrf.mxu3  ;;  %2046 = vmatmul.bf16.gmra.mxu0 %v11547_v23  ;;  %v11783_v53 = vpack.c.bf16 %v2410_v0, %v2408_v24  ;;  %v1998_v20 = vadd.f32 %v11693_v7, %v1659_v61  ;;  %v8813_v7 = vld [vmem:[%s16851_s2 + $0x2d0] sm:$0xf] }
 0x26e   : > { %v8814_v0 = vor.u32 %v9972_v58, %v8813_v7  ;;  %v8709_v7 = vld [vmem:[%s16851_s2 + $0x200] sm:$0xf] }
 0x26f   : > { %16925 = vst [vmem:[#allocation17_spill] sm:$0xff] %v11783_v53  ;;  %v11788_v37 = vpop.f32.mrf.mxu1  ;;  %v2087_v17 = vadd.f32 %v11720_v22, %v1998_v20  ;;  %v9948_v22 = vld [vmem:[%s16851_s2 + $0x214] sm:$0xf0]  ;;  %v1510_v20 = vmax.f32 %v1443_v5, 0.0 }
 0x270   : > { %v8718_v32 = vor.u32 %v9948_v22, %v8717_v11  ;;  %2787 = vmatpush.bf16.msrb.mxu1 %v8814_v0  ;;  %v8613_v22 = vld [vmem:[%s16851_s2 + $0x188] sm:$0xf0] }
 0x271   : > { %v2348_v40 = vadd.f32 %v11674_v19, %v2087_v17  ;;  %v11817_v56 = vpack.c.bf16 %v1512_v1, %v1510_v20  ;;  %v9905_v17 = vld [vmem:[%s16851_s2 + $0x104] sm:$0xf]  ;;  %v8549_v1 = vld [vmem:[%s16851_s2 + $0x108] sm:$0xf0] }
 0x272   : > { %v11798_v29 = vpop.f32.mrf.mxu0  ;;  %2702 = vmatpush.bf16.msrb.mxu0 %v8718_v32  ;;  %v8552_v11 = vor.u32 %v9905_v17, %v8549_v1  ;;  %v1361_v32 = vadd.f32 %v11559_v30, %v11307_v31 }
 0x273   : > { %v2412_v0 = vmax.f32 %v2348_v40, 0.0  ;;  %v1359_v40 = vadd.f32 %v11545_v44, %v11307_v31 }
 0x274   : > { %v1661_v24 = vpop.f32.mrf.mxu2  ;;  %2158 = vmatpush.bf16.msra.mxu2 %v8552_v11 }
 0x275   : > { %v2000_v2 = vadd.f32 %v11707_v12, %v1661_v24  ;;  %v11814_v61 = vpop.f32.mrf.mxu3  ;;  %v9946_v12 = vld [vmem:[%s16851_s2 + $0x204] sm:$0xf0]  ;;  %v1448_v30 = vadd.f32 %v11537_v26, %v1359_v40  ;;  %v10511_v26 = vld [vmem:[%s10689_s29 + $0x70] sm:$0xff] }
 0x276   : > { %v8710_v5 = vor.u32 %v9946_v12, %v8709_v7  ;;  %v10510_v24 = vld [vmem:[%s10689_s29 + $0x68] sm:$0xff] }
 0x277   : > { %v2089_v15 = vadd.f32 %v2088_v59, %v2000_v2  ;;  %v2096_v34 = vpop.f32.mrf.mxu1 }
 0x278   : > { %2703 = vmatpush.bf16.msrb.mxu0 %v8710_v5 }
 0x279   : > { %v2350_v58 = vadd.f32 %v11674_v19, %v2089_v15  ;;  %8525 = vmatmul.msk.bf16.gmra.mxu2 %vm579_vm0, %v10509_v42  ;;  %v9921_v42 = vld [vmem:[%s16851_s2 + $0x184] sm:$0xf] }
 0x27a   : > { %8542 = vmatmul.msk.bf16.gmra.mxu3 %vm579_vm0, %v10510_v24  ;;  %2135 = vmatmul.bf16.gmra.mxu1 %v11817_v56  ;;  %v11830_v59 = vpop.f32.mrf.mxu0  ;;  %v8616_v15 = vor.u32 %v9921_v42, %v8613_v22 }
 0x27b   : > { %v2414_v2 = vmax.f32 %v2350_v58, 0.0  ;;  %v1450_v58 = vadd.f32 %v11555_v54, %v1361_v32 }
 0x27c   : > { %v1664_v20 = vpop.f32.mrf.mxu2  ;;  %2247 = vmatpush.bf16.msrb.mxu3 %v8616_v15 }
 0x27d   : > { %v11846_v7 = vpop.f32.mrf.mxu3  ;;  %2051 = vmatmul.bf16.gmra.mxu0 %v11582_v41  ;;  %v11849_v12 = vpack.c.bf16 %v2414_v2, %v2412_v0  ;;  %v2003_v5 = vadd.f32 %v11729_v28, %v1664_v20  ;;  %v1516_v22 = vmax.f32 %v1450_v58, 0.0  ;;  %v1514_v2 = vmax.f32 %v1448_v30, 0.0  ;;  %v8805_v30 = vld [vmem:[%s16851_s2 + $0x2c0] sm:$0xf] }
 0x27f   : > { %v2098_v17 = vpop.f32.mrf.mxu1  ;;  %v2092_v42 = vadd.f32 %v11767_v33, %v2003_v5  ;;  %v11862_v20 = vpack.c.bf16 %v1516_v22, %v1514_v2 }
 0x281   : > { %v2352_v31 = vadd.f32 %v11674_v19, %v2092_v42  ;;  %v9970_v42 = vld [vmem:[%s16851_s2 + $0x2c4] sm:$0xf0] }
 0x282   : > { %v2014_v1 = vpop.f32.mrf.mxu0 }
 0x284   : > { %v1666_v41 = vpop.f32.mrf.mxu2 }
 0x285   : > { %v2005_v0 = vadd.f32 %v11755_v47, %v1666_v41  ;;  %v11858_v11 = vpop.f32.mrf.mxu3  ;;  %v2416_v47 = vmax.f32 %v2352_v31, 0.0 }
 0x287   : > { %v2094_v44 = vadd.f32 %v11788_v37, %v2005_v0  ;;  %v2101_v28 = vpop.f32.mrf.mxu1  ;;  %v8806_v0 = vor.u32 %v9970_v42, %v8805_v30 }
 0x289   : > { %v2354_v54 = vadd.f32 %v11674_v19, %v2094_v44  ;;  %8526 = vmatmul.msk.bf16.gmra.mxu2 %vm579_vm0, %v10510_v24  ;;  %2788 = vmatpush.bf16.msrb.mxu1 %v8806_v0 }
 0x28a   : > { %8543 = vmatmul.msk.bf16.gmra.mxu3 %vm579_vm0, %v10511_v26  ;;  %2140 = vmatmul.bf16.gmra.mxu1 %v11862_v20  ;;  %v2017_v41 = vpop.f32.mrf.mxu0 }
 0x28b   : > { %v2418_v33 = vmax.f32 %v2354_v54, 0.0 }
 0x28c   : > { %v1669_v32 = vpop.f32.mrf.mxu2 }
 0x28d   : > { %v11869_v15 = vpop.f32.mrf.mxu3  ;;  %2056 = vmatmul.bf16.gmra.mxu0 %v11609_v50  ;;  %v11872_v37 = vpack.c.bf16 %v2418_v33, %v2416_v47  ;;  %v2008_v40 = vadd.f32 %v11776_v10, %v1669_v32  ;;  %v10512_v47 = vld [vmem:[%s10689_s29 + $0x78] sm:$0xff] }
 0x28f   : > { %16926 = vst [vmem:[#allocation18_spill] sm:$0xff] %v11872_v37  ;;  %v2103_v5 = vpop.f32.mrf.mxu1  ;;  %v2097_v58 = vadd.f32 %v2096_v34, %v2008_v40 }
 0x291   : > { %v2356_v10 = vadd.f32 %v11674_v19, %v2097_v58 }
 0x292   : > { %v2019_v24 = vpop.f32.mrf.mxu0 }
 0x293   : > { %v2420_v32 = vmax.f32 %v2356_v10, 0.0 }
 0x294   : > { %v1671_v22 = vpop.f32.mrf.mxu2 }
 0x295   : > { %v2010_v2 = vadd.f32 %v11798_v29, %v1671_v22  ;;  %v11882_v31 = vpop.f32.mrf.mxu3 }
 0x296   : > { %16927 = vst [vmem:[#allocation19_spill] sm:$0xff] %v11882_v31 }
 0x297   : > { %v2099_v44 = vadd.f32 %v2098_v17, %v2010_v2  ;;  %v2106_v54 = vpop.f32.mrf.mxu1 }
 0x299   : > { %v2358_v34 = vadd.f32 %v11674_v19, %v2099_v44  ;;  %8527 = vmatmul.msk.bf16.gmra.mxu2 %vm579_vm0, %v10511_v26 }
 0x29a   : > { %8544 = vmatmul.msk.bf16.gmra.mxu3 %vm579_vm0, %v10512_v47  ;;  %2145 = vmatmul.bf16.gmra.mxu1 %v11654_v48  ;;  %v2022_v33 = vpop.f32.mrf.mxu0 }
 0x29b   : > { %v2422_v40 = vmax.f32 %v2358_v34, 0.0 }
 0x29c   : > { %v1674_v29 = vpop.f32.mrf.mxu2 }
 0x29d   : > { %v11890_v30 = vpop.f32.mrf.mxu3  ;;  %2704 = vmatmul.bf16.vlgmr.msrb.gmra.mxu0 %v11697_v60  ;;  %v11893_v58 = vpack.c.bf16 %v2422_v40, %v2420_v32  ;;  %v2013_v17 = vadd.f32 %v11830_v59, %v1674_v29 }
 0x29f   : > { %16928 = vst [vmem:[#allocation20_spill] sm:$0xff] %v11893_v58  ;;  %v2108_v42 = vpop.f32.mrf.mxu1  ;;  %v2102_v26 = vadd.f32 %v2101_v28, %v2013_v17 }
 0x2a1   : > { %v2360_v50 = vadd.f32 %v11674_v19, %v2102_v26 }
 0x2a2   : > { %v2024_v22 = vpop.f32.mrf.mxu0 }
 0x2a3   : > { %v2424_v40 = vmax.f32 %v2360_v50, 0.0 }
 0x2a4   : > { %v1676_v0 = vpop.f32.mrf.mxu2 }
 0x2a5   : > { %v2015_v2 = vadd.f32 %v2014_v1, %v1676_v0  ;;  %v11896_v44 = vpop.f32.mrf.mxu3 }
 0x2a7   : > { %v2104_v10 = vadd.f32 %v2103_v5, %v2015_v2  ;;  %v2111_v34 = vpop.f32.mrf.mxu1 }
 0x2a9   : > { %v2362_v31 = vadd.f32 %v11674_v19, %v2104_v10  ;;  %8528 = vmatmul.msk.bf16.gmra.mxu2 %vm579_vm0, %v10512_v47  ;;  %v8797_v47 = vld [vmem:[%s16851_s2 + $0x2b0] sm:$0xf] }
 0x2aa   : > { %2248 = vmatmul.bf16.vlgmr.msrb.gmra.mxu3 %v11342_v39  ;;  %v2027_v32 = vpop.f32.mrf.mxu0  ;;  %v9968_v39 = vld [vmem:[%s16851_s2 + $0x2b4] sm:$0xf0] }
 0x2ab   : > { %v2426_v59 = vmax.f32 %v2362_v31, 0.0  ;;  %v8798_v31 = vor.u32 %v9968_v39, %v8797_v47 }
 0x2ac   : > { %v1679_v29 = vpop.f32.mrf.mxu2 }
 0x2ad   : > { %v11902_v60 = vpop.f32.mrf.mxu3  ;;  %2709 = vmatmul.bf16.gmra.mxu0 %v11748_v13  ;;  %v11905_v1 = vpack.c.bf16 %v2426_v59, %v2424_v40  ;;  %v2018_v28 = vadd.f32 %v2017_v41, %v1679_v29  ;;  %2789 = vmatpush.bf16.msrb.mxu1 %v8798_v31  ;;  %v9959_v29 = vld [vmem:[%s16851_s2 + $0x274] sm:$0xf] }
 0x2af   : > { %16929 = vst [vmem:[#allocation21_spill] sm:$0xff] %v11905_v1  ;;  %v2113_v17 = vpop.f32.mrf.mxu1  ;;  %v2107_v26 = vadd.f32 %v2106_v54, %v2018_v28 }
 0x2b1   : > { %v2364_v10 = vadd.f32 %v11674_v19, %v2107_v26 }
 0x2b2   : > { %v2029_v5 = vpop.f32.mrf.mxu0 }
 0x2b3   : > { %v2428_v28 = vmax.f32 %v2364_v10, 0.0  ;;  %v8831_v10 = vld [vmem:[%s16851_s2 + $0x2f8] sm:$0xf0] }
 0x2b4   : > { %v1681_v50 = vpop.f32.mrf.mxu2 }
 0x2b5   : > { %v2020_v0 = vadd.f32 %v2019_v24, %v1681_v50  ;;  %v11913_v2 = vpop.f32.mrf.mxu3  ;;  %v8767_v24 = vld [vmem:[%s16851_s2 + $0x278] sm:$0xf0] }
 0x2b6   : > { %v8770_v26 = vor.u32 %v9959_v29, %v8767_v24 }
 0x2b7   : > { %v2109_v41 = vadd.f32 %v2108_v42, %v2020_v0  ;;  %v2116_v40 = vpop.f32.mrf.mxu1 }
 0x2b8   : > { %2874 = vmatpush.bf16.msrb.mxu2 %v8770_v26 }
 0x2b9   : > { %v2366_v54 = vadd.f32 %v11674_v19, %v2109_v41  ;;  %2159 = vmatmul.bf16.vlgmr.msra.gmra.mxu2 %v11100_v36  ;;  %v9975_v41 = vld [vmem:[%s16851_s2 + $0x2f4] sm:$0xf] }
 0x2ba   : > { %2253 = vmatmul.bf16.gmra.mxu3 %v11366_v35  ;;  %v11919_v59 = vpop.f32.mrf.mxu0  ;;  %v8834_v29 = vor.u32 %v9975_v41, %v8831_v10 }
 0x2bb   : > { %v2430_v42 = vmax.f32 %v2366_v54, 0.0 }
 0x2bc   : > { %v1684_v47 = vpop.f32.mrf.mxu2  ;;  %2963 = vmatpush.bf16.msra.mxu3 %v8834_v29 }
 0x2bd   : > { %v11927_v39 = vpop.f32.mrf.mxu3  ;;  %2714 = vmatmul.bf16.gmra.mxu0 %v11783_v53  ;;  %v11930_v36 = vpack.c.bf16 %v2430_v42, %v2428_v28  ;;  %v2023_v35 = vadd.f32 %v2022_v33, %v1684_v47 }
 0x2be   : > { %16930 = vst [vmem:[#allocation22_spill] sm:$0xff] %v11927_v39 }
 0x2bf   : > { %16931 = vst [vmem:[#allocation23_spill] sm:$0xff] %v11930_v36  ;;  %v2118_v50 = vpop.f32.mrf.mxu1  ;;  %v2112_v0 = vadd.f32 %v2111_v34, %v2023_v35 }
 0x2c1   : > { %v2368_v28 = vadd.f32 %v11674_v19, %v2112_v0 }
 0x2c2   : > { %v2034_v31 = vpop.f32.mrf.mxu0 }
 0x2c3   : > { %v2432_v47 = vmax.f32 %v2368_v28, 0.0 }
 0x2c4   : > { %v1686_v54 = vpop.f32.mrf.mxu2 }
 0x2c5   : > { %v2025_v24 = vadd.f32 %v2024_v22, %v1686_v54  ;;  %v11938_v39 = vpop.f32.mrf.mxu3 }
 0x2c7   : > { %v2114_v33 = vadd.f32 %v2113_v17, %v2025_v24  ;;  %v2121_v26 = vpop.f32.mrf.mxu1 }
 0x2c9   : > { %v2370_v34 = vadd.f32 %v11674_v19, %v2114_v33  ;;  %2164 = vmatmul.bf16.gmra.mxu2 %v11124_v9  ;;  %v8789_v9 = vld [vmem:[%s16851_s2 + $0x2a0] sm:$0xf] }
 0x2ca   : > { %2258 = vmatmul.bf16.gmra.mxu3 %v11403_v8  ;;  %v2037_v42 = vpop.f32.mrf.mxu0  ;;  %v9966_v8 = vld [vmem:[%s16851_s2 + $0x2a4] sm:$0xf0] }
 0x2cb   : > { %v2434_v35 = vmax.f32 %v2370_v34, 0.0  ;;  %v8790_v29 = vor.u32 %v9966_v8, %v8789_v9  ;;  %v9957_v34 = vld [vmem:[%s16851_s2 + $0x264] sm:$0xf] }
 0x2cc   : > { %v1689_v53 = vpop.f32.mrf.mxu2 }
 0x2cd   : > { %v11944_v13 = vpop.f32.mrf.mxu3  ;;  %2719 = vmatmul.bf16.gmra.mxu0 %v11849_v12  ;;  %v11947_v22 = vpack.c.bf16 %v2434_v35, %v2432_v47  ;;  %v2028_v41 = vadd.f32 %v2027_v32, %v1689_v53  ;;  %2790 = vmatpush.bf16.msrb.mxu1 %v8790_v29  ;;  %v9973_v29 = vld [vmem:[%s16851_s2 + $0x2e4] sm:$0xf] }
 0x2cf   : > { %16932 = vst [vmem:[#allocation24_spill] sm:$0xff] %v11947_v22  ;;  %v2123_v0 = vpop.f32.mrf.mxu1  ;;  %v2117_v10 = vadd.f32 %v2116_v40, %v2028_v41 }
 0x2d1   : > { %v2372_v33 = vadd.f32 %v11674_v19, %v2117_v10 }
 0x2d2   : > { %v2039_v17 = vpop.f32.mrf.mxu0 }
 0x2d3   : > { %v2436_v47 = vmax.f32 %v2372_v33, 0.0 }
 0x2d4   : > { %v1691_v54 = vpop.f32.mrf.mxu2 }
 0x2d5   : > { %v2030_v24 = vadd.f32 %v2029_v5, %v1691_v54  ;;  %v11955_v28 = vpop.f32.mrf.mxu3  ;;  %v8759_v5 = vld [vmem:[%s16851_s2 + $0x268] sm:$0xf0] }
 0x2d6   : > { %v8762_v35 = vor.u32 %v9957_v34, %v8759_v5 }
 0x2d7   : > { %v2119_v53 = vadd.f32 %v2118_v50, %v2030_v24  ;;  %v2126_v50 = vpop.f32.mrf.mxu1  ;;  %v8823_v24 = vld [vmem:[%s16851_s2 + $0x2e8] sm:$0xf0] }
 0x2d8   : > { %2875 = vmatpush.bf16.msrb.mxu2 %v8762_v35 }
 0x2d9   : > { %v2374_v32 = vadd.f32 %v11674_v19, %v2119_v53  ;;  %2169 = vmatmul.bf16.gmra.mxu2 %v11148_v45  ;;  %v8826_v53 = vor.u32 %v9973_v29, %v8823_v24 }
 0x2da   : > { %2263 = vmatmul.bf16.gmra.mxu3 %v11428_v43  ;;  %v11961_v40 = vpop.f32.mrf.mxu0 }
 0x2db   : > { %v2438_v41 = vmax.f32 %v2374_v32, 0.0  ;;  %v8901_v32 = vld [vmem:[%s16852_s3 + $0xb0] sm:$0xf]  ;;  %2964 = vmatpush.bf16.msra.mxu3 %v8826_v53 }
 0x2dc   : > { %v1694_v10 = vpop.f32.mrf.mxu2 }
 0x2dd   : > { %v11969_v9 = vpop.f32.mrf.mxu3  ;;  %2724 = vmatmul.bf16.gmra.mxu0 %v11872_v37  ;;  %v11972_v45 = vpack.c.bf16 %v2438_v41, %v2436_v47  ;;  %v2033_v43 = vadd.f32 %v11919_v59, %v1694_v10  ;;  %v10016_v59 = vld [vmem:[%s16852_s3 + $0xb4] sm:$0xf0] }
 0x2de   : > { %v8902_v5 = vor.u32 %v10016_v59, %v8901_v32 }
 0x2df   : > { %16933 = vst [vmem:[#allocation25_spill] sm:$0xff] %v11972_v45  ;;  %v2122_v54 = vadd.f32 %v2121_v26, %v2033_v43  ;;  %v2128_v47 = vpop.f32.mrf.mxu1 }
 0x2e0   : > { %3234 = vmatpush.bf16.msra.mxu0 %v8902_v5 }
 0x2e1   : > { %v2376_v35 = vadd.f32 %v11674_v19, %v2122_v54 }
 0x2e2   : > { %v2044_v8 = vpop.f32.mrf.mxu0 }
 0x2e3   : > { %v2440_v29 = vmax.f32 %v2376_v35, 0.0 }
 0x2e4   : > { %v1696_v33 = vpop.f32.mrf.mxu2 }
 0x2e5   : > { %v2035_v34 = vadd.f32 %v2034_v31, %v1696_v33  ;;  %v11987_v26 = vpop.f32.mrf.mxu3 }
 0x2e7   : > { %v2124_v41 = vadd.f32 %v2123_v0, %v2035_v34  ;;  %v2131_v54 = vpop.f32.mrf.mxu1 }
 0x2e9   : > { %v2378_v10 = vadd.f32 %v11674_v19, %v2124_v41  ;;  %2174 = vmatmul.bf16.gmra.mxu2 %v11178_v27  ;;  %v8781_v27 = vld [vmem:[%s16851_s2 + $0x290] sm:$0xf] }
 0x2ea   : > { %2268 = vmatmul.bf16.gmra.mxu3 %v11471_v62  ;;  %v2047_v43 = vpop.f32.mrf.mxu0  ;;  %v9964_v62 = vld [vmem:[%s16851_s2 + $0x294] sm:$0xf0] }
 0x2eb   : > { %v2442_v24 = vmax.f32 %v2378_v10, 0.0  ;;  %v8782_v34 = vor.u32 %v9964_v62, %v8781_v27  ;;  %v9955_v27 = vld [vmem:[%s16851_s2 + $0x254] sm:$0xf] }
 0x2ec   : > { %v1699_v37 = vpop.f32.mrf.mxu2 }
 0x2ed   : > { %v11993_v31 = vpop.f32.mrf.mxu3  ;;  %2729 = vmatmul.bf16.gmra.mxu0 %v11893_v58  ;;  %v11996_v33 = vpack.c.bf16 %v2442_v24, %v2440_v29  ;;  %v2038_v53 = vadd.f32 %v2037_v42, %v1699_v37  ;;  %2791 = vmatpush.bf16.msrb.mxu1 %v8782_v34  ;;  %v16938_v29 = vld [vmem:[#allocation9_spill] sm:$0xff] }
 0x2ee   : > { %16934 = vst [vmem:[#allocation26_spill] sm:$0xff] %v11993_v31 }
 0x2ef   : > { %16935 = vst [vmem:[#allocation27_spill] sm:$0xff] %v11996_v33  ;;  %v2127_v32 = vadd.f32 %v2126_v50, %v2038_v53  ;;  %v16937_v50 = vld [vmem:[#allocation2_spill] sm:$0xff]  ;;  %v2133_v10 = vpop.f32.mrf.mxu1 }
 0x2f1   : > { %v2380_v41 = vadd.f32 %v11674_v19, %v2127_v32 }
 0x2f2   : > { %v2049_v0 = vpop.f32.mrf.mxu0 }
 0x2f3   : > { %v2444_v53 = vmax.f32 %v2380_v41, 0.0 }
 0x2f4   : > { %v1701_v59 = vpop.f32.mrf.mxu2 }
 0x2f5   : > { %v2040_v5 = vadd.f32 %v2039_v17, %v1701_v59  ;;  %v12004_v35 = vpop.f32.mrf.mxu3  ;;  %v8751_v17 = vld [vmem:[%s16851_s2 + $0x258] sm:$0xf0] }
 0x2f6   : > { %16936 = vst [vmem:[#allocation28_spill] sm:$0xff] %v12004_v35 }
 0x2f7   : > { %v2129_v37 = vadd.f32 %v2128_v47, %v2040_v5  ;;  %v8754_v47 = vor.u32 %v9955_v27, %v8751_v17 }
 0x2f9   : > { %v2382_v42 = vadd.f32 %v11674_v19, %v2129_v37  ;;  %2179 = vmatmul.bf16.gmra.mxu2 %v16937_v50  ;;  %v9971_v50 = vld [vmem:[%s16851_s2 + $0x2d4] sm:$0xf] }
 0x2fa   : > { %2273 = vmatmul.bf16.gmra.mxu3 %v16938_v29  ;;  %v2052_v24 = vpop.f32.mrf.mxu0  ;;  %2876 = vmatpush.bf16.msrb.mxu2 %v8754_v47  ;;  %v2136_v29 = vpop.f32.mrf.mxu1 }
 0x2fb   : > { %v2446_v62 = vmax.f32 %v2382_v42, 0.0  ;;  %v8815_v42 = vld [vmem:[%s16851_s2 + $0x2d8] sm:$0xf0] }
 0x2fc   : > { %v1704_v32 = vpop.f32.mrf.mxu2  ;;  %v8818_v17 = vor.u32 %v9971_v50, %v8815_v42  ;;  %v8773_v42 = vld [vmem:[%s16851_s2 + $0x280] sm:$0xf] }
 0x2fd   : > { %v12016_v59 = vpop.f32.mrf.mxu3  ;;  %2734 = vmatmul.bf16.gmra.mxu0 %v11905_v1  ;;  %v12019_v34 = vpack.c.bf16 %v2446_v62, %v2444_v53  ;;  %v2043_v5 = vadd.f32 %v11961_v40, %v1704_v32  ;;  %v16940_v62 = vld [vmem:[#allocation3_spill] sm:$0xff]  ;;  %v16941_v32 = vld [vmem:[#allocation10_spill] sm:$0xff] }
 0x2fe   : > { %16939 = vst [vmem:[#allocation2_spill] sm:$0xff] %v12016_v59  ;;  %2965 = vmatpush.bf16.msra.mxu3 %v8818_v17 }
 0x2ff   : > { %v2132_v37 = vadd.f32 %v2131_v54, %v2043_v5 }
 0x301   : > { %v2384_v53 = vadd.f32 %v11674_v19, %v2132_v37 }
 0x302   : > { %v2054_v41 = vpop.f32.mrf.mxu0  ;;  %v2138_v50 = vpop.f32.mrf.mxu1 }
 0x303   : > { %v2448_v5 = vmax.f32 %v2384_v53, 0.0 }
 0x304   : > { %v1706_v27 = vpop.f32.mrf.mxu2 }
 0x305   : > { %v2045_v59 = vadd.f32 %v2044_v8, %v1706_v27  ;;  %v12028_v1 = vpop.f32.mrf.mxu3  ;;  %v9962_v27 = vld [vmem:[%s16851_s2 + $0x284] sm:$0xf0] }
 0x306   : > { %v8774_v53 = vor.u32 %v9962_v27, %v8773_v42 }
 0x307   : > { %v2134_v40 = vadd.f32 %v2133_v10, %v2045_v59 }
 0x308   : > { %2792 = vmatpush.bf16.msrb.mxu1 %v8774_v53 }
 0x309   : > { %v2386_v54 = vadd.f32 %v11674_v19, %v2134_v40  ;;  %2184 = vmatmul.bf16.gmra.mxu2 %v16940_v62 }
 0x30a   : > { %2278 = vmatmul.bf16.gmra.mxu3 %v16941_v32  ;;  %v12034_v47 = vpop.f32.mrf.mxu0 }
 0x30b   : > { %v2450_v58 = vmax.f32 %v2386_v54, 0.0 }
 0x30c   : > { %v1709_v35 = vpop.f32.mrf.mxu2 }
 0x30d   : > { %v12036_v31 = vpop.f32.mrf.mxu3  ;;  %2739 = vmatmul.bf16.gmra.mxu0 %v11930_v36  ;;  %v12039_v8 = vpack.c.bf16 %v2450_v58, %v2448_v5  ;;  %v2048_v37 = vadd.f32 %v2047_v43, %v1709_v35  ;;  %v2141_v43 = vpop.f32.mrf.mxu1 }
 0x30f   : > { %16942 = vst [vmem:[#allocation9_spill] sm:$0xff] %v12039_v8  ;;  %v2137_v59 = vadd.f32 %v2136_v29, %v2048_v37  ;;  %v16943_v29 = vld [vmem:[#allocation4_spill] sm:$0xff]  ;;  %v8743_v37 = vld [vmem:[%s16851_s2 + $0x248] sm:$0xf0] }
 0x311   : > { %v2388_v58 = vadd.f32 %v11674_v19, %v2137_v59 }
 0x312   : > { %v2059_v10 = vpop.f32.mrf.mxu0 }
 0x313   : > { %v2452_v5 = vmax.f32 %v2388_v58, 0.0 }
 0x314   : > { %v1711_v17 = vpop.f32.mrf.mxu2 }
 0x315   : > { %v2050_v40 = vadd.f32 %v2049_v0, %v1711_v17  ;;  %v12047_v54 = vpop.f32.mrf.mxu3  ;;  %v9953_v0 = vld [vmem:[%s16851_s2 + $0x244] sm:$0xf]  ;;  %v2143_v53 = vpop.f32.mrf.mxu1 }
 0x316   : > { %v8746_v42 = vor.u32 %v9953_v0, %v8743_v37 }
 0x317   : > { %v2139_v62 = vadd.f32 %v2138_v50, %v2050_v40 }
 0x318   : > { %2877 = vmatpush.bf16.msrb.mxu2 %v8746_v42 }
 0x319   : > { %v2390_v35 = vadd.f32 %v11674_v19, %v2139_v62  ;;  %2189 = vmatmul.bf16.gmra.mxu2 %v16943_v29  ;;  %v9969_v62 = vld [vmem:[%s16851_s2 + $0x2c4] sm:$0xf] }
 0x31a   : > { %2283 = vmatmul.bf16.gmra.mxu3 %v11562_v49  ;;  %v12053_v32 = vpop.f32.mrf.mxu0 }
 0x31b   : > { %v2454_v59 = vmax.f32 %v2390_v35, 0.0  ;;  %v8807_v35 = vld [vmem:[%s16851_s2 + $0x2c8] sm:$0xf0] }
 0x31c   : > { %v1714_v50 = vpop.f32.mrf.mxu2  ;;  %v8810_v0 = vor.u32 %v9969_v62, %v8807_v35  ;;  %v16946_v62 = vld [vmem:[#allocation5_spill] sm:$0xff] }
 0x31d   : > { %v12061_v27 = vpop.f32.mrf.mxu3  ;;  %2744 = vmatmul.bf16.gmra.mxu0 %v11947_v22  ;;  %v12064_v17 = vpack.c.bf16 %v2454_v59, %v2452_v5  ;;  %v2053_v49 = vadd.f32 %v2052_v24, %v1714_v50  ;;  %v8893_v5 = vld [vmem:[%s16852_s3 + $0xa0] sm:$0xf]  ;;  %v10014_v24 = vld [vmem:[%s16852_s3 + $0xa4] sm:$0xf0]  ;;  %v2146_v36 = vpop.f32.mrf.mxu1 }
 0x31e   : > { %16944 = vst [vmem:[#allocation3_spill] sm:$0xff] %v12061_v27  ;;  %v8894_v59 = vor.u32 %v10014_v24, %v8893_v5  ;;  %2966 = vmatpush.bf16.msra.mxu3 %v8810_v0  ;;  %v8903_v24 = vld [vmem:[%s16852_s3 + $0xb8] sm:$0xf0] }
 0x31f   : > { %16945 = vst [vmem:[#allocation10_spill] sm:$0xff] %v12064_v17  ;;  %v2142_v58 = vadd.f32 %v2141_v43, %v2053_v49 }
 0x320   : > { %3235 = vmatpush.bf16.msra.mxu0 %v8894_v59 }
 0x321   : > { %v2392_v50 = vadd.f32 %v11674_v19, %v2142_v58 }
 0x322   : > { %v12066_v40 = vpop.f32.mrf.mxu0 }
 0x323   : > { %v2456_v22 = vmax.f32 %v2392_v50, 0.0 }
 0x324   : > { %v1716_v29 = vpop.f32.mrf.mxu2 }
 0x325   : > { %v2055_v37 = vadd.f32 %v2054_v41, %v1716_v29  ;;  %v12080_v43 = vpop.f32.mrf.mxu3 }
 0x327   : > { %v2144_v42 = vadd.f32 %v2143_v53, %v2055_v37 }
 0x329   : > { %v2394_v49 = vadd.f32 %v11674_v19, %v2144_v42  ;;  %2194 = vmatmul.bf16.gmra.mxu2 %v16946_v62 }
 0x32a   : > { %2288 = vmatmul.bf16.gmra.mxu3 %v11601_v3  ;;  %v12086_v35 = vpop.f32.mrf.mxu0  ;;  %v10015_v3 = vld [vmem:[%s16852_s3 + $0xb4] sm:$0xf] }
 0x32b   : > { %v2458_v27 = vmax.f32 %v2394_v49, 0.0  ;;  %v8906_v59 = vor.u32 %v10015_v3, %v8903_v24  ;;  %v2148_v49 = vpop.f32.mrf.mxu1 }
 0x32c   : > { %v1719_v41 = vpop.f32.mrf.mxu2 }
 0x32d   : > { %v2249_v29 = vpop.f32.mrf.mxu3  ;;  %2749 = vmatmul.bf16.gmra.mxu0 %v11972_v45  ;;  %v12089_v0 = vpack.c.bf16 %v2458_v27, %v2456_v22  ;;  %v2058_v53 = vadd.f32 %v12034_v47, %v1719_v41  ;;  %3323 = vmatpush.bf16.msra.mxu1 %v8906_v59 }
 0x32f   : > { %16947 = vst [vmem:[#allocation4_spill] sm:$0xff] %v12089_v0  ;;  %v2147_v5 = vadd.f32 %v2146_v36, %v2058_v53  ;;  %v16948_v36 = vld [vmem:[#allocation6_spill] sm:$0xff]  ;;  %v9951_v53 = vld [vmem:[%s16851_s2 + $0x234] sm:$0xf] }
 0x331   : > { %v2396_v22 = vadd.f32 %v11674_v19, %v2147_v5 }
 0x332   : > { %v12092_v58 = vpop.f32.mrf.mxu0 }
 0x333   : > { %v2460_v41 = vmax.f32 %v2396_v22, 0.0  ;;  %v9967_v22 = vld [vmem:[%s16851_s2 + $0x2b4] sm:$0xf] }
 0x334   : > { %v1721_v37 = vpop.f32.mrf.mxu2 }
 0x335   : > { %v2060_v50 = vadd.f32 %v2059_v10, %v1721_v37  ;;  %v2251_v42 = vpop.f32.mrf.mxu3  ;;  %v8735_v10 = vld [vmem:[%s16851_s2 + $0x238] sm:$0xf0] }
 0x336   : > { %v8738_v24 = vor.u32 %v9951_v53, %v8735_v10 }
 0x337   : > { %v2149_v47 = vadd.f32 %v2148_v49, %v2060_v50  ;;  %v12119_v49 = vperm.slane %v11668_v4, 1 }
 0x338   : > { %2878 = vmatpush.bf16.msrb.mxu2 %v8738_v24 }
 0x339   : > { %v2398_v27 = vadd.f32 %v11674_v19, %v2149_v47  ;;  %2199 = vmatmul.bf16.gmra.mxu2 %v16948_v36  ;;  %v8799_v47 = vld [vmem:[%s16851_s2 + $0x2b8] sm:$0xf0] }
 0x33a   : > { %2293 = vmatmul.bf16.gmra.mxu3 %v11634_v52  ;;  %v12104_v62 = vpop.f32.mrf.mxu0  ;;  %v8802_v36 = vor.u32 %v9967_v22, %v8799_v47  ;;  %v16952_v47 = vld [vmem:[#allocation14_spill] sm:$0xff] }
 0x33b   : > { %v2462_v3 = vmax.f32 %v2398_v27, 0.0 }
 0x33c   : > { %v2160_v5 = vpop.f32.mrf.mxu2  ;;  %2967 = vmatpush.bf16.msra.mxu3 %v8802_v36 }
 0x33d   : > { %v2254_v37 = vpop.f32.mrf.mxu3  ;;  %2754 = vmatmul.bf16.gmra.mxu0 %v11996_v33  ;;  %v12113_v19 = vpack.c.bf16 %v2462_v3, %v2460_v41  ;;  %v2161_v52 = vadd.f32 %v2160_v5, %v11614_v21  ;;  %v16950_v41 = vld [vmem:[#allocation13_spill] sm:$0xff]  ;;  %v16951_v3 = vld [vmem:[#allocation7_spill] sm:$0xff] }
 0x33f   : > { %16949 = vst [vmem:[#allocation5_spill] sm:$0xff] %v12113_v19  ;;  %v2250_v50 = vadd.f32 %v2249_v29, %v2161_v52 }
 0x341   : > { %v2337_v21 = vadd.f32 %v12119_v49, %v2250_v50 }
 0x342   : > { %v12116_v59 = vpop.f32.mrf.mxu0 }
 0x343   : > { %v2401_v24 = vmax.f32 %v2337_v21, 0.0 }
 0x344   : > { %v2162_v27 = vpop.f32.mrf.mxu2 }
 0x345   : > { %v2163_v53 = vadd.f32 %v2162_v27, %v16950_v41  ;;  %v2256_v10 = vpop.f32.mrf.mxu3 }
 0x347   : > { %v2252_v29 = vadd.f32 %v2251_v42, %v2163_v53 }
 0x349   : > { %v2339_v4 = vadd.f32 %v12119_v49, %v2252_v29  ;;  %2204 = vmatmul.bf16.gmra.mxu2 %v16951_v3 }
 0x34a   : > { %2298 = vmatmul.bf16.gmra.mxu3 %v11686_v38  ;;  %v12132_v5 = vpop.f32.mrf.mxu0 }
 0x34b   : > { %v2403_v52 = vmax.f32 %v2339_v4, 0.0  ;;  %v16953_v4 = vld [vmem:[#allocation8_spill] sm:$0xff] }
 0x34c   : > { %v2165_v33 = vpop.f32.mrf.mxu2 }
 0x34d   : > { %v12134_v45 = vpack.c.bf16 %v2403_v52, %v2401_v24  ;;  %v2259_v22 = vpop.f32.mrf.mxu3  ;;  %2759 = vmatmul.bf16.gmra.mxu0 %v12019_v34  ;;  %v2166_v27 = vadd.f32 %v2165_v33, %v16952_v47 }
 0x34f   : > { %2793 = vmatmul.bf16.vlgmr.msrb.gmra.mxu1 %v12134_v45  ;;  %v2255_v50 = vadd.f32 %v2254_v37, %v2166_v27  ;;  %v9949_v37 = vld [vmem:[%s16851_s2 + $0x224] sm:$0xf] }
 0x351   : > { %v2341_v53 = vadd.f32 %v12119_v49, %v2255_v50 }
 0x352   : > { %v12139_v42 = vpop.f32.mrf.mxu0 }
 0x353   : > { %v2405_v33 = vmax.f32 %v2341_v53, 0.0  ;;  %v8791_v53 = vld [vmem:[%s16851_s2 + $0x2a8] sm:$0xf0] }
 0x354   : > { %v2167_v36 = vpop.f32.mrf.mxu2 }
 0x355   : > { %v2168_v38 = vadd.f32 %v2167_v36, %v11683_v6  ;;  %v2261_v41 = vpop.f32.mrf.mxu3  ;;  %v8727_v6 = vld [vmem:[%s16851_s2 + $0x228] sm:$0xf0] }
 0x357   : > { %v2257_v21 = vadd.f32 %v2256_v10, %v2168_v38  ;;  %v8730_v10 = vor.u32 %v9949_v37, %v8727_v6  ;;  %v9965_v38 = vld [vmem:[%s16851_s2 + $0x2a4] sm:$0xf] }
 0x359   : > { %v2343_v29 = vadd.f32 %v12119_v49, %v2257_v21  ;;  %2209 = vmatmul.bf16.gmra.mxu2 %v16953_v4  ;;  %v8885_v4 = vld [vmem:[%s16852_s3 + $0x90] sm:$0xf] }
 0x35a   : > { %2303 = vmatmul.bf16.gmra.mxu3 %v11722_v18  ;;  %v12146_v3 = vpop.f32.mrf.mxu0  ;;  %2879 = vmatpush.bf16.msrb.mxu2 %v8730_v10 }
 0x35b   : > { %v2407_v24 = vmax.f32 %v2343_v29, 0.0  ;;  %v8794_v29 = vor.u32 %v9965_v38, %v8791_v53 }
 0x35c   : > { %v2170_v52 = vpop.f32.mrf.mxu2 }
 0x35d   : > { %v2264_v47 = vpop.f32.mrf.mxu3  ;;  %2764 = vmatmul.bf16.gmra.mxu0 %v12039_v8  ;;  %v12155_v27 = vpack.c.bf16 %v2407_v24, %v2405_v33  ;;  %v2171_v18 = vadd.f32 %v2170_v52, %v11699_v25  ;;  %v10012_v25 = vld [vmem:[%s16852_s3 + $0x94] sm:$0xf0]  ;;  %2968 = vmatpush.bf16.msra.mxu3 %v8794_v29 }
 0x35e   : > { %v8886_v24 = vor.u32 %v10012_v25, %v8885_v4 }
 0x35f   : > { %2798 = vmatmul.bf16.gmra.mxu1 %v12155_v27  ;;  %v2260_v36 = vadd.f32 %v2259_v22, %v2171_v18 }
 0x360   : > { %3236 = vmatpush.bf16.msra.mxu0 %v8886_v24 }
 0x361   : > { %v2345_v37 = vadd.f32 %v12119_v49, %v2260_v36 }
 0x362   : > { %v12159_v50 = vpop.f32.mrf.mxu0 }
 0x363   : > { %v2409_v18 = vmax.f32 %v2345_v37, 0.0  ;;  %v10010_v37 = vld [vmem:[%s16852_s3 + $0x84] sm:$0xf0] }
 0x364   : > { %v2172_v21 = vpop.f32.mrf.mxu2 }
 0x365   : > { %v2173_v22 = vadd.f32 %v2172_v21, %v11717_v57  ;;  %v2266_v33 = vpop.f32.mrf.mxu3 }
 0x367   : > { %v2262_v6 = vadd.f32 %v2261_v41, %v2173_v22 }
 0x369   : > { %v2347_v52 = vadd.f32 %v12119_v49, %v2262_v6  ;;  %2214 = vmatmul.bf16.gmra.mxu2 %v11479_v14  ;;  %v10013_v14 = vld [vmem:[%s16852_s3 + $0xa4] sm:$0xf] }
 0x36a   : > { %2308 = vmatmul.bf16.gmra.mxu3 %v11769_v55  ;;  %v12178_v10 = vpop.f32.mrf.mxu0  ;;  %v8895_v55 = vld [vmem:[%s16852_s3 + $0xa8] sm:$0xf0] }
 0x36b   : > { %v2411_v38 = vmax.f32 %v2347_v52, 0.0  ;;  %v8898_v4 = vor.u32 %v10013_v14, %v8895_v55  ;;  %v9963_v55 = vld [vmem:[%s16851_s2 + $0x294] sm:$0xf] }
 0x36c   : > { %v2175_v53 = vpop.f32.mrf.mxu2 }
 0x36d   : > { %v2269_v8 = vpop.f32.mrf.mxu3  ;;  %2769 = vmatmul.bf16.gmra.mxu0 %v12064_v17  ;;  %v12181_v57 = vpack.c.bf16 %v2411_v38, %v2409_v18  ;;  %v2176_v36 = vadd.f32 %v2175_v53, %v11745_v63  ;;  %3324 = vmatpush.bf16.msra.mxu1 %v8898_v4  ;;  %v8719_v53 = vld [vmem:[%s16851_s2 + $0x218] sm:$0xf0] }
 0x36f   : > { %2803 = vmatmul.bf16.gmra.mxu1 %v12181_v57  ;;  %v2265_v21 = vadd.f32 %v2264_v47, %v2176_v36  ;;  %v8877_v47 = vld [vmem:[%s16852_s3 + $0x80] sm:$0xf] }
 0x370   : > { %v8878_v52 = vor.u32 %v10010_v37, %v8877_v47  ;;  %v8775_v47 = vld [vmem:[%s16851_s2 + $0x288] sm:$0xf0] }
 0x371   : > { %v2349_v63 = vadd.f32 %v12119_v49, %v2265_v21 }
 0x372   : > { %v12185_v41 = vpop.f32.mrf.mxu0  ;;  %3237 = vmatpush.bf16.msra.mxu0 %v8878_v52 }
 0x373   : > { %v2413_v18 = vmax.f32 %v2349_v63, 0.0 }
 0x374   : > { %v2177_v29 = vpop.f32.mrf.mxu2 }
 0x375   : > { %v2178_v25 = vadd.f32 %v2177_v29, %v11764_v46  ;;  %v2271_v22 = vpop.f32.mrf.mxu3  ;;  %v8783_v29 = vld [vmem:[%s16851_s2 + $0x298] sm:$0xf0] }
 0x376   : > { %v8786_v4 = vor.u32 %v9963_v55, %v8783_v29 }
 0x377   : > { %v2267_v24 = vadd.f32 %v2266_v33, %v2178_v25  ;;  %v9947_v33 = vld [vmem:[%s16851_s2 + $0x214] sm:$0xf] }
 0x378   : > { %v8722_v21 = vor.u32 %v9947_v33, %v8719_v53  ;;  %2969 = vmatpush.bf16.msra.mxu3 %v8786_v4  ;;  %v8711_v4 = vld [vmem:[%s16851_s2 + $0x208] sm:$0xf0] }
 0x379   : > { %v2351_v6 = vadd.f32 %v12119_v49, %v2267_v24  ;;  %2219 = vmatmul.bf16.gmra.mxu2 %v11516_v16 }
 0x37a   : > { %2313 = vmatmul.bf16.gmra.mxu3 %v11817_v56  ;;  %v12204_v46 = vpop.f32.mrf.mxu0  ;;  %2880 = vmatpush.bf16.msrb.mxu2 %v8722_v21 }
 0x37b   : > { %v2415_v38 = vmax.f32 %v2351_v6, 0.0 }
 0x37c   : > { %v2180_v36 = vpop.f32.mrf.mxu2 }
 0x37d   : > { %v2274_v14 = vpop.f32.mrf.mxu3  ;;  %2774 = vmatmul.bf16.gmra.mxu0 %v12089_v0  ;;  %v12213_v16 = vpack.c.bf16 %v2415_v38, %v2413_v18  ;;  %v2181_v56 = vadd.f32 %v2180_v36, %v11780_v51  ;;  %v9961_v51 = vld [vmem:[%s16851_s2 + $0x284] sm:$0xf]  ;;  %v12341_v0 = vld [vmem:[%s10689_s29 + $0x18] sm:$0xff] }
 0x37e   : > { %v8778_v52 = vor.u32 %v9961_v51, %v8775_v47  ;;  %16959 = vst [vmem:[#allocation6_spill] sm:$0xff] %v12341_v0 }
 0x37f   : > { %2808 = vmatmul.bf16.gmra.mxu1 %v12213_v16  ;;  %v2270_v63 = vadd.f32 %v2269_v8, %v2181_v56 }
 0x380   : > { %2970 = vmatpush.bf16.msra.mxu3 %v8778_v52 }
 0x381   : > { %v2353_v18 = vadd.f32 %v12119_v49, %v2270_v63 }
 0x382   : > { %v12223_v25 = vpop.f32.mrf.mxu0 }
 0x383   : > { %v2417_v53 = vmax.f32 %v2353_v18, 0.0 }
 0x384   : > { %v2182_v24 = vpop.f32.mrf.mxu2 }
 0x385   : > { %v2183_v37 = vadd.f32 %v2182_v24, %v11814_v61  ;;  %v2276_v6 = vpop.f32.mrf.mxu3 }
 0x387   : > { %v2272_v38 = vadd.f32 %v2271_v22, %v2183_v37  ;;  %v16954_v37 = vld [vmem:[#allocation11_spill] sm:$0xff] }
 0x389   : > { %v2355_v8 = vadd.f32 %v12119_v49, %v2272_v38  ;;  %2224 = vmatmul.bf16.gmra.mxu2 %v11547_v23 }
 0x38a   : > { %2318 = vmatmul.bf16.gmra.mxu3 %v11862_v20  ;;  %v12236_v33 = vpop.f32.mrf.mxu0  ;;  %v9945_v20 = vld [vmem:[%s16851_s2 + $0x204] sm:$0xf] }
 0x38b   : > { %v2419_v36 = vmax.f32 %v2355_v8, 0.0  ;;  %v8714_v51 = vor.u32 %v9945_v20, %v8711_v4 }
 0x38c   : > { %v2185_v21 = vpop.f32.mrf.mxu2 }
 0x38d   : > { %v2279_v56 = vpop.f32.mrf.mxu3  ;;  %2779 = vmatmul.bf16.gmra.mxu0 %v12113_v19  ;;  %v12239_v61 = vpack.c.bf16 %v2419_v36, %v2417_v53  ;;  %v2186_v55 = vadd.f32 %v2185_v21, %v11846_v7  ;;  %2881 = vmatpush.bf16.msrb.mxu2 %v8714_v51  ;;  %v12259_v36 = vld [vmem:[%s10689_s29] sm:$0xff] }
 0x38f   : > { %2813 = vmatmul.bf16.gmra.mxu1 %v12239_v61  ;;  %v2275_v29 = vadd.f32 %v2274_v14, %v2186_v55 }
 0x391   : > { %v2357_v7 = vadd.f32 %v12119_v49, %v2275_v29  ;;  %v16955_v29 = vld [vmem:[#allocation19_spill] sm:$0xff] }
 0x392   : > { %v12243_v22 = vpop.f32.mrf.mxu0 }
 0x393   : > { %v2421_v18 = vmax.f32 %v2357_v7, 0.0  ;;  %v16956_v7 = vld [vmem:[#allocation12_spill] sm:$0xff] }
 0x394   : > { %v2187_v23 = vpop.f32.mrf.mxu2 }
 0x395   : > { %v2188_v63 = vadd.f32 %v2187_v23, %v11858_v11  ;;  %v2281_v24 = vpop.f32.mrf.mxu3 }
 0x397   : > { %v2277_v47 = vadd.f32 %v2276_v6, %v2188_v63 }
 0x399   : > { %v2359_v14 = vadd.f32 %v12119_v49, %v2277_v47  ;;  %2229 = vmatmul.bf16.gmra.mxu2 %v16954_v37 }
 0x39a   : > { %2323 = vmatmul.bf16.gmra.mxu3 %v11654_v48  ;;  %v12256_v52 = vpop.f32.mrf.mxu0 }
 0x39b   : > { %v2423_v38 = vmax.f32 %v2359_v14, 0.0 }
 0x39c   : > { %v2190_v8 = vpop.f32.mrf.mxu2 }
 0x39d   : > { %v2284_v53 = vpop.f32.mrf.mxu3  ;;  %8907 = vmatmul.msk.bf16.vlgmr.msra.gmra.mxu0 %vm579_vm0, %v12259_v36  ;;  %v12263_v11 = vpack.c.bf16 %v2423_v38, %v2421_v18  ;;  %v2191_v6 = vadd.f32 %v2190_v8, %v11869_v15 }
 0x39f   : > { %2818 = vmatmul.bf16.gmra.mxu1 %v12263_v11  ;;  %v2280_v48 = vadd.f32 %v2279_v56, %v2191_v6  ;;  %v12277_v56 = vld [vmem:[%s10689_s29 + $0x8] sm:$0xff]  ;;  %v10011_v6 = vld [vmem:[%s16852_s3 + $0x94] sm:$0xf] }
 0x3a1   : > { %v2361_v4 = vadd.f32 %v12119_v49, %v2280_v48  ;;  %v8887_v48 = vld [vmem:[%s16852_s3 + $0x98] sm:$0xf0] }
 0x3a2   : > { %v12267_v21 = vpop.f32.mrf.mxu0 }
 0x3a3   : > { %v2425_v47 = vmax.f32 %v2361_v4, 0.0 }
 0x3a4   : > { %v2192_v55 = vpop.f32.mrf.mxu2 }
 0x3a5   : > { %v2193_v23 = vadd.f32 %v2192_v55, %v16955_v29  ;;  %v2286_v20 = vpop.f32.mrf.mxu3  ;;  %v8890_v29 = vor.u32 %v10011_v6, %v8887_v48  ;;  %v12307_v6 = vld [vmem:[%s10689_s29 + $0x10] sm:$0xff] }
 0x3a7   : > { %v2282_v63 = vadd.f32 %v2281_v24, %v2193_v23  ;;  %3325 = vmatpush.bf16.msra.mxu1 %v8890_v29 }
 0x3a9   : > { %v2363_v51 = vadd.f32 %v12119_v49, %v2282_v63  ;;  %2234 = vmatmul.bf16.gmra.mxu2 %v16956_v7 }
 0x3aa   : > { %2971 = vmatmul.bf16.vlgmr.msra.gmra.mxu3 %v12134_v45  ;;  %v12274_v15 = vpop.f32.mrf.mxu0 }
 0x3ab   : > { %v2427_v14 = vmax.f32 %v2363_v51, 0.0  ;;  %v16957_v51 = vld [vmem:[#allocation15_spill] sm:$0xff] }
 0x3ac   : > { %v2195_v37 = vpop.f32.mrf.mxu2 }
 0x3ad   : > { %v2289_v18 = vpop.f32.mrf.mxu3  ;;  %8908 = vmatmul.msk.bf16.gmra.mxu0 %vm579_vm0, %v12277_v56  ;;  %v12281_v38 = vpack.c.bf16 %v2427_v14, %v2425_v47  ;;  %v2196_v24 = vadd.f32 %v2195_v37, %v11890_v30  ;;  %v9992_v37 = vld [vmem:[%s16851_s2 + $0x374] sm:$0xf0] }
 0x3af   : > { %2823 = vmatmul.bf16.gmra.mxu1 %v12281_v38  ;;  %v2285_v45 = vadd.f32 %v2284_v53, %v2196_v24 }
 0x3b1   : > { %v2365_v30 = vadd.f32 %v12119_v49, %v2285_v45 }
 0x3b2   : > { %v12285_v8 = vpop.f32.mrf.mxu0 }
 0x3b3   : > { %v2429_v47 = vmax.f32 %v2365_v30, 0.0  ;;  %v10008_v30 = vld [vmem:[%s16851_s2 + $0x3f4] sm:$0xf0] }
 0x3b4   : > { %v2197_v55 = vpop.f32.mrf.mxu2 }
 0x3b5   : > { %v2198_v23 = vadd.f32 %v2197_v55, %v11896_v44  ;;  %v2291_v4 = vpop.f32.mrf.mxu3  ;;  %v8997_v44 = vld [vmem:[%s16851_s2 + $0x370] sm:$0xf] }
 0x3b7   : > { %v2287_v63 = vadd.f32 %v2286_v20, %v2198_v23  ;;  %v8998_v20 = vor.u32 %v9992_v37, %v8997_v44  ;;  %v9061_v23 = vld [vmem:[%s16851_s2 + $0x3f0] sm:$0xf] }
 0x3b9   : > { %v2367_v53 = vadd.f32 %v12119_v49, %v2287_v63  ;;  %2882 = vmatmul.bf16.vlgmr.msrb.gmra.mxu2 %v16957_v51  ;;  %v12326_v63 = vld [vmem:[%s16853_s4 + $0x3] ss:$8 sm:$0x3] }
 0x3ba   : > { %2976 = vmatmul.bf16.gmra.mxu3 %v12155_v27  ;;  %v12298_v7 = vpop.f32.mrf.mxu0  ;;  %3568 = vmatpush.bf16.msra.mxu2 %v8998_v20 }
 0x3bb   : > { %v2431_v14 = vmax.f32 %v2367_v53, 0.0 }
 0x3bc   : > { %v2200_v24 = vpop.f32.mrf.mxu2 }
 0x3bd   : > { %v2294_v45 = vpop.f32.mrf.mxu3  ;;  %8909 = vmatmul.msk.bf16.gmra.mxu0 %vm579_vm0, %v12307_v6  ;;  %v12311_v27 = vpack.c.bf16 %v2431_v14, %v2429_v47  ;;  %v2201_v48 = vadd.f32 %v2200_v24, %v11902_v60  ;;  %v9062_v60 = vor.u32 %v10008_v30, %v9061_v23  ;;  %v16958_v24 = vld [vmem:[#allocation16_spill] sm:$0xff] }
 0x3bf   : > { %2828 = vmatmul.bf16.gmra.mxu1 %v12311_v27  ;;  %v2290_v29 = vadd.f32 %v2289_v18, %v2201_v48  ;;  %3657 = vmatpush.bf16.msrb.mxu3 %v9062_v60  ;;  %v12330_v18 = vperm.slane %v12326_v63, 0 }
 0x3c1   : > { %v2369_v14 = vadd.f32 %v12119_v49, %v2290_v29  ;;  %v16960_v29 = vld [vmem:[#allocation22_spill] sm:$0xff] }
 0x3c2   : > { %v12315_v55 = vpop.f32.mrf.mxu0 }
 0x3c3   : > { %v2433_v48 = vmax.f32 %v2369_v14, 0.0 }
 0x3c4   : > { %v2202_v53 = vpop.f32.mrf.mxu2 }
 0x3c5   : > { %v2203_v51 = vadd.f32 %v2202_v53, %v11913_v2  ;;  %v2296_v47 = vpop.f32.mrf.mxu3  ;;  %v2706_v2 = vadd.f32 %v12053_v32, %v12330_v18  ;;  %v2708_v32 = vadd.f32 %v12066_v40, %v12330_v18 }
 0x3c7   : > { %v2292_v44 = vadd.f32 %v2291_v4, %v2203_v51 }
 0x3c9   : > { %v2371_v37 = vadd.f32 %v12119_v49, %v2292_v44  ;;  %2887 = vmatmul.bf16.gmra.mxu2 %v16958_v24 }
 0x3ca   : > { %2981 = vmatmul.bf16.gmra.mxu3 %v12181_v57  ;;  %v12336_v20 = vpop.f32.mrf.mxu0 }
 0x3cb   : > { %v2435_v23 = vmax.f32 %v2371_v37, 0.0 }
 0x3cc   : > { %v2205_v30 = vpop.f32.mrf.mxu2  ;;  %v2794_v53 = vpop.f32.mrf.mxu1 }
 0x3cd   : > { %v2299_v60 = vpop.f32.mrf.mxu3  ;;  %v2795_v19 = vadd.f32 %v2794_v53, %v2706_v2  ;;  %8910 = vmatmul.msk.bf16.gmra.mxu0 %vm579_vm0, %v12341_v0  ;;  %v12345_v4 = vpack.c.bf16 %v2435_v23, %v2433_v48  ;;  %v2206_v57 = vadd.f32 %v2205_v30, %v16960_v29 }
 0x3cf   : > { %2833 = vmatmul.bf16.gmra.mxu1 %v12345_v4  ;;  %v2295_v14 = vadd.f32 %v2294_v45, %v2206_v57  ;;  %v3052_v48 = vmax.f32 %v2795_v19, 0.0  ;;  %v8989_v19 = vld [vmem:[%s16851_s2 + $0x360] sm:$0xf] }
 0x3d1   : > { %v2373_v17 = vadd.f32 %v12119_v49, %v2295_v14 }
 0x3d2   : > { %v12349_v51 = vpop.f32.mrf.mxu0 }
 0x3d3   : > { %16961 = vst [vmem:[#allocation13_spill] sm:$0xff] %v12349_v51  ;;  %v16962_v51 = vld [vmem:[#allocation17_spill] sm:$0xff]  ;;  %v2437_v45 = vmax.f32 %v2373_v17, 0.0 }
 0x3d4   : > { %v2207_v44 = vpop.f32.mrf.mxu2  ;;  %v2796_v37 = vpop.f32.mrf.mxu1 }
 0x3d5   : > { %v2208_v24 = vadd.f32 %v2207_v44, %v11938_v39  ;;  %v2301_v2 = vpop.f32.mrf.mxu3  ;;  %v2797_v53 = vadd.f32 %v2796_v37, %v2708_v32  ;;  %v2711_v39 = vadd.f32 %v12086_v35, %v12330_v18  ;;  %v12371_v44 = vld [vmem:[%s10689_s29 + $0x20] sm:$0xff] }
 0x3d7   : > { %v2297_v23 = vadd.f32 %v2296_v47, %v2208_v24  ;;  %v3054_v0 = vmax.f32 %v2797_v53, 0.0  ;;  %v2713_v24 = vadd.f32 %v12092_v58, %v12330_v18  ;;  %v8999_v58 = vld [vmem:[%s16851_s2 + $0x378] sm:$0xf0] }
 0x3d9   : > { %v2375_v30 = vadd.f32 %v12119_v49, %v2297_v23  ;;  %v12356_v29 = vpack.c.bf16 %v3054_v0, %v3052_v48  ;;  %2892 = vmatmul.bf16.gmra.mxu2 %v16962_v51  ;;  %v9990_v0 = vld [vmem:[%s16851_s2 + $0x364] sm:$0xf0]  ;;  %v9053_v48 = vld [vmem:[%s16851_s2 + $0x3e0] sm:$0xf] }
 0x3da   : > { %2986 = vmatmul.bf16.gmra.mxu3 %v12213_v16  ;;  %v12360_v40 = vpop.f32.mrf.mxu0  ;;  %v8990_v51 = vor.u32 %v9990_v0, %v8989_v19  ;;  %v10006_v23 = vld [vmem:[%s16851_s2 + $0x3e4] sm:$0xf0] }
 0x3db   : > { %v2439_v57 = vmax.f32 %v2375_v30, 0.0 }
 0x3dc   : > { %v2210_v47 = vpop.f32.mrf.mxu2  ;;  %v2799_v32 = vpop.f32.mrf.mxu1  ;;  %3569 = vmatpush.bf16.msra.mxu2 %v8990_v51 }
 0x3dd   : > { %v2304_v14 = vpop.f32.mrf.mxu3  ;;  %v2800_v16 = vadd.f32 %v2799_v32, %v2711_v39  ;;  %8911 = vmatmul.msk.bf16.gmra.mxu0 %vm579_vm0, %v12371_v44  ;;  %v12375_v17 = vpack.c.bf16 %v2439_v57, %v2437_v45  ;;  %v2211_v35 = vadd.f32 %v2210_v47, %v11944_v13  ;;  %v9054_v45 = vor.u32 %v10006_v23, %v9053_v48  ;;  %v9991_v13 = vld [vmem:[%s16851_s2 + $0x374] sm:$0xf] }
 0x3de   : > { %v9002_v0 = vor.u32 %v9991_v13, %v8999_v58  ;;  %v12407_v13 = vld [vmem:[%s10689_s29 + $0x28] sm:$0xff] }
 0x3df   : > { %2838 = vmatmul.bf16.gmra.mxu1 %v12375_v17  ;;  %v2300_v53 = vadd.f32 %v2299_v60, %v2211_v35  ;;  %3658 = vmatpush.bf16.msrb.mxu3 %v9054_v45  ;;  %v3056_v32 = vmax.f32 %v2800_v16, 0.0 }
 0x3e0   : > { %3746 = vmatpush.bf16.msrb.mxu0 %v9002_v0  ;;  %v8879_v0 = vld [vmem:[%s16852_s3 + $0x88] sm:$0xf0] }
 0x3e1   : > { %v2377_v47 = vadd.f32 %v12119_v49, %v2300_v53 }
 0x3e2   : > { %v12379_v37 = vpop.f32.mrf.mxu0 }
 0x3e4   : > { %v2212_v30 = vpop.f32.mrf.mxu2  ;;  %v2801_v39 = vpop.f32.mrf.mxu1 }
 0x3e5   : > { %v2213_v60 = vadd.f32 %v2212_v30, %v11955_v28  ;;  %v2306_v57 = vpop.f32.mrf.mxu3  ;;  %v2802_v19 = vadd.f32 %v2801_v39, %v2713_v24  ;;  %v2716_v24 = vadd.f32 %v12104_v62, %v12330_v18  ;;  %v2441_v30 = vmax.f32 %v2377_v47, 0.0 }
 0x3e6   : > { %v2718_v62 = vadd.f32 %v12116_v59, %v12330_v18 }
 0x3e7   : > { %v2302_v51 = vadd.f32 %v2301_v2, %v2213_v60  ;;  %v3058_v35 = vmax.f32 %v2802_v19, 0.0  ;;  %v10009_v19 = vld [vmem:[%s16852_s3 + $0x84] sm:$0xf] }
 0x3e9   : > { %v2379_v48 = vadd.f32 %v12119_v49, %v2302_v51  ;;  %2897 = vmatmul.bf16.gmra.mxu2 %v11849_v12  ;;  %v12399_v23 = vpack.c.bf16 %v3058_v35, %v3056_v32  ;;  %v8882_v51 = vor.u32 %v10009_v19, %v8879_v0 }
 0x3ea   : > { %2991 = vmatmul.bf16.gmra.mxu3 %v12239_v61  ;;  %v12402_v28 = vpop.f32.mrf.mxu0 }
 0x3eb   : > { %v2443_v53 = vmax.f32 %v2379_v48, 0.0  ;;  %3326 = vmatpush.bf16.msra.mxu1 %v8882_v51  ;;  %v12443_v51 = vld [vmem:[%s10689_s29 + $0x30] sm:$0xff] }
 0x3ec   : > { %v2215_v16 = vpop.f32.mrf.mxu2  ;;  %v2804_v39 = vpop.f32.mrf.mxu1 }
 0x3ed   : > { %v2309_v2 = vpop.f32.mrf.mxu3  ;;  %v2805_v45 = vadd.f32 %v2804_v39, %v2716_v24  ;;  %8912 = vmatmul.msk.bf16.gmra.mxu0 %vm579_vm0, %v12407_v13  ;;  %v12411_v12 = vpack.c.bf16 %v2443_v53, %v2441_v30  ;;  %v2216_v61 = vadd.f32 %v2215_v16, %v11969_v9  ;;  %v16963_v16 = vld [vmem:[#allocation18_spill] sm:$0xff] }
 0x3ef   : > { %2843 = vmatmul.bf16.gmra.mxu1 %v12411_v12  ;;  %v2305_v60 = vadd.f32 %v2304_v14, %v2216_v61  ;;  %v3060_v59 = vmax.f32 %v2805_v45, 0.0  ;;  %v2721_v45 = vadd.f32 %v12132_v5, %v12330_v18 }
 0x3f1   : > { %v2381_v24 = vadd.f32 %v12119_v49, %v2305_v60 }
 0x3f2   : > { %v12415_v58 = vpop.f32.mrf.mxu0 }
 0x3f4   : > { %v2217_v47 = vpop.f32.mrf.mxu2  ;;  %v2806_v32 = vpop.f32.mrf.mxu1 }
 0x3f5   : > { %v2218_v9 = vadd.f32 %v2217_v47, %v11987_v26  ;;  %v2311_v35 = vpop.f32.mrf.mxu3  ;;  %v2807_v48 = vadd.f32 %v2806_v32, %v2718_v62  ;;  %v8981_v26 = vld [vmem:[%s16851_s2 + $0x350] sm:$0xf]  ;;  %v2445_v62 = vmax.f32 %v2381_v24, 0.0  ;;  %v2723_v24 = vadd.f32 %v12139_v42, %v12330_v18  ;;  %v8991_v42 = vld [vmem:[%s16851_s2 + $0x368] sm:$0xf0] }
 0x3f7   : > { %v2307_v14 = vadd.f32 %v2306_v57, %v2218_v9  ;;  %v3062_v30 = vmax.f32 %v2807_v48, 0.0  ;;  %v9988_v57 = vld [vmem:[%s16851_s2 + $0x354] sm:$0xf0]  ;;  %v16965_v48 = vld [vmem:[#allocation26_spill] sm:$0xff] }
 0x3f8   : > { %v8982_v19 = vor.u32 %v9988_v57, %v8981_v26 }
 0x3f9   : > { %v2383_v53 = vadd.f32 %v12119_v49, %v2307_v14  ;;  %2902 = vmatmul.bf16.gmra.mxu2 %v16963_v16  ;;  %v12429_v39 = vpack.c.bf16 %v3062_v30, %v3060_v59  ;;  %v9045_v30 = vld [vmem:[%s16851_s2 + $0x3d0] sm:$0xf] }
 0x3fa   : > { %2996 = vmatmul.bf16.gmra.mxu3 %v12263_v11  ;;  %v12432_v61 = vpop.f32.mrf.mxu0  ;;  %3570 = vmatpush.bf16.msra.mxu2 %v8982_v19 }
 0x3fb   : > { %16964 = vst [vmem:[#allocation7_spill] sm:$0xff] %v12429_v39  ;;  %v2447_v60 = vmax.f32 %v2383_v53, 0.0  ;;  %v10004_v53 = vld [vmem:[%s16851_s2 + $0x3d4] sm:$0xf0]  ;;  %v16968_v39 = vld [vmem:[#allocation20_spill] sm:$0xff] }
 0x3fc   : > { %v2220_v0 = vpop.f32.mrf.mxu2  ;;  %v2809_v47 = vpop.f32.mrf.mxu1  ;;  %v9046_v57 = vor.u32 %v10004_v53, %v9045_v30 }
 0x3fd   : > { %v2314_v32 = vpop.f32.mrf.mxu3  ;;  %v2810_v11 = vadd.f32 %v2809_v47, %v2721_v45  ;;  %8913 = vmatmul.msk.bf16.gmra.mxu0 %vm579_vm0, %v12443_v51  ;;  %v12447_v9 = vpack.c.bf16 %v2447_v60, %v2445_v62  ;;  %v2221_v59 = vadd.f32 %v2220_v0, %v16965_v48  ;;  %v9989_v45 = vld [vmem:[%s16851_s2 + $0x364] sm:$0xf] }
 0x3fe   : > { %v8994_v0 = vor.u32 %v9989_v45, %v8991_v42  ;;  %3659 = vmatpush.bf16.msrb.mxu3 %v9046_v57  ;;  %v12479_v42 = vld [vmem:[%s10689_s29 + $0x38] sm:$0xff] }
 0x3ff   : > { %2848 = vmatmul.bf16.gmra.mxu1 %v12447_v9  ;;  %v2310_v14 = vadd.f32 %v2309_v2, %v2221_v59  ;;  %v16967_v2 = vld [vmem:[#allocation28_spill] sm:$0xff]  ;;  %v3064_v48 = vmax.f32 %v2810_v11, 0.0 }
 0x400   : > { %3747 = vmatpush.bf16.msrb.mxu0 %v8994_v0 }
 0x401   : > { %v2385_v47 = vadd.f32 %v12119_v49, %v2310_v14 }
 0x402   : > { %v12451_v5 = vpop.f32.mrf.mxu0 }
 0x403   : > { %16966 = vst [vmem:[#allocation14_spill] sm:$0xff] %v12451_v5 }
 0x404   : > { %v2222_v16 = vpop.f32.mrf.mxu2  ;;  %v2811_v26 = vpop.f32.mrf.mxu1 }
 0x405   : > { %v2223_v62 = vadd.f32 %v2222_v16, %v16967_v2  ;;  %v2316_v60 = vpop.f32.mrf.mxu3  ;;  %v2812_v19 = vadd.f32 %v2811_v26, %v2723_v24  ;;  %v2726_v24 = vadd.f32 %v12146_v3, %v12330_v18  ;;  %v2449_v26 = vmax.f32 %v2385_v47, 0.0  ;;  %v16969_v2 = vld [vmem:[#allocation2_spill] sm:$0xff] }
 0x406   : > { %v2728_v3 = vadd.f32 %v12159_v50, %v12330_v18 }
 0x407   : > { %v2312_v59 = vadd.f32 %v2311_v35, %v2223_v62  ;;  %v3066_v30 = vmax.f32 %v2812_v19, 0.0 }
 0x409   : > { %v2387_v53 = vadd.f32 %v12119_v49, %v2312_v59  ;;  %2907 = vmatmul.bf16.gmra.mxu2 %v16968_v39  ;;  %v12471_v5 = vpack.c.bf16 %v3066_v30, %v3064_v48 }
 0x40a   : > { %3001 = vmatmul.bf16.gmra.mxu3 %v12281_v38  ;;  %v12474_v16 = vpop.f32.mrf.mxu0 }
 0x40b   : > { %v2451_v14 = vmax.f32 %v2387_v53, 0.0 }
 0x40c   : > { %v2225_v11 = vpop.f32.mrf.mxu2  ;;  %v2814_v57 = vpop.f32.mrf.mxu1 }
 0x40d   : > { %v2319_v35 = vpop.f32.mrf.mxu3  ;;  %v2815_v45 = vadd.f32 %v2814_v57, %v2726_v24  ;;  %8914 = vmatmul.msk.bf16.gmra.mxu0 %vm579_vm0, %v12479_v42  ;;  %v12483_v39 = vpack.c.bf16 %v2451_v14, %v2449_v26  ;;  %v2226_v38 = vadd.f32 %v2225_v11, %v16969_v2  ;;  %v16970_v57 = vld [vmem:[#allocation21_spill] sm:$0xff] }
 0x40f   : > { %2853 = vmatmul.bf16.gmra.mxu1 %v12483_v39  ;;  %v2315_v19 = vadd.f32 %v2314_v32, %v2226_v38  ;;  %v3068_v24 = vmax.f32 %v2815_v45, 0.0  ;;  %v9986_v32 = vld [vmem:[%s16851_s2 + $0x344] sm:$0xf0] }
 0x411   : > { %v2389_v53 = vadd.f32 %v12119_v49, %v2315_v19 }
 0x412   : > { %v12487_v62 = vpop.f32.mrf.mxu0 }
 0x413   : > { %v2453_v45 = vmax.f32 %v2389_v53, 0.0  ;;  %v10002_v53 = vld [vmem:[%s16851_s2 + $0x3c4] sm:$0xf0] }
 0x414   : > { %v2227_v0 = vpop.f32.mrf.mxu2  ;;  %v2816_v47 = vpop.f32.mrf.mxu1 }
 0x415   : > { %v2228_v48 = vadd.f32 %v2227_v0, %v12028_v1  ;;  %v2321_v59 = vpop.f32.mrf.mxu3  ;;  %v2817_v30 = vadd.f32 %v2816_v47, %v2728_v3  ;;  %v8973_v1 = vld [vmem:[%s16851_s2 + $0x340] sm:$0xf] }
 0x416   : > { %v8974_v3 = vor.u32 %v9986_v32, %v8973_v1 }
 0x417   : > { %v2317_v26 = vadd.f32 %v2316_v60, %v2228_v48  ;;  %v3070_v14 = vmax.f32 %v2817_v30, 0.0  ;;  %v2731_v60 = vadd.f32 %v12178_v10, %v12330_v18  ;;  %v12509_v48 = vld [vmem:[%s10689_s29 + $0x40] sm:$0xff] }
 0x418   : > { %3571 = vmatpush.bf16.msra.mxu2 %v8974_v3  ;;  %v9037_v10 = vld [vmem:[%s16851_s2 + $0x3c0] sm:$0xf] }
 0x419   : > { %v2391_v11 = vadd.f32 %v12119_v49, %v2317_v26  ;;  %2912 = vmatmul.bf16.gmra.mxu2 %v16970_v57  ;;  %v12495_v2 = vpack.c.bf16 %v3070_v14, %v3068_v24  ;;  %v9987_v26 = vld [vmem:[%s16851_s2 + $0x354] sm:$0xf]  ;;  %v2733_v57 = vadd.f32 %v12185_v41, %v12330_v18 }
 0x41a   : > { %3006 = vmatmul.bf16.gmra.mxu3 %v12311_v27  ;;  %v12498_v50 = vpop.f32.mrf.mxu0 }
 0x41b   : > { %16971 = vst [vmem:[#allocation8_spill] sm:$0xff] %v12495_v2  ;;  %v2455_v38 = vmax.f32 %v2391_v11, 0.0  ;;  %v9038_v11 = vor.u32 %v10002_v53, %v9037_v10  ;;  %v16974_v2 = vld [vmem:[#allocation23_spill] sm:$0xff] }
 0x41c   : > { %16972 = vst [vmem:[#allocation11_spill] sm:$0xff] %v12498_v50  ;;  %v2230_v19 = vpop.f32.mrf.mxu2  ;;  %v2819_v0 = vpop.f32.mrf.mxu1 }
 0x41d   : > { %v2324_v47 = vpop.f32.mrf.mxu3  ;;  %v2820_v27 = vadd.f32 %v2819_v0, %v2731_v60  ;;  %8915 = vmatmul.msk.bf16.gmra.mxu0 %vm579_vm0, %v12509_v48  ;;  %v12513_v30 = vpack.c.bf16 %v2455_v38, %v2453_v45  ;;  %v2231_v24 = vadd.f32 %v2230_v19, %v12036_v31  ;;  %v8983_v31 = vld [vmem:[%s16851_s2 + $0x358] sm:$0xf0]  ;;  %3660 = vmatpush.bf16.msrb.mxu3 %v9038_v11 }
 0x41e   : > { %v8986_v32 = vor.u32 %v9987_v26, %v8983_v31 }
 0x41f   : > { %2858 = vmatmul.bf16.gmra.mxu1 %v12513_v30  ;;  %v2320_v1 = vadd.f32 %v2319_v35, %v2231_v24  ;;  %v3072_v10 = vmax.f32 %v2820_v27, 0.0 }
 0x420   : > { %3748 = vmatpush.bf16.msrb.mxu0 %v8986_v32 }
 0x421   : > { %v2393_v0 = vadd.f32 %v12119_v49, %v2320_v1 }
 0x422   : > { %v12526_v14 = vpop.f32.mrf.mxu0 }
 0x423   : > { %16973 = vst [vmem:[#allocation19_spill] sm:$0xff] %v12526_v14  ;;  %v2457_v24 = vmax.f32 %v2393_v0, 0.0 }
 0x424   : > { %v2232_v60 = vpop.f32.mrf.mxu2  ;;  %v2821_v45 = vpop.f32.mrf.mxu1 }
 0x425   : > { %v2233_v38 = vadd.f32 %v2232_v60, %v12047_v54  ;;  %v2326_v3 = vpop.f32.mrf.mxu3  ;;  %v2822_v19 = vadd.f32 %v2821_v45, %v2733_v57  ;;  %v2736_v54 = vadd.f32 %v12204_v46, %v12330_v18  ;;  %v12545_v57 = vld [vmem:[%s10689_s29 + $0x48] sm:$0xff]  ;;  %v10007_v46 = vld [vmem:[%s16851_s2 + $0x3f4] sm:$0xf]  ;;  %v2738_v60 = vadd.f32 %v12223_v25, %v12330_v18 }
 0x426   : > { %v12570_v25 = vperm.slane %v12326_v63, 1 }
 0x427   : > { %v2322_v53 = vadd.f32 %v2321_v59, %v2233_v38  ;;  %v3074_v50 = vmax.f32 %v2822_v19, 0.0 }
 0x429   : > { %v2395_v14 = vadd.f32 %v12119_v49, %v2322_v53  ;;  %2917 = vmatmul.bf16.gmra.mxu2 %v16974_v2  ;;  %v12537_v41 = vpack.c.bf16 %v3074_v50, %v3072_v10  ;;  %v16976_v50 = vld [vmem:[#allocation3_spill] sm:$0xff] }
 0x42a   : > { %3011 = vmatmul.bf16.gmra.mxu3 %v12345_v4  ;;  %v12540_v35 = vpop.f32.mrf.mxu0 }
 0x42b   : > { %16975 = vst [vmem:[#allocation12_spill] sm:$0xff] %v12540_v35  ;;  %v2459_v26 = vmax.f32 %v2395_v14, 0.0  ;;  %v9063_v14 = vld [vmem:[%s16851_s2 + $0x3f8] sm:$0xf0] }
 0x42c   : > { %v2235_v11 = vpop.f32.mrf.mxu2  ;;  %v2824_v31 = vpop.f32.mrf.mxu1  ;;  %v9066_v32 = vor.u32 %v10007_v46, %v9063_v14 }
 0x42d   : > { %v2825_v27 = vadd.f32 %v2824_v31, %v2736_v54  ;;  %v2972_v59 = vpop.f32.mrf.mxu3  ;;  %8916 = vmatmul.msk.bf16.gmra.mxu0 %vm579_vm0, %v12545_v57  ;;  %v12549_v2 = vpack.c.bf16 %v2459_v26, %v2457_v24  ;;  %v2236_v4 = vadd.f32 %v2235_v11, %v16976_v50  ;;  %v16977_v50 = vld [vmem:[#allocation24_spill] sm:$0xff] }
 0x42e   : > { %3835 = vmatpush.bf16.msrb.mxu1 %v9066_v32 }
 0x42f   : > { %2863 = vmatmul.bf16.gmra.mxu1 %v12549_v2  ;;  %v2325_v45 = vadd.f32 %v2324_v47, %v2236_v4  ;;  %v3076_v24 = vmax.f32 %v2825_v27, 0.0  ;;  %v8965_v27 = vld [vmem:[%s16851_s2 + $0x330] sm:$0xf] }
 0x431   : > { %v2397_v54 = vadd.f32 %v12119_v49, %v2325_v45 }
 0x432   : > { %v12559_v1 = vpop.f32.mrf.mxu0 }
 0x433   : > { %v2461_v4 = vmax.f32 %v2397_v54, 0.0 }
 0x434   : > { %v2237_v38 = vpop.f32.mrf.mxu2  ;;  %v2826_v19 = vpop.f32.mrf.mxu1 }
 0x435   : > { %v2238_v0 = vadd.f32 %v2237_v38, %v12080_v43  ;;  %v2827_v10 = vadd.f32 %v2826_v19, %v2738_v60  ;;  %v12564_v53 = vpop.f32.mrf.mxu3  ;;  %v12587_v38 = vld [vmem:[%s10689_s29 + $0x50] sm:$0xff] }
 0x437   : > { %v2327_v26 = vadd.f32 %v2326_v3, %v2238_v0  ;;  %v3078_v11 = vmax.f32 %v2827_v10, 0.0  ;;  %v2741_v3 = vadd.f32 %v12236_v33, %v12330_v18  ;;  %v9029_v33 = vld [vmem:[%s16851_s2 + $0x3b0] sm:$0xf]  ;;  %v10000_v10 = vld [vmem:[%s16851_s2 + $0x3b4] sm:$0xf0] }
 0x439   : > { %v2399_v31 = vadd.f32 %v12119_v49, %v2327_v26  ;;  %2922 = vmatmul.bf16.gmra.mxu2 %v16977_v50  ;;  %v12572_v47 = vpack.c.bf16 %v3078_v11, %v3076_v24  ;;  %v9984_v49 = vld [vmem:[%s16851_s2 + $0x334] sm:$0xf0]  ;;  %v9030_v24 = vor.u32 %v10000_v10, %v9029_v33  ;;  %v9985_v26 = vld [vmem:[%s16851_s2 + $0x344] sm:$0xf]  ;;  %v2743_v11 = vadd.f32 %v12243_v22, %v12330_v18 }
 0x43a   : > { %3016 = vmatmul.bf16.gmra.mxu3 %v12375_v17  ;;  %v12575_v43 = vpop.f32.mrf.mxu0  ;;  %v8966_v46 = vor.u32 %v9984_v49, %v8965_v27  ;;  %v2746_v22 = vadd.f32 %v12256_v52, %v12330_v18  ;;  %v10005_v52 = vld [vmem:[%s16851_s2 + $0x3e4] sm:$0xf] }
 0x43b   : > { %16978 = vst [vmem:[#allocation15_spill] sm:$0xff] %v12575_v43  ;;  %v2463_v63 = vmax.f32 %v2399_v31, 0.0  ;;  %3661 = vmatpush.bf16.msrb.mxu3 %v9030_v24  ;;  %v2766_v43 = vadd.f32 %v12360_v40, %v12330_v18  ;;  %v10001_v40 = vld [vmem:[%s16851_s2 + $0x3c4] sm:$0xf] }
 0x43c   : > { %v2829_v14 = vpop.f32.mrf.mxu1  ;;  %v2883_v32 = vpop.f32.mrf.mxu2  ;;  %3572 = vmatpush.bf16.msra.mxu2 %v8966_v46  ;;  %v16980_v46 = vld [vmem:[#allocation25_spill] sm:$0xff] }
 0x43d   : > { %v2830_v60 = vadd.f32 %v2829_v14, %v2741_v3  ;;  %v2884_v17 = vadd.f32 %v2883_v32, %v12570_v25  ;;  %v2977_v45 = vpop.f32.mrf.mxu3  ;;  %8917 = vmatmul.msk.bf16.gmra.mxu0 %vm579_vm0, %v12587_v38  ;;  %v12591_v19 = vpack.c.bf16 %v2463_v63, %v2461_v4 }
 0x43f   : > { %v12593_v0 = vadd.f32 %v2972_v59, %v2884_v17  ;;  %2868 = vmatmul.bf16.gmra.mxu1 %v12591_v19  ;;  %v8975_v59 = vld [vmem:[%s16851_s2 + $0x348] sm:$0xf0]  ;;  %v3080_v4 = vmax.f32 %v2830_v60, 0.0 }
 0x440   : > { %v8978_v31 = vor.u32 %v9985_v26, %v8975_v59  ;;  %v12626_v59 = vld [vmem:[%s10689_s29 + $0x58] sm:$0xff] }
 0x442   : > { %v12602_v54 = vpop.f32.mrf.mxu0  ;;  %3749 = vmatpush.bf16.msrb.mxu0 %v8978_v31 }
 0x443   : > { %16979 = vst [vmem:[#allocation16_spill] sm:$0xff] %v12602_v54 }
 0x444   : > { %v2831_v50 = vpop.f32.mrf.mxu1  ;;  %v12612_v27 = vpop.f32.mrf.mxu2 }
 0x445   : > { %v2832_v49 = vadd.f32 %v2831_v50, %v2743_v11  ;;  %v12614_v3 = vpop.f32.mrf.mxu3  ;;  %v2748_v50 = vadd.f32 %v12267_v21, %v12330_v18  ;;  %v8957_v21 = vld [vmem:[%s16851_s2 + $0x320] sm:$0xf] }
 0x447   : > { %v3082_v63 = vmax.f32 %v2832_v49, 0.0 }
 0x449   : > { %2927 = vmatmul.bf16.gmra.mxu2 %v16980_v46  ;;  %v12617_v14 = vpack.c.bf16 %v3082_v63, %v3080_v4 }
 0x44a   : > { %3021 = vmatmul.bf16.gmra.mxu3 %v12411_v12  ;;  %v12620_v32 = vpop.f32.mrf.mxu0  ;;  %v9055_v12 = vld [vmem:[%s16851_s2 + $0x3e8] sm:$0xf0] }
 0x44b   : > { %16981 = vst [vmem:[#allocation22_spill] sm:$0xff] %v12620_v32  ;;  %v9058_v31 = vor.u32 %v10005_v52, %v9055_v12 }
 0x44c   : > { %v2834_v17 = vpop.f32.mrf.mxu1  ;;  %v2888_v33 = vpop.f32.mrf.mxu2 }
 0x44d   : > { %v2835_v10 = vadd.f32 %v2834_v17, %v2746_v22  ;;  %v2889_v24 = vadd.f32 %v2888_v33, %v12570_v25  ;;  %v2982_v26 = vpop.f32.mrf.mxu3  ;;  %8918 = vmatmul.msk.bf16.gmra.mxu0 %vm579_vm0, %v12626_v59  ;;  %3836 = vmatpush.bf16.msrb.mxu1 %v9058_v31  ;;  %v16983_v22 = vld [vmem:[#allocation27_spill] sm:$0xff] }
 0x44f   : > { %v12630_v60 = vadd.f32 %v2977_v45, %v2889_v24  ;;  %8923 = vmatmul.msk.bf16.vlgmr.msra.gmra.mxu1 %vm579_vm0, %v12259_v36  ;;  %v3084_v63 = vmax.f32 %v2835_v10, 0.0  ;;  %v9982_v24 = vld [vmem:[%s16851_s2 + $0x324] sm:$0xf0]  ;;  %v2751_v10 = vadd.f32 %v12274_v15, %v12330_v18  ;;  %v9021_v15 = vld [vmem:[%s16851_s2 + $0x3a0] sm:$0xf] }
 0x450   : > { %v8958_v52 = vor.u32 %v9982_v24, %v8957_v21  ;;  %v9983_v24 = vld [vmem:[%s16851_s2 + $0x334] sm:$0xf] }
 0x452   : > { %v12640_v11 = vpop.f32.mrf.mxu0  ;;  %3573 = vmatpush.bf16.msra.mxu2 %v8958_v52 }
 0x453   : > { %16982 = vst [vmem:[#allocation17_spill] sm:$0xff] %v12640_v11 }
 0x454   : > { %v2836_v49 = vpop.f32.mrf.mxu1  ;;  %v12644_v45 = vpop.f32.mrf.mxu2 }
 0x455   : > { %v2837_v4 = vadd.f32 %v2836_v49, %v2748_v50  ;;  %v12646_v36 = vpop.f32.mrf.mxu3 }
 0x457   : > { %v3086_v46 = vmax.f32 %v2837_v4, 0.0  ;;  %v12664_v4 = vld [vmem:[%s10689_s29 + $0x60] sm:$0xff] }
 0x459   : > { %2932 = vmatmul.bf16.gmra.mxu2 %v16983_v22  ;;  %v12649_v17 = vpack.c.bf16 %v3086_v46, %v3084_v63  ;;  %v9998_v46 = vld [vmem:[%s16851_s2 + $0x3a4] sm:$0xf0] }
 0x45a   : > { %3026 = vmatmul.bf16.gmra.mxu3 %v12447_v9  ;;  %v12652_v33 = vpop.f32.mrf.mxu0  ;;  %v9022_v21 = vor.u32 %v9998_v46, %v9021_v15 }
 0x45b   : > { %16984 = vst [vmem:[#allocation18_spill] sm:$0xff] %v12652_v33 }
 0x45c   : > { %v2839_v12 = vpop.f32.mrf.mxu1  ;;  %v2893_v31 = vpop.f32.mrf.mxu2  ;;  %3662 = vmatpush.bf16.msrb.mxu3 %v9022_v21 }
 0x45d   : > { %v2840_v50 = vadd.f32 %v2839_v12, %v2751_v10  ;;  %v2894_v49 = vadd.f32 %v2893_v31, %v12570_v25  ;;  %v2987_v9 = vpop.f32.mrf.mxu3  ;;  %8919 = vmatmul.msk.bf16.gmra.mxu0 %vm579_vm0, %v12664_v4 }
 0x45f   : > { %v12668_v63 = vadd.f32 %v2982_v26, %v2894_v49  ;;  %8924 = vmatmul.msk.bf16.gmra.mxu1 %vm579_vm0, %v12277_v56  ;;  %v8967_v26 = vld [vmem:[%s16851_s2 + $0x338] sm:$0xf0]  ;;  %v2753_v56 = vadd.f32 %v12285_v8, %v12330_v18  ;;  %v3088_v15 = vmax.f32 %v2840_v50, 0.0  ;;  %v2756_v8 = vadd.f32 %v12298_v7, %v12330_v18  ;;  %v9981_v7 = vld [vmem:[%s16851_s2 + $0x324] sm:$0xf] }
 0x460   : > { %v8970_v10 = vor.u32 %v9983_v24, %v8967_v26  ;;  %v10003_v50 = vld [vmem:[%s16851_s2 + $0x3d4] sm:$0xf] }
 0x462   : > { %v12678_v22 = vpop.f32.mrf.mxu0  ;;  %3750 = vmatpush.bf16.msrb.mxu0 %v8970_v10  ;;  %v12702_v10 = vld [vmem:[%s10689_s29 + $0x68] sm:$0xff] }
 0x463   : > { %16985 = vst [vmem:[#allocation26_spill] sm:$0xff] %v12678_v22 }
 0x464   : > { %v2841_v52 = vpop.f32.mrf.mxu1  ;;  %v12688_v12 = vpop.f32.mrf.mxu2 }
 0x465   : > { %v2842_v31 = vadd.f32 %v2841_v52, %v2753_v56  ;;  %v12690_v49 = vpop.f32.mrf.mxu3 }
 0x467   : > { %v3090_v46 = vmax.f32 %v2842_v31, 0.0 }
 0x469   : > { %2937 = vmatmul.bf16.gmra.mxu2 %v12019_v34  ;;  %v12693_v33 = vpack.c.bf16 %v3090_v46, %v3088_v15  ;;  %v2758_v46 = vadd.f32 %v12315_v55, %v12330_v18  ;;  %v9977_v55 = vld [vmem:[%s16851_s2 + $0x304] sm:$0xf] }
 0x46a   : > { %3031 = vmatmul.bf16.gmra.mxu3 %v12483_v39  ;;  %v12696_v22 = vpop.f32.mrf.mxu0  ;;  %v8959_v39 = vld [vmem:[%s16851_s2 + $0x328] sm:$0xf0] }
 0x46b   : > { %16986 = vst [vmem:[#allocation28_spill] sm:$0xff] %v12696_v22  ;;  %v8962_v31 = vor.u32 %v9981_v7, %v8959_v39 }
 0x46c   : > { %v2844_v24 = vpop.f32.mrf.mxu1  ;;  %v2898_v21 = vpop.f32.mrf.mxu2 }
 0x46d   : > { %v2845_v26 = vadd.f32 %v2844_v24, %v2756_v8  ;;  %v2899_v56 = vadd.f32 %v2898_v21, %v12570_v25  ;;  %v2992_v52 = vpop.f32.mrf.mxu3  ;;  %8920 = vmatmul.msk.bf16.gmra.mxu0 %vm579_vm0, %v12702_v10  ;;  %v9979_v21 = vld [vmem:[%s16851_s2 + $0x314] sm:$0xf] }
 0x46e   : > { %3751 = vmatpush.bf16.msrb.mxu0 %v8962_v31  ;;  %v8943_v31 = vld [vmem:[%s16851_s2 + $0x308] sm:$0xf0] }
 0x46f   : > { %v12706_v34 = vadd.f32 %v2987_v9, %v2899_v56  ;;  %8925 = vmatmul.msk.bf16.gmra.mxu1 %vm579_vm0, %v12307_v6  ;;  %v9047_v9 = vld [vmem:[%s16851_s2 + $0x3d8] sm:$0xf0] }
 0x470   : > { %v9050_v6 = vor.u32 %v10003_v50, %v9047_v9  ;;  %v8951_v56 = vld [vmem:[%s16851_s2 + $0x318] sm:$0xf0]  ;;  %v3092_v9 = vmax.f32 %v2845_v26, 0.0  ;;  %v8949_v26 = vld [vmem:[%s16851_s2 + $0x310] sm:$0xf] }
 0x471   : > { %v8954_v50 = vor.u32 %v9979_v21, %v8951_v56  ;;  %v2761_v21 = vadd.f32 %v12336_v20, %v12330_v18  ;;  %v9013_v20 = vld [vmem:[%s16851_s2 + $0x390] sm:$0xf] }
 0x472   : > { %v12722_v15 = vpop.f32.mrf.mxu0  ;;  %3837 = vmatpush.bf16.msrb.mxu1 %v9050_v6  ;;  %v16988_v6 = vld [vmem:[#allocation9_spill] sm:$0xff] }
 0x473   : > { %16987 = vst [vmem:[#allocation20_spill] sm:$0xff] %v12722_v15  ;;  %3752 = vmatpush.bf16.msrb.mxu0 %v8954_v50  ;;  %v8946_v15 = vor.u32 %v9977_v55, %v8943_v31  ;;  %v12758_v55 = vld [vmem:[%s10689_s29 + $0x70] sm:$0xff] }
 0x474   : > { %v2846_v8 = vpop.f32.mrf.mxu1  ;;  %v12726_v24 = vpop.f32.mrf.mxu2 }
 0x475   : > { %v2847_v7 = vadd.f32 %v2846_v8, %v2758_v46  ;;  %v12734_v39 = vpop.f32.mrf.mxu3  ;;  %v9980_v8 = vld [vmem:[%s16851_s2 + $0x314] sm:$0xf0] }
 0x476   : > { %v8950_v56 = vor.u32 %v9980_v8, %v8949_v26 }
 0x477   : > { %v3094_v22 = vmax.f32 %v2847_v7, 0.0  ;;  %3753 = vmatpush.bf16.msrb.mxu0 %v8946_v15  ;;  %v9996_v15 = vld [vmem:[%s16851_s2 + $0x394] sm:$0xf0] }
 0x478   : > { %3574 = vmatpush.bf16.msra.mxu2 %v8950_v56  ;;  %v9014_v26 = vor.u32 %v9996_v15, %v9013_v20 }
 0x479   : > { %2942 = vmatmul.bf16.gmra.mxu2 %v16988_v6  ;;  %v12743_v32 = vpack.c.bf16 %v3094_v22, %v3092_v9  ;;  %v16990_v6 = vld [vmem:[#allocation6_spill] sm:$0xff] }
 0x47a   : > { %3036 = vmatmul.bf16.gmra.mxu3 %v12513_v30  ;;  %v12746_v46 = vpop.f32.mrf.mxu0 }
 0x47b   : > { %16989 = vst [vmem:[#allocation2_spill] sm:$0xff] %v12746_v46  ;;  %3663 = vmatpush.bf16.msrb.mxu3 %v9014_v26  ;;  %v16993_v26 = vld [vmem:[#allocation10_spill] sm:$0xff] }
 0x47c   : > { %v2849_v7 = vpop.f32.mrf.mxu1  ;;  %v2903_v22 = vpop.f32.mrf.mxu2 }
 0x47d   : > { %v2850_v50 = vadd.f32 %v2849_v7, %v2761_v21  ;;  %v2904_v30 = vadd.f32 %v2903_v22, %v12570_v25  ;;  %v2997_v9 = vpop.f32.mrf.mxu3  ;;  %8921 = vmatmul.msk.bf16.gmra.mxu0 %vm579_vm0, %v12758_v55  ;;  %v16992_v21 = vld [vmem:[#allocation13_spill] sm:$0xff]  ;;  %v9005_v22 = vld [vmem:[%s16851_s2 + $0x380] sm:$0xf] }
 0x47e   : > { %v2763_v7 = vadd.f32 %v16992_v21, %v12330_v18 }
 0x47f   : > { %v12762_v31 = vadd.f32 %v2992_v52, %v2904_v30  ;;  %8926 = vmatmul.msk.bf16.gmra.mxu1 %vm579_vm0, %v16990_v6  ;;  %v9994_v30 = vld [vmem:[%s16851_s2 + $0x384] sm:$0xf0]  ;;  %v3096_v46 = vmax.f32 %v2850_v50, 0.0  ;;  %v12796_v50 = vld [vmem:[%s10689_s29 + $0x78] sm:$0xff] }
 0x480   : > { %v9006_v15 = vor.u32 %v9994_v30, %v9005_v22 }
 0x482   : > { %v12772_v8 = vpop.f32.mrf.mxu0  ;;  %3664 = vmatpush.bf16.msrb.mxu3 %v9006_v15 }
 0x483   : > { %16991 = vst [vmem:[#allocation21_spill] sm:$0xff] %v12772_v8 }
 0x484   : > { %v2851_v52 = vpop.f32.mrf.mxu1  ;;  %v12776_v56 = vpop.f32.mrf.mxu2 }
 0x485   : > { %v2852_v6 = vadd.f32 %v2851_v52, %v2763_v7  ;;  %v12784_v20 = vpop.f32.mrf.mxu3 }
 0x487   : > { %v3098_v8 = vmax.f32 %v2852_v6, 0.0 }
 0x489   : > { %2947 = vmatmul.bf16.gmra.mxu2 %v16993_v26  ;;  %v12787_v21 = vpack.c.bf16 %v3098_v8, %v3096_v46  ;;  %v2768_v8 = vadd.f32 %v12379_v37, %v12330_v18  ;;  %v16996_v37 = vld [vmem:[#allocation4_spill] sm:$0xff] }
 0x48a   : > { %3041 = vmatmul.bf16.gmra.mxu3 %v12549_v2  ;;  %v12790_v11 = vpop.f32.mrf.mxu0  ;;  %v9039_v2 = vld [vmem:[%s16851_s2 + $0x3c8] sm:$0xf0] }
 0x48b   : > { %16994 = vst [vmem:[#allocation23_spill] sm:$0xff] %v12790_v11  ;;  %v2771_v11 = vadd.f32 %v12402_v28, %v12330_v18  ;;  %v2773_v28 = vadd.f32 %v12415_v58, %v12330_v18 }
 0x48c   : > { %v2854_v54 = vpop.f32.mrf.mxu1  ;;  %v2908_v7 = vpop.f32.mrf.mxu2 }
 0x48d   : > { %v2855_v52 = vadd.f32 %v2854_v54, %v2766_v43  ;;  %v2909_v35 = vadd.f32 %v2908_v7, %v12570_v25  ;;  %v3002_v22 = vpop.f32.mrf.mxu3  ;;  %8922 = vmatmul.msk.bf16.gmra.mxu0 %vm579_vm0, %v12796_v50  ;;  %v9042_v54 = vor.u32 %v10001_v40, %v9039_v2 }
 0x48f   : > { %v12800_v46 = vadd.f32 %v2997_v9, %v2909_v35  ;;  %8927 = vmatmul.msk.bf16.gmra.mxu1 %vm579_vm0, %v12371_v44  ;;  %v8941_v44 = vld [vmem:[%s16851_s2 + $0x300] sm:$0xf]  ;;  %v9978_v9 = vld [vmem:[%s16851_s2 + $0x304] sm:$0xf0]  ;;  %v3100_v7 = vmax.f32 %v2855_v52, 0.0 }
 0x490   : > { %3838 = vmatpush.bf16.msrb.mxu1 %v9042_v54  ;;  %v8942_v26 = vor.u32 %v9978_v9, %v8941_v44 }
 0x492   : > { %v12810_v43 = vpop.f32.mrf.mxu0  ;;  %3575 = vmatpush.bf16.msra.mxu2 %v8942_v26 }
 0x493   : > { %16995 = vst [vmem:[#allocation3_spill] sm:$0xff] %v12810_v43 }
 0x494   : > { %v2856_v30 = vpop.f32.mrf.mxu1  ;;  %v12814_v35 = vpop.f32.mrf.mxu2 }
 0x495   : > { %v2857_v6 = vadd.f32 %v2856_v30, %v2768_v8  ;;  %v12822_v15 = vpop.f32.mrf.mxu3  ;;  %v2886_v8 = vadd.f32 %v12612_v27, %v12570_v25 }
 0x497   : > { %v3102_v40 = vmax.f32 %v2857_v6, 0.0 }
 0x499   : > { %2952 = vmatmul.bf16.gmra.mxu2 %v16996_v37  ;;  %v12825_v2 = vpack.c.bf16 %v3102_v40, %v3100_v7 }
 0x49a   : > { %3046 = vmatmul.bf16.gmra.mxu3 %v12591_v19  ;;  %v12828_v54 = vpop.f32.mrf.mxu0  ;;  %v2975_v19 = vadd.f32 %v12564_v53, %v2886_v8  ;;  %v2776_v8 = vadd.f32 %v12432_v61, %v12330_v18  ;;  %v9999_v61 = vld [vmem:[%s16851_s2 + $0x3b4] sm:$0xf] }
 0x49b   : > { %16997 = vst [vmem:[#allocation24_spill] sm:$0xff] %v12828_v54 }
 0x49c   : > { %v2859_v30 = vpop.f32.mrf.mxu1  ;;  %v2913_v43 = vpop.f32.mrf.mxu2  ;;  %v3055_v27 = vmax.f32 %v2975_v19, 0.0  ;;  %v2891_v19 = vadd.f32 %v12644_v45, %v12570_v25  ;;  %v9031_v45 = vld [vmem:[%s16851_s2 + $0x3b8] sm:$0xf0] }
 0x49d   : > { %v2860_v44 = vadd.f32 %v2859_v30, %v2771_v11  ;;  %v2914_v52 = vadd.f32 %v2913_v43, %v12570_v25  ;;  %v3007_v9 = vpop.f32.mrf.mxu3  ;;  %3754 = vmatmul.bf16.vlgmr.msrb.gmra.mxu0 %v12356_v29 }
 0x49f   : > { %v12836_v6 = vadd.f32 %v3002_v22, %v2914_v52  ;;  %8928 = vmatmul.msk.bf16.gmra.mxu1 %vm579_vm0, %v12407_v13  ;;  %v3053_v22 = vmax.f32 %v12593_v0, 0.0  ;;  %v3104_v37 = vmax.f32 %v2860_v44, 0.0  ;;  %v16999_v13 = vld [vmem:[#allocation5_spill] sm:$0xff] }
 0x4a1   : > { %v12850_v52 = vpack.c.bf16 %v3055_v27, %v3053_v22  ;;  %v2980_v22 = vadd.f32 %v12614_v3, %v2891_v19  ;;  %v3057_v19 = vmax.f32 %v12630_v60, 0.0  ;;  %v10032_v60 = vld [vmem:[%s16851_s2 + $0x474] sm:$0xf0] }
 0x4a2   : > { %v12841_v26 = vpop.f32.mrf.mxu0 }
 0x4a3   : > { %16998 = vst [vmem:[#allocation25_spill] sm:$0xff] %v12841_v26 }
 0x4a4   : > { %v2861_v7 = vpop.f32.mrf.mxu1  ;;  %v12845_v11 = vpop.f32.mrf.mxu2 }
 0x4a5   : > { %v2862_v43 = vadd.f32 %v2861_v7, %v2773_v28  ;;  %v12847_v40 = vpop.f32.mrf.mxu3 }
 0x4a7   : > { %v3106_v30 = vmax.f32 %v2862_v43, 0.0 }
 0x4a9   : > { %2957 = vmatmul.bf16.gmra.mxu2 %v16999_v13  ;;  %v12853_v53 = vpack.c.bf16 %v3106_v30, %v3104_v37  ;;  %v9034_v30 = vor.u32 %v9999_v61, %v9031_v45  ;;  %v17002_v13 = vld [vmem:[#allocation14_spill] sm:$0xff]  ;;  %v9159_v45 = vld [vmem:[%s16851_s2 + $0x470] sm:$0xf] }
 0x4aa   : > { %3665 = vmatmul.bf16.vlgmr.msrb.gmra.mxu3 %v12850_v52  ;;  %v12856_v58 = vpop.f32.mrf.mxu0 }
 0x4ab   : > { %17000 = vst [vmem:[#allocation27_spill] sm:$0xff] %v12856_v58  ;;  %3839 = vmatpush.bf16.msrb.mxu1 %v9034_v30  ;;  %v9160_v30 = vor.u32 %v10032_v60, %v9159_v45 }
 0x4ac   : > { %v2864_v28 = vpop.f32.mrf.mxu1  ;;  %v2918_v0 = vpop.f32.mrf.mxu2 }
 0x4ad   : > { %v2865_v44 = vadd.f32 %v2864_v28, %v2776_v8  ;;  %v2919_v27 = vadd.f32 %v2918_v0, %v12570_v25  ;;  %v3012_v7 = vpop.f32.mrf.mxu3  ;;  %3759 = vmatmul.bf16.gmra.mxu0 %v12399_v23  ;;  %v3059_v8 = vmax.f32 %v2980_v22, 0.0  ;;  %4291 = vmatpush.bf16.msrb.mxu2 %v9160_v30 }
 0x4af   : > { %v12864_v43 = vadd.f32 %v3007_v9, %v2919_v27  ;;  %8929 = vmatmul.msk.bf16.gmra.mxu1 %vm579_vm0, %v12443_v51  ;;  %v2778_v9 = vadd.f32 %v17002_v13, %v12330_v18  ;;  %v3108_v27 = vmax.f32 %v2865_v44, 0.0  ;;  %v12884_v54 = vpack.c.bf16 %v3059_v8, %v3057_v19 }
 0x4b0   : > { %v2781_v44 = vadd.f32 %v12474_v16, %v12330_v18 }
 0x4b2   : > { %v12875_v37 = vpop.f32.mrf.mxu0 }
 0x4b3   : > { %17001 = vst [vmem:[#allocation9_spill] sm:$0xff] %v12875_v37 }
 0x4b4   : > { %v2866_v28 = vpop.f32.mrf.mxu1  ;;  %v12879_v0 = vpop.f32.mrf.mxu2 }
 0x4b5   : > { %v2867_v51 = vadd.f32 %v2866_v28, %v2778_v9  ;;  %v12881_v3 = vpop.f32.mrf.mxu3 }
 0x4b7   : > { %v3110_v58 = vmax.f32 %v2867_v51, 0.0  ;;  %v17004_v51 = vld [vmem:[#allocation7_spill] sm:$0xff] }
 0x4b9   : > { %3576 = vmatmul.bf16.vlgmr.msra.gmra.mxu2 %v12356_v29  ;;  %v12887_v61 = vpack.c.bf16 %v3110_v58, %v3108_v27  ;;  %v2896_v29 = vadd.f32 %v12688_v12, %v12570_v25  ;;  %v9223_v12 = vld [vmem:[%s16851_s2 + $0x4f0] sm:$0xf]  ;;  %v10048_v27 = vld [vmem:[%s16851_s2 + $0x4f4] sm:$0xf0] }
 0x4ba   : > { %3670 = vmatmul.bf16.gmra.mxu3 %v12884_v54  ;;  %v12890_v22 = vpop.f32.mrf.mxu0  ;;  %v9224_v60 = vor.u32 %v10048_v27, %v9223_v12 }
 0x4bb   : > { %17003 = vst [vmem:[#allocation6_spill] sm:$0xff] %v12890_v22  ;;  %v2985_v16 = vadd.f32 %v12646_v36, %v2896_v29  ;;  %v3061_v29 = vmax.f32 %v12668_v63, 0.0 }
 0x4bc   : > { %v2869_v58 = vpop.f32.mrf.mxu1  ;;  %v2923_v13 = vpop.f32.mrf.mxu2  ;;  %4380 = vmatpush.bf16.msra.mxu3 %v9224_v60 }
 0x4bd   : > { %v2870_v9 = vadd.f32 %v2869_v58, %v2781_v44  ;;  %v2924_v8 = vadd.f32 %v2923_v13, %v12570_v25  ;;  %v3017_v28 = vpop.f32.mrf.mxu3  ;;  %3764 = vmatmul.bf16.gmra.mxu0 %v17004_v51  ;;  %v3063_v44 = vmax.f32 %v2985_v16, 0.0 }
 0x4bf   : > { %v12904_v19 = vadd.f32 %v3012_v7, %v2924_v8  ;;  %8930 = vmatmul.msk.bf16.gmra.mxu1 %vm579_vm0, %v12479_v42  ;;  %v2783_v7 = vadd.f32 %v12487_v62, %v12330_v18  ;;  %v3112_v13 = vmax.f32 %v2870_v9, 0.0  ;;  %v12924_v22 = vpack.c.bf16 %v3063_v44, %v3061_v29 }
 0x4c0   : > { %v2901_v62 = vadd.f32 %v12726_v24, %v12570_v25  ;;  %v9023_v24 = vld [vmem:[%s16851_s2 + $0x3a8] sm:$0xf0] }
 0x4c2   : > { %v12915_v45 = vpop.f32.mrf.mxu0 }
 0x4c3   : > { %17005 = vst [vmem:[#allocation13_spill] sm:$0xff] %v12915_v45 }
 0x4c4   : > { %v2871_v30 = vpop.f32.mrf.mxu1  ;;  %v12919_v58 = vpop.f32.mrf.mxu2 }
 0x4c5   : > { %v2872_v42 = vadd.f32 %v2871_v30, %v2783_v7  ;;  %v12921_v36 = vpop.f32.mrf.mxu3  ;;  %v9997_v7 = vld [vmem:[%s16851_s2 + $0x3a4] sm:$0xf] }
 0x4c6   : > { %v9026_v30 = vor.u32 %v9997_v7, %v9023_v24 }
 0x4c7   : > { %v3114_v8 = vmax.f32 %v2872_v42, 0.0 }
 0x4c8   : > { %3840 = vmatpush.bf16.msrb.mxu1 %v9026_v30  ;;  %v17009_v30 = vld [vmem:[#allocation8_spill] sm:$0xff] }
 0x4c9   : > { %3581 = vmatmul.bf16.gmra.mxu2 %v12399_v23  ;;  %v12927_v12 = vpack.c.bf16 %v3114_v8, %v3112_v13  ;;  %v2990_v23 = vadd.f32 %v12690_v49, %v2901_v62  ;;  %v3065_v49 = vmax.f32 %v12706_v34, 0.0  ;;  %v9151_v62 = vld [vmem:[%s16851_s2 + $0x460] sm:$0xf]  ;;  %v2906_v34 = vadd.f32 %v12776_v56, %v12570_v25 }
 0x4ca   : > { %3675 = vmatmul.bf16.gmra.mxu3 %v12924_v22  ;;  %v12930_v18 = vpop.f32.mrf.mxu0  ;;  %v9215_v56 = vld [vmem:[%s16851_s2 + $0x4e0] sm:$0xf] }
 0x4cb   : > { %17006 = vst [vmem:[#allocation10_spill] sm:$0xff] %v12930_v18  ;;  %v3067_v42 = vmax.f32 %v2990_v23, 0.0 }
 0x4cc   : > { %v2928_v16 = vpop.f32.mrf.mxu2  ;;  %v12934_v27 = vpop.f32.mrf.mxu1 }
 0x4cd   : > { %v2929_v63 = vadd.f32 %v2928_v16, %v12570_v25  ;;  %v3022_v9 = vpop.f32.mrf.mxu3  ;;  %3769 = vmatmul.bf16.gmra.mxu0 %v12471_v5  ;;  %v12958_v13 = vpack.c.bf16 %v3067_v42, %v3065_v49  ;;  %v10030_v16 = vld [vmem:[%s16851_s2 + $0x464] sm:$0xf0]  ;;  %v2995_v49 = vadd.f32 %v12734_v39, %v2906_v34 }
 0x4cf   : > { %v12938_v60 = vadd.f32 %v3017_v28, %v2929_v63  ;;  %8931 = vmatmul.msk.bf16.gmra.mxu1 %vm579_vm0, %v12509_v48  ;;  %v9152_v63 = vor.u32 %v10030_v16, %v9151_v62  ;;  %v10046_v62 = vld [vmem:[%s16851_s2 + $0x4e4] sm:$0xf0] }
 0x4d1   : > { %4292 = vmatpush.bf16.msrb.mxu2 %v9152_v63  ;;  %v3071_v63 = vmax.f32 %v2995_v49, 0.0  ;;  %v2911_v49 = vadd.f32 %v12814_v35, %v12570_v25  ;;  %v9015_v35 = vld [vmem:[%s16851_s2 + $0x398] sm:$0xf0] }
 0x4d2   : > { %v12949_v44 = vpop.f32.mrf.mxu0 }
 0x4d3   : > { %17007 = vst [vmem:[#allocation4_spill] sm:$0xff] %v12949_v44 }
 0x4d4   : > { %v12951_v29 = vpop.f32.mrf.mxu2  ;;  %v12953_v28 = vpop.f32.mrf.mxu1 }
 0x4d5   : > { %v12955_v48 = vpop.f32.mrf.mxu3 }
 0x4d9   : > { %3586 = vmatmul.bf16.gmra.mxu2 %v17004_v51 }
 0x4da   : > { %3680 = vmatmul.bf16.gmra.mxu3 %v12958_v13  ;;  %v12962_v8 = vpop.f32.mrf.mxu0 }
 0x4db   : > { %17008 = vst [vmem:[#allocation5_spill] sm:$0xff] %v12962_v8 }
 0x4dc   : > { %v2933_v23 = vpop.f32.mrf.mxu2  ;;  %v12972_v7 = vpop.f32.mrf.mxu1 }
 0x4dd   : > { %v2934_v51 = vadd.f32 %v2933_v23, %v12570_v25  ;;  %v3027_v24 = vpop.f32.mrf.mxu3  ;;  %3774 = vmatmul.bf16.gmra.mxu0 %v17009_v30  ;;  %v9216_v23 = vor.u32 %v10046_v62, %v9215_v56  ;;  %v3069_v56 = vmax.f32 %v12762_v31, 0.0 }
 0x4df   : > { %v12976_v42 = vadd.f32 %v3022_v9, %v2934_v51  ;;  %8932 = vmatmul.msk.bf16.gmra.mxu1 %vm579_vm0, %v12545_v57  ;;  %v10031_v9 = vld [vmem:[%s16851_s2 + $0x474] sm:$0xf]  ;;  %v9161_v57 = vld [vmem:[%s16851_s2 + $0x478] sm:$0xf0]  ;;  %4381 = vmatpush.bf16.msra.mxu3 %v9216_v23  ;;  %v13002_v62 = vpack.c.bf16 %v3071_v63, %v3069_v56 }
 0x4e0   : > { %v9164_v39 = vor.u32 %v10031_v9, %v9161_v57 }
 0x4e2   : > { %v12987_v16 = vpop.f32.mrf.mxu0  ;;  %4469 = vmatpush.bf16.msra.mxu0 %v9164_v39  ;;  %v9995_v39 = vld [vmem:[%s16851_s2 + $0x394] sm:$0xf] }
 0x4e3   : > { %17010 = vst [vmem:[#allocation14_spill] sm:$0xff] %v12987_v16  ;;  %v9018_v56 = vor.u32 %v9995_v39, %v9015_v35  ;;  %v10028_v39 = vld [vmem:[%s16851_s2 + $0x454] sm:$0xf0]  ;;  %v2916_v35 = vadd.f32 %v12845_v11, %v12570_v25  ;;  %v9207_v11 = vld [vmem:[%s16851_s2 + $0x4d0] sm:$0xf] }
 0x4e4   : > { %v12995_v34 = vpop.f32.mrf.mxu2  ;;  %v12997_v51 = vpop.f32.mrf.mxu1 }
 0x4e5   : > { %v12999_v8 = vpop.f32.mrf.mxu3  ;;  %3841 = vmatpush.bf16.msrb.mxu1 %v9018_v56 }
 0x4e9   : > { %3591 = vmatmul.bf16.gmra.mxu2 %v12471_v5  ;;  %v3000_v5 = vadd.f32 %v12784_v20, %v2911_v49  ;;  %v3073_v20 = vmax.f32 %v12800_v46, 0.0 }
 0x4ea   : > { %3685 = vmatmul.bf16.gmra.mxu3 %v13002_v62  ;;  %v13006_v16 = vpop.f32.mrf.mxu0 }
 0x4eb   : > { %17011 = vst [vmem:[#allocation7_spill] sm:$0xff] %v13006_v16 }
 0x4ec   : > { %v2938_v9 = vpop.f32.mrf.mxu2  ;;  %v13010_v57 = vpop.f32.mrf.mxu1 }
 0x4ed   : > { %v2939_v23 = vadd.f32 %v2938_v9, %v12570_v25  ;;  %v3032_v18 = vpop.f32.mrf.mxu3  ;;  %3779 = vmatmul.bf16.gmra.mxu0 %v12537_v41  ;;  %v3075_v9 = vmax.f32 %v3000_v5, 0.0  ;;  %v9143_v5 = vld [vmem:[%s16851_s2 + $0x450] sm:$0xf] }
 0x4ef   : > { %v13014_v31 = vadd.f32 %v3027_v24, %v2939_v23  ;;  %8933 = vmatmul.msk.bf16.gmra.mxu1 %vm579_vm0, %v12587_v38  ;;  %v13034_v49 = vpack.c.bf16 %v3075_v9, %v3073_v20  ;;  %v9144_v9 = vor.u32 %v10028_v39, %v9143_v5  ;;  %v10044_v5 = vld [vmem:[%s16851_s2 + $0x4d4] sm:$0xf0] }
 0x4f1   : > { %4293 = vmatpush.bf16.msrb.mxu2 %v9144_v9 }
 0x4f2   : > { %v13025_v63 = vpop.f32.mrf.mxu0 }
 0x4f3   : > { %17012 = vst [vmem:[#allocation8_spill] sm:$0xff] %v13025_v63  ;;  %v3005_v63 = vadd.f32 %v12822_v15, %v2916_v35 }
 0x4f4   : > { %v13027_v16 = vpop.f32.mrf.mxu2  ;;  %v13029_v24 = vpop.f32.mrf.mxu1 }
 0x4f5   : > { %v13031_v38 = vpop.f32.mrf.mxu3  ;;  %v3079_v35 = vmax.f32 %v3005_v63, 0.0  ;;  %v2921_v63 = vadd.f32 %v12879_v0, %v12570_v25  ;;  %v9007_v0 = vld [vmem:[%s16851_s2 + $0x388] sm:$0xf0] }
 0x4f9   : > { %3596 = vmatmul.bf16.gmra.mxu2 %v17009_v30 }
 0x4fa   : > { %3690 = vmatmul.bf16.gmra.mxu3 %v13034_v49  ;;  %v13038_v23 = vpop.f32.mrf.mxu0 }
 0x4fb   : > { %17013 = vst [vmem:[#allocation29_spill] sm:$0xff] %v13038_v23 }
 0x4fc   : > { %v2943_v46 = vpop.f32.mrf.mxu2  ;;  %v13048_v56 = vpop.f32.mrf.mxu1 }
 0x4fd   : > { %17014 = vst [vmem:[#allocation30_spill] sm:$0xff] %v13048_v56  ;;  %v2944_v30 = vadd.f32 %v2943_v46, %v12570_v25  ;;  %v3037_v20 = vpop.f32.mrf.mxu3  ;;  %3784 = vmatmul.bf16.gmra.mxu0 %v12572_v47  ;;  %v9208_v46 = vor.u32 %v10044_v5, %v9207_v11  ;;  %v3077_v11 = vmax.f32 %v12836_v6, 0.0 }
 0x4ff   : > { %v13052_v23 = vadd.f32 %v3032_v18, %v2944_v30  ;;  %8934 = vmatmul.msk.bf16.gmra.mxu1 %vm579_vm0, %v12626_v59  ;;  %v10029_v18 = vld [vmem:[%s16851_s2 + $0x464] sm:$0xf]  ;;  %v9153_v59 = vld [vmem:[%s16851_s2 + $0x468] sm:$0xf0]  ;;  %4382 = vmatpush.bf16.msra.mxu3 %v9208_v46  ;;  %v13078_v5 = vpack.c.bf16 %v3079_v35, %v3077_v11 }
 0x500   : > { %v9156_v15 = vor.u32 %v10029_v18, %v9153_v59 }
 0x502   : > { %v13063_v39 = vpop.f32.mrf.mxu0  ;;  %4470 = vmatpush.bf16.msra.mxu0 %v9156_v15  ;;  %v9993_v15 = vld [vmem:[%s16851_s2 + $0x384] sm:$0xf] }
 0x503   : > { %17015 = vst [vmem:[#allocation31_spill] sm:$0xff] %v13063_v39  ;;  %v9010_v11 = vor.u32 %v9993_v15, %v9007_v0  ;;  %v10026_v15 = vld [vmem:[%s16851_s2 + $0x444] sm:$0xf0]  ;;  %v2926_v0 = vadd.f32 %v12919_v58, %v12570_v25  ;;  %v9199_v58 = vld [vmem:[%s16851_s2 + $0x4c0] sm:$0xf] }
 0x504   : > { %v13071_v9 = vpop.f32.mrf.mxu2  ;;  %v13073_v30 = vpop.f32.mrf.mxu1 }
 0x505   : > { %17016 = vst [vmem:[#allocation32_spill] sm:$0xff] %v13073_v30  ;;  %v13075_v44 = vpop.f32.mrf.mxu3  ;;  %3842 = vmatpush.bf16.msrb.mxu1 %v9010_v11  ;;  %v3015_v37 = vadd.f32 %v12881_v3, %v2926_v0  ;;  %v9145_v0 = vld [vmem:[%s16851_s2 + $0x458] sm:$0xf0]  ;;  %v3093_v30 = vmax.f32 %v12976_v42, 0.0  ;;  %v10047_v42 = vld [vmem:[%s16851_s2 + $0x4f4] sm:$0xf] }
 0x509   : > { %3601 = vmatmul.bf16.gmra.mxu2 %v12537_v41  ;;  %v3010_v41 = vadd.f32 %v12847_v40, %v2921_v63  ;;  %v3081_v40 = vmax.f32 %v12864_v43, 0.0 }
 0x50a   : > { %3695 = vmatmul.bf16.gmra.mxu3 %v13078_v5  ;;  %v13082_v39 = vpop.f32.mrf.mxu0 }
 0x50b   : > { %17017 = vst [vmem:[#allocation33_spill] sm:$0xff] %v13082_v39 }
 0x50c   : > { %v2948_v18 = vpop.f32.mrf.mxu2  ;;  %v13086_v59 = vpop.f32.mrf.mxu1 }
 0x50d   : > { %17018 = vst [vmem:[#allocation34_spill] sm:$0xff] %v13086_v59  ;;  %v2949_v46 = vadd.f32 %v2948_v18, %v12570_v25  ;;  %v3042_v45 = vpop.f32.mrf.mxu3  ;;  %3789 = vmatmul.bf16.gmra.mxu0 %v12617_v14  ;;  %v3083_v18 = vmax.f32 %v3010_v41, 0.0  ;;  %v9135_v41 = vld [vmem:[%s16851_s2 + $0x440] sm:$0xf] }
 0x50f   : > { %v13090_v6 = vadd.f32 %v3037_v20, %v2949_v46  ;;  %8935 = vmatmul.msk.bf16.gmra.mxu1 %vm579_vm0, %v12664_v4  ;;  %v13110_v63 = vpack.c.bf16 %v3083_v18, %v3081_v40  ;;  %v9136_v18 = vor.u32 %v10026_v15, %v9135_v41  ;;  %v10042_v41 = vld [vmem:[%s16851_s2 + $0x4c4] sm:$0xf0]  ;;  %v3087_v15 = vmax.f32 %v3015_v37, 0.0 }
 0x510   : > { %v9200_v3 = vor.u32 %v10042_v41, %v9199_v58  ;;  %v2931_v58 = vadd.f32 %v12951_v29, %v12570_v25 }
 0x511   : > { %4294 = vmatpush.bf16.msrb.mxu2 %v9136_v18 }
 0x512   : > { %v13101_v35 = vpop.f32.mrf.mxu0  ;;  %4383 = vmatpush.bf16.msra.mxu3 %v9200_v3 }
 0x513   : > { %17019 = vst [vmem:[#allocation35_spill] sm:$0xff] %v13101_v35 }
 0x514   : > { %v13103_v39 = vpop.f32.mrf.mxu2  ;;  %v13105_v20 = vpop.f32.mrf.mxu1 }
 0x515   : > { %17020 = vst [vmem:[#allocation36_spill] sm:$0xff] %v13105_v20  ;;  %v13107_v4 = vpop.f32.mrf.mxu3 }
 0x519   : > { %3606 = vmatmul.bf16.gmra.mxu2 %v12572_v47 }
 0x51a   : > { %3700 = vmatmul.bf16.gmra.mxu3 %v13110_v63  ;;  %v13114_v46 = vpop.f32.mrf.mxu0 }
 0x51c   : > { %v2953_v43 = vpop.f32.mrf.mxu2  ;;  %v13124_v11 = vpop.f32.mrf.mxu1 }
 0x51d   : > { %17021 = vst [vmem:[#allocation37_spill] sm:$0xff] %v13124_v11  ;;  %v2954_v47 = vadd.f32 %v2953_v43, %v12570_v25  ;;  %v3047_v40 = vpop.f32.mrf.mxu3  ;;  %3794 = vmatmul.bf16.gmra.mxu0 %v12649_v17  ;;  %v3085_v11 = vmax.f32 %v12904_v19, 0.0 }
 0x51f   : > { %v13128_v35 = vadd.f32 %v3042_v45, %v2954_v47  ;;  %8936 = vmatmul.msk.bf16.gmra.mxu1 %vm579_vm0, %v12702_v10  ;;  %v10027_v45 = vld [vmem:[%s16851_s2 + $0x454] sm:$0xf]  ;;  %v13154_v59 = vpack.c.bf16 %v3087_v15, %v3085_v11 }
 0x520   : > { %v9148_v47 = vor.u32 %v10027_v45, %v9145_v0 }
 0x522   : > { %v13133_v20 = vpop.f32.mrf.mxu0  ;;  %4471 = vmatpush.bf16.msra.mxu0 %v9148_v47 }
 0x524   : > { %v13144_v43 = vpop.f32.mrf.mxu2  ;;  %v13146_v10 = vpop.f32.mrf.mxu1 }
 0x525   : > { %17022 = vst [vmem:[#allocation38_spill] sm:$0xff] %v13146_v10  ;;  %v13151_v18 = vpop.f32.mrf.mxu3 }
 0x529   : > { %3611 = vmatmul.bf16.gmra.mxu2 %v12617_v14  ;;  %v3020_v14 = vadd.f32 %v12921_v36, %v2931_v58  ;;  %v9127_v36 = vld [vmem:[%s16851_s2 + $0x430] sm:$0xf]  ;;  %v2936_v58 = vadd.f32 %v12995_v34, %v12570_v25 }
 0x52a   : > { %3705 = vmatmul.bf16.gmra.mxu3 %v13154_v59  ;;  %v13158_v37 = vpop.f32.mrf.mxu0  ;;  %v9191_v34 = vld [vmem:[%s16851_s2 + $0x4b0] sm:$0xf] }
 0x52b   : > { %v3091_v15 = vmax.f32 %v3020_v14, 0.0 }
 0x52c   : > { %v2958_v41 = vpop.f32.mrf.mxu2  ;;  %v13162_v10 = vpop.f32.mrf.mxu1 }
 0x52d   : > { %17023 = vst [vmem:[#allocation39_spill] sm:$0xff] %v13162_v10  ;;  %v2959_v45 = vadd.f32 %v2958_v41, %v12570_v25  ;;  %v13165_v0 = vpop.f32.mrf.mxu3  ;;  %3799 = vmatmul.bf16.gmra.mxu0 %v12693_v33  ;;  %v3089_v41 = vmax.f32 %v12938_v60, 0.0 }
 0x52f   : > { %v13168_v19 = vadd.f32 %v3047_v40, %v2959_v45  ;;  %8937 = vmatmul.msk.bf16.gmra.mxu1 %vm579_vm0, %v12758_v55  ;;  %v13182_v10 = vpack.c.bf16 %v3091_v15, %v3089_v41  ;;  %v10024_v40 = vld [vmem:[%s16851_s2 + $0x434] sm:$0xf0]  ;;  %v3025_v15 = vadd.f32 %v12955_v48, %v2936_v58  ;;  %v9137_v48 = vld [vmem:[%s16851_s2 + $0x448] sm:$0xf0] }
 0x532   : > { %v13173_v11 = vpop.f32.mrf.mxu0 }
 0x534   : > { %v13175_v29 = vpop.f32.mrf.mxu2  ;;  %v13177_v3 = vpop.f32.mrf.mxu1 }
 0x535   : > { %17024 = vst [vmem:[#allocation40_spill] sm:$0xff] %v13177_v3  ;;  %v13179_v47 = vpop.f32.mrf.mxu3 }
 0x539   : > { %3616 = vmatmul.bf16.gmra.mxu2 %v12649_v17  ;;  %v9128_v17 = vor.u32 %v10024_v40, %v9127_v36  ;;  %v10040_v36 = vld [vmem:[%s16851_s2 + $0x4b4] sm:$0xf0]  ;;  %v3095_v40 = vmax.f32 %v3025_v15, 0.0 }
 0x53a   : > { %3710 = vmatmul.bf16.gmra.mxu3 %v13182_v10  ;;  %v13186_v55 = vpop.f32.mrf.mxu0 }
 0x53b   : > { %4295 = vmatpush.bf16.msrb.mxu2 %v9128_v17  ;;  %v9192_v17 = vor.u32 %v10040_v36, %v9191_v34  ;;  %v13227_v15 = vpack.c.bf16 %v3095_v40, %v3093_v30  ;;  %v2941_v36 = vadd.f32 %v13027_v16, %v12570_v25  ;;  %v9225_v16 = vld [vmem:[%s16851_s2 + $0x4f8] sm:$0xf0] }
 0x53c   : > { %v13196_v60 = vpop.f32.mrf.mxu1  ;;  %v13198_v45 = vpop.f32.mrf.mxu2 }
 0x53d   : > { %17025 = vst [vmem:[#allocation41_spill] sm:$0xff] %v13196_v60  ;;  %v13200_v14 = vpop.f32.mrf.mxu3  ;;  %3804 = vmatmul.bf16.gmra.mxu0 %v12743_v32  ;;  %4384 = vmatpush.bf16.msra.mxu3 %v9192_v17 }
 0x53f   : > { %8938 = vmatmul.msk.bf16.gmra.mxu1 %vm579_vm0, %v12796_v50  ;;  %v10025_v50 = vld [vmem:[%s16851_s2 + $0x444] sm:$0xf] }
 0x540   : > { %v9140_v26 = vor.u32 %v10025_v50, %v9137_v48  ;;  %v9228_v48 = vor.u32 %v10047_v42, %v9225_v16  ;;  %v10022_v42 = vld [vmem:[%s16851_s2 + $0x424] sm:$0xf0] }
 0x542   : > { %v13206_v41 = vpop.f32.mrf.mxu0  ;;  %4472 = vmatpush.bf16.msra.mxu0 %v9140_v26  ;;  %v3030_v26 = vadd.f32 %v12999_v8, %v2941_v36  ;;  %4558 = vmatpush.bf16.msra.mxu1 %v9228_v48 }
 0x544   : > { %v13214_v60 = vpop.f32.mrf.mxu1  ;;  %v13216_v3 = vpop.f32.mrf.mxu2  ;;  %v3099_v30 = vmax.f32 %v3030_v26, 0.0  ;;  %v9119_v26 = vld [vmem:[%s16851_s2 + $0x420] sm:$0xf] }
 0x545   : > { %17026 = vst [vmem:[#allocation42_spill] sm:$0xff] %v13214_v60  ;;  %v13224_v58 = vpop.f32.mrf.mxu3 }
 0x549   : > { %3621 = vmatmul.bf16.gmra.mxu2 %v12693_v33 }
 0x54a   : > { %3715 = vmatmul.bf16.gmra.mxu3 %v13227_v15  ;;  %v13231_v34 = vpop.f32.mrf.mxu0 }
 0x54c   : > { %v13235_v60 = vpop.f32.mrf.mxu1  ;;  %v13237_v56 = vpop.f32.mrf.mxu2 }
 0x54d   : > { %17027 = vst [vmem:[#allocation43_spill] sm:$0xff] %v13235_v60  ;;  %v13239_v50 = vpop.f32.mrf.mxu3  ;;  %3809 = vmatmul.bf16.gmra.mxu0 %v12787_v21 }
 0x54f   : > { %3843 = vmatmul.bf16.vlgmr.msrb.gmra.mxu1 %v12850_v52  ;;  %v3097_v52 = vmax.f32 %v13014_v31, 0.0  ;;  %v2946_v31 = vadd.f32 %v13071_v9, %v12570_v25  ;;  %v9183_v9 = vld [vmem:[%s16851_s2 + $0x4a0] sm:$0xf] }
 0x551   : > { %v13259_v8 = vpack.c.bf16 %v3099_v30, %v3097_v52  ;;  %v3035_v52 = vadd.f32 %v13031_v38, %v2946_v31  ;;  %v9129_v38 = vld [vmem:[%s16851_s2 + $0x438] sm:$0xf0] }
 0x552   : > { %v13244_v33 = vpop.f32.mrf.mxu0 }
 0x553   : > { %17028 = vst [vmem:[#allocation44_spill] sm:$0xff] %v13244_v33 }
 0x554   : > { %v13252_v40 = vpop.f32.mrf.mxu1  ;;  %v13254_v17 = vpop.f32.mrf.mxu2 }
 0x555   : > { %17029 = vst [vmem:[#allocation45_spill] sm:$0xff] %v13252_v40  ;;  %v13256_v60 = vpop.f32.mrf.mxu3 }
 0x559   : > { %3626 = vmatmul.bf16.gmra.mxu2 %v12743_v32  ;;  %v9120_v32 = vor.u32 %v10022_v42, %v9119_v26  ;;  %v3103_v26 = vmax.f32 %v3035_v52, 0.0 }
 0x55a   : > { %3720 = vmatmul.bf16.gmra.mxu3 %v13259_v8  ;;  %v13263_v36 = vpop.f32.mrf.mxu0 }
 0x55b   : > { %17030 = vst [vmem:[#allocation46_spill] sm:$0xff] %v13263_v36  ;;  %4296 = vmatpush.bf16.msrb.mxu2 %v9120_v32 }
 0x55c   : > { %v13273_v16 = vpop.f32.mrf.mxu1  ;;  %v13275_v30 = vpop.f32.mrf.mxu2 }
 0x55d   : > { %17031 = vst [vmem:[#allocation47_spill] sm:$0xff] %v13273_v16  ;;  %v13277_v48 = vpop.f32.mrf.mxu3  ;;  %3814 = vmatmul.bf16.gmra.mxu0 %v12825_v2  ;;  %v10038_v16 = vld [vmem:[%s16851_s2 + $0x4a4] sm:$0xf0] }
 0x55e   : > { %v9184_v32 = vor.u32 %v10038_v16, %v9183_v9  ;;  %v2951_v9 = vadd.f32 %v13103_v39, %v12570_v25 }
 0x55f   : > { %3848 = vmatmul.bf16.gmra.mxu1 %v12884_v54  ;;  %v10023_v54 = vld [vmem:[%s16851_s2 + $0x434] sm:$0xf] }
 0x560   : > { %v9132_v31 = vor.u32 %v10023_v54, %v9129_v38  ;;  %4385 = vmatpush.bf16.msra.mxu3 %v9184_v32  ;;  %v10045_v38 = vld [vmem:[%s16851_s2 + $0x4e4] sm:$0xf] }
 0x562   : > { %v13282_v40 = vpop.f32.mrf.mxu0  ;;  %4473 = vmatpush.bf16.msra.mxu0 %v9132_v31 }
 0x563   : > { %17032 = vst [vmem:[#allocation48_spill] sm:$0xff] %v13282_v40  ;;  %v3101_v40 = vmax.f32 %v13052_v23, 0.0  ;;  %v3040_v23 = vadd.f32 %v13075_v44, %v2951_v9 }
 0x564   : > { %v13290_v42 = vpop.f32.mrf.mxu1  ;;  %v13292_v36 = vpop.f32.mrf.mxu2 }
 0x565   : > { %17033 = vst [vmem:[#allocation49_spill] sm:$0xff] %v13290_v42  ;;  %v13301_v33 = vpop.f32.mrf.mxu3  ;;  %v13303_v52 = vpack.c.bf16 %v3103_v26, %v3101_v40  ;;  %v9121_v40 = vld [vmem:[%s16851_s2 + $0x428] sm:$0xf0]  ;;  %v3107_v44 = vmax.f32 %v3040_v23, 0.0  ;;  %v10017_v23 = vld [vmem:[%s16851_s2 + $0x404] sm:$0xf] }
 0x569   : > { %3631 = vmatmul.bf16.gmra.mxu2 %v12787_v21  ;;  %v10021_v21 = vld [vmem:[%s16851_s2 + $0x424] sm:$0xf] }
 0x56a   : > { %3725 = vmatmul.bf16.gmra.mxu3 %v13303_v52  ;;  %v13307_v16 = vpop.f32.mrf.mxu0  ;;  %v9124_v39 = vor.u32 %v10021_v21, %v9121_v40  ;;  %v10019_v21 = vld [vmem:[%s16851_s2 + $0x414] sm:$0xf]  ;;  %v9113_v40 = vld [vmem:[%s16851_s2 + $0x418] sm:$0xf0] }
 0x56b   : > { %17034 = vst [vmem:[#allocation50_spill] sm:$0xff] %v13307_v16  ;;  %v3105_v16 = vmax.f32 %v13090_v6, 0.0 }
 0x56c   : > { %v13311_v42 = vpop.f32.mrf.mxu1  ;;  %v13313_v54 = vpop.f32.mrf.mxu2  ;;  %4474 = vmatpush.bf16.msra.mxu0 %v9124_v39 }
 0x56d   : > { %17035 = vst [vmem:[#allocation51_spill] sm:$0xff] %v13311_v42  ;;  %3819 = vmatmul.bf16.gmra.mxu0 %v12853_v53  ;;  %v13324_v26 = vpop.f32.mrf.mxu3  ;;  %v13345_v39 = vpack.c.bf16 %v3107_v44, %v3105_v16  ;;  %v10020_v16 = vld [vmem:[%s16851_s2 + $0x414] sm:$0xf0] }
 0x56f   : > { %3853 = vmatmul.bf16.gmra.mxu1 %v12924_v22  ;;  %v9217_v22 = vld [vmem:[%s16851_s2 + $0x4e8] sm:$0xf0] }
 0x570   : > { %v9220_v42 = vor.u32 %v10045_v38, %v9217_v22  ;;  %v9105_v38 = vld [vmem:[%s16851_s2 + $0x408] sm:$0xf0] }
 0x571   : > { %v9108_v22 = vor.u32 %v10017_v23, %v9105_v38 }
 0x572   : > { %v13326_v32 = vpop.f32.mrf.mxu0  ;;  %4559 = vmatpush.bf16.msra.mxu1 %v9220_v42  ;;  %v9111_v42 = vld [vmem:[%s16851_s2 + $0x410] sm:$0xf] }
 0x573   : > { %17036 = vst [vmem:[#allocation52_spill] sm:$0xff] %v13326_v32  ;;  %v9116_v32 = vor.u32 %v10019_v21, %v9113_v40  ;;  %v9112_v40 = vor.u32 %v10020_v16, %v9111_v42 }
 0x574   : > { %v13334_v31 = vpop.f32.mrf.mxu1  ;;  %v13336_v9 = vpop.f32.mrf.mxu2 }
 0x575   : > { %17037 = vst [vmem:[#allocation53_spill] sm:$0xff] %v13334_v31  ;;  %4475 = vmatpush.bf16.msra.mxu0 %v9116_v32  ;;  %v13357_v6 = vpop.f32.mrf.mxu3  ;;  %v2956_v32 = vadd.f32 %v13144_v43, %v12570_v25  ;;  %4297 = vmatpush.bf16.msrb.mxu2 %v9112_v40  ;;  %v10036_v43 = vld [vmem:[%s16851_s2 + $0x494] sm:$0xf0] }
 0x577   : > { %v3045_v23 = vadd.f32 %v13107_v4, %v2956_v32 }
 0x579   : > { %3636 = vmatmul.bf16.gmra.mxu2 %v12825_v2  ;;  %4476 = vmatpush.bf16.msra.mxu0 %v9108_v22  ;;  %v9175_v22 = vld [vmem:[%s16851_s2 + $0x490] sm:$0xf] }
 0x57a   : > { %3730 = vmatmul.bf16.gmra.mxu3 %v13345_v39  ;;  %v13355_v21 = vpop.f32.mrf.mxu0  ;;  %v9176_v16 = vor.u32 %v10036_v43, %v9175_v22 }
 0x57c   : > { %v13367_v2 = vpop.f32.mrf.mxu1  ;;  %v13369_v44 = vpop.f32.mrf.mxu2  ;;  %4386 = vmatpush.bf16.msra.mxu3 %v9176_v16 }
 0x57d   : > { %17038 = vst [vmem:[#allocation54_spill] sm:$0xff] %v13367_v2  ;;  %3824 = vmatmul.bf16.gmra.mxu0 %v12887_v61  ;;  %v3111_v2 = vmax.f32 %v3045_v23, 0.0  ;;  %v13386_v40 = vpop.f32.mrf.mxu3 }
 0x57f   : > { %3858 = vmatmul.bf16.gmra.mxu1 %v12958_v13  ;;  %v3109_v13 = vmax.f32 %v13128_v35, 0.0  ;;  %v17045_v35 = vld [vmem:[#allocation11_spill] sm:$0xff] }
 0x581   : > { %v13389_v4 = vpack.c.bf16 %v3111_v2, %v3109_v13  ;;  %v3578_v2 = vadd.f32 %v13198_v45, %v17045_v35  ;;  %v10043_v35 = vld [vmem:[%s16851_s2 + $0x4d4] sm:$0xf] }
 0x582   : > { %v13374_v38 = vpop.f32.mrf.mxu0 }
 0x583   : > { %17039 = vst [vmem:[#allocation55_spill] sm:$0xff] %v13374_v38  ;;  %v17043_v38 = vld [vmem:[#allocation19_spill] sm:$0xff] }
 0x584   : > { %v13382_v31 = vpop.f32.mrf.mxu1  ;;  %v13384_v42 = vpop.f32.mrf.mxu2  ;;  %17041 = vst [vmem:[#allocation57_spill] sm:$0xff] %v13389_v4  ;;  %v3580_v23 = vadd.f32 %v13216_v3, %v17043_v38 }
 0x585   : > { %17040 = vst [vmem:[#allocation56_spill] sm:$0xff] %v13382_v31  ;;  %v2961_v31 = vadd.f32 %v13175_v29, %v12570_v25  ;;  %v13412_v3 = vpop.f32.mrf.mxu3  ;;  %v3667_v29 = vadd.f32 %v13165_v0, %v3578_v2  ;;  %v10018_v2 = vld [vmem:[%s16851_s2 + $0x404] sm:$0xf0] }
 0x586   : > { %v3669_v16 = vadd.f32 %v13179_v47, %v3580_v23  ;;  %v9209_v47 = vld [vmem:[%s16851_s2 + $0x4d8] sm:$0xf0] }
 0x587   : > { %v3050_v25 = vadd.f32 %v13151_v18, %v2961_v31  ;;  %v9212_v0 = vor.u32 %v10043_v35, %v9209_v47  ;;  %v9103_v31 = vld [vmem:[%s16851_s2 + $0x400] sm:$0xf] }
 0x589   : > { %3641 = vmatmul.bf16.gmra.mxu2 %v12853_v53  ;;  %v13409_v53 = vld [vmem:[%s16853_s4 + $0x4] ss:$8 sm:$0x3]  ;;  %4560 = vmatpush.bf16.msra.mxu1 %v9212_v0 }
 0x58a   : > { %3735 = vmatmul.bf16.gmra.mxu3 %v13389_v4  ;;  %v13393_v32 = vpop.f32.mrf.mxu0  ;;  %v13418_v38 = vperm.slane %v13409_v53, 0 }
 0x58b   : > { %17042 = vst [vmem:[#allocation58_spill] sm:$0xff] %v13393_v32 }
 0x58c   : > { %v13399_v22 = vpop.f32.mrf.mxu1  ;;  %v13401_v43 = vpop.f32.mrf.mxu2  ;;  %v3933_v13 = vadd.f32 %v13418_v38, %v3669_v16  ;;  %v3931_v16 = vadd.f32 %v13418_v38, %v3667_v29  ;;  %v3585_v29 = vadd.f32 %v13254_v17, %v12559_v1  ;;  %v9167_v1 = vld [vmem:[%s16851_s2 + $0x480] sm:$0xf] }
 0x58d   : > { %17044 = vst [vmem:[#allocation19_spill] sm:$0xff] %v13399_v22  ;;  %3829 = vmatmul.bf16.gmra.mxu0 %v12927_v12  ;;  %v9104_v22 = vor.u32 %v10018_v2, %v9103_v31  ;;  %v13443_v35 = vpop.f32.mrf.mxu3 }
 0x58e   : > { %v3995_v32 = vmax.f32 %v3931_v16, 0.0 }
 0x58f   : > { %3863 = vmatmul.bf16.gmra.mxu1 %v13002_v62  ;;  %v3115_v62 = vmax.f32 %v3050_v25, 0.0  ;;  %v3997_v25 = vmax.f32 %v3933_v13, 0.0  ;;  %4298 = vmatpush.bf16.msrb.mxu2 %v9104_v22  ;;  %v17049_v22 = vld [vmem:[#allocation12_spill] sm:$0xff]  ;;  %v3674_v13 = vadd.f32 %v13224_v58, %v3585_v29 }
 0x590   : > { %v17051_v29 = vld [vmem:[#allocation16_spill] sm:$0xff] }
 0x591   : > { %v4059_v4 = vpack.c.bf16 %v3997_v25, %v3995_v32  ;;  %v3937_v32 = vadd.f32 %v13418_v38, %v3674_v13 }
 0x592   : > { %v13420_v45 = vpop.f32.mrf.mxu0 }
 0x593   : > { %17046 = vst [vmem:[#allocation11_spill] sm:$0xff] %v13420_v45  ;;  %v3113_v45 = vmax.f32 %v13168_v19, 0.0  ;;  %v4001_v2 = vmax.f32 %v3937_v32, 0.0 }
 0x594   : > { %v13429_v23 = vpop.f32.mrf.mxu1  ;;  %v13431_v18 = vpop.f32.mrf.mxu2 }
 0x595   : > { %17047 = vst [vmem:[#allocation59_spill] sm:$0xff] %v13429_v23  ;;  %v13441_v23 = vpack.c.bf16 %v3115_v62, %v3113_v45  ;;  %v3583_v45 = vadd.f32 %v13237_v56, %v17049_v22  ;;  %v13463_v0 = vpop.f32.mrf.mxu3  ;;  %v10034_v56 = vld [vmem:[%s16851_s2 + $0x484] sm:$0xf0]  ;;  %v3590_v22 = vadd.f32 %v13292_v36, %v17051_v29 }
 0x599   : > { %3646 = vmatmul.bf16.gmra.mxu2 %v12887_v61  ;;  %v3672_v61 = vadd.f32 %v13200_v14, %v3583_v45 }
 0x59a   : > { %3740 = vmatmul.bf16.gmra.mxu3 %v13441_v23  ;;  %v13447_v47 = vpop.f32.mrf.mxu0 }
 0x59b   : > { %v3935_v14 = vadd.f32 %v13418_v38, %v3672_v61  ;;  %v3679_v61 = vadd.f32 %v13256_v60, %v3590_v22  ;;  %v17056_v22 = vld [vmem:[#allocation17_spill] sm:$0xff] }
 0x59c   : > { %v13451_v31 = vpop.f32.mrf.mxu1  ;;  %v13453_v19 = vpop.f32.mrf.mxu2 }
 0x59d   : > { %17048 = vst [vmem:[#allocation60_spill] sm:$0xff] %v13451_v31  ;;  %4477 = vmatmul.bf16.vlgmr.msra.gmra.mxu0 %v4059_v4  ;;  %v3999_v16 = vmax.f32 %v3935_v14, 0.0  ;;  %v3941_v36 = vadd.f32 %v13418_v38, %v3679_v61 }
 0x59f   : > { %3868 = vmatmul.bf16.gmra.mxu1 %v13034_v49  ;;  %v9168_v49 = vor.u32 %v10034_v56, %v9167_v1  ;;  %v4061_v45 = vpack.c.bf16 %v4001_v2, %v3999_v16  ;;  %v13487_v56 = vpop.f32.mrf.mxu3  ;;  %v4005_v2 = vmax.f32 %v3941_v36, 0.0 }
 0x5a1   : > { %4387 = vmatpush.bf16.msra.mxu3 %v9168_v49  ;;  %v10041_v49 = vld [vmem:[%s16851_s2 + $0x4c4] sm:$0xf] }
 0x5a2   : > { %v13460_v62 = vpop.f32.mrf.mxu0 }
 0x5a4   : > { %v13471_v17 = vpop.f32.mrf.mxu1  ;;  %v13473_v58 = vpop.f32.mrf.mxu2 }
 0x5a5   : > { %17050 = vst [vmem:[#allocation12_spill] sm:$0xff] %v13471_v17  ;;  %v17053_v17 = vld [vmem:[#allocation15_spill] sm:$0xff] }
 0x5a6   : > { %v3588_v1 = vadd.f32 %v13275_v30, %v17053_v17  ;;  %v9201_v30 = vld [vmem:[%s16851_s2 + $0x4c8] sm:$0xf0] }
 0x5a7   : > { %v9204_v60 = vor.u32 %v10041_v49, %v9201_v30 }
 0x5a9   : > { %3651 = vmatmul.bf16.gmra.mxu2 %v12927_v12  ;;  %v3677_v12 = vadd.f32 %v13239_v50, %v3588_v1  ;;  %4561 = vmatpush.bf16.msra.mxu1 %v9204_v60  ;;  %v13506_v50 = vpop.f32.mrf.mxu3  ;;  %v3595_v1 = vadd.f32 %v13336_v9, %v17056_v22 }
 0x5aa   : > { %v13477_v25 = vpop.f32.mrf.mxu0 }
 0x5ab   : > { %v3684_v9 = vadd.f32 %v13301_v33, %v3595_v1 }
 0x5ac   : > { %v13481_v13 = vpop.f32.mrf.mxu1  ;;  %v13483_v31 = vpop.f32.mrf.mxu2 }
 0x5ad   : > { %17052 = vst [vmem:[#allocation16_spill] sm:$0xff] %v13481_v13  ;;  %4482 = vmatmul.bf16.gmra.mxu0 %v4061_v45  ;;  %v3945_v22 = vadd.f32 %v13418_v38, %v3684_v9 }
 0x5af   : > { %3873 = vmatmul.bf16.gmra.mxu1 %v13078_v5  ;;  %v3939_v5 = vadd.f32 %v13418_v38, %v3677_v12  ;;  %v10088_v12 = vld [vmem:[%s16852_s3 + $0xf4] sm:$0xf0]  ;;  %v4009_v1 = vmax.f32 %v3945_v22, 0.0 }
 0x5b1   : > { %v4003_v16 = vmax.f32 %v3939_v5, 0.0 }
 0x5b2   : > { %v13492_v32 = vpop.f32.mrf.mxu0 }
 0x5b3   : > { %v4063_v61 = vpack.c.bf16 %v4005_v2, %v4003_v16  ;;  %v13527_v2 = vpop.f32.mrf.mxu3 }
 0x5b4   : > { %v13501_v17 = vpop.f32.mrf.mxu1  ;;  %v13503_v14 = vpop.f32.mrf.mxu2 }
 0x5b5   : > { %17054 = vst [vmem:[#allocation15_spill] sm:$0xff] %v13501_v17  ;;  %v9295_v17 = vld [vmem:[%s16852_s3 + $0xf0] sm:$0xf] }
 0x5b6   : > { %v9296_v36 = vor.u32 %v10088_v12, %v9295_v17  ;;  %v10087_v17 = vld [vmem:[%s16852_s3 + $0xf4] sm:$0xf] }
 0x5b8   : > { %4829 = vmatpush.bf16.msra.mxu2 %v9296_v36 }
 0x5b9   : > { %4299 = vmatmul.bf16.vlgmr.msrb.gmra.mxu2 %v4059_v4  ;;  %v17058_v4 = vld [vmem:[#allocation22_spill] sm:$0xff] }
 0x5ba   : > { %v13508_v29 = vpop.f32.mrf.mxu0  ;;  %v3593_v60 = vadd.f32 %v13313_v54, %v17058_v4  ;;  %v9297_v54 = vld [vmem:[%s16852_s3 + $0xf8] sm:$0xf0] }
 0x5bb   : > { %17055 = vst [vmem:[#allocation61_spill] sm:$0xff] %v13508_v29  ;;  %v17062_v29 = vld [vmem:[#allocation18_spill] sm:$0xff] }
 0x5bc   : > { %v13518_v49 = vpop.f32.mrf.mxu1  ;;  %v13520_v30 = vpop.f32.mrf.mxu2  ;;  %v3682_v5 = vadd.f32 %v13277_v48, %v3593_v60  ;;  %v17061_v60 = vld [vmem:[#allocation26_spill] sm:$0xff] }
 0x5bd   : > { %17057 = vst [vmem:[#allocation17_spill] sm:$0xff] %v13518_v49  ;;  %4487 = vmatmul.bf16.gmra.mxu0 %v4063_v61  ;;  %v3600_v9 = vadd.f32 %v13384_v42, %v17061_v60  ;;  %v13547_v49 = vpop.f32.mrf.mxu3 }
 0x5be   : > { %v3943_v48 = vadd.f32 %v13418_v38, %v3682_v5  ;;  %v3756_v5 = vadd.f32 %v13114_v46, %v12934_v27  ;;  %v10039_v27 = vld [vmem:[%s16851_s2 + $0x4b4] sm:$0xf] }
 0x5bf   : > { %3878 = vmatmul.bf16.gmra.mxu1 %v13110_v63  ;;  %v9300_v63 = vor.u32 %v10087_v17, %v9297_v54  ;;  %v3598_v17 = vadd.f32 %v13369_v44, %v17062_v29  ;;  %v13559_v54 = vperm.slane %v13409_v53, 1 }
 0x5c0   : > { %v4007_v36 = vmax.f32 %v3943_v48, 0.0  ;;  %v3758_v48 = vadd.f32 %v13133_v20, %v12953_v28 }
 0x5c1   : > { %4918 = vmatpush.bf16.msrb.mxu3 %v9300_v63  ;;  %v3687_v22 = vadd.f32 %v13324_v26, %v3598_v17 }
 0x5c2   : > { %v13529_v16 = vpop.f32.mrf.mxu0  ;;  %v4065_v13 = vpack.c.bf16 %v4009_v1, %v4007_v36 }
 0x5c3   : > { %17059 = vst [vmem:[#allocation22_spill] sm:$0xff] %v13529_v16  ;;  %v3947_v53 = vadd.f32 %v13418_v38, %v3687_v22 }
 0x5c4   : > { %v13538_v12 = vpop.f32.mrf.mxu1  ;;  %v13540_v33 = vpop.f32.mrf.mxu2 }
 0x5c5   : > { %17060 = vst [vmem:[#allocation62_spill] sm:$0xff] %v13538_v12  ;;  %v13575_v29 = vpop.f32.mrf.mxu3  ;;  %v4011_v36 = vmax.f32 %v3947_v53, 0.0 }
 0x5c9   : > { %4304 = vmatmul.bf16.gmra.mxu2 %v4061_v45  ;;  %v3689_v45 = vadd.f32 %v13357_v6, %v3600_v9 }
 0x5ca   : > { %v13543_v4 = vpop.f32.mrf.mxu0 }
 0x5cb   : > { %v3949_v44 = vadd.f32 %v13418_v38, %v3689_v45 }
 0x5cc   : > { %v13549_v16 = vpop.f32.mrf.mxu2  ;;  %v3844_v12 = vpop.f32.mrf.mxu1 }
 0x5cd   : > { %4492 = vmatmul.bf16.gmra.mxu0 %v4065_v13  ;;  %v3845_v42 = vadd.f32 %v3844_v12, %v3756_v5  ;;  %v4013_v1 = vmax.f32 %v3949_v44, 0.0  ;;  %v17063_v5 = vld [vmem:[#allocation20_spill] sm:$0xff] }
 0x5ce   : > { %v3605_v45 = vadd.f32 %v13431_v18, %v17063_v5 }
 0x5cf   : > { %3883 = vmatmul.bf16.gmra.mxu1 %v13154_v59  ;;  %v9193_v59 = vld [vmem:[%s16851_s2 + $0x4b8] sm:$0xf0]  ;;  %v3932_v28 = vadd.f32 %v13559_v54, %v3845_v42  ;;  %v4067_v22 = vpack.c.bf16 %v4013_v1, %v4011_v36 }
 0x5d0   : > { %v9196_v6 = vor.u32 %v10039_v27, %v9193_v59  ;;  %v3694_v44 = vadd.f32 %v13412_v3, %v3605_v45 }
 0x5d1   : > { %v3996_v60 = vmax.f32 %v3932_v28, 0.0 }
 0x5d2   : > { %v13561_v63 = vpop.f32.mrf.mxu0  ;;  %4562 = vmatpush.bf16.msra.mxu1 %v9196_v6  ;;  %v13593_v6 = vpop.f32.mrf.mxu3 }
 0x5d4   : > { %v13572_v46 = vpop.f32.mrf.mxu2  ;;  %v3846_v26 = vpop.f32.mrf.mxu1 }
 0x5d5   : > { %v3847_v20 = vadd.f32 %v3846_v26, %v3758_v48  ;;  %v17064_v48 = vld [vmem:[#allocation28_spill] sm:$0xff] }
 0x5d6   : > { %v3603_v26 = vadd.f32 %v13401_v43, %v17064_v48  ;;  %v3763_v43 = vadd.f32 %v13173_v11, %v12997_v51  ;;  %v17065_v48 = vld [vmem:[#allocation21_spill] sm:$0xff] }
 0x5d7   : > { %v3934_v12 = vadd.f32 %v13559_v54, %v3847_v20  ;;  %v3953_v20 = vadd.f32 %v13418_v38, %v3694_v44 }
 0x5d8   : > { %v3692_v18 = vadd.f32 %v13386_v40, %v3603_v26  ;;  %v3610_v26 = vadd.f32 %v13473_v58, %v17065_v48  ;;  %v17067_v48 = vld [vmem:[#allocation3_spill] sm:$0xff] }
 0x5d9   : > { %v3998_v9 = vmax.f32 %v3934_v12, 0.0  ;;  %4309 = vmatmul.bf16.gmra.mxu2 %v4063_v61  ;;  %v3761_v61 = vadd.f32 %v13158_v37, %v12972_v7  ;;  %v9391_v7 = vld [vmem:[%s16851_s2 + $0x570] sm:$0xf]  ;;  %v10064_v37 = vld [vmem:[%s16851_s2 + $0x574] sm:$0xf0]  ;;  %v4017_v11 = vmax.f32 %v3953_v20, 0.0 }
 0x5da   : > { %v13579_v17 = vpop.f32.mrf.mxu0  ;;  %v9392_v40 = vor.u32 %v10064_v37, %v9391_v7  ;;  %v3951_v12 = vadd.f32 %v13418_v38, %v3692_v18  ;;  %v3699_v7 = vadd.f32 %v13463_v0, %v3610_v26  ;;  %v3615_v26 = vadd.f32 %v13503_v14, %v17067_v48 }
 0x5db   : > { %v13583_v27 = vpack.c.bf16 %v3998_v9, %v3996_v60  ;;  %v13613_v9 = vpop.f32.mrf.mxu3 }
 0x5dc   : > { %v13585_v59 = vpop.f32.mrf.mxu2  ;;  %v3849_v42 = vpop.f32.mrf.mxu1  ;;  %5163 = vmatpush.bf16.msrb.mxu0 %v9392_v40  ;;  %v4015_v60 = vmax.f32 %v3951_v12, 0.0  ;;  %v3768_v40 = vadd.f32 %v13206_v41, %v13029_v24 }
 0x5dd   : > { %4388 = vmatmul.bf16.vlgmr.msra.gmra.mxu3 %v13583_v27  ;;  %4497 = vmatmul.bf16.gmra.mxu0 %v4067_v22  ;;  %v3850_v53 = vadd.f32 %v3849_v42, %v3761_v61 }
 0x5de   : > { %v13621_v44 = vpack.c.bf16 %v4017_v11, %v4015_v60 }
 0x5df   : > { %3888 = vmatmul.bf16.gmra.mxu1 %v13182_v10  ;;  %v3936_v1 = vadd.f32 %v13559_v54, %v3850_v53 }
 0x5e1   : > { %v4000_v5 = vmax.f32 %v3936_v1, 0.0 }
 0x5e2   : > { %v13597_v28 = vpop.f32.mrf.mxu0 }
 0x5e3   : > { %v13639_v12 = vpop.f32.mrf.mxu3 }
 0x5e4   : > { %v13608_v3 = vpop.f32.mrf.mxu2  ;;  %v3851_v10 = vpop.f32.mrf.mxu1 }
 0x5e5   : > { %v3852_v36 = vadd.f32 %v3851_v10, %v3763_v43  ;;  %v17066_v43 = vld [vmem:[#allocation2_spill] sm:$0xff] }
 0x5e6   : > { %v3608_v20 = vadd.f32 %v13453_v19, %v17066_v43  ;;  %v3957_v19 = vadd.f32 %v13418_v38, %v3699_v7 }
 0x5e7   : > { %v3938_v51 = vadd.f32 %v13559_v54, %v3852_v36 }
 0x5e8   : > { %v3697_v58 = vadd.f32 %v13443_v35, %v3608_v20  ;;  %v9287_v20 = vld [vmem:[%s16852_s3 + $0xe0] sm:$0xf] }
 0x5e9   : > { %v4002_v45 = vmax.f32 %v3938_v51, 0.0  ;;  %4314 = vmatmul.bf16.gmra.mxu2 %v4065_v13  ;;  %v3766_v13 = vadd.f32 %v13186_v55, %v13010_v57  ;;  %v10037_v57 = vld [vmem:[%s16851_s2 + $0x4a4] sm:$0xf]  ;;  %v9185_v55 = vld [vmem:[%s16851_s2 + $0x4a8] sm:$0xf0]  ;;  %v4021_v51 = vmax.f32 %v3957_v19, 0.0 }
 0x5ea   : > { %v13615_v42 = vpop.f32.mrf.mxu0  ;;  %v9188_v0 = vor.u32 %v10037_v57, %v9185_v55  ;;  %v3955_v1 = vadd.f32 %v13418_v38, %v3697_v58  ;;  %v17069_v19 = vld [vmem:[#allocation30_spill] sm:$0xff]  ;;  %v3704_v55 = vadd.f32 %v13506_v50, %v3615_v26 }
 0x5eb   : > { %v13619_v61 = vpack.c.bf16 %v4002_v45, %v4000_v5  ;;  %v13670_v14 = vpop.f32.mrf.mxu3  ;;  %v3771_v57 = vadd.f32 %v13231_v34, %v17069_v19  ;;  %v9289_v34 = vld [vmem:[%s16852_s3 + $0xe8] sm:$0xf0] }
 0x5ec   : > { %v13623_v18 = vpop.f32.mrf.mxu2  ;;  %v3854_v53 = vpop.f32.mrf.mxu1  ;;  %4563 = vmatpush.bf16.msra.mxu1 %v9188_v0  ;;  %v4019_v11 = vmax.f32 %v3955_v1, 0.0 }
 0x5ed   : > { %4393 = vmatmul.bf16.gmra.mxu3 %v13619_v61  ;;  %4502 = vmatmul.bf16.gmra.mxu0 %v13621_v44  ;;  %v3855_v37 = vadd.f32 %v3854_v53, %v3766_v13  ;;  %v10086_v13 = vld [vmem:[%s16852_s3 + $0xe4] sm:$0xf0] }
 0x5ee   : > { %v13658_v43 = vpack.c.bf16 %v4021_v51, %v4019_v11  ;;  %v9288_v58 = vor.u32 %v10086_v13, %v9287_v20  ;;  %v10085_v51 = vld [vmem:[%s16852_s3 + $0xe4] sm:$0xf]  ;;  %v9383_v11 = vld [vmem:[%s16851_s2 + $0x560] sm:$0xf] }
 0x5ef   : > { %3893 = vmatmul.bf16.gmra.mxu1 %v13227_v15  ;;  %v3940_v24 = vadd.f32 %v13559_v54, %v3855_v37  ;;  %v17068_v37 = vld [vmem:[#allocation23_spill] sm:$0xff] }
 0x5f0   : > { %4830 = vmatpush.bf16.msra.mxu2 %v9288_v58 }
 0x5f1   : > { %v4004_v60 = vmax.f32 %v3940_v24, 0.0  ;;  %v17071_v24 = vld [vmem:[#allocation44_spill] sm:$0xff] }
 0x5f2   : > { %v13634_v10 = vpop.f32.mrf.mxu0 }
 0x5f3   : > { %v13700_v13 = vpop.f32.mrf.mxu3 }
 0x5f4   : > { %v13647_v15 = vpop.f32.mrf.mxu2  ;;  %v3856_v35 = vpop.f32.mrf.mxu1 }
 0x5f5   : > { %v3857_v41 = vadd.f32 %v3856_v35, %v3768_v40  ;;  %v3613_v40 = vadd.f32 %v13483_v31, %v17068_v37  ;;  %v17070_v31 = vld [vmem:[#allocation32_spill] sm:$0xff] }
 0x5f7   : > { %v3942_v36 = vadd.f32 %v13559_v54, %v3857_v41  ;;  %v3702_v35 = vadd.f32 %v13487_v56, %v3613_v40  ;;  %v3773_v41 = vadd.f32 %v17071_v24, %v17070_v31  ;;  %v9292_v56 = vor.u32 %v10085_v51, %v9289_v34  ;;  %v17073_v51 = vld [vmem:[#allocation24_spill] sm:$0xff]  ;;  %v17074_v34 = vld [vmem:[#allocation34_spill] sm:$0xff] }
 0x5f9   : > { %v4006_v5 = vmax.f32 %v3942_v36, 0.0  ;;  %4319 = vmatmul.bf16.gmra.mxu2 %v4067_v22  ;;  %v3961_v36 = vadd.f32 %v13418_v38, %v3704_v55  ;;  %4919 = vmatpush.bf16.msrb.mxu3 %v9292_v56  ;;  %v17072_v55 = vld [vmem:[#allocation25_spill] sm:$0xff] }
 0x5fa   : > { %v13652_v45 = vpop.f32.mrf.mxu0 }
 0x5fb   : > { %v13656_v53 = vpack.c.bf16 %v4006_v5, %v4004_v60  ;;  %v10062_v60 = vld [vmem:[%s16851_s2 + $0x564] sm:$0xf0]  ;;  %v3959_v5 = vadd.f32 %v13418_v38, %v3702_v35  ;;  %v4025_v58 = vmax.f32 %v3961_v36, 0.0  ;;  %v3620_v35 = vadd.f32 %v13540_v33, %v17072_v55 }
 0x5fc   : > { %v13666_v7 = vpop.f32.mrf.mxu2  ;;  %v3859_v22 = vpop.f32.mrf.mxu1  ;;  %v9384_v20 = vor.u32 %v10062_v60, %v9383_v11  ;;  %v3618_v36 = vadd.f32 %v13520_v30, %v17073_v51 }
 0x5fd   : > { %4398 = vmatmul.bf16.gmra.mxu3 %v13656_v53  ;;  %4507 = vmatmul.bf16.gmra.mxu0 %v13658_v43  ;;  %v3860_v0 = vadd.f32 %v3859_v22, %v3771_v57  ;;  %v4023_v37 = vmax.f32 %v3959_v5, 0.0  ;;  %v3709_v56 = vadd.f32 %v13547_v49, %v3620_v35  ;;  %v13720_v11 = vpop.f32.mrf.mxu3 }
 0x5fe   : > { %5164 = vmatpush.bf16.msrb.mxu0 %v9384_v20  ;;  %v3707_v33 = vadd.f32 %v13527_v2, %v3618_v36 }
 0x5ff   : > { %3898 = vmatmul.bf16.gmra.mxu1 %v13259_v8  ;;  %v3944_v48 = vadd.f32 %v13559_v54, %v3860_v0  ;;  %v4073_v31 = vpack.c.bf16 %v4025_v58, %v4023_v37  ;;  %v3965_v20 = vadd.f32 %v13418_v38, %v3709_v56 }
 0x600   : > { %v3963_v37 = vadd.f32 %v13418_v38, %v3707_v33 }
 0x601   : > { %v4008_v40 = vmax.f32 %v3944_v48, 0.0  ;;  %v17076_v48 = vld [vmem:[#allocation36_spill] sm:$0xff]  ;;  %v4029_v35 = vmax.f32 %v3965_v20, 0.0 }
 0x602   : > { %v13679_v1 = vpop.f32.mrf.mxu0 }
 0x604   : > { %v13690_v50 = vpop.f32.mrf.mxu2  ;;  %v3861_v8 = vpop.f32.mrf.mxu1 }
 0x605   : > { %v3862_v26 = vadd.f32 %v3861_v8, %v3773_v41  ;;  %v17075_v8 = vld [vmem:[#allocation46_spill] sm:$0xff]  ;;  %v13743_v56 = vpop.f32.mrf.mxu3 }
 0x607   : > { %v3946_v22 = vadd.f32 %v13559_v54, %v3862_v26  ;;  %v17077_v26 = vld [vmem:[#allocation48_spill] sm:$0xff] }
 0x608   : > { %v3778_v30 = vadd.f32 %v17077_v26, %v17076_v48 }
 0x609   : > { %v4010_v19 = vmax.f32 %v3946_v22, 0.0  ;;  %4324 = vmatmul.bf16.gmra.mxu2 %v13621_v44  ;;  %v3776_v44 = vadd.f32 %v17075_v8, %v17074_v34  ;;  %v10035_v22 = vld [vmem:[%s16851_s2 + $0x494] sm:$0xf]  ;;  %v17078_v8 = vld [vmem:[#allocation9_spill] sm:$0xff] }
 0x60a   : > { %v13704_v57 = vpop.f32.mrf.mxu0 }
 0x60b   : > { %v13708_v0 = vpack.c.bf16 %v4010_v19, %v4008_v40 }
 0x60c   : > { %v13710_v24 = vpop.f32.mrf.mxu2  ;;  %v3864_v41 = vpop.f32.mrf.mxu1 }
 0x60d   : > { %4403 = vmatmul.bf16.gmra.mxu3 %v13708_v0  ;;  %4512 = vmatmul.bf16.gmra.mxu0 %v4073_v31  ;;  %v3865_v60 = vadd.f32 %v3864_v41, %v3776_v44  ;;  %v4027_v41 = vmax.f32 %v3963_v37, 0.0  ;;  %v3625_v44 = vadd.f32 %v13572_v46, %v17078_v8  ;;  %v9375_v37 = vld [vmem:[%s16851_s2 + $0x550] sm:$0xf] }
 0x60f   : > { %3903 = vmatmul.bf16.gmra.mxu1 %v13303_v52  ;;  %v9177_v52 = vld [vmem:[%s16851_s2 + $0x498] sm:$0xf0]  ;;  %v3948_v40 = vadd.f32 %v13559_v54, %v3865_v60  ;;  %v4075_v60 = vpack.c.bf16 %v4029_v35, %v4027_v41  ;;  %v17083_v35 = vld [vmem:[#allocation52_spill] sm:$0xff] }
 0x610   : > { %v9180_v58 = vor.u32 %v10035_v22, %v9177_v52  ;;  %v17081_v22 = vld [vmem:[#allocation50_spill] sm:$0xff] }
 0x611   : > { %v4012_v51 = vmax.f32 %v3948_v40, 0.0 }
 0x612   : > { %v13722_v5 = vpop.f32.mrf.mxu0  ;;  %4564 = vmatpush.bf16.msra.mxu1 %v9180_v58 }
 0x614   : > { %v13733_v49 = vpop.f32.mrf.mxu2  ;;  %v3866_v2 = vpop.f32.mrf.mxu1 }
 0x615   : > { %v3867_v19 = vadd.f32 %v3866_v2, %v3778_v30  ;;  %v17079_v30 = vld [vmem:[#allocation27_spill] sm:$0xff]  ;;  %v3714_v2 = vadd.f32 %v13593_v6, %v3625_v44 }
 0x616   : > { %v3623_v20 = vadd.f32 %v13549_v16, %v17079_v30  ;;  %v10060_v16 = vld [vmem:[%s16851_s2 + $0x554] sm:$0xf0] }
 0x617   : > { %v3950_v55 = vadd.f32 %v13559_v54, %v3867_v19  ;;  %v9376_v19 = vor.u32 %v10060_v16, %v9375_v37  ;;  %v3969_v6 = vadd.f32 %v13418_v38, %v3714_v2  ;;  %v10033_v2 = vld [vmem:[%s16851_s2 + $0x484] sm:$0xf]  ;;  %v17084_v37 = vld [vmem:[#allocation13_spill] sm:$0xff] }
 0x618   : > { %v3712_v46 = vadd.f32 %v13575_v29, %v3623_v20 }
 0x619   : > { %v4014_v36 = vmax.f32 %v3950_v55, 0.0  ;;  %4329 = vmatmul.bf16.gmra.mxu2 %v13658_v43  ;;  %v17080_v43 = vld [vmem:[#allocation37_spill] sm:$0xff]  ;;  %v17082_v55 = vld [vmem:[#allocation38_spill] sm:$0xff]  ;;  %5165 = vmatpush.bf16.msrb.mxu0 %v9376_v19  ;;  %v4033_v30 = vmax.f32 %v3969_v6, 0.0 }
 0x61a   : > { %v13739_v34 = vpop.f32.mrf.mxu0  ;;  %v3781_v52 = vadd.f32 %v17081_v22, %v17080_v43  ;;  %v3783_v41 = vadd.f32 %v17083_v35, %v17082_v55 }
 0x61b   : > { %v13745_v33 = vpack.c.bf16 %v4014_v36, %v4012_v51  ;;  %v3967_v51 = vadd.f32 %v13418_v38, %v3712_v46  ;;  %v13771_v36 = vpop.f32.mrf.mxu3  ;;  %v9169_v46 = vld [vmem:[%s16851_s2 + $0x488] sm:$0xf0] }
 0x61c   : > { %v13747_v48 = vpop.f32.mrf.mxu2  ;;  %v3869_v26 = vpop.f32.mrf.mxu1  ;;  %v9172_v55 = vor.u32 %v10033_v2, %v9169_v46 }
 0x61d   : > { %4408 = vmatmul.bf16.gmra.mxu3 %v13745_v33  ;;  %4517 = vmatmul.bf16.gmra.mxu0 %v4075_v60  ;;  %v3870_v58 = vadd.f32 %v3869_v26, %v3781_v52  ;;  %v4031_v20 = vmax.f32 %v3967_v51, 0.0 }
 0x61e   : > { %4565 = vmatpush.bf16.msra.mxu1 %v9172_v55 }
 0x61f   : > { %3908 = vmatmul.bf16.gmra.mxu1 %v13345_v39  ;;  %v3952_v8 = vadd.f32 %v13559_v54, %v3870_v58  ;;  %v3630_v58 = vadd.f32 %v13608_v3, %v17084_v37  ;;  %v13787_v19 = vpack.c.bf16 %v4033_v30, %v4031_v20 }
 0x621   : > { %v4016_v43 = vmax.f32 %v3952_v8, 0.0  ;;  %v3719_v3 = vadd.f32 %v13639_v12, %v3630_v58 }
 0x622   : > { %v13763_v40 = vpop.f32.mrf.mxu0 }
 0x623   : > { %v13798_v8 = vpop.f32.mrf.mxu3  ;;  %v3973_v2 = vadd.f32 %v13418_v38, %v3719_v3  ;;  %v17090_v3 = vld [vmem:[#allocation4_spill] sm:$0xff] }
 0x624   : > { %v13768_v39 = vpop.f32.mrf.mxu2  ;;  %v3871_v29 = vpop.f32.mrf.mxu1 }
 0x625   : > { %v3872_v44 = vadd.f32 %v3871_v29, %v3783_v41  ;;  %v17085_v41 = vld [vmem:[#allocation6_spill] sm:$0xff]  ;;  %v17086_v29 = vld [vmem:[#allocation39_spill] sm:$0xff] }
 0x626   : > { %v3628_v6 = vadd.f32 %v13585_v59, %v17085_v41  ;;  %v3786_v51 = vadd.f32 %v13355_v21, %v17086_v29  ;;  %v17088_v59 = vld [vmem:[#allocation40_spill] sm:$0xff]  ;;  %v4037_v41 = vmax.f32 %v3973_v2, 0.0 }
 0x627   : > { %v3954_v26 = vadd.f32 %v13559_v54, %v3872_v44  ;;  %v17087_v44 = vld [vmem:[#allocation57_spill] sm:$0xff] }
 0x629   : > { %v4018_v22 = vmax.f32 %v3954_v26, 0.0  ;;  %4334 = vmatmul.bf16.gmra.mxu2 %v4073_v31  ;;  %v3717_v26 = vadd.f32 %v13613_v9, %v3628_v6 }
 0x62a   : > { %v13775_v52 = vpop.f32.mrf.mxu0 }
 0x62b   : > { %v13785_v16 = vpack.c.bf16 %v4018_v22, %v4016_v43  ;;  %v17089_v43 = vld [vmem:[#allocation55_spill] sm:$0xff]  ;;  %v3971_v21 = vadd.f32 %v13418_v38, %v3717_v26 }
 0x62c   : > { %v13789_v35 = vpop.f32.mrf.mxu2  ;;  %v3874_v31 = vpop.f32.mrf.mxu1  ;;  %v3788_v22 = vadd.f32 %v17089_v43, %v17088_v59  ;;  %v10084_v43 = vld [vmem:[%s16852_s3 + $0xd4] sm:$0xf0] }
 0x62d   : > { %4413 = vmatmul.bf16.gmra.mxu3 %v13785_v16  ;;  %4522 = vmatmul.bf16.gmra.mxu0 %v13787_v19  ;;  %v3875_v30 = vadd.f32 %v3874_v31, %v3786_v51  ;;  %v4035_v9 = vmax.f32 %v3971_v21, 0.0  ;;  %v13812_v31 = vpop.f32.mrf.mxu3 }
 0x62f   : > { %3913 = vmatmul.bf16.gmra.mxu1 %v17087_v44  ;;  %v3956_v12 = vadd.f32 %v13559_v54, %v3875_v30  ;;  %v3635_v44 = vadd.f32 %v13647_v15, %v17090_v3  ;;  %v13820_v26 = vpack.c.bf16 %v4037_v41, %v4035_v9  ;;  %v9279_v30 = vld [vmem:[%s16852_s3 + $0xd0] sm:$0xf]  ;;  %v17092_v15 = vld [vmem:[#allocation41_spill] sm:$0xff] }
 0x631   : > { %v4020_v6 = vmax.f32 %v3956_v12, 0.0  ;;  %v17093_v12 = vld [vmem:[#allocation58_spill] sm:$0xff] }
 0x632   : > { %v13802_v20 = vpop.f32.mrf.mxu0 }
 0x634   : > { %v13807_v46 = vpop.f32.mrf.mxu2  ;;  %v3876_v37 = vpop.f32.mrf.mxu1 }
 0x635   : > { %v3877_v58 = vadd.f32 %v3876_v37, %v3788_v22  ;;  %v17091_v37 = vld [vmem:[#allocation10_spill] sm:$0xff] }
 0x636   : > { %v3633_v21 = vadd.f32 %v13623_v18, %v17091_v37  ;;  %v9281_v18 = vld [vmem:[%s16852_s3 + $0xd8] sm:$0xf0] }
 0x637   : > { %v3958_v55 = vadd.f32 %v13559_v54, %v3877_v58  ;;  %v3791_v58 = vadd.f32 %v17093_v12, %v17092_v15 }
 0x638   : > { %v3722_v41 = vadd.f32 %v13670_v14, %v3633_v21  ;;  %v17095_v14 = vld [vmem:[#allocation42_spill] sm:$0xff] }
 0x639   : > { %v4022_v29 = vmax.f32 %v3958_v55, 0.0  ;;  %4339 = vmatmul.bf16.gmra.mxu2 %v4075_v60  ;;  %v9280_v60 = vor.u32 %v10084_v43, %v9279_v30  ;;  %v3724_v55 = vadd.f32 %v13700_v13, %v3635_v44  ;;  %v9367_v13 = vld [vmem:[%s16851_s2 + $0x540] sm:$0xf]  ;;  %v17096_v44 = vld [vmem:[#allocation11_spill] sm:$0xff] }
 0x63a   : > { %v13814_v51 = vpop.f32.mrf.mxu0  ;;  %v3793_v30 = vadd.f32 %v17096_v44, %v17095_v14  ;;  %v3975_v15 = vadd.f32 %v13418_v38, %v3722_v41 }
 0x63b   : > { %v13818_v59 = vpack.c.bf16 %v4022_v29, %v4020_v6  ;;  %4831 = vmatpush.bf16.msra.mxu2 %v9280_v60  ;;  %v10083_v6 = vld [vmem:[%s16852_s3 + $0xd4] sm:$0xf]  ;;  %v3977_v43 = vadd.f32 %v13418_v38, %v3724_v55 }
 0x63c   : > { %v3879_v22 = vpop.f32.mrf.mxu1  ;;  %v13828_v2 = vpop.f32.mrf.mxu2  ;;  %v9284_v3 = vor.u32 %v10083_v6, %v9281_v18 }
 0x63d   : > { %4418 = vmatmul.bf16.gmra.mxu3 %v13818_v59  ;;  %4527 = vmatmul.bf16.gmra.mxu0 %v13820_v26  ;;  %v3880_v9 = vadd.f32 %v3879_v22, %v3791_v58  ;;  %v13856_v22 = vpop.f32.mrf.mxu3  ;;  %v4041_v18 = vmax.f32 %v3977_v43, 0.0 }
 0x63e   : > { %4920 = vmatpush.bf16.msrb.mxu3 %v9284_v3 }
 0x63f   : > { %3918 = vmatmul.bf16.gmra.mxu1 %v13441_v23  ;;  %v10058_v23 = vld [vmem:[%s16851_s2 + $0x544] sm:$0xf0]  ;;  %v3960_v12 = vadd.f32 %v13559_v54, %v3880_v9 }
 0x640   : > { %v9368_v60 = vor.u32 %v10058_v23, %v9367_v13  ;;  %v17097_v13 = vld [vmem:[#allocation14_spill] sm:$0xff] }
 0x641   : > { %v4024_v14 = vmax.f32 %v3960_v12, 0.0  ;;  %v3640_v23 = vadd.f32 %v13690_v50, %v17097_v13 }
 0x642   : > { %v13845_v29 = vpop.f32.mrf.mxu0  ;;  %5166 = vmatpush.bf16.msrb.mxu0 %v9368_v60  ;;  %v17098_v60 = vld [vmem:[#allocation5_spill] sm:$0xff] }
 0x643   : > { %17094 = vst [vmem:[#allocation26_spill] sm:$0xff] %v13845_v29  ;;  %v4039_v29 = vmax.f32 %v3975_v15, 0.0  ;;  %v3638_v43 = vadd.f32 %v13666_v7, %v17098_v60  ;;  %v3729_v50 = vadd.f32 %v13743_v56, %v3640_v23 }
 0x644   : > { %v3881_v37 = vpop.f32.mrf.mxu1  ;;  %v13858_v21 = vpop.f32.mrf.mxu2 }
 0x645   : > { %v3882_v58 = vadd.f32 %v3881_v37, %v3793_v30  ;;  %v13870_v41 = vpack.c.bf16 %v4041_v18, %v4039_v29  ;;  %v17099_v37 = vld [vmem:[#allocation43_spill] sm:$0xff]  ;;  %v3727_v29 = vadd.f32 %v13720_v11, %v3638_v43  ;;  %v3981_v18 = vadd.f32 %v13418_v38, %v3729_v50 }
 0x646   : > { %v3796_v15 = vadd.f32 %v13447_v47, %v17099_v37  ;;  %v10080_v47 = vld [vmem:[%s16851_s2 + $0x5f4] sm:$0xf0] }
 0x647   : > { %v3962_v6 = vadd.f32 %v13559_v54, %v3882_v58 }
 0x649   : > { %v4026_v44 = vmax.f32 %v3962_v6, 0.0  ;;  %4344 = vmatmul.bf16.gmra.mxu2 %v13787_v19  ;;  %v13878_v19 = vpop.f32.mrf.mxu3  ;;  %v17100_v6 = vld [vmem:[#allocation45_spill] sm:$0xff] }
 0x64a   : > { %v13864_v55 = vpop.f32.mrf.mxu0  ;;  %v3798_v7 = vadd.f32 %v13460_v62, %v17100_v6  ;;  %v17101_v6 = vld [vmem:[#allocation8_spill] sm:$0xff] }
 0x64b   : > { %v13868_v3 = vpack.c.bf16 %v4026_v44, %v4024_v14  ;;  %v9455_v14 = vld [vmem:[%s16851_s2 + $0x5f0] sm:$0xf]  ;;  %v3979_v44 = vadd.f32 %v13418_v38, %v3727_v29 }
 0x64c   : > { %v3884_v9 = vpop.f32.mrf.mxu1  ;;  %v13872_v30 = vpop.f32.mrf.mxu2  ;;  %v9456_v11 = vor.u32 %v10080_v47, %v9455_v14  ;;  %v3645_v14 = vadd.f32 %v13733_v49, %v17101_v6 }
 0x64d   : > { %4423 = vmatmul.bf16.gmra.mxu3 %v13868_v3  ;;  %4532 = vmatmul.bf16.gmra.mxu0 %v13870_v41  ;;  %v3885_v12 = vadd.f32 %v3884_v9, %v3796_v15  ;;  %v4045_v9 = vmax.f32 %v3981_v18, 0.0  ;;  %v4043_v43 = vmax.f32 %v3979_v44, 0.0  ;;  %v17102_v18 = vld [vmem:[#allocation7_spill] sm:$0xff] }
 0x64e   : > { %5252 = vmatpush.bf16.msrb.mxu1 %v9456_v11  ;;  %v3734_v44 = vadd.f32 %v13798_v8, %v3645_v14 }
 0x64f   : > { %4566 = vmatmul.bf16.vlgmr.msra.gmra.mxu1 %v13583_v27  ;;  %v3964_v13 = vadd.f32 %v13559_v54, %v3885_v12  ;;  %v13910_v12 = vpack.c.bf16 %v4045_v9, %v4043_v43  ;;  %v17104_v43 = vld [vmem:[#allocation49_spill] sm:$0xff] }
 0x650   : > { %v3803_v8 = vadd.f32 %v13492_v32, %v17104_v43 }
 0x651   : > { %v13901_v60 = vpop.f32.mrf.mxu3  ;;  %v4028_v37 = vmax.f32 %v3964_v13, 0.0 }
 0x652   : > { %v13885_v58 = vpop.f32.mrf.mxu0 }
 0x654   : > { %v3886_v56 = vpop.f32.mrf.mxu1  ;;  %v13896_v27 = vpop.f32.mrf.mxu2 }
 0x655   : > { %v3887_v23 = vadd.f32 %v3886_v56, %v3798_v7  ;;  %v3643_v56 = vadd.f32 %v13710_v24, %v17102_v18  ;;  %v9359_v24 = vld [vmem:[%s16851_s2 + $0x530] sm:$0xf] }
 0x657   : > { %v3966_v62 = vadd.f32 %v13559_v54, %v3887_v23  ;;  %v3732_v13 = vadd.f32 %v13771_v36, %v3643_v56 }
 0x659   : > { %v4030_v15 = vmax.f32 %v3966_v62, 0.0  ;;  %4349 = vmatmul.bf16.gmra.mxu2 %v13820_v26  ;;  %v17103_v26 = vld [vmem:[#allocation47_spill] sm:$0xff]  ;;  %v10056_v62 = vld [vmem:[%s16851_s2 + $0x534] sm:$0xf0]  ;;  %v3983_v36 = vadd.f32 %v13418_v38, %v3732_v13 }
 0x65a   : > { %v13904_v50 = vpop.f32.mrf.mxu0  ;;  %v3801_v11 = vadd.f32 %v13477_v25, %v17103_v26  ;;  %v9360_v25 = vor.u32 %v10056_v62, %v9359_v24 }
 0x65b   : > { %v13908_v29 = vpack.c.bf16 %v4030_v15, %v4028_v37  ;;  %v4047_v26 = vmax.f32 %v3983_v36, 0.0 }
 0x65c   : > { %v3889_v7 = vpop.f32.mrf.mxu1  ;;  %v13912_v47 = vpop.f32.mrf.mxu2  ;;  %5167 = vmatpush.bf16.msrb.mxu0 %v9360_v25 }
 0x65d   : > { %4428 = vmatmul.bf16.gmra.mxu3 %v13908_v29  ;;  %4537 = vmatmul.bf16.gmra.mxu0 %v13910_v12  ;;  %v3890_v23 = vadd.f32 %v3889_v7, %v3801_v11 }
 0x65f   : > { %4571 = vmatmul.bf16.gmra.mxu1 %v13619_v61  ;;  %v3985_v61 = vadd.f32 %v13418_v38, %v3734_v44  ;;  %v3968_v6 = vadd.f32 %v13559_v54, %v3890_v23  ;;  %v17105_v44 = vld [vmem:[#allocation31_spill] sm:$0xff] }
 0x660   : > { %v13922_v49 = vpop.f32.mrf.mxu3  ;;  %v3650_v62 = vadd.f32 %v13768_v39, %v17105_v44 }
 0x661   : > { %v4049_v18 = vmax.f32 %v3985_v61, 0.0  ;;  %v4032_v11 = vmax.f32 %v3968_v6, 0.0 }
 0x662   : > { %v13931_v9 = vpop.f32.mrf.mxu0  ;;  %v3739_v6 = vadd.f32 %v13856_v22, %v3650_v62  ;;  %v17111_v22 = vld [vmem:[#allocation22_spill] sm:$0xff] }
 0x663   : > { %v13950_v13 = vpack.c.bf16 %v4049_v18, %v4047_v26  ;;  %v9447_v62 = vld [vmem:[%s16851_s2 + $0x5e0] sm:$0xf] }
 0x664   : > { %v3891_v37 = vpop.f32.mrf.mxu1  ;;  %v13936_v15 = vpop.f32.mrf.mxu2 }
 0x665   : > { %v3892_v14 = vadd.f32 %v3891_v37, %v3803_v8  ;;  %v17106_v8 = vld [vmem:[#allocation29_spill] sm:$0xff] }
 0x666   : > { %v3648_v61 = vadd.f32 %v13747_v48, %v17106_v8  ;;  %v17108_v37 = vld [vmem:[#allocation61_spill] sm:$0xff]  ;;  %v10054_v48 = vld [vmem:[%s16851_s2 + $0x524] sm:$0xf0] }
 0x667   : > { %v3970_v7 = vadd.f32 %v13559_v54, %v3892_v14  ;;  %v9351_v14 = vld [vmem:[%s16851_s2 + $0x520] sm:$0xf]  ;;  %v10078_v8 = vld [vmem:[%s16851_s2 + $0x5e4] sm:$0xf0] }
 0x668   : > { %v13941_v56 = vpop.f32.mrf.mxu3  ;;  %v9352_v26 = vor.u32 %v10054_v48, %v9351_v14 }
 0x669   : > { %v4034_v24 = vmax.f32 %v3970_v7, 0.0  ;;  %4354 = vmatmul.bf16.gmra.mxu2 %v13870_v41  ;;  %v17107_v41 = vld [vmem:[#allocation51_spill] sm:$0xff]  ;;  %v3737_v7 = vadd.f32 %v13812_v31, %v3648_v61  ;;  %v9343_v61 = vld [vmem:[%s16851_s2 + $0x510] sm:$0xf] }
 0x66a   : > { %v13944_v32 = vpop.f32.mrf.mxu0  ;;  %v3806_v36 = vadd.f32 %v17108_v37, %v17107_v41  ;;  %5168 = vmatpush.bf16.msrb.mxu0 %v9352_v26  ;;  %v10052_v37 = vld [vmem:[%s16851_s2 + $0x514] sm:$0xf0] }
 0x66b   : > { %v13948_v25 = vpack.c.bf16 %v4034_v24, %v4032_v11  ;;  %v17110_v24 = vld [vmem:[#allocation53_spill] sm:$0xff]  ;;  %v9344_v48 = vor.u32 %v10052_v37, %v9343_v61 }
 0x66c   : > { %v3894_v23 = vpop.f32.mrf.mxu1  ;;  %v13952_v43 = vpop.f32.mrf.mxu2  ;;  %v3808_v44 = vadd.f32 %v17111_v22, %v17110_v24 }
 0x66d   : > { %4433 = vmatmul.bf16.gmra.mxu3 %v13948_v25  ;;  %4542 = vmatmul.bf16.gmra.mxu0 %v13950_v13  ;;  %v3895_v18 = vadd.f32 %v3894_v23, %v3806_v36  ;;  %v9448_v23 = vor.u32 %v10078_v8, %v9447_v62  ;;  %v3987_v36 = vadd.f32 %v13418_v38, %v3737_v7  ;;  %v9335_v62 = vld [vmem:[%s16851_s2 + $0x500] sm:$0xf]  ;;  %v10050_v8 = vld [vmem:[%s16851_s2 + $0x504] sm:$0xf0] }
 0x66e   : > { %5169 = vmatpush.bf16.msrb.mxu0 %v9344_v48 }
 0x66f   : > { %4576 = vmatmul.bf16.gmra.mxu1 %v13656_v53  ;;  %v3989_v53 = vadd.f32 %v13418_v38, %v3739_v6  ;;  %v3972_v6 = vadd.f32 %v13559_v54, %v3895_v18  ;;  %v4051_v7 = vmax.f32 %v3987_v36, 0.0  ;;  %v10082_v36 = vld [vmem:[%s16852_s3 + $0xc4] sm:$0xf0] }
 0x670   : > { %v13962_v39 = vpop.f32.mrf.mxu3  ;;  %5253 = vmatpush.bf16.msrb.mxu1 %v9448_v23 }
 0x671   : > { %v4053_v24 = vmax.f32 %v3989_v53, 0.0  ;;  %v17112_v53 = vld [vmem:[#allocation35_spill] sm:$0xff] }
 0x672   : > { %v13971_v11 = vpop.f32.mrf.mxu0  ;;  %v3655_v23 = vadd.f32 %v13807_v46, %v17112_v53 }
 0x673   : > { %17109 = vst [vmem:[#allocation18_spill] sm:$0xff] %v13971_v11  ;;  %v4036_v11 = vmax.f32 %v3972_v6, 0.0  ;;  %v14008_v37 = vpack.c.bf16 %v4053_v24, %v4051_v7 }
 0x674   : > { %v3896_v41 = vpop.f32.mrf.mxu1  ;;  %v13982_v31 = vpop.f32.mrf.mxu2 }
 0x675   : > { %v3897_v14 = vadd.f32 %v3896_v41, %v3808_v44  ;;  %v9336_v44 = vor.u32 %v10050_v8, %v9335_v62  ;;  %v3744_v62 = vadd.f32 %v13901_v60, %v3655_v23 }
 0x677   : > { %v3974_v26 = vadd.f32 %v13559_v54, %v3897_v14  ;;  %5170 = vmatpush.bf16.msrb.mxu0 %v9336_v44  ;;  %v9271_v14 = vld [vmem:[%s16852_s3 + $0xc0] sm:$0xf]  ;;  %v9273_v44 = vld [vmem:[%s16852_s3 + $0xc8] sm:$0xf0] }
 0x678   : > { %v13993_v22 = vpop.f32.mrf.mxu3  ;;  %v9272_v48 = vor.u32 %v10082_v36, %v9271_v14  ;;  %v17116_v14 = vld [vmem:[#allocation56_spill] sm:$0xff] }
 0x679   : > { %v4038_v18 = vmax.f32 %v3974_v26, 0.0  ;;  %4359 = vmatmul.bf16.gmra.mxu2 %v13910_v12  ;;  %v17113_v26 = vld [vmem:[#allocation33_spill] sm:$0xff]  ;;  %v3813_v60 = vadd.f32 %v13561_v63, %v17116_v14 }
 0x67a   : > { %v14002_v41 = vpop.f32.mrf.mxu0  ;;  %v3653_v46 = vadd.f32 %v13789_v35, %v17113_v26  ;;  %4832 = vmatpush.bf16.msra.mxu2 %v9272_v48  ;;  %v10081_v35 = vld [vmem:[%s16852_s3 + $0xc4] sm:$0xf] }
 0x67b   : > { %v14006_v61 = vpack.c.bf16 %v4038_v18, %v4036_v11  ;;  %v17114_v11 = vld [vmem:[#allocation54_spill] sm:$0xff] }
 0x67c   : > { %v3899_v12 = vpop.f32.mrf.mxu1  ;;  %v14016_v6 = vpop.f32.mrf.mxu2  ;;  %v3811_v24 = vadd.f32 %v13543_v4, %v17114_v11  ;;  %v3742_v7 = vadd.f32 %v13878_v19, %v3653_v46  ;;  %v9276_v4 = vor.u32 %v10081_v35, %v9273_v44 }
 0x67d   : > { %4438 = vmatmul.bf16.gmra.mxu3 %v14006_v61  ;;  %4547 = vmatmul.bf16.gmra.mxu0 %v14008_v37 }
 0x67e   : > { %v3900_v18 = vadd.f32 %v3899_v12, %v3811_v24  ;;  %4921 = vmatpush.bf16.msrb.mxu3 %v9276_v4  ;;  %v3991_v19 = vadd.f32 %v13418_v38, %v3742_v7  ;;  %v14058_v7 = vld [vmem:[%s16853_s4 + $0x5] ss:$8 sm:$0x3] }
 0x67f   : > { %4581 = vmatmul.bf16.gmra.mxu1 %v13708_v0  ;;  %v3993_v0 = vadd.f32 %v13418_v38, %v3744_v62 }
 0x680   : > { %v14026_v8 = vpop.f32.mrf.mxu3  ;;  %v3976_v12 = vadd.f32 %v13559_v54, %v3900_v18  ;;  %v4055_v24 = vmax.f32 %v3991_v19, 0.0  ;;  %v17118_v18 = vld [vmem:[#allocation19_spill] sm:$0xff] }
 0x681   : > { %v4057_v46 = vmax.f32 %v3993_v0, 0.0 }
 0x682   : > { %v14035_v53 = vpop.f32.mrf.mxu0  ;;  %v4040_v35 = vmax.f32 %v3976_v12, 0.0 }
 0x683   : > { %17115 = vst [vmem:[#allocation20_spill] sm:$0xff] %v14035_v53  ;;  %v4089_v4 = vpack.c.bf16 %v4057_v46, %v4055_v24  ;;  %v10076_v24 = vld [vmem:[%s16851_s2 + $0x5d4] sm:$0xf0] }
 0x684   : > { %v3901_v23 = vpop.f32.mrf.mxu1  ;;  %v14040_v36 = vpop.f32.mrf.mxu2 }
 0x685   : > { %v3902_v48 = vadd.f32 %v3901_v23, %v3813_v60  ;;  %v3816_v60 = vadd.f32 %v13579_v17, %v17118_v18 }
 0x687   : > { %v3978_v26 = vadd.f32 %v13559_v54, %v3902_v48  ;;  %v17120_v48 = vld [vmem:[#allocation59_spill] sm:$0xff] }
 0x688   : > { %v14045_v11 = vpop.f32.mrf.mxu3 }
 0x689   : > { %v4042_v44 = vmax.f32 %v3978_v26, 0.0  ;;  %4364 = vmatmul.bf16.gmra.mxu2 %v13950_v13  ;;  %v14063_v13 = vperm.slane %v14058_v7, 0  ;;  %v3818_v26 = vadd.f32 %v13597_v28, %v17120_v48 }
 0x68a   : > { %v14048_v63 = vpop.f32.mrf.mxu0 }
 0x68b   : > { %17117 = vst [vmem:[#allocation28_spill] sm:$0xff] %v14048_v63  ;;  %v14050_v62 = vpack.c.bf16 %v4042_v44, %v4040_v35  ;;  %v4303_v23 = vadd.f32 %v13858_v21, %v14063_v13  ;;  %v4301_v46 = vadd.f32 %v13828_v2, %v14063_v13 }
 0x68c   : > { %v3904_v14 = vpop.f32.mrf.mxu1  ;;  %v14052_v38 = vpop.f32.mrf.mxu2 }
 0x68d   : > { %4443 = vmatmul.bf16.gmra.mxu3 %v14050_v62  ;;  %4552 = vmatmul.bf16.gmra.mxu0 %v4089_v4  ;;  %v3905_v19 = vadd.f32 %v3904_v14, %v3816_v60  ;;  %v4392_v17 = vadd.f32 %v13941_v56, %v4303_v23  ;;  %v4390_v14 = vadd.f32 %v13922_v49, %v4301_v46 }
 0x68f   : > { %4586 = vmatmul.bf16.gmra.mxu1 %v13745_v33  ;;  %v9439_v33 = vld [vmem:[%s16851_s2 + $0x5d0] sm:$0xf]  ;;  %v3980_v28 = vadd.f32 %v13559_v54, %v3905_v19  ;;  %v4649_v2 = vmax.f32 %v4392_v17, 0.0  ;;  %v4647_v23 = vmax.f32 %v4390_v14, 0.0  ;;  %v4306_v14 = vadd.f32 %v13872_v30, %v14063_v13 }
 0x690   : > { %v14066_v0 = vpop.f32.mrf.mxu3  ;;  %v9440_v44 = vor.u32 %v10076_v24, %v9439_v33 }
 0x691   : > { %v4044_v48 = vmax.f32 %v3980_v28, 0.0  ;;  %v14093_v53 = vpack.c.bf16 %v4649_v2, %v4647_v23 }
 0x692   : > { %v14070_v12 = vpop.f32.mrf.mxu0  ;;  %5254 = vmatpush.bf16.msrb.mxu1 %v9440_v44 }
 0x693   : > { %17119 = vst [vmem:[#allocation21_spill] sm:$0xff] %v14070_v12 }
 0x694   : > { %v3906_v21 = vpop.f32.mrf.mxu1  ;;  %v14083_v35 = vpop.f32.mrf.mxu2 }
 0x695   : > { %v3907_v18 = vadd.f32 %v3906_v21, %v3818_v26  ;;  %v17121_v26 = vld [vmem:[#allocation60_spill] sm:$0xff] }
 0x696   : > { %v3821_v46 = vadd.f32 %v13615_v42, %v17121_v26  ;;  %v17122_v21 = vld [vmem:[#allocation12_spill] sm:$0xff] }
 0x697   : > { %v3982_v56 = vadd.f32 %v13559_v54, %v3907_v18  ;;  %v3823_v44 = vadd.f32 %v13634_v10, %v17122_v21 }
 0x698   : > { %v14088_v60 = vpop.f32.mrf.mxu3 }
 0x699   : > { %v4046_v12 = vmax.f32 %v3982_v56, 0.0  ;;  %4369 = vmatmul.bf16.gmra.mxu2 %v14008_v37  ;;  %v4308_v37 = vadd.f32 %v13896_v27, %v14063_v13 }
 0x69a   : > { %v14091_v63 = vpop.f32.mrf.mxu0 }
 0x69b   : > { %v14095_v33 = vpack.c.bf16 %v4046_v12, %v4044_v48  ;;  %v4397_v28 = vadd.f32 %v13993_v22, %v4308_v37 }
 0x69c   : > { %v3909_v49 = vpop.f32.mrf.mxu1  ;;  %v14097_v19 = vpop.f32.mrf.mxu2 }
 0x69d   : > { %4448 = vmatmul.bf16.gmra.mxu3 %v14095_v33  ;;  %5171 = vmatmul.bf16.vlgmr.msrb.gmra.mxu0 %v14093_v53  ;;  %v3910_v24 = vadd.f32 %v3909_v49, %v3821_v46  ;;  %v4653_v27 = vmax.f32 %v4397_v28, 0.0 }
 0x69f   : > { %4591 = vmatmul.bf16.gmra.mxu1 %v13785_v16  ;;  %v4395_v16 = vadd.f32 %v13962_v39, %v4306_v14  ;;  %v3984_v2 = vadd.f32 %v13559_v54, %v3910_v24  ;;  %v17124_v24 = vld [vmem:[#allocation16_spill] sm:$0xff] }
 0x6a0   : > { %v14104_v17 = vpop.f32.mrf.mxu3  ;;  %v3826_v21 = vadd.f32 %v13652_v45, %v17124_v24  ;;  %v9431_v45 = vld [vmem:[%s16851_s2 + $0x5c0] sm:$0xf] }
 0x6a1   : > { %v4651_v49 = vmax.f32 %v4395_v16, 0.0  ;;  %v4048_v10 = vmax.f32 %v3984_v2, 0.0  ;;  %v4311_v2 = vadd.f32 %v13912_v47, %v14063_v13 }
 0x6a2   : > { %v14108_v12 = vpop.f32.mrf.mxu0 }
 0x6a3   : > { %v14126_v46 = vpack.c.bf16 %v4653_v27, %v4651_v49 }
 0x6a4   : > { %v3911_v18 = vpop.f32.mrf.mxu1  ;;  %v14115_v42 = vpop.f32.mrf.mxu2 }
 0x6a5   : > { %v3912_v56 = vadd.f32 %v3911_v18, %v3823_v44  ;;  %17123 = vst [vmem:[#allocation2_spill] sm:$0xff] %v14126_v46  ;;  %v17125_v18 = vld [vmem:[#allocation15_spill] sm:$0xff] }
 0x6a6   : > { %v3828_v16 = vadd.f32 %v13679_v1, %v17125_v18  ;;  %v4400_v1 = vadd.f32 %v14026_v8, %v4311_v2  ;;  %v9393_v2 = vld [vmem:[%s16851_s2 + $0x578] sm:$0xf0] }
 0x6a7   : > { %v3986_v23 = vadd.f32 %v13559_v54, %v3912_v56 }
 0x6a8   : > { %v14120_v48 = vpop.f32.mrf.mxu3 }
 0x6a9   : > { %v4050_v26 = vmax.f32 %v3986_v23, 0.0  ;;  %4374 = vmatmul.bf16.gmra.mxu2 %v4089_v4  ;;  %v4313_v4 = vadd.f32 %v13936_v15, %v14063_v13 }
 0x6aa   : > { %v14122_v30 = vpop.f32.mrf.mxu0 }
 0x6ab   : > { %v14124_v22 = vpack.c.bf16 %v4050_v26, %v4048_v10  ;;  %v4402_v56 = vadd.f32 %v14045_v11, %v4313_v4  ;;  %v14160_v4 = vld [vmem:[%s10689_s29] sm:$0xff] }
 0x6ac   : > { %v3914_v37 = vpop.f32.mrf.mxu1  ;;  %v14128_v39 = vpop.f32.mrf.mxu2 }
 0x6ad   : > { %4453 = vmatmul.bf16.gmra.mxu3 %v14124_v22  ;;  %5176 = vmatmul.bf16.gmra.mxu0 %v14126_v46  ;;  %v3915_v14 = vadd.f32 %v3914_v37, %v3826_v21  ;;  %v4657_v11 = vmax.f32 %v4402_v56, 0.0  ;;  %v4655_v37 = vmax.f32 %v4400_v1, 0.0  ;;  %v10079_v1 = vld [vmem:[%s16851_s2 + $0x5f4] sm:$0xf] }
 0x6af   : > { %4596 = vmatmul.bf16.gmra.mxu1 %v13818_v59  ;;  %v10074_v59 = vld [vmem:[%s16851_s2 + $0x5c4] sm:$0xf0]  ;;  %v3988_v49 = vadd.f32 %v13559_v54, %v3915_v14  ;;  %v14168_v14 = vpack.c.bf16 %v4657_v11, %v4655_v37 }
 0x6b0   : > { %v14135_v44 = vpop.f32.mrf.mxu3  ;;  %v9432_v23 = vor.u32 %v10074_v59, %v9431_v45 }
 0x6b1   : > { %v4052_v24 = vmax.f32 %v3988_v49, 0.0  ;;  %17126 = vst [vmem:[#allocation3_spill] sm:$0xff] %v14168_v14  ;;  %v9457_v49 = vld [vmem:[%s16851_s2 + $0x5f8] sm:$0xf0] }
 0x6b2   : > { %v14139_v28 = vpop.f32.mrf.mxu0  ;;  %5255 = vmatpush.bf16.msrb.mxu1 %v9432_v23  ;;  %v9460_v11 = vor.u32 %v10079_v1, %v9457_v49 }
 0x6b4   : > { %v3916_v15 = vpop.f32.mrf.mxu1  ;;  %v14152_v27 = vpop.f32.mrf.mxu2  ;;  %5430 = vmatpush.bf16.msra.mxu3 %v9460_v11 }
 0x6b5   : > { %v3917_v47 = vadd.f32 %v3916_v15, %v3828_v16  ;;  %v10063_v16 = vld [vmem:[%s16851_s2 + $0x574] sm:$0xf]  ;;  %v17127_v15 = vld [vmem:[#allocation17_spill] sm:$0xff] }
 0x6b6   : > { %v9396_v59 = vor.u32 %v10063_v16, %v9393_v2  ;;  %v3831_v23 = vadd.f32 %v13704_v57, %v17127_v15  ;;  %v17128_v57 = vld [vmem:[#allocation62_spill] sm:$0xff] }
 0x6b7   : > { %v3990_v10 = vadd.f32 %v13559_v54, %v3917_v47 }
 0x6b8   : > { %v14157_v26 = vpop.f32.mrf.mxu3  ;;  %5341 = vmatpush.bf16.msrb.mxu2 %v9396_v59 }
 0x6b9   : > { %v4054_v21 = vmax.f32 %v3990_v10, 0.0  ;;  %9301 = vmatmul.msk.bf16.vlgmr.msra.gmra.mxu2 %vm579_vm0, %v14160_v4  ;;  %v4318_v10 = vadd.f32 %v13982_v31, %v14063_v13 }
 0x6ba   : > { %v14164_v18 = vpop.f32.mrf.mxu0 }
 0x6bb   : > { %v14166_v8 = vpack.c.bf16 %v4054_v21, %v4052_v24  ;;  %v4316_v21 = vadd.f32 %v13952_v43, %v14063_v13  ;;  %v4407_v16 = vadd.f32 %v14088_v60, %v4318_v10  ;;  %v14211_v60 = vld [vmem:[%s10689_s29 + $0x8] sm:$0xff] }
 0x6bc   : > { %v3919_v56 = vpop.f32.mrf.mxu1  ;;  %v14176_v45 = vpop.f32.mrf.mxu2 }
 0x6bd   : > { %4458 = vmatmul.bf16.gmra.mxu3 %v14166_v8  ;;  %5181 = vmatmul.bf16.gmra.mxu0 %v14168_v14  ;;  %v3920_v37 = vadd.f32 %v3919_v56, %v3831_v23  ;;  %v4405_v15 = vadd.f32 %v14066_v0, %v4316_v21  ;;  %v14205_v23 = vperm.slane %v14058_v7, 1  ;;  %v4661_v1 = vmax.f32 %v4407_v16, 0.0 }
 0x6bf   : > { %4601 = vmatmul.bf16.gmra.mxu1 %v13868_v3  ;;  %v3833_v3 = vadd.f32 %v13722_v5, %v17128_v57  ;;  %v3992_v31 = vadd.f32 %v13559_v54, %v3920_v37  ;;  %v4659_v11 = vmax.f32 %v4405_v15, 0.0  ;;  %v4479_v10 = vadd.f32 %v13739_v34, %v14205_v23 }
 0x6c0   : > { %v14189_v47 = vpop.f32.mrf.mxu3  ;;  %v4481_v15 = vadd.f32 %v13763_v40, %v14205_v23 }
 0x6c1   : > { %v4056_v43 = vmax.f32 %v3992_v31, 0.0  ;;  %v14221_v37 = vpack.c.bf16 %v4661_v1, %v4659_v11  ;;  %v4321_v31 = vadd.f32 %v14016_v6, %v14063_v13  ;;  %v10072_v1 = vld [vmem:[%s16851_s2 + $0x5b4] sm:$0xf0] }
 0x6c2   : > { %v14193_v24 = vpop.f32.mrf.mxu0 }
 0x6c3   : > { %17129 = vst [vmem:[#allocation23_spill] sm:$0xff] %v14221_v37  ;;  %v4410_v40 = vadd.f32 %v14104_v17, %v4321_v31  ;;  %v4484_v17 = vadd.f32 %v13775_v52, %v14205_v23  ;;  %v9385_v31 = vld [vmem:[%s16851_s2 + $0x568] sm:$0xf0]  ;;  %v10077_v52 = vld [vmem:[%s16851_s2 + $0x5e4] sm:$0xf] }
 0x6c4   : > { %v3921_v2 = vpop.f32.mrf.mxu1  ;;  %v14200_v59 = vpop.f32.mrf.mxu2 }
 0x6c5   : > { %v3922_v56 = vadd.f32 %v3921_v2, %v3833_v3  ;;  %v4323_v2 = vadd.f32 %v14040_v36, %v14063_v13 }
 0x6c7   : > { %v3994_v49 = vadd.f32 %v13559_v54, %v3922_v56  ;;  %v4412_v56 = vadd.f32 %v14120_v48, %v4323_v2 }
 0x6c8   : > { %v14208_v5 = vpop.f32.mrf.mxu3 }
 0x6c9   : > { %v4058_v57 = vmax.f32 %v3994_v49, 0.0  ;;  %9302 = vmatmul.msk.bf16.gmra.mxu2 %vm579_vm0, %v14211_v60  ;;  %v4665_v6 = vmax.f32 %v4412_v56, 0.0 }
 0x6ca   : > { %v14215_v0 = vpop.f32.mrf.mxu0 }
 0x6cb   : > { %v14219_v7 = vpack.c.bf16 %v4058_v57, %v4056_v43 }
 0x6cc   : > { %v14223_v54 = vpop.f32.mrf.mxu2  ;;  %v4567_v3 = vpop.f32.mrf.mxu1 }
 0x6cd   : > { %v4568_v21 = vadd.f32 %v4567_v3, %v4479_v10  ;;  %4463 = vmatmul.bf16.gmra.mxu3 %v14219_v7  ;;  %5186 = vmatmul.bf16.gmra.mxu0 %v14221_v37  ;;  %v4663_v3 = vmax.f32 %v4410_v40, 0.0  ;;  %v14253_v37 = vld [vmem:[%s10689_s29 + $0x10] sm:$0xff] }
 0x6cf   : > { %4606 = vmatmul.bf16.gmra.mxu1 %v13908_v29  ;;  %v9423_v29 = vld [vmem:[%s16851_s2 + $0x5b0] sm:$0xf]  ;;  %v4648_v57 = vmax.f32 %v4568_v21, 0.0  ;;  %v10061_v21 = vld [vmem:[%s16851_s2 + $0x564] sm:$0xf] }
 0x6d0   : > { %v14228_v16 = vpop.f32.mrf.mxu3  ;;  %v9424_v11 = vor.u32 %v10072_v1, %v9423_v29  ;;  %v9388_v1 = vor.u32 %v10061_v21, %v9385_v31 }
 0x6d2   : > { %v14232_v34 = vpop.f32.mrf.mxu0  ;;  %5256 = vmatpush.bf16.msrb.mxu1 %v9424_v11  ;;  %5342 = vmatpush.bf16.msrb.mxu2 %v9388_v1  ;;  %v9449_v11 = vld [vmem:[%s16851_s2 + $0x5e8] sm:$0xf0] }
 0x6d4   : > { %v14245_v36 = vpop.f32.mrf.mxu2  ;;  %v4569_v49 = vpop.f32.mrf.mxu1 }
 0x6d5   : > { %v4570_v43 = vadd.f32 %v4569_v49, %v4481_v15  ;;  %v14261_v15 = vpack.c.bf16 %v4665_v6, %v4663_v3  ;;  %v10104_v6 = vld [vmem:[%s16851_s2 + $0x674] sm:$0xf0]  ;;  %v4486_v3 = vadd.f32 %v13802_v20, %v14205_v23 }
 0x6d7   : > { %v4650_v10 = vmax.f32 %v4570_v43, 0.0  ;;  %17130 = vst [vmem:[#allocation30_spill] sm:$0xff] %v14261_v15  ;;  %v9452_v43 = vor.u32 %v10077_v52, %v9449_v11 }
 0x6d8   : > { %v14248_v48 = vpop.f32.mrf.mxu3 }
 0x6d9   : > { %v14250_v2 = vpack.c.bf16 %v4650_v10, %v4648_v57  ;;  %9303 = vmatmul.msk.bf16.gmra.mxu2 %vm579_vm0, %v14253_v37  ;;  %5431 = vmatpush.bf16.msra.mxu3 %v9452_v43 }
 0x6da   : > { %v14257_v14 = vpop.f32.mrf.mxu0 }
 0x6dc   : > { %v14269_v56 = vpop.f32.mrf.mxu2  ;;  %v4572_v29 = vpop.f32.mrf.mxu1 }
 0x6dd   : > { %v4573_v49 = vadd.f32 %v4572_v29, %v4484_v17  ;;  %9317 = vmatmul.msk.bf16.vlgmr.msrb.gmra.mxu3 %vm579_vm0, %v14160_v4  ;;  %5191 = vmatmul.bf16.gmra.mxu0 %v14261_v15  ;;  %v9553_v4 = vld [vmem:[%s16851_s2 + $0x670] sm:$0xf]  ;;  %v4326_v17 = vadd.f32 %v14052_v38, %v14063_v13  ;;  %v14304_v15 = vld [vmem:[%s10689_s29 + $0x18] sm:$0xff] }
 0x6de   : > { %v9554_v57 = vor.u32 %v10104_v6, %v9553_v4 }
 0x6df   : > { %4611 = vmatmul.bf16.gmra.mxu1 %v13948_v25  ;;  %v4328_v25 = vadd.f32 %v14083_v35, %v14063_v13  ;;  %v4415_v1 = vadd.f32 %v14135_v44, %v4326_v17  ;;  %v4652_v11 = vmax.f32 %v4573_v49, 0.0  ;;  %v4333_v17 = vadd.f32 %v14115_v42, %v14063_v13 }
 0x6e0   : > { %v14281_v40 = vpop.f32.mrf.mxu3  ;;  %5886 = vmatpush.bf16.msra.mxu0 %v9554_v57 }
 0x6e1   : > { %v4417_v21 = vadd.f32 %v14157_v26, %v4328_v25  ;;  %v4667_v43 = vmax.f32 %v4415_v1, 0.0  ;;  %v4489_v26 = vadd.f32 %v13814_v51, %v14205_v23  ;;  %v17132_v51 = vld [vmem:[#allocation26_spill] sm:$0xff]  ;;  %v4331_v1 = vadd.f32 %v14097_v19, %v14063_v13 }
 0x6e2   : > { %v14291_v10 = vpop.f32.mrf.mxu0 }
 0x6e3   : > { %v4669_v52 = vmax.f32 %v4417_v21, 0.0 }
 0x6e4   : > { %v14298_v31 = vpop.f32.mrf.mxu2  ;;  %v4574_v29 = vpop.f32.mrf.mxu1 }
 0x6e5   : > { %v4575_v35 = vadd.f32 %v4574_v29, %v4486_v3  ;;  %v14314_v44 = vpack.c.bf16 %v4669_v52, %v4667_v43  ;;  %v4491_v29 = vadd.f32 %v17132_v51, %v14205_v23  ;;  %v14345_v51 = vld [vmem:[%s10689_s29 + $0x20] sm:$0xff] }
 0x6e7   : > { %v4654_v4 = vmax.f32 %v4575_v35, 0.0  ;;  %17131 = vst [vmem:[#allocation32_spill] sm:$0xff] %v14314_v44  ;;  %v10070_v35 = vld [vmem:[%s16851_s2 + $0x5a4] sm:$0xf0] }
 0x6e8   : > { %v14301_v6 = vpop.f32.mrf.mxu3 }
 0x6e9   : > { %9304 = vmatmul.msk.bf16.gmra.mxu2 %vm579_vm0, %v14304_v15  ;;  %v14308_v20 = vpack.c.bf16 %v4654_v4, %v4652_v11  ;;  %v4420_v4 = vadd.f32 %v14189_v47, %v4331_v1  ;;  %v4494_v47 = vadd.f32 %v13864_v55, %v14205_v23  ;;  %v9377_v1 = vld [vmem:[%s16851_s2 + $0x558] sm:$0xf0]  ;;  %v10075_v55 = vld [vmem:[%s16851_s2 + $0x5d4] sm:$0xf] }
 0x6ea   : > { %v14310_v38 = vpop.f32.mrf.mxu0 }
 0x6ec   : > { %v14316_v25 = vpop.f32.mrf.mxu2  ;;  %v4577_v49 = vpop.f32.mrf.mxu1 }
 0x6ed   : > { %v4578_v57 = vadd.f32 %v4577_v49, %v4489_v26  ;;  %9318 = vmatmul.msk.bf16.gmra.mxu3 %vm579_vm0, %v14211_v60  ;;  %5196 = vmatmul.bf16.gmra.mxu0 %v14314_v44  ;;  %v4422_v60 = vadd.f32 %v14208_v5, %v4333_v17  ;;  %v4671_v17 = vmax.f32 %v4420_v4, 0.0 }
 0x6ef   : > { %4616 = vmatmul.bf16.gmra.mxu1 %v14006_v61  ;;  %v9415_v61 = vld [vmem:[%s16851_s2 + $0x5a0] sm:$0xf]  ;;  %v4673_v26 = vmax.f32 %v4422_v60, 0.0  ;;  %v4656_v19 = vmax.f32 %v4578_v57, 0.0  ;;  %v10059_v57 = vld [vmem:[%s16851_s2 + $0x554] sm:$0xf] }
 0x6f0   : > { %v14322_v3 = vpop.f32.mrf.mxu3  ;;  %v9416_v11 = vor.u32 %v10070_v35, %v9415_v61  ;;  %v9380_v35 = vor.u32 %v10059_v57, %v9377_v1 }
 0x6f2   : > { %v14326_v21 = vpop.f32.mrf.mxu0  ;;  %5257 = vmatpush.bf16.msrb.mxu1 %v9416_v11  ;;  %5343 = vmatpush.bf16.msrb.mxu2 %v9380_v35  ;;  %v9441_v11 = vld [vmem:[%s16851_s2 + $0x5d8] sm:$0xf0] }
 0x6f4   : > { %v14339_v42 = vpop.f32.mrf.mxu2  ;;  %v4579_v52 = vpop.f32.mrf.mxu1 }
 0x6f5   : > { %v4580_v43 = vadd.f32 %v4579_v52, %v4491_v29  ;;  %v14355_v29 = vpack.c.bf16 %v4673_v26, %v4671_v17  ;;  %v10102_v26 = vld [vmem:[%s16851_s2 + $0x664] sm:$0xf0]  ;;  %v4496_v17 = vadd.f32 %v13885_v58, %v14205_v23 }
 0x6f7   : > { %v4658_v49 = vmax.f32 %v4580_v43, 0.0  ;;  %17133 = vst [vmem:[#allocation44_spill] sm:$0xff] %v14355_v29  ;;  %v9444_v43 = vor.u32 %v10075_v55, %v9441_v11 }
 0x6f8   : > { %v14342_v5 = vpop.f32.mrf.mxu3 }
 0x6f9   : > { %9305 = vmatmul.msk.bf16.gmra.mxu2 %vm579_vm0, %v14345_v51  ;;  %v14349_v44 = vpack.c.bf16 %v4658_v49, %v4656_v19  ;;  %5432 = vmatpush.bf16.msra.mxu3 %v9444_v43 }
 0x6fa   : > { %v14351_v46 = vpop.f32.mrf.mxu0 }
 0x6fc   : > { %v14363_v60 = vpop.f32.mrf.mxu2  ;;  %v4582_v61 = vpop.f32.mrf.mxu1 }
 0x6fd   : > { %v4583_v52 = vadd.f32 %v4582_v61, %v4494_v47  ;;  %9319 = vmatmul.msk.bf16.gmra.mxu3 %vm579_vm0, %v14253_v37  ;;  %5201 = vmatmul.bf16.gmra.mxu0 %v14355_v29  ;;  %v9545_v37 = vld [vmem:[%s16851_s2 + $0x660] sm:$0xf]  ;;  %v4336_v47 = vadd.f32 %v14128_v39, %v14063_v13  ;;  %v14398_v29 = vld [vmem:[%s10689_s29 + $0x28] sm:$0xff] }
 0x6fe   : > { %v9546_v19 = vor.u32 %v10102_v26, %v9545_v37 }
 0x6ff   : > { %4621 = vmatmul.bf16.gmra.mxu1 %v14050_v62  ;;  %v4338_v62 = vadd.f32 %v14152_v27, %v14063_v13  ;;  %v4425_v35 = vadd.f32 %v14228_v16, %v4336_v47  ;;  %v4660_v11 = vmax.f32 %v4583_v52, 0.0  ;;  %v4343_v47 = vadd.f32 %v14200_v59, %v14063_v13 }
 0x700   : > { %v14375_v4 = vpop.f32.mrf.mxu3  ;;  %5887 = vmatpush.bf16.msra.mxu0 %v9546_v19 }
 0x701   : > { %v4427_v57 = vadd.f32 %v14248_v48, %v4338_v62  ;;  %v4675_v43 = vmax.f32 %v4425_v35, 0.0  ;;  %v4499_v48 = vadd.f32 %v13904_v50, %v14205_v23  ;;  %v4501_v50 = vadd.f32 %v13931_v9, %v14205_v23  ;;  %v10068_v35 = vld [vmem:[%s16851_s2 + $0x594] sm:$0xf0] }
 0x702   : > { %v14385_v49 = vpop.f32.mrf.mxu0 }
 0x703   : > { %v4677_v55 = vmax.f32 %v4427_v57, 0.0 }
 0x704   : > { %v14392_v1 = vpop.f32.mrf.mxu2  ;;  %v4584_v61 = vpop.f32.mrf.mxu1 }
 0x705   : > { %v4585_v27 = vadd.f32 %v4584_v61, %v4496_v17  ;;  %v14408_v16 = vpack.c.bf16 %v4677_v55, %v4675_v43  ;;  %v4341_v61 = vadd.f32 %v14176_v45, %v14063_v13 }
 0x707   : > { %v4662_v37 = vmax.f32 %v4585_v27, 0.0  ;;  %17135 = vst [vmem:[#allocation24_spill] sm:$0xff] %v14408_v16  ;;  %v4430_v9 = vadd.f32 %v14281_v40, %v4341_v61  ;;  %v4504_v40 = vadd.f32 %v13944_v32, %v14205_v23  ;;  %v9369_v61 = vld [vmem:[%s16851_s2 + $0x548] sm:$0xf0]  ;;  %v10073_v32 = vld [vmem:[%s16851_s2 + $0x5c4] sm:$0xf] }
 0x708   : > { %v14395_v26 = vpop.f32.mrf.mxu3 }
 0x709   : > { %9306 = vmatmul.msk.bf16.gmra.mxu2 %vm579_vm0, %v14398_v29  ;;  %v14402_v58 = vpack.c.bf16 %v4662_v37, %v4660_v11 }
 0x70a   : > { %v14404_v39 = vpop.f32.mrf.mxu0 }
 0x70b   : > { %17134 = vst [vmem:[#allocation25_spill] sm:$0xff] %v14404_v39  ;;  %v14588_v39 = vld [vmem:[%s10689_s29 + $0x48] sm:$0xff] }
 0x70c   : > { %v14410_v62 = vpop.f32.mrf.mxu2  ;;  %v4587_v52 = vpop.f32.mrf.mxu1 }
 0x70d   : > { %v4588_v19 = vadd.f32 %v4587_v52, %v4499_v48  ;;  %9320 = vmatmul.msk.bf16.gmra.mxu3 %vm579_vm0, %v14304_v15  ;;  %5206 = vmatmul.bf16.gmra.mxu0 %v14408_v16  ;;  %v4432_v15 = vadd.f32 %v14301_v6, %v4343_v47  ;;  %v4679_v48 = vmax.f32 %v4430_v9, 0.0  ;;  %v14439_v52 = vld [vmem:[%s10689_s29 + $0x30] sm:$0xff] }
 0x70f   : > { %4626 = vmatmul.bf16.gmra.mxu1 %v14095_v33  ;;  %v9407_v33 = vld [vmem:[%s16851_s2 + $0x590] sm:$0xf]  ;;  %v4681_v37 = vmax.f32 %v4432_v15, 0.0  ;;  %v4664_v45 = vmax.f32 %v4588_v19, 0.0  ;;  %v10057_v19 = vld [vmem:[%s16851_s2 + $0x544] sm:$0xf] }
 0x710   : > { %v14416_v17 = vpop.f32.mrf.mxu3  ;;  %v9408_v55 = vor.u32 %v10068_v35, %v9407_v33  ;;  %v9372_v35 = vor.u32 %v10057_v19, %v9369_v61  ;;  %v4346_v19 = vadd.f32 %v14223_v54, %v14063_v13 }
 0x712   : > { %v14420_v57 = vpop.f32.mrf.mxu0  ;;  %5258 = vmatpush.bf16.msrb.mxu1 %v9408_v55  ;;  %5344 = vmatpush.bf16.msrb.mxu2 %v9372_v35  ;;  %v9433_v55 = vld [vmem:[%s16851_s2 + $0x5c8] sm:$0xf0] }
 0x713   : > { %17136 = vst [vmem:[#allocation34_spill] sm:$0xff] %v14420_v57  ;;  %v14492_v57 = vld [vmem:[%s10689_s29 + $0x38] sm:$0xff] }
 0x714   : > { %v14433_v59 = vpop.f32.mrf.mxu2  ;;  %v4589_v27 = vpop.f32.mrf.mxu1 }
 0x715   : > { %v4590_v11 = vadd.f32 %v4589_v27, %v4501_v50  ;;  %v14449_v50 = vpack.c.bf16 %v4681_v37, %v4679_v48  ;;  %v10100_v37 = vld [vmem:[%s16851_s2 + $0x654] sm:$0xf0]  ;;  %v17138_v48 = vld [vmem:[#allocation18_spill] sm:$0xff] }
 0x717   : > { %v4666_v43 = vmax.f32 %v4590_v11, 0.0  ;;  %17137 = vst [vmem:[#allocation46_spill] sm:$0xff] %v14449_v50  ;;  %v9436_v11 = vor.u32 %v10073_v32, %v9433_v55  ;;  %v4435_v32 = vadd.f32 %v14322_v3, %v4346_v19  ;;  %v9399_v3 = vld [vmem:[%s16851_s2 + $0x580] sm:$0xf] }
 0x718   : > { %v14436_v6 = vpop.f32.mrf.mxu3 }
 0x719   : > { %9307 = vmatmul.msk.bf16.gmra.mxu2 %vm579_vm0, %v14439_v52  ;;  %v14443_v47 = vpack.c.bf16 %v4666_v43, %v4664_v45  ;;  %5433 = vmatpush.bf16.msra.mxu3 %v9436_v11  ;;  %v4683_v11 = vmax.f32 %v4435_v32, 0.0 }
 0x71a   : > { %v14445_v16 = vpop.f32.mrf.mxu0 }
 0x71c   : > { %v14457_v15 = vpop.f32.mrf.mxu2  ;;  %v4592_v33 = vpop.f32.mrf.mxu1 }
 0x71d   : > { %v4593_v27 = vadd.f32 %v4592_v33, %v4504_v40  ;;  %9321 = vmatmul.msk.bf16.gmra.mxu3 %vm579_vm0, %v14345_v51  ;;  %5211 = vmatmul.bf16.gmra.mxu0 %v14449_v50  ;;  %v9537_v51 = vld [vmem:[%s16851_s2 + $0x650] sm:$0xf]  ;;  %v4506_v40 = vadd.f32 %v17138_v48, %v14205_v23 }
 0x71e   : > { %v9538_v45 = vor.u32 %v10100_v37, %v9537_v51 }
 0x71f   : > { %4631 = vmatmul.bf16.gmra.mxu1 %v14124_v22  ;;  %v4348_v22 = vadd.f32 %v14245_v36, %v14063_v13  ;;  %v4668_v51 = vmax.f32 %v4593_v27, 0.0  ;;  %v10066_v27 = vld [vmem:[%s16851_s2 + $0x584] sm:$0xf0] }
 0x720   : > { %v14469_v9 = vpop.f32.mrf.mxu3  ;;  %5888 = vmatpush.bf16.msra.mxu0 %v9538_v45  ;;  %v9400_v48 = vor.u32 %v10066_v27, %v9399_v3 }
 0x721   : > { %v4437_v61 = vadd.f32 %v14342_v5, %v4348_v22  ;;  %v4509_v22 = vadd.f32 %v14002_v41, %v14205_v23  ;;  %v4353_v41 = vadd.f32 %v14298_v31, %v14063_v13 }
 0x722   : > { %v14479_v43 = vpop.f32.mrf.mxu0  ;;  %5259 = vmatpush.bf16.msrb.mxu1 %v9400_v48 }
 0x723   : > { %v4685_v55 = vmax.f32 %v4437_v61, 0.0 }
 0x724   : > { %v14486_v33 = vpop.f32.mrf.mxu2  ;;  %v4594_v35 = vpop.f32.mrf.mxu1 }
 0x725   : > { %v4595_v36 = vadd.f32 %v4594_v35, %v4506_v40  ;;  %v14508_v45 = vpack.c.bf16 %v4685_v55, %v4683_v11 }
 0x727   : > { %v4670_v37 = vmax.f32 %v4595_v36, 0.0  ;;  %17139 = vst [vmem:[#allocation36_spill] sm:$0xff] %v14508_v45  ;;  %v17140_v36 = vld [vmem:[#allocation20_spill] sm:$0xff] }
 0x728   : > { %v14489_v50 = vpop.f32.mrf.mxu3  ;;  %v4511_v55 = vadd.f32 %v17140_v36, %v14205_v23 }
 0x729   : > { %9308 = vmatmul.msk.bf16.gmra.mxu2 %vm579_vm0, %v14492_v57  ;;  %v14496_v54 = vpack.c.bf16 %v4670_v37, %v4668_v51  ;;  %v4351_v51 = vadd.f32 %v14269_v56, %v14063_v13 }
 0x72a   : > { %v14498_v5 = vpop.f32.mrf.mxu0 }
 0x72c   : > { %v14510_v40 = vpop.f32.mrf.mxu2  ;;  %v4597_v19 = vpop.f32.mrf.mxu1 }
 0x72d   : > { %v4598_v61 = vadd.f32 %v4597_v19, %v4509_v22  ;;  %9322 = vmatmul.msk.bf16.gmra.mxu3 %vm579_vm0, %v14398_v29  ;;  %5216 = vmatmul.bf16.gmra.mxu0 %v14508_v45  ;;  %v4442_v29 = vadd.f32 %v14395_v26, %v4353_v41  ;;  %v14533_v45 = vld [vmem:[%s10689_s29 + $0x40] sm:$0xff]  ;;  %v17141_v41 = vld [vmem:[#allocation28_spill] sm:$0xff] }
 0x72e   : > { %v4514_v36 = vadd.f32 %v17141_v41, %v14205_v23 }
 0x72f   : > { %4636 = vmatmul.bf16.gmra.mxu1 %v14166_v8  ;;  %v4440_v8 = vadd.f32 %v14375_v4, %v4351_v51  ;;  %v4689_v27 = vmax.f32 %v4442_v29, 0.0  ;;  %v4672_v22 = vmax.f32 %v4598_v61, 0.0  ;;  %v10055_v61 = vld [vmem:[%s16851_s2 + $0x534] sm:$0xf] }
 0x730   : > { %v14516_v35 = vpop.f32.mrf.mxu3 }
 0x731   : > { %v4687_v19 = vmax.f32 %v4440_v8, 0.0 }
 0x732   : > { %v14520_v32 = vpop.f32.mrf.mxu0 }
 0x733   : > { %v14543_v4 = vpack.c.bf16 %v4689_v27, %v4687_v19  ;;  %v10071_v27 = vld [vmem:[%s16851_s2 + $0x5b4] sm:$0xf]  ;;  %v10098_v19 = vld [vmem:[%s16851_s2 + $0x644] sm:$0xf0] }
 0x734   : > { %v14527_v37 = vpop.f32.mrf.mxu2  ;;  %v4599_v11 = vpop.f32.mrf.mxu1 }
 0x735   : > { %v4600_v3 = vadd.f32 %v4599_v11, %v4511_v55  ;;  %17142 = vst [vmem:[#allocation48_spill] sm:$0xff] %v14543_v4  ;;  %v9361_v55 = vld [vmem:[%s16851_s2 + $0x538] sm:$0xf0] }
 0x736   : > { %v9364_v11 = vor.u32 %v10055_v61, %v9361_v55  ;;  %v17144_v61 = vld [vmem:[#allocation21_spill] sm:$0xff] }
 0x737   : > { %v4674_v48 = vmax.f32 %v4600_v3, 0.0  ;;  %v4516_v55 = vadd.f32 %v17144_v61, %v14205_v23 }
 0x738   : > { %v14530_v31 = vpop.f32.mrf.mxu3  ;;  %5345 = vmatpush.bf16.msrb.mxu2 %v9364_v11 }
 0x739   : > { %9309 = vmatmul.msk.bf16.gmra.mxu2 %vm579_vm0, %v14533_v45  ;;  %v14537_v56 = vpack.c.bf16 %v4674_v48, %v4672_v22  ;;  %v9425_v22 = vld [vmem:[%s16851_s2 + $0x5b8] sm:$0xf0] }
 0x73a   : > { %v14539_v26 = vpop.f32.mrf.mxu0 }
 0x73c   : > { %v4602_v51 = vpop.f32.mrf.mxu1  ;;  %v4834_v29 = vpop.f32.mrf.mxu2 }
 0x73d   : > { %v4603_v8 = vadd.f32 %v4602_v51, %v4514_v36  ;;  %v14552_v3 = vadd.f32 %v14445_v16, %v4834_v29  ;;  %9323 = vmatmul.msk.bf16.gmra.mxu3 %vm579_vm0, %v14439_v52  ;;  %5221 = vmatmul.bf16.gmra.mxu0 %v14543_v4  ;;  %v9428_v16 = vor.u32 %v10071_v27, %v9425_v22  ;;  %v9529_v52 = vld [vmem:[%s16851_s2 + $0x640] sm:$0xf] }
 0x73e   : > { %v9530_v41 = vor.u32 %v10098_v19, %v9529_v52  ;;  %v4356_v51 = vadd.f32 %v14316_v25, %v14063_v13 }
 0x73f   : > { %17143 = vst [vmem:[#allocation9_spill] sm:$0xff] %v14552_v3  ;;  %4641 = vmatmul.bf16.gmra.mxu1 %v14219_v7  ;;  %v4358_v7 = vadd.f32 %v14339_v42, %v14063_v13  ;;  %5434 = vmatpush.bf16.msra.mxu3 %v9428_v16  ;;  %v4676_v19 = vmax.f32 %v4603_v8, 0.0 }
 0x740   : > { %v14564_v48 = vpop.f32.mrf.mxu3  ;;  %5889 = vmatpush.bf16.msra.mxu0 %v9530_v41  ;;  %v4445_v22 = vadd.f32 %v14416_v17, %v4356_v51  ;;  %v4519_v17 = vadd.f32 %v14091_v63, %v14205_v23  ;;  %v9617_v63 = vld [vmem:[%s16851_s2 + $0x6f0] sm:$0xf]  ;;  %v10120_v51 = vld [vmem:[%s16851_s2 + $0x6f4] sm:$0xf0] }
 0x741   : > { %v4447_v29 = vadd.f32 %v14436_v6, %v4358_v7 }
 0x742   : > { %v14574_v36 = vpop.f32.mrf.mxu0  ;;  %v4691_v61 = vmax.f32 %v4445_v22, 0.0 }
 0x743   : > { %v4693_v52 = vmax.f32 %v4447_v29, 0.0  ;;  %v9618_v29 = vor.u32 %v10120_v51, %v9617_v63  ;;  %v14631_v51 = vld [vmem:[%s10689_s29 + $0x50] sm:$0xff] }
 0x744   : > { %v4604_v11 = vpop.f32.mrf.mxu1  ;;  %v4836_v27 = vpop.f32.mrf.mxu2 }
 0x745   : > { %v4605_v4 = vadd.f32 %v4604_v11, %v4516_v55  ;;  %v14583_v42 = vadd.f32 %v14479_v43, %v4836_v27  ;;  %v14598_v43 = vpack.c.bf16 %v4693_v52, %v4691_v61  ;;  %v4521_v11 = vadd.f32 %v14108_v12, %v14205_v23  ;;  %5975 = vmatpush.bf16.msra.mxu1 %v9618_v29 }
 0x746   : > { %v4361_v27 = vadd.f32 %v14363_v60, %v14063_v13 }
 0x747   : > { %v4678_v16 = vmax.f32 %v4605_v4, 0.0 }
 0x748   : > { %v14585_v3 = vpop.f32.mrf.mxu3 }
 0x749   : > { %9310 = vmatmul.msk.bf16.gmra.mxu2 %vm579_vm0, %v14588_v39  ;;  %v14592_v25 = vpack.c.bf16 %v4678_v16, %v4676_v19  ;;  %v4450_v16 = vadd.f32 %v14469_v9, %v4361_v27  ;;  %v10053_v9 = vld [vmem:[%s16851_s2 + $0x524] sm:$0xf] }
 0x74a   : > { %v14594_v6 = vpop.f32.mrf.mxu0 }
 0x74b   : > { %v4695_v12 = vmax.f32 %v4450_v16, 0.0 }
 0x74c   : > { %v4607_v7 = vpop.f32.mrf.mxu1  ;;  %v4839_v8 = vpop.f32.mrf.mxu2 }
 0x74d   : > { %v4608_v4 = vadd.f32 %v4607_v7, %v4519_v17  ;;  %v14601_v41 = vadd.f32 %v14498_v5, %v4839_v8  ;;  %9324 = vmatmul.msk.bf16.gmra.mxu3 %vm579_vm0, %v14492_v57  ;;  %5226 = vmatmul.bf16.gmra.mxu0 %v14598_v43  ;;  %v4363_v5 = vadd.f32 %v14392_v1, %v14063_v13 }
 0x74f   : > { %5260 = vmatmul.bf16.vlgmr.msrb.gmra.mxu1 %v14250_v2  ;;  %v4452_v22 = vadd.f32 %v14489_v50, %v4363_v5  ;;  %v4680_v7 = vmax.f32 %v4608_v4, 0.0  ;;  %v4524_v4 = vadd.f32 %v14122_v30, %v14205_v23  ;;  %v10069_v30 = vld [vmem:[%s16851_s2 + $0x5a4] sm:$0xf] }
 0x750   : > { %v14607_v55 = vpop.f32.mrf.mxu3 }
 0x751   : > { %v4697_v17 = vmax.f32 %v4452_v22, 0.0 }
 0x752   : > { %v14617_v57 = vpop.f32.mrf.mxu0 }
 0x753   : > { %v14647_v5 = vpack.c.bf16 %v4697_v17, %v4695_v12  ;;  %v4368_v17 = vadd.f32 %v14433_v59, %v14063_v13  ;;  %v4526_v12 = vadd.f32 %v14139_v28, %v14205_v23 }
 0x754   : > { %v4609_v52 = vpop.f32.mrf.mxu1  ;;  %v4841_v19 = vpop.f32.mrf.mxu2 }
 0x755   : > { %v4610_v61 = vadd.f32 %v4609_v52, %v4521_v11  ;;  %v14626_v1 = vadd.f32 %v14520_v32, %v4841_v19  ;;  %v9353_v32 = vld [vmem:[%s16851_s2 + $0x528] sm:$0xf0]  ;;  %17145 = vst [vmem:[#allocation27_spill] sm:$0xff] %v14647_v5 }
 0x756   : > { %v9356_v29 = vor.u32 %v10053_v9, %v9353_v32  ;;  %v9417_v19 = vld [vmem:[%s16851_s2 + $0x5a8] sm:$0xf0]  ;;  %v4366_v9 = vadd.f32 %v14410_v62, %v14063_v13  ;;  %v4457_v32 = vadd.f32 %v14530_v31, %v4368_v17 }
 0x757   : > { %v4682_v8 = vmax.f32 %v4610_v61, 0.0  ;;  %v10096_v61 = vld [vmem:[%s16851_s2 + $0x634] sm:$0xf0] }
 0x758   : > { %v14628_v63 = vpop.f32.mrf.mxu3  ;;  %5346 = vmatpush.bf16.msrb.mxu2 %v9356_v29 }
 0x759   : > { %9311 = vmatmul.msk.bf16.gmra.mxu2 %vm579_vm0, %v14631_v51  ;;  %v14635_v60 = vpack.c.bf16 %v4682_v8, %v4680_v7 }
 0x75a   : > { %v14637_v50 = vpop.f32.mrf.mxu0 }
 0x75c   : > { %v4612_v11 = vpop.f32.mrf.mxu1  ;;  %v4844_v27 = vpop.f32.mrf.mxu2 }
 0x75d   : > { %v4613_v22 = vadd.f32 %v4612_v11, %v4524_v4  ;;  %v14650_v52 = vadd.f32 %v14539_v26, %v4844_v27  ;;  %9325 = vmatmul.msk.bf16.gmra.mxu3 %vm579_vm0, %v14533_v45  ;;  %5231 = vmatmul.bf16.gmra.mxu0 %v14647_v5  ;;  %v9420_v26 = vor.u32 %v10069_v30, %v9417_v19  ;;  %v9521_v45 = vld [vmem:[%s16851_s2 + $0x630] sm:$0xf]  ;;  %v4701_v30 = vmax.f32 %v4457_v32, 0.0  ;;  %v10118_v32 = vld [vmem:[%s16851_s2 + $0x6e4] sm:$0xf0] }
 0x75e   : > { %v9522_v7 = vor.u32 %v10096_v61, %v9521_v45  ;;  %v4455_v11 = vadd.f32 %v14516_v35, %v4366_v9  ;;  %v14686_v61 = vld [vmem:[%s10689_s29 + $0x58] sm:$0xff]  ;;  %v4529_v35 = vadd.f32 %v14164_v18, %v14205_v23  ;;  %v9609_v18 = vld [vmem:[%s16851_s2 + $0x6e0] sm:$0xf] }
 0x75f   : > { %5265 = vmatmul.bf16.gmra.mxu1 %v14308_v20  ;;  %5435 = vmatpush.bf16.msra.mxu3 %v9420_v26  ;;  %v4684_v19 = vmax.f32 %v4613_v22, 0.0 }
 0x760   : > { %v14662_v16 = vpop.f32.mrf.mxu3  ;;  %5890 = vmatpush.bf16.msra.mxu0 %v9522_v7  ;;  %v4699_v28 = vmax.f32 %v4455_v11, 0.0  ;;  %v4371_v11 = vadd.f32 %v14457_v15, %v14063_v13 }
 0x762   : > { %v14672_v8 = vpop.f32.mrf.mxu0 }
 0x764   : > { %v4614_v4 = vpop.f32.mrf.mxu1  ;;  %v4846_v29 = vpop.f32.mrf.mxu2 }
 0x765   : > { %v4615_v27 = vadd.f32 %v4614_v4, %v4526_v12  ;;  %v14681_v59 = vadd.f32 %v14574_v36, %v4846_v29  ;;  %v14696_v36 = vpack.c.bf16 %v4701_v30, %v4699_v28  ;;  %v9610_v4 = vor.u32 %v10118_v32, %v9609_v18  ;;  %v14729_v32 = vld [vmem:[%s10689_s29 + $0x60] sm:$0xff] }
 0x766   : > { %v4531_v29 = vadd.f32 %v14193_v24, %v14205_v23 }
 0x767   : > { %v4686_v26 = vmax.f32 %v4615_v27, 0.0  ;;  %17146 = vst [vmem:[#allocation37_spill] sm:$0xff] %v14696_v36  ;;  %5976 = vmatpush.bf16.msra.mxu1 %v9610_v4 }
 0x768   : > { %v14683_v45 = vpop.f32.mrf.mxu3 }
 0x769   : > { %9312 = vmatmul.msk.bf16.gmra.mxu2 %vm579_vm0, %v14686_v61  ;;  %v14690_v62 = vpack.c.bf16 %v4686_v26, %v4684_v19  ;;  %v4460_v26 = vadd.f32 %v14564_v48, %v4371_v11  ;;  %v10051_v48 = vld [vmem:[%s16851_s2 + $0x514] sm:$0xf] }
 0x76a   : > { %v14692_v31 = vpop.f32.mrf.mxu0 }
 0x76b   : > { %v4703_v24 = vmax.f32 %v4460_v26, 0.0 }
 0x76c   : > { %v4617_v17 = vpop.f32.mrf.mxu1  ;;  %v4849_v22 = vpop.f32.mrf.mxu2 }
 0x76d   : > { %v4618_v7 = vadd.f32 %v4617_v17, %v4529_v35  ;;  %v14699_v12 = vadd.f32 %v14594_v6, %v4849_v22  ;;  %9326 = vmatmul.msk.bf16.gmra.mxu3 %vm579_vm0, %v14588_v39  ;;  %5236 = vmatmul.bf16.gmra.mxu0 %v14696_v36  ;;  %v4373_v6 = vadd.f32 %v14486_v33, %v14063_v13 }
 0x76f   : > { %5270 = vmatmul.bf16.gmra.mxu1 %v14349_v44  ;;  %v4462_v27 = vadd.f32 %v14585_v3, %v4373_v6  ;;  %v4688_v17 = vmax.f32 %v4618_v7, 0.0  ;;  %v4534_v7 = vadd.f32 %v14215_v0, %v14205_v23  ;;  %v10067_v0 = vld [vmem:[%s16851_s2 + $0x594] sm:$0xf] }
 0x770   : > { %v14705_v9 = vpop.f32.mrf.mxu3 }
 0x771   : > { %v4705_v35 = vmax.f32 %v4462_v27, 0.0 }
 0x772   : > { %v14715_v39 = vpop.f32.mrf.mxu0 }
 0x773   : > { %v14745_v6 = vpack.c.bf16 %v4705_v35, %v4703_v24  ;;  %v4378_v35 = vadd.f32 %v14527_v37, %v14063_v13  ;;  %v4536_v24 = vadd.f32 %v14232_v34, %v14205_v23  ;;  %v4539_v34 = vadd.f32 %v14257_v14, %v14205_v23  ;;  %v9601_v14 = vld [vmem:[%s16851_s2 + $0x6d0] sm:$0xf] }
 0x774   : > { %v4619_v30 = vpop.f32.mrf.mxu1  ;;  %v4851_v19 = vpop.f32.mrf.mxu2 }
 0x775   : > { %v4620_v28 = vadd.f32 %v4619_v30, %v4531_v29  ;;  %v14724_v33 = vadd.f32 %v14617_v57, %v4851_v19  ;;  %v9345_v57 = vld [vmem:[%s16851_s2 + $0x518] sm:$0xf0]  ;;  %17148 = vst [vmem:[#allocation38_spill] sm:$0xff] %v14745_v6 }
 0x776   : > { %v9348_v4 = vor.u32 %v10051_v48, %v9345_v57  ;;  %v9409_v19 = vld [vmem:[%s16851_s2 + $0x598] sm:$0xf0]  ;;  %v4376_v48 = vadd.f32 %v14510_v40, %v14063_v13  ;;  %v4467_v57 = vadd.f32 %v14628_v63, %v4378_v35 }
 0x777   : > { %v4690_v22 = vmax.f32 %v4620_v28, 0.0  ;;  %v10094_v28 = vld [vmem:[%s16851_s2 + $0x624] sm:$0xf0] }
 0x778   : > { %v14726_v18 = vpop.f32.mrf.mxu3  ;;  %5347 = vmatpush.bf16.msrb.mxu2 %v9348_v4 }
 0x779   : > { %17147 = vst [vmem:[#allocation50_spill] sm:$0xff] %v14726_v18  ;;  %9313 = vmatmul.msk.bf16.gmra.mxu2 %vm579_vm0, %v14729_v32  ;;  %v14733_v15 = vpack.c.bf16 %v4690_v22, %v4688_v17 }
 0x77a   : > { %v14735_v3 = vpop.f32.mrf.mxu0 }
 0x77c   : > { %v4622_v29 = vpop.f32.mrf.mxu1  ;;  %v4854_v11 = vpop.f32.mrf.mxu2 }
 0x77d   : > { %v4623_v27 = vadd.f32 %v4622_v29, %v4534_v7  ;;  %v14748_v30 = vadd.f32 %v14637_v50, %v4854_v11  ;;  %9327 = vmatmul.msk.bf16.gmra.mxu3 %vm579_vm0, %v14631_v51  ;;  %5241 = vmatmul.bf16.gmra.mxu0 %v14745_v6  ;;  %v9412_v50 = vor.u32 %v10067_v0, %v9409_v19  ;;  %v9513_v51 = vld [vmem:[%s16851_s2 + $0x620] sm:$0xf]  ;;  %v4709_v11 = vmax.f32 %v4467_v57, 0.0 }
 0x77e   : > { %v9514_v17 = vor.u32 %v10094_v28, %v9513_v51  ;;  %v4465_v29 = vadd.f32 %v14607_v55, %v4376_v48  ;;  %v14783_v28 = vld [vmem:[%s10689_s29 + $0x68] sm:$0xff]  ;;  %v10116_v48 = vld [vmem:[%s16851_s2 + $0x6d4] sm:$0xf0]  ;;  %v4541_v57 = vadd.f32 %v14291_v10, %v14205_v23 }
 0x77f   : > { %5275 = vmatmul.bf16.gmra.mxu1 %v14402_v58  ;;  %5436 = vmatpush.bf16.msra.mxu3 %v9412_v50  ;;  %v4692_v0 = vmax.f32 %v4623_v27, 0.0 }
 0x780   : > { %v14760_v26 = vpop.f32.mrf.mxu3  ;;  %5891 = vmatpush.bf16.msra.mxu0 %v9514_v17  ;;  %v4707_v50 = vmax.f32 %v4465_v29, 0.0  ;;  %v10049_v29 = vld [vmem:[%s16851_s2 + $0x504] sm:$0xf] }
 0x781   : > { %17149 = vst [vmem:[#allocation52_spill] sm:$0xff] %v14760_v26 }
 0x782   : > { %v14770_v22 = vpop.f32.mrf.mxu0  ;;  %v14791_v63 = vpack.c.bf16 %v4709_v11, %v4707_v50 }
 0x784   : > { %v4624_v7 = vpop.f32.mrf.mxu1  ;;  %v14777_v4 = vpop.f32.mrf.mxu2  ;;  %17151 = vst [vmem:[#allocation6_spill] sm:$0xff] %v14791_v63 }
 0x785   : > { %v4625_v37 = vadd.f32 %v4624_v7, %v4536_v24 }
 0x787   : > { %v4694_v19 = vmax.f32 %v4625_v37, 0.0  ;;  %v9337_v37 = vld [vmem:[%s16851_s2 + $0x508] sm:$0xf0] }
 0x788   : > { %v14780_v51 = vpop.f32.mrf.mxu3 }
 0x789   : > { %17150 = vst [vmem:[#allocation13_spill] sm:$0xff] %v14780_v51  ;;  %9314 = vmatmul.msk.bf16.gmra.mxu2 %vm579_vm0, %v14783_v28  ;;  %v14787_v13 = vpack.c.bf16 %v4694_v19, %v4692_v0  ;;  %v9340_v19 = vor.u32 %v10049_v29, %v9337_v37 }
 0x78a   : > { %v5207_v40 = vpop.f32.mrf.mxu0 }
 0x78b   : > { %5348 = vmatpush.bf16.msrb.mxu2 %v9340_v19  ;;  %v4546_v19 = vadd.f32 %v14326_v21, %v14205_v23 }
 0x78c   : > { %v4627_v55 = vpop.f32.mrf.mxu1  ;;  %v4859_v35 = vpop.f32.mrf.mxu2 }
 0x78d   : > { %v4628_v27 = vadd.f32 %v4627_v55, %v4539_v34  ;;  %v14794_v17 = vadd.f32 %v14692_v31, %v4859_v35  ;;  %9328 = vmatmul.msk.bf16.gmra.mxu3 %vm579_vm0, %v14686_v61  ;;  %5246 = vmatmul.bf16.gmra.mxu0 %v14791_v63  ;;  %v9602_v31 = vor.u32 %v10116_v48, %v9601_v14  ;;  %v14823_v55 = vld [vmem:[%s10689_s29 + $0x70] sm:$0xff] }
 0x78e   : > { %v4544_v14 = vadd.f32 %v14310_v38, %v14205_v23  ;;  %v9401_v38 = vld [vmem:[%s16851_s2 + $0x588] sm:$0xf0] }
 0x78f   : > { %5280 = vmatmul.bf16.gmra.mxu1 %v14443_v47  ;;  %v4696_v50 = vmax.f32 %v4628_v27, 0.0 }
 0x790   : > { %v14800_v24 = vpop.f32.mrf.mxu3  ;;  %5977 = vmatpush.bf16.msra.mxu1 %v9602_v31 }
 0x791   : > { %17152 = vst [vmem:[#allocation39_spill] sm:$0xff] %v14800_v24 }
 0x792   : > { %v14818_v11 = vpop.f32.mrf.mxu0 }
 0x794   : > { %v4629_v61 = vpop.f32.mrf.mxu1  ;;  %v14810_v7 = vpop.f32.mrf.mxu2 }
 0x795   : > { %v4630_v0 = vadd.f32 %v4629_v61, %v4541_v57  ;;  %v10065_v61 = vld [vmem:[%s16851_s2 + $0x584] sm:$0xf] }
 0x796   : > { %v9404_v37 = vor.u32 %v10065_v61, %v9401_v38 }
 0x797   : > { %v4698_v34 = vmax.f32 %v4630_v0, 0.0 }
 0x798   : > { %v14820_v10 = vpop.f32.mrf.mxu3  ;;  %5437 = vmatpush.bf16.msra.mxu3 %v9404_v37  ;;  %v4549_v37 = vadd.f32 %v14351_v46, %v14205_v23  ;;  %v10114_v46 = vld [vmem:[%s16851_s2 + $0x6c4] sm:$0xf0] }
 0x799   : > { %17153 = vst [vmem:[#allocation57_spill] sm:$0xff] %v14820_v10  ;;  %9315 = vmatmul.msk.bf16.gmra.mxu2 %vm579_vm0, %v14823_v55  ;;  %v14827_v35 = vpack.c.bf16 %v4698_v34, %v4696_v50 }
 0x79a   : > { %v5212_v27 = vpop.f32.mrf.mxu0 }
 0x79c   : > { %v4632_v48 = vpop.f32.mrf.mxu1  ;;  %v4864_v31 = vpop.f32.mrf.mxu2 }
 0x79d   : > { %v4633_v63 = vadd.f32 %v4632_v48, %v4544_v14  ;;  %v14832_v57 = vadd.f32 %v14735_v3, %v4864_v31  ;;  %9329 = vmatmul.msk.bf16.gmra.mxu3 %vm579_vm0, %v14729_v32  ;;  %v9505_v3 = vld [vmem:[%s16851_s2 + $0x610] sm:$0xf]  ;;  %v10092_v32 = vld [vmem:[%s16851_s2 + $0x614] sm:$0xf0] }
 0x79e   : > { %v9506_v0 = vor.u32 %v10092_v32, %v9505_v3 }
 0x79f   : > { %5285 = vmatmul.bf16.gmra.mxu1 %v14496_v54  ;;  %v4700_v48 = vmax.f32 %v4633_v63, 0.0 }
 0x7a0   : > { %v14843_v29 = vpop.f32.mrf.mxu3  ;;  %5892 = vmatpush.bf16.msra.mxu0 %v9506_v0 }
 0x7a1   : > { %17154 = vst [vmem:[#allocation40_spill] sm:$0xff] %v14843_v29  ;;  %v10544_v29 = vld [vmem:[%s10689_s29 + $0x78] sm:$0xff] }
 0x7a2   : > { %v14857_v38 = vpop.f32.mrf.mxu0 }
 0x7a4   : > { %v4634_v50 = vpop.f32.mrf.mxu1  ;;  %v14853_v34 = vpop.f32.mrf.mxu2 }
 0x7a5   : > { %v4635_v14 = vadd.f32 %v4634_v50, %v4546_v19  ;;  %v9593_v19 = vld [vmem:[%s16851_s2 + $0x6c0] sm:$0xf] }
 0x7a6   : > { %v9594_v50 = vor.u32 %v10114_v46, %v9593_v19  ;;  %v10090_v19 = vld [vmem:[%s16851_s2 + $0x604] sm:$0xf0] }
 0x7a7   : > { %v4702_v31 = vmax.f32 %v4635_v14, 0.0 }
 0x7a8   : > { %v14855_v61 = vpop.f32.mrf.mxu3  ;;  %5978 = vmatpush.bf16.msra.mxu1 %v9594_v50  ;;  %v17158_v50 = vld [vmem:[#allocation25_spill] sm:$0xff] }
 0x7a9   : > { %17155 = vst [vmem:[#allocation55_spill] sm:$0xff] %v14855_v61  ;;  %9316 = vmatmul.msk.bf16.gmra.mxu2 %vm579_vm0, %v10544_v29  ;;  %v14861_v6 = vpack.c.bf16 %v4702_v31, %v4700_v48 }
 0x7aa   : > { %v5217_v14 = vpop.f32.mrf.mxu0 }
 0x7ac   : > { %v4637_v21 = vpop.f32.mrf.mxu1  ;;  %v4869_v3 = vpop.f32.mrf.mxu2 }
 0x7ad   : > { %v4638_v32 = vadd.f32 %v4637_v21, %v4549_v37  ;;  %v14865_v0 = vadd.f32 %v5207_v40, %v4869_v3  ;;  %9330 = vmatmul.msk.bf16.gmra.mxu3 %vm579_vm0, %v14783_v28  ;;  %v4551_v40 = vadd.f32 %v14385_v49, %v14205_v23 }
 0x7af   : > { %5290 = vmatmul.bf16.gmra.mxu1 %v14537_v56  ;;  %v4704_v37 = vmax.f32 %v4638_v32, 0.0 }
 0x7b0   : > { %v14870_v63 = vpop.f32.mrf.mxu3 }
 0x7b1   : > { %17156 = vst [vmem:[#allocation4_spill] sm:$0xff] %v14870_v63  ;;  %v9497_v63 = vld [vmem:[%s16851_s2 + $0x600] sm:$0xf] }
 0x7b2   : > { %v9498_v49 = vor.u32 %v10090_v19, %v9497_v63  ;;  %v10103_v63 = vld [vmem:[%s16851_s2 + $0x674] sm:$0xf]  ;;  %v17160_v19 = vld [vmem:[#allocation34_spill] sm:$0xff] }
 0x7b4   : > { %v4639_v48 = vpop.f32.mrf.mxu1  ;;  %v14880_v31 = vpop.f32.mrf.mxu2  ;;  %5893 = vmatpush.bf16.msra.mxu0 %v9498_v49  ;;  %v4556_v49 = vadd.f32 %v17160_v19, %v14205_v23 }
 0x7b5   : > { %v4640_v28 = vadd.f32 %v4639_v48, %v4551_v40  ;;  %v4554_v40 = vadd.f32 %v17158_v50, %v14205_v23  ;;  %v14931_v23 = vld [vmem:[%s16853_s4 + $0x6] ss:$8 sm:$0x3] }
 0x7b7   : > { %v4706_v21 = vmax.f32 %v4640_v28, 0.0  ;;  %v14895_v28 = vpop.f32.mrf.mxu0 }
 0x7b8   : > { %v14882_v3 = vpop.f32.mrf.mxu3 }
 0x7b9   : > { %17157 = vst [vmem:[#allocation10_spill] sm:$0xff] %v14882_v3  ;;  %5349 = vmatmul.bf16.vlgmr.msrb.gmra.mxu2 %v14093_v53  ;;  %v14891_v46 = vpack.c.bf16 %v4706_v21, %v4704_v37  ;;  %v9555_v37 = vld [vmem:[%s16851_s2 + $0x678] sm:$0xf0] }
 0x7ba   : > { %v9558_v21 = vor.u32 %v10103_v63, %v9555_v37  ;;  %v17162_v63 = vld [vmem:[#allocation2_spill] sm:$0xff] }
 0x7bc   : > { %v4642_v32 = vpop.f32.mrf.mxu1  ;;  %v4874_v48 = vpop.f32.mrf.mxu2  ;;  %6064 = vmatpush.bf16.msra.mxu2 %v9558_v21  ;;  %v17164_v21 = vld [vmem:[#allocation9_spill] sm:$0xff] }
 0x7bd   : > { %v4643_v3 = vadd.f32 %v4642_v32, %v4554_v40  ;;  %v14897_v61 = vadd.f32 %v5212_v27, %v4874_v48  ;;  %9331 = vmatmul.msk.bf16.gmra.mxu3 %vm579_vm0, %v14823_v55  ;;  %v10119_v27 = vld [vmem:[%s16851_s2 + $0x6f4] sm:$0xf]  ;;  %v9619_v55 = vld [vmem:[%s16851_s2 + $0x6f8] sm:$0xf0] }
 0x7be   : > { %v9622_v50 = vor.u32 %v10119_v27, %v9619_v55 }
 0x7bf   : > { %5295 = vmatmul.bf16.gmra.mxu1 %v14592_v25  ;;  %v4708_v10 = vmax.f32 %v4643_v3, 0.0 }
 0x7c0   : > { %v14902_v53 = vpop.f32.mrf.mxu3  ;;  %6153 = vmatpush.bf16.msrb.mxu3 %v9622_v50 }
 0x7c1   : > { %17159 = vst [vmem:[#allocation41_spill] sm:$0xff] %v14902_v53  ;;  %v5222_v53 = vpop.f32.mrf.mxu0 }
 0x7c4   : > { %v4644_v40 = vpop.f32.mrf.mxu1  ;;  %v14918_v32 = vpop.f32.mrf.mxu2 }
 0x7c5   : > { %v4645_v48 = vadd.f32 %v4644_v40, %v4556_v49 }
 0x7c7   : > { %v4710_v24 = vmax.f32 %v4645_v48, 0.0 }
 0x7c8   : > { %v14920_v36 = vpop.f32.mrf.mxu3 }
 0x7c9   : > { %17161 = vst [vmem:[#allocation58_spill] sm:$0xff] %v14920_v36  ;;  %5354 = vmatmul.bf16.gmra.mxu2 %v17162_v63  ;;  %v14923_v37 = vpack.c.bf16 %v4710_v24, %v4708_v10  ;;  %v14936_v27 = vpop.f32.mrf.mxu0  ;;  %v14940_v10 = vperm.slane %v14931_v23, 0 }
 0x7cc   : > { %v4879_v51 = vpop.f32.mrf.mxu2  ;;  %v5261_v26 = vpop.f32.mrf.mxu1 }
 0x7cd   : > { %v14925_v5 = vadd.f32 %v5217_v14, %v4879_v51  ;;  %9332 = vmatmul.msk.bf16.gmra.mxu3 %vm579_vm0, %v10544_v29  ;;  %v5262_v24 = vadd.f32 %v5261_v26, %v17164_v21  ;;  %v9585_v51 = vld [vmem:[%s16851_s2 + $0x6b0] sm:$0xf]  ;;  %v10112_v29 = vld [vmem:[%s16851_s2 + $0x6b4] sm:$0xf0]  ;;  %v17166_v21 = vld [vmem:[#allocation3_spill] sm:$0xff] }
 0x7ce   : > { %v9586_v14 = vor.u32 %v10112_v29, %v9585_v51 }
 0x7cf   : > { %5300 = vmatmul.bf16.gmra.mxu1 %v14635_v60  ;;  %v5526_v49 = vadd.f32 %v14940_v10, %v5262_v24 }
 0x7d0   : > { %v14934_v3 = vpop.f32.mrf.mxu3  ;;  %5979 = vmatpush.bf16.msra.mxu1 %v9586_v14  ;;  %v10101_v14 = vld [vmem:[%s16851_s2 + $0x664] sm:$0xf] }
 0x7d1   : > { %17163 = vst [vmem:[#allocation42_spill] sm:$0xff] %v14934_v3  ;;  %v5590_v48 = vmax.f32 %v5526_v49, 0.0  ;;  %v5227_v3 = vpop.f32.mrf.mxu0  ;;  %v9611_v49 = vld [vmem:[%s16851_s2 + $0x6e8] sm:$0xf0] }
 0x7d4   : > { %v14948_v55 = vpop.f32.mrf.mxu2  ;;  %v5263_v19 = vpop.f32.mrf.mxu1 }
 0x7d5   : > { %v5264_v26 = vadd.f32 %v5263_v19, %v14583_v42  ;;  %v9547_v19 = vld [vmem:[%s16851_s2 + $0x668] sm:$0xf0] }
 0x7d7   : > { %v5528_v50 = vadd.f32 %v14940_v10, %v5264_v26 }
 0x7d8   : > { %v14953_v40 = vpop.f32.mrf.mxu3 }
 0x7d9   : > { %17165 = vst [vmem:[#allocation11_spill] sm:$0xff] %v14953_v40  ;;  %v5592_v63 = vmax.f32 %v5528_v50, 0.0  ;;  %5359 = vmatmul.bf16.gmra.mxu2 %v17166_v21  ;;  %v10136_v50 = vld [vmem:[%s16854_s5 + $0x74] sm:$0xf0]  ;;  %v17170_v40 = vld [vmem:[#allocation23_spill] sm:$0xff] }
 0x7db   : > { %v14956_v36 = vpack.c.bf16 %v5592_v63, %v5590_v48 }
 0x7dc   : > { %v4884_v51 = vpop.f32.mrf.mxu2  ;;  %v5266_v29 = vpop.f32.mrf.mxu1 }
 0x7dd   : > { %17167 = vst [vmem:[#allocation14_spill] sm:$0xff] %v14956_v36  ;;  %v14958_v18 = vadd.f32 %v5222_v53, %v4884_v51  ;;  %5438 = vmatmul.bf16.vlgmr.msra.gmra.mxu3 %v14250_v2  ;;  %5894 = vmatmul.bf16.vlgmr.msra.gmra.mxu0 %v14956_v36  ;;  %v5267_v24 = vadd.f32 %v5266_v29, %v14601_v41  ;;  %v10117_v2 = vld [vmem:[%s16851_s2 + $0x6e4] sm:$0xf]  ;;  %v9681_v41 = vld [vmem:[%s16854_s5 + $0x70] sm:$0xf]  ;;  %v14986_v51 = vpop.f32.mrf.mxu0 }
 0x7de   : > { %v9550_v53 = vor.u32 %v10101_v14, %v9547_v19  ;;  %v9614_v26 = vor.u32 %v10117_v2, %v9611_v49  ;;  %v9682_v21 = vor.u32 %v10136_v50, %v9681_v41 }
 0x7df   : > { %5305 = vmatmul.bf16.gmra.mxu1 %v14690_v62  ;;  %v5530_v29 = vadd.f32 %v14940_v10, %v5267_v24 }
 0x7e0   : > { %v14963_v42 = vpop.f32.mrf.mxu3  ;;  %6065 = vmatpush.bf16.msra.mxu2 %v9550_v53  ;;  %6154 = vmatpush.bf16.msrb.mxu3 %v9614_v26 }
 0x7e1   : > { %17168 = vst [vmem:[#allocation5_spill] sm:$0xff] %v14963_v42  ;;  %6536 = vmatpush.bf16.msrb.mxu0 %v9682_v21  ;;  %v5594_v49 = vmax.f32 %v5530_v29, 0.0 }
 0x7e4   : > { %v14984_v48 = vpop.f32.mrf.mxu2  ;;  %v5268_v63 = vpop.f32.mrf.mxu1 }
 0x7e5   : > { %v5269_v14 = vadd.f32 %v5268_v63, %v14626_v1  ;;  %v5232_v1 = vpop.f32.mrf.mxu0 }
 0x7e7   : > { %v5532_v19 = vadd.f32 %v14940_v10, %v5269_v14 }
 0x7e8   : > { %v14991_v2 = vpop.f32.mrf.mxu3 }
 0x7e9   : > { %17169 = vst [vmem:[#allocation43_spill] sm:$0xff] %v14991_v2  ;;  %v5596_v42 = vmax.f32 %v5532_v19, 0.0  ;;  %5364 = vmatmul.bf16.gmra.mxu2 %v17170_v40  ;;  %v9577_v40 = vld [vmem:[%s16851_s2 + $0x6a0] sm:$0xf] }
 0x7eb   : > { %v14994_v36 = vpack.c.bf16 %v5596_v42, %v5594_v49 }
 0x7ec   : > { %v4889_v53 = vpop.f32.mrf.mxu2  ;;  %v5271_v41 = vpop.f32.mrf.mxu1 }
 0x7ed   : > { %17171 = vst [vmem:[#allocation45_spill] sm:$0xff] %v14994_v36  ;;  %v14996_v50 = vadd.f32 %v5227_v3, %v4889_v53  ;;  %5443 = vmatmul.bf16.gmra.mxu3 %v14308_v20  ;;  %5899 = vmatmul.bf16.gmra.mxu0 %v14994_v36  ;;  %v5272_v26 = vadd.f32 %v5271_v41, %v14650_v52  ;;  %v10110_v3 = vld [vmem:[%s16851_s2 + $0x6a4] sm:$0xf0]  ;;  %v15017_v19 = vpop.f32.mrf.mxu0  ;;  %v17175_v41 = vld [vmem:[#allocation30_spill] sm:$0xff] }
 0x7ee   : > { %v9578_v42 = vor.u32 %v10110_v3, %v9577_v40  ;;  %17174 = vst [vmem:[#allocation47_spill] sm:$0xff] %v15017_v19 }
 0x7ef   : > { %5310 = vmatmul.bf16.gmra.mxu1 %v14733_v15  ;;  %v5534_v21 = vadd.f32 %v14940_v10, %v5272_v26 }
 0x7f0   : > { %v15001_v24 = vpop.f32.mrf.mxu3  ;;  %5980 = vmatpush.bf16.msra.mxu1 %v9578_v42  ;;  %v10099_v42 = vld [vmem:[%s16851_s2 + $0x654] sm:$0xf] }
 0x7f1   : > { %17172 = vst [vmem:[#allocation8_spill] sm:$0xff] %v15001_v24  ;;  %v5598_v49 = vmax.f32 %v5534_v21, 0.0  ;;  %v9603_v21 = vld [vmem:[%s16851_s2 + $0x6d8] sm:$0xf0] }
 0x7f4   : > { %v15010_v63 = vpop.f32.mrf.mxu2  ;;  %v5273_v20 = vpop.f32.mrf.mxu1 }
 0x7f5   : > { %v5274_v29 = vadd.f32 %v5273_v20, %v14681_v59  ;;  %v9539_v20 = vld [vmem:[%s16851_s2 + $0x658] sm:$0xf0] }
 0x7f7   : > { %v5536_v14 = vadd.f32 %v14940_v10, %v5274_v29  ;;  %v5237_v29 = vpop.f32.mrf.mxu0 }
 0x7f8   : > { %v15015_v52 = vpop.f32.mrf.mxu3 }
 0x7f9   : > { %17173 = vst [vmem:[#allocation7_spill] sm:$0xff] %v15015_v52  ;;  %v5600_v53 = vmax.f32 %v5536_v14, 0.0  ;;  %5369 = vmatmul.bf16.gmra.mxu2 %v17175_v41  ;;  %v17179_v52 = vld [vmem:[#allocation32_spill] sm:$0xff] }
 0x7fb   : > { %v15020_v24 = vpack.c.bf16 %v5600_v53, %v5598_v49  ;;  %v10134_v49 = vld [vmem:[%s16854_s5 + $0x64] sm:$0xf0] }
 0x7fc   : > { %v4894_v40 = vpop.f32.mrf.mxu2  ;;  %v5276_v3 = vpop.f32.mrf.mxu1 }
 0x7fd   : > { %17176 = vst [vmem:[#allocation49_spill] sm:$0xff] %v15020_v24  ;;  %v15022_v2 = vadd.f32 %v5232_v1, %v4894_v40  ;;  %5448 = vmatmul.bf16.gmra.mxu3 %v14349_v44  ;;  %5904 = vmatmul.bf16.gmra.mxu0 %v15020_v24  ;;  %v5277_v26 = vadd.f32 %v5276_v3, %v14699_v12  ;;  %v10115_v44 = vld [vmem:[%s16851_s2 + $0x6d4] sm:$0xf]  ;;  %v9673_v12 = vld [vmem:[%s16854_s5 + $0x60] sm:$0xf] }
 0x7fe   : > { %v9542_v1 = vor.u32 %v10099_v42, %v9539_v20  ;;  %v9606_v14 = vor.u32 %v10115_v44, %v9603_v21  ;;  %v9674_v40 = vor.u32 %v10134_v49, %v9673_v12 }
 0x7ff   : > { %5315 = vmatmul.bf16.gmra.mxu1 %v14787_v13  ;;  %v5538_v3 = vadd.f32 %v14940_v10, %v5277_v26 }
 0x800   : > { %v15027_v59 = vpop.f32.mrf.mxu3  ;;  %6066 = vmatpush.bf16.msra.mxu2 %v9542_v1  ;;  %6155 = vmatpush.bf16.msrb.mxu3 %v9606_v14  ;;  %v15058_v1 = vpop.f32.mrf.mxu0  ;;  %v10108_v14 = vld [vmem:[%s16851_s2 + $0x694] sm:$0xf0] }
 0x801   : > { %17177 = vst [vmem:[#allocation31_spill] sm:$0xff] %v15027_v59  ;;  %6537 = vmatpush.bf16.msrb.mxu0 %v9674_v40  ;;  %v5602_v44 = vmax.f32 %v5538_v3, 0.0 }
 0x804   : > { %v15048_v53 = vpop.f32.mrf.mxu2  ;;  %v5278_v41 = vpop.f32.mrf.mxu1 }
 0x805   : > { %v5279_v42 = vadd.f32 %v5278_v41, %v14724_v33 }
 0x807   : > { %v5540_v20 = vadd.f32 %v14940_v10, %v5279_v42 }
 0x808   : > { %v15053_v59 = vpop.f32.mrf.mxu3 }
 0x809   : > { %17178 = vst [vmem:[#allocation29_spill] sm:$0xff] %v15053_v59  ;;  %v5604_v21 = vmax.f32 %v5540_v20, 0.0  ;;  %5374 = vmatmul.bf16.gmra.mxu2 %v17179_v52  ;;  %v9569_v52 = vld [vmem:[%s16851_s2 + $0x690] sm:$0xf] }
 0x80b   : > { %v15056_v24 = vpack.c.bf16 %v5604_v21, %v5602_v44  ;;  %v17182_v44 = vld [vmem:[#allocation44_spill] sm:$0xff] }
 0x80c   : > { %v4899_v36 = vpop.f32.mrf.mxu2  ;;  %v5281_v19 = vpop.f32.mrf.mxu1 }
 0x80d   : > { %v15060_v12 = vadd.f32 %v5237_v29, %v4899_v36  ;;  %5453 = vmatmul.bf16.gmra.mxu3 %v14402_v58  ;;  %5909 = vmatmul.bf16.gmra.mxu0 %v15056_v24  ;;  %v5282_v26 = vadd.f32 %v5281_v19, %v14748_v30  ;;  %v9570_v36 = vor.u32 %v10108_v14, %v9569_v52  ;;  %v5242_v30 = vpop.f32.mrf.mxu0 }
 0x80e   : > { %v5195_v58 = vadd.f32 %v14672_v8, %v14777_v4 }
 0x80f   : > { %5320 = vmatmul.bf16.gmra.mxu1 %v14827_v35  ;;  %v5542_v41 = vadd.f32 %v14940_v10, %v5282_v26 }
 0x810   : > { %v15065_v33 = vpop.f32.mrf.mxu3  ;;  %5981 = vmatpush.bf16.msra.mxu1 %v9570_v36 }
 0x811   : > { %17180 = vst [vmem:[#allocation51_spill] sm:$0xff] %v15065_v33  ;;  %v5606_v42 = vmax.f32 %v5542_v41, 0.0 }
 0x814   : > { %v15076_v29 = vpop.f32.mrf.mxu2  ;;  %v5283_v49 = vpop.f32.mrf.mxu1 }
 0x815   : > { %v5284_v40 = vadd.f32 %v5283_v49, %v5195_v58  ;;  %v15092_v14 = vpop.f32.mrf.mxu0  ;;  %v10097_v58 = vld [vmem:[%s16851_s2 + $0x644] sm:$0xf]  ;;  %v9531_v49 = vld [vmem:[%s16851_s2 + $0x648] sm:$0xf0] }
 0x816   : > { %v9534_v41 = vor.u32 %v10097_v58, %v9531_v49 }
 0x817   : > { %v5544_v19 = vadd.f32 %v14940_v10, %v5284_v40  ;;  %v9595_v40 = vld [vmem:[%s16851_s2 + $0x6c8] sm:$0xf0] }
 0x818   : > { %v15080_v3 = vpop.f32.mrf.mxu3  ;;  %6067 = vmatpush.bf16.msra.mxu2 %v9534_v41 }
 0x819   : > { %17181 = vst [vmem:[#allocation61_spill] sm:$0xff] %v15080_v3  ;;  %v5608_v20 = vmax.f32 %v5544_v19, 0.0  ;;  %5379 = vmatmul.bf16.gmra.mxu2 %v17182_v44 }
 0x81b   : > { %v15083_v21 = vpack.c.bf16 %v5608_v20, %v5606_v42  ;;  %v10132_v42 = vld [vmem:[%s16854_s5 + $0x54] sm:$0xf0] }
 0x81c   : > { %v4904_v52 = vpop.f32.mrf.mxu2  ;;  %v5286_v8 = vpop.f32.mrf.mxu1 }
 0x81d   : > { %v15085_v4 = vadd.f32 %v5242_v30, %v4904_v52  ;;  %5458 = vmatmul.bf16.gmra.mxu3 %v14443_v47  ;;  %5914 = vmatmul.bf16.gmra.mxu0 %v15083_v21  ;;  %v5287_v36 = vadd.f32 %v5286_v8, %v14794_v17  ;;  %v10113_v47 = vld [vmem:[%s16851_s2 + $0x6c4] sm:$0xf]  ;;  %v9665_v17 = vld [vmem:[%s16854_s5 + $0x50] sm:$0xf]  ;;  %v5200_v30 = vadd.f32 %v14715_v39, %v14810_v7 }
 0x81e   : > { %v9598_v19 = vor.u32 %v10113_v47, %v9595_v40  ;;  %v9666_v52 = vor.u32 %v10132_v42, %v9665_v17  ;;  %v17184_v47 = vld [vmem:[#allocation24_spill] sm:$0xff]  ;;  %v5247_v40 = vpop.f32.mrf.mxu0 }
 0x81f   : > { %5325 = vmatmul.bf16.gmra.mxu1 %v14861_v6  ;;  %v5546_v8 = vadd.f32 %v14940_v10, %v5287_v36 }
 0x820   : > { %v15090_v26 = vpop.f32.mrf.mxu3  ;;  %6156 = vmatpush.bf16.msrb.mxu3 %v9598_v19  ;;  %6538 = vmatpush.bf16.msrb.mxu0 %v9666_v52  ;;  %v10106_v19 = vld [vmem:[%s16851_s2 + $0x684] sm:$0xf0] }
 0x821   : > { %17183 = vst [vmem:[#allocation53_spill] sm:$0xff] %v15090_v26  ;;  %v5610_v39 = vmax.f32 %v5546_v8, 0.0 }
 0x824   : > { %v15115_v20 = vpop.f32.mrf.mxu2  ;;  %v5288_v44 = vpop.f32.mrf.mxu1 }
 0x825   : > { %v5289_v58 = vadd.f32 %v5288_v44, %v5200_v30  ;;  %v9561_v30 = vld [vmem:[%s16851_s2 + $0x680] sm:$0xf] }
 0x827   : > { %v5548_v49 = vadd.f32 %v14940_v10, %v5289_v58 }
 0x828   : > { %v15119_v26 = vpop.f32.mrf.mxu3 }
 0x829   : > { %v5612_v7 = vmax.f32 %v5548_v49, 0.0  ;;  %5384 = vmatmul.bf16.gmra.mxu2 %v17184_v47 }
 0x82b   : > { %v15122_v3 = vpack.c.bf16 %v5612_v7, %v5610_v39  ;;  %v17185_v39 = vld [vmem:[#allocation46_spill] sm:$0xff] }
 0x82c   : > { %v4909_v33 = vpop.f32.mrf.mxu2  ;;  %v5291_v59 = vpop.f32.mrf.mxu1 }
 0x82d   : > { %v15124_v41 = vadd.f32 %v5247_v40, %v4909_v33  ;;  %5463 = vmatmul.bf16.gmra.mxu3 %v14496_v54  ;;  %5919 = vmatmul.bf16.gmra.mxu0 %v15122_v3  ;;  %v5292_v17 = vadd.f32 %v5291_v59, %v14832_v57  ;;  %v9562_v33 = vor.u32 %v10106_v19, %v9561_v30  ;;  %v9523_v30 = vld [vmem:[%s16851_s2 + $0x638] sm:$0xf0] }
 0x82e   : > { %v5205_v54 = vadd.f32 %v14770_v22, %v14853_v34 }
 0x82f   : > { %5330 = vmatmul.bf16.gmra.mxu1 %v14891_v46  ;;  %v5550_v52 = vadd.f32 %v14940_v10, %v5292_v17  ;;  %v10095_v17 = vld [vmem:[%s16851_s2 + $0x634] sm:$0xf] }
 0x830   : > { %v15129_v36 = vpop.f32.mrf.mxu3  ;;  %5982 = vmatpush.bf16.msra.mxu1 %v9562_v33  ;;  %v9526_v19 = vor.u32 %v10095_v17, %v9523_v30  ;;  %v9587_v33 = vld [vmem:[%s16851_s2 + $0x6b8] sm:$0xf0]  ;;  %v17188_v30 = vld [vmem:[#allocation36_spill] sm:$0xff] }
 0x831   : > { %v5614_v58 = vmax.f32 %v5550_v52, 0.0  ;;  %v10130_v52 = vld [vmem:[%s16854_s5 + $0x44] sm:$0xf0] }
 0x832   : > { %6068 = vmatpush.bf16.msra.mxu2 %v9526_v19 }
 0x834   : > { %v15140_v42 = vpop.f32.mrf.mxu2  ;;  %v5293_v44 = vpop.f32.mrf.mxu1 }
 0x835   : > { %v5294_v8 = vadd.f32 %v5293_v44, %v5205_v54  ;;  %v5210_v54 = vadd.f32 %v14818_v11, %v14880_v31 }
 0x837   : > { %v5552_v57 = vadd.f32 %v14940_v10, %v5294_v8 }
 0x838   : > { %v15144_v59 = vpop.f32.mrf.mxu3 }
 0x839   : > { %v5616_v49 = vmax.f32 %v5552_v57, 0.0  ;;  %5389 = vmatmul.bf16.gmra.mxu2 %v17185_v39 }
 0x83b   : > { %v15147_v7 = vpack.c.bf16 %v5616_v49, %v5614_v58 }
 0x83c   : > { %v5296_v47 = vpop.f32.mrf.mxu1  ;;  %v15149_v40 = vpop.f32.mrf.mxu2 }
 0x83d   : > { %5468 = vmatmul.bf16.gmra.mxu3 %v14537_v56  ;;  %5924 = vmatmul.bf16.gmra.mxu0 %v15147_v7  ;;  %v5297_v34 = vadd.f32 %v5296_v47, %v14865_v0  ;;  %v10111_v56 = vld [vmem:[%s16851_s2 + $0x6b4] sm:$0xf]  ;;  %v9657_v0 = vld [vmem:[%s16854_s5 + $0x40] sm:$0xf] }
 0x83e   : > { %v9590_v44 = vor.u32 %v10111_v56, %v9587_v33  ;;  %v9658_v58 = vor.u32 %v10130_v52, %v9657_v0  ;;  %v15193_v0 = vpop.f32.mrf.mxu0 }
 0x83f   : > { %5335 = vmatmul.bf16.gmra.mxu1 %v14923_v37  ;;  %v5554_v49 = vadd.f32 %v14940_v10, %v5297_v34 }
 0x840   : > { %v15154_v22 = vpop.f32.mrf.mxu3  ;;  %6157 = vmatpush.bf16.msrb.mxu3 %v9590_v44  ;;  %6539 = vmatpush.bf16.msrb.mxu0 %v9658_v58 }
 0x841   : > { %17186 = vst [vmem:[#allocation22_spill] sm:$0xff] %v15154_v22  ;;  %v5618_v11 = vmax.f32 %v5554_v49, 0.0  ;;  %v10152_v49 = vld [vmem:[%s16854_s5 + $0xf4] sm:$0xf0] }
 0x844   : > { %v5298_v8 = vpop.f32.mrf.mxu1  ;;  %v15177_v57 = vpop.f32.mrf.mxu2 }
 0x845   : > { %v5299_v39 = vadd.f32 %v5298_v8, %v5210_v54  ;;  %v5215_v54 = vadd.f32 %v14857_v38, %v14918_v32 }
 0x847   : > { %v5556_v47 = vadd.f32 %v14940_v10, %v5299_v39 }
 0x848   : > { %v15181_v17 = vpop.f32.mrf.mxu3 }
 0x849   : > { %17187 = vst [vmem:[#allocation35_spill] sm:$0xff] %v15181_v17  ;;  %v5620_v31 = vmax.f32 %v5556_v47, 0.0  ;;  %5394 = vmatmul.bf16.gmra.mxu2 %v17188_v30  ;;  %v15247_v17 = vperm.slane %v14931_v23, 1 }
 0x84b   : > { %v15184_v56 = vpack.c.bf16 %v5620_v31, %v5618_v11  ;;  %v17191_v11 = vld [vmem:[#allocation48_spill] sm:$0xff] }
 0x84c   : > { %v5301_v33 = vpop.f32.mrf.mxu1  ;;  %v15186_v22 = vpop.f32.mrf.mxu2 }
 0x84d   : > { %5473 = vmatmul.bf16.gmra.mxu3 %v14592_v25  ;;  %5929 = vmatmul.bf16.gmra.mxu0 %v15184_v56  ;;  %v5302_v19 = vadd.f32 %v5301_v33, %v14897_v61  ;;  %v9745_v25 = vld [vmem:[%s16854_s5 + $0xf0] sm:$0xf] }
 0x84e   : > { %v9746_v61 = vor.u32 %v10152_v49, %v9745_v25 }
 0x84f   : > { %v5558_v8 = vadd.f32 %v14940_v10, %v5302_v19 }
 0x850   : > { %v15190_v34 = vpop.f32.mrf.mxu3  ;;  %6625 = vmatpush.bf16.msrb.mxu1 %v9746_v61  ;;  %v9579_v61 = vld [vmem:[%s16851_s2 + $0x6a8] sm:$0xf0] }
 0x851   : > { %17189 = vst [vmem:[#allocation33_spill] sm:$0xff] %v15190_v34  ;;  %v5622_v38 = vmax.f32 %v5558_v8, 0.0  ;;  %v10093_v8 = vld [vmem:[%s16851_s2 + $0x624] sm:$0xf] }
 0x854   : > { %v5303_v44 = vpop.f32.mrf.mxu1  ;;  %v15197_v52 = vpop.f32.mrf.mxu2 }
 0x855   : > { %v5304_v58 = vadd.f32 %v5303_v44, %v5215_v54 }
 0x857   : > { %v5560_v39 = vadd.f32 %v14940_v10, %v5304_v58  ;;  %v9515_v58 = vld [vmem:[%s16851_s2 + $0x628] sm:$0xf0] }
 0x858   : > { %v15207_v47 = vpop.f32.mrf.mxu3  ;;  %v9518_v49 = vor.u32 %v10093_v8, %v9515_v58 }
 0x859   : > { %17190 = vst [vmem:[#allocation54_spill] sm:$0xff] %v15207_v47  ;;  %v5624_v32 = vmax.f32 %v5560_v39, 0.0  ;;  %5399 = vmatmul.bf16.gmra.mxu2 %v17191_v11  ;;  %v5220_v39 = vadd.f32 %v14895_v28, %v14948_v55  ;;  %v10128_v11 = vld [vmem:[%s16854_s5 + $0x34] sm:$0xf0] }
 0x85a   : > { %v15210_v31 = vpop.f32.mrf.mxu0  ;;  %6069 = vmatpush.bf16.msra.mxu2 %v9518_v49 }
 0x85b   : > { %v15212_v30 = vpack.c.bf16 %v5624_v32, %v5622_v38  ;;  %v5351_v38 = vadd.f32 %v15149_v40, %v14662_v16  ;;  %v5353_v16 = vadd.f32 %v15177_v57, %v14683_v45 }
 0x85c   : > { %v5306_v33 = vpop.f32.mrf.mxu1  ;;  %v15214_v19 = vpop.f32.mrf.mxu2 }
 0x85d   : > { %5478 = vmatmul.bf16.gmra.mxu3 %v14635_v60  ;;  %5934 = vmatmul.bf16.gmra.mxu0 %v15212_v30  ;;  %v5307_v44 = vadd.f32 %v5306_v33, %v14925_v5  ;;  %v10109_v60 = vld [vmem:[%s16851_s2 + $0x6a4] sm:$0xf]  ;;  %v9649_v5 = vld [vmem:[%s16854_s5 + $0x30] sm:$0xf] }
 0x85e   : > { %v9582_v32 = vor.u32 %v10109_v60, %v9579_v61  ;;  %v9650_v58 = vor.u32 %v10128_v11, %v9649_v5  ;;  %v5225_v11 = vadd.f32 %v14936_v27, %v14984_v48  ;;  %v17192_v27 = vld [vmem:[#allocation50_spill] sm:$0xff] }
 0x85f   : > { %v5562_v47 = vadd.f32 %v14940_v10, %v5307_v44  ;;  %v5358_v48 = vadd.f32 %v15197_v52, %v17192_v27  ;;  %v9641_v27 = vld [vmem:[%s16854_s5 + $0x20] sm:$0xf] }
 0x860   : > { %v5439_v54 = vpop.f32.mrf.mxu3  ;;  %6158 = vmatpush.bf16.msrb.mxu3 %v9582_v32  ;;  %6540 = vmatpush.bf16.msrb.mxu0 %v9650_v58 }
 0x861   : > { %v5440_v34 = vadd.f32 %v5439_v54, %v5351_v38  ;;  %v5626_v60 = vmax.f32 %v5562_v47, 0.0 }
 0x862   : > { %v15225_v25 = vpop.f32.mrf.mxu0 }
 0x863   : > { %v5527_v61 = vadd.f32 %v15247_v17, %v5440_v34 }
 0x864   : > { %v5308_v33 = vpop.f32.mrf.mxu1  ;;  %v15243_v8 = vpop.f32.mrf.mxu2 }
 0x865   : > { %v5309_v28 = vadd.f32 %v5308_v33, %v5220_v39  ;;  %v5591_v45 = vmax.f32 %v5527_v61, 0.0  ;;  %v5356_v33 = vadd.f32 %v15186_v22, %v14705_v9 }
 0x867   : > { %v5564_v55 = vadd.f32 %v14940_v10, %v5309_v28 }
 0x868   : > { %v5441_v40 = vpop.f32.mrf.mxu3 }
 0x869   : > { %v5628_v49 = vmax.f32 %v5564_v55, 0.0  ;;  %v5442_v5 = vadd.f32 %v5441_v40, %v5353_v16  ;;  %5404 = vmatmul.bf16.gmra.mxu2 %v14598_v43  ;;  %v10150_v40 = vld [vmem:[%s16854_s5 + $0xe4] sm:$0xf0] }
 0x86a   : > { %v15254_v54 = vpop.f32.mrf.mxu0 }
 0x86b   : > { %v5529_v23 = vadd.f32 %v15247_v17, %v5442_v5  ;;  %v15257_v44 = vpack.c.bf16 %v5628_v49, %v5626_v60 }
 0x86c   : > { %v5311_v39 = vpop.f32.mrf.mxu1  ;;  %v15259_v38 = vpop.f32.mrf.mxu2 }
 0x86d   : > { %v5593_v57 = vmax.f32 %v5529_v23, 0.0  ;;  %5483 = vmatmul.bf16.gmra.mxu3 %v14690_v62  ;;  %5939 = vmatmul.bf16.gmra.mxu0 %v15257_v44  ;;  %v5312_v43 = vadd.f32 %v5311_v39, %v14958_v18  ;;  %v9737_v18 = vld [vmem:[%s16854_s5 + $0xe0] sm:$0xf]  ;;  %v17193_v39 = vld [vmem:[#allocation27_spill] sm:$0xff] }
 0x86e   : > { %v9738_v60 = vor.u32 %v10150_v40, %v9737_v18  ;;  %v9507_v18 = vld [vmem:[%s16851_s2 + $0x618] sm:$0xf0] }
 0x86f   : > { %v15263_v34 = vpack.c.bf16 %v5593_v57, %v5591_v45  ;;  %v5566_v62 = vadd.f32 %v14940_v10, %v5312_v43 }
 0x870   : > { %v5444_v47 = vpop.f32.mrf.mxu3  ;;  %6626 = vmatpush.bf16.msrb.mxu1 %v9738_v60  ;;  %v10107_v60 = vld [vmem:[%s16851_s2 + $0x694] sm:$0xf] }
 0x871   : > { %5983 = vmatmul.bf16.vlgmr.msra.gmra.mxu1 %v15263_v34  ;;  %v5445_v16 = vadd.f32 %v5444_v47, %v5356_v33  ;;  %v5630_v61 = vmax.f32 %v5566_v62, 0.0 }
 0x872   : > { %v15267_v32 = vpop.f32.mrf.mxu0 }
 0x873   : > { %v5531_v49 = vadd.f32 %v15247_v17, %v5445_v16 }
 0x874   : > { %v5313_v58 = vpop.f32.mrf.mxu1  ;;  %v15273_v28 = vpop.f32.mrf.mxu2 }
 0x875   : > { %v5314_v55 = vadd.f32 %v5313_v58, %v5225_v11  ;;  %v5595_v52 = vmax.f32 %v5531_v49, 0.0  ;;  %v10126_v49 = vld [vmem:[%s16854_s5 + $0x24] sm:$0xf0] }
 0x877   : > { %v5568_v9 = vadd.f32 %v14940_v10, %v5314_v55  ;;  %v10091_v55 = vld [vmem:[%s16851_s2 + $0x614] sm:$0xf] }
 0x878   : > { %v5446_v22 = vpop.f32.mrf.mxu3 }
 0x879   : > { %v5632_v5 = vmax.f32 %v5568_v9, 0.0  ;;  %v5447_v23 = vadd.f32 %v5446_v22, %v5358_v48  ;;  %5409 = vmatmul.bf16.gmra.mxu2 %v17193_v39  ;;  %v5230_v48 = vadd.f32 %v14986_v51, %v15010_v63  ;;  %v17194_v9 = vld [vmem:[#allocation52_spill] sm:$0xff]  ;;  %v9642_v39 = vor.u32 %v10126_v49, %v9641_v27  ;;  %v17195_v51 = vld [vmem:[#allocation13_spill] sm:$0xff] }
 0x87a   : > { %v15287_v45 = vpop.f32.mrf.mxu0  ;;  %v5361_v22 = vadd.f32 %v15214_v19, %v17194_v9  ;;  %v5363_v63 = vadd.f32 %v15243_v8, %v17195_v51  ;;  %v17196_v9 = vld [vmem:[#allocation37_spill] sm:$0xff] }
 0x87b   : > { %v5533_v57 = vadd.f32 %v15247_v17, %v5447_v23  ;;  %v15290_v47 = vpack.c.bf16 %v5632_v5, %v5630_v61  ;;  %6541 = vmatpush.bf16.msrb.mxu0 %v9642_v39 }
 0x87c   : > { %v5316_v43 = vpop.f32.mrf.mxu1  ;;  %v15292_v11 = vpop.f32.mrf.mxu2 }
 0x87d   : > { %v5597_v33 = vmax.f32 %v5533_v57, 0.0  ;;  %5488 = vmatmul.bf16.gmra.mxu3 %v14733_v15  ;;  %5944 = vmatmul.bf16.gmra.mxu0 %v15290_v47  ;;  %v5317_v16 = vadd.f32 %v5316_v43, %v14996_v50  ;;  %v9510_v15 = vor.u32 %v10091_v55, %v9507_v18  ;;  %v9571_v50 = vld [vmem:[%s16851_s2 + $0x698] sm:$0xf0] }
 0x87e   : > { %v9574_v61 = vor.u32 %v10107_v60, %v9571_v50 }
 0x87f   : > { %v15296_v58 = vpack.c.bf16 %v5597_v33, %v5595_v52  ;;  %6070 = vmatpush.bf16.msra.mxu2 %v9510_v15  ;;  %v5570_v57 = vadd.f32 %v14940_v10, %v5317_v16 }
 0x880   : > { %v5449_v62 = vpop.f32.mrf.mxu3  ;;  %6159 = vmatpush.bf16.msrb.mxu3 %v9574_v61 }
 0x881   : > { %5988 = vmatmul.bf16.gmra.mxu1 %v15296_v58  ;;  %v5450_v43 = vadd.f32 %v5449_v62, %v5361_v22  ;;  %v5634_v55 = vmax.f32 %v5570_v57, 0.0  ;;  %v17197_v57 = vld [vmem:[#allocation47_spill] sm:$0xff] }
 0x882   : > { %v15306_v40 = vpop.f32.mrf.mxu0 }
 0x883   : > { %v5535_v18 = vadd.f32 %v15247_v17, %v5450_v43  ;;  %v5235_v43 = vadd.f32 %v17197_v57, %v15048_v53  ;;  %v9729_v53 = vld [vmem:[%s16854_s5 + $0xd0] sm:$0xf] }
 0x884   : > { %v5318_v5 = vpop.f32.mrf.mxu1  ;;  %v15324_v23 = vpop.f32.mrf.mxu2 }
 0x885   : > { %v5319_v52 = vadd.f32 %v5318_v5, %v5230_v48  ;;  %v5599_v8 = vmax.f32 %v5535_v18, 0.0 }
 0x887   : > { %v5572_v19 = vadd.f32 %v14940_v10, %v5319_v52  ;;  %v17198_v52 = vld [vmem:[#allocation39_spill] sm:$0xff] }
 0x888   : > { %v5451_v33 = vpop.f32.mrf.mxu3  ;;  %v5366_v51 = vadd.f32 %v15259_v38, %v17198_v52  ;;  %v10148_v38 = vld [vmem:[%s16854_s5 + $0xd4] sm:$0xf0] }
 0x889   : > { %v5636_v60 = vmax.f32 %v5572_v19, 0.0  ;;  %v5452_v50 = vadd.f32 %v5451_v33, %v5363_v63  ;;  %5414 = vmatmul.bf16.gmra.mxu2 %v17196_v9  ;;  %v17199_v9 = vld [vmem:[#allocation57_spill] sm:$0xff] }
 0x88a   : > { %v15332_v15 = vpop.f32.mrf.mxu0 }
 0x88b   : > { %v5537_v62 = vadd.f32 %v15247_v17, %v5452_v50  ;;  %v15335_v16 = vpack.c.bf16 %v5636_v60, %v5634_v55  ;;  %v9730_v50 = vor.u32 %v10148_v38, %v9729_v53  ;;  %v10105_v38 = vld [vmem:[%s16851_s2 + $0x684] sm:$0xf] }
 0x88c   : > { %v5321_v27 = vpop.f32.mrf.mxu1  ;;  %v15337_v48 = vpop.f32.mrf.mxu2 }
 0x88d   : > { %v5601_v22 = vmax.f32 %v5537_v62, 0.0  ;;  %5493 = vmatmul.bf16.gmra.mxu3 %v14787_v13  ;;  %5949 = vmatmul.bf16.gmra.mxu0 %v15335_v16  ;;  %v5322_v5 = vadd.f32 %v5321_v27, %v15022_v2  ;;  %v10089_v13 = vld [vmem:[%s16851_s2 + $0x604] sm:$0xf]  ;;  %v9499_v2 = vld [vmem:[%s16851_s2 + $0x608] sm:$0xf0]  ;;  %v5368_v62 = vadd.f32 %v15273_v28, %v17199_v9 }
 0x88e   : > { %v9502_v60 = vor.u32 %v10089_v13, %v9499_v2  ;;  %6627 = vmatpush.bf16.msrb.mxu1 %v9730_v50  ;;  %v9633_v9 = vld [vmem:[%s16854_s5 + $0x10] sm:$0xf] }
 0x88f   : > { %v15341_v61 = vpack.c.bf16 %v5601_v22, %v5599_v8  ;;  %v5574_v33 = vadd.f32 %v14940_v10, %v5322_v5 }
 0x890   : > { %v5454_v49 = vpop.f32.mrf.mxu3  ;;  %6071 = vmatpush.bf16.msra.mxu2 %v9502_v60  ;;  %v9563_v60 = vld [vmem:[%s16851_s2 + $0x688] sm:$0xf0] }
 0x891   : > { %5993 = vmatmul.bf16.gmra.mxu1 %v15341_v61  ;;  %v5455_v55 = vadd.f32 %v5454_v49, %v5366_v51  ;;  %v5638_v22 = vmax.f32 %v5574_v33, 0.0 }
 0x892   : > { %v15345_v39 = vpop.f32.mrf.mxu0 }
 0x893   : > { %v5539_v49 = vadd.f32 %v15247_v17, %v5455_v55 }
 0x894   : > { %v5323_v63 = vpop.f32.mrf.mxu1  ;;  %v15351_v19 = vpop.f32.mrf.mxu2 }
 0x895   : > { %v5324_v18 = vadd.f32 %v5323_v63, %v5235_v43  ;;  %v17200_v43 = vld [vmem:[#allocation38_spill] sm:$0xff]  ;;  %v5603_v2 = vmax.f32 %v5539_v49, 0.0 }
 0x897   : > { %v5576_v27 = vadd.f32 %v14940_v10, %v5324_v18 }
 0x898   : > { %v5456_v8 = vpop.f32.mrf.mxu3 }
 0x899   : > { %v5640_v5 = vmax.f32 %v5576_v27, 0.0  ;;  %v5457_v57 = vadd.f32 %v5456_v8, %v5368_v62  ;;  %5419 = vmatmul.bf16.gmra.mxu2 %v17200_v43  ;;  %v5240_v62 = vadd.f32 %v15058_v1, %v15076_v29  ;;  %v17201_v27 = vld [vmem:[#allocation40_spill] sm:$0xff] }
 0x89a   : > { %v15371_v52 = vpop.f32.mrf.mxu0  ;;  %v5371_v8 = vadd.f32 %v15292_v11, %v17201_v27 }
 0x89b   : > { %v5541_v51 = vadd.f32 %v15247_v17, %v5457_v57  ;;  %v15374_v63 = vpack.c.bf16 %v5640_v5, %v5638_v22 }
 0x89c   : > { %v5326_v13 = vpop.f32.mrf.mxu1  ;;  %v15376_v28 = vpop.f32.mrf.mxu2 }
 0x89d   : > { %v5605_v18 = vmax.f32 %v5541_v51, 0.0  ;;  %5498 = vmatmul.bf16.gmra.mxu3 %v14827_v35  ;;  %5954 = vmatmul.bf16.gmra.mxu0 %v15374_v63  ;;  %v5327_v53 = vadd.f32 %v5326_v13, %v15060_v12  ;;  %v9566_v35 = vor.u32 %v10105_v38, %v9563_v60  ;;  %v10124_v12 = vld [vmem:[%s16854_s5 + $0x14] sm:$0xf0]  ;;  %v17202_v13 = vld [vmem:[#allocation55_spill] sm:$0xff] }
 0x89e   : > { %v9634_v22 = vor.u32 %v10124_v12, %v9633_v9  ;;  %v17203_v9 = vld [vmem:[#allocation6_spill] sm:$0xff] }
 0x89f   : > { %v15380_v33 = vpack.c.bf16 %v5605_v18, %v5603_v2  ;;  %6160 = vmatpush.bf16.msrb.mxu3 %v9566_v35  ;;  %v5578_v57 = vadd.f32 %v14940_v10, %v5327_v53  ;;  %v5373_v2 = vadd.f32 %v15324_v23, %v17202_v13 }
 0x8a0   : > { %v5459_v55 = vpop.f32.mrf.mxu3  ;;  %6542 = vmatpush.bf16.msrb.mxu0 %v9634_v22 }
 0x8a1   : > { %5998 = vmatmul.bf16.gmra.mxu1 %v15380_v33  ;;  %v5460_v43 = vadd.f32 %v5459_v55, %v5371_v8  ;;  %v5642_v1 = vmax.f32 %v5578_v57, 0.0 }
 0x8a2   : > { %v15390_v50 = vpop.f32.mrf.mxu0 }
 0x8a3   : > { %v5543_v29 = vadd.f32 %v15247_v17, %v5460_v43  ;;  %v5245_v43 = vadd.f32 %v15092_v14, %v15115_v20  ;;  %v17205_v14 = vld [vmem:[#allocation10_spill] sm:$0xff] }
 0x8a4   : > { %v5328_v49 = vpop.f32.mrf.mxu1  ;;  %v15402_v5 = vpop.f32.mrf.mxu2  ;;  %v5378_v20 = vadd.f32 %v15351_v19, %v17205_v14  ;;  %v5250_v14 = vadd.f32 %v15193_v0, %v15140_v42  ;;  %v17210_v0 = vld [vmem:[#allocation45_spill] sm:$0xff] }
 0x8a5   : > { %v5329_v51 = vadd.f32 %v5328_v49, %v5240_v62  ;;  %v5607_v23 = vmax.f32 %v5543_v29, 0.0  ;;  %v10146_v29 = vld [vmem:[%s16854_s5 + $0xc4] sm:$0xf0] }
 0x8a7   : > { %v5580_v18 = vadd.f32 %v14940_v10, %v5329_v51  ;;  %v17204_v51 = vld [vmem:[#allocation4_spill] sm:$0xff] }
 0x8a8   : > { %v5461_v38 = vpop.f32.mrf.mxu3  ;;  %v5376_v13 = vadd.f32 %v15337_v48, %v17204_v51 }
 0x8a9   : > { %v5644_v11 = vmax.f32 %v5580_v18, 0.0  ;;  %v5462_v60 = vadd.f32 %v5461_v38, %v5373_v2  ;;  %5424 = vmatmul.bf16.gmra.mxu2 %v17203_v9 }
 0x8aa   : > { %v15410_v12 = vpop.f32.mrf.mxu0 }
 0x8ab   : > { %v5545_v53 = vadd.f32 %v15247_v17, %v5462_v60  ;;  %v15413_v55 = vpack.c.bf16 %v5644_v11, %v5642_v1 }
 0x8ac   : > { %v5331_v35 = vpop.f32.mrf.mxu1  ;;  %v15415_v62 = vpop.f32.mrf.mxu2 }
 0x8ad   : > { %v5609_v27 = vmax.f32 %v5545_v53, 0.0  ;;  %5503 = vmatmul.bf16.gmra.mxu3 %v14861_v6  ;;  %5959 = vmatmul.bf16.gmra.mxu0 %v15413_v55  ;;  %v5332_v49 = vadd.f32 %v5331_v35, %v15085_v4  ;;  %v9721_v4 = vld [vmem:[%s16854_s5 + $0xc0] sm:$0xf] }
 0x8ae   : > { %v9722_v11 = vor.u32 %v10146_v29, %v9721_v4 }
 0x8af   : > { %v15419_v8 = vpack.c.bf16 %v5609_v27, %v5607_v23  ;;  %v5582_v6 = vadd.f32 %v14940_v10, %v5332_v49  ;;  %v17206_v27 = vld [vmem:[#allocation14_spill] sm:$0xff] }
 0x8b0   : > { %v5464_v22 = vpop.f32.mrf.mxu3  ;;  %6628 = vmatpush.bf16.msrb.mxu1 %v9722_v11 }
 0x8b1   : > { %6003 = vmatmul.bf16.gmra.mxu1 %v15419_v8  ;;  %v5465_v38 = vadd.f32 %v5464_v22, %v5376_v13  ;;  %v5646_v9 = vmax.f32 %v5582_v6, 0.0  ;;  %v9625_v6 = vld [vmem:[%s16854_s5] sm:$0xf] }
 0x8b2   : > { %v15423_v57 = vpop.f32.mrf.mxu0 }
 0x8b3   : > { %v5547_v53 = vadd.f32 %v15247_v17, %v5465_v38  ;;  %v10122_v38 = vld [vmem:[%s16854_s5 + $0x4] sm:$0xf0] }
 0x8b4   : > { %v5333_v2 = vpop.f32.mrf.mxu1  ;;  %v15429_v18 = vpop.f32.mrf.mxu2 }
 0x8b5   : > { %v5334_v1 = vadd.f32 %v5333_v2, %v5245_v43  ;;  %v5611_v19 = vmax.f32 %v5547_v53, 0.0 }
 0x8b7   : > { %v5584_v48 = vadd.f32 %v14940_v10, %v5334_v1  ;;  %v9626_v1 = vor.u32 %v10122_v38, %v9625_v6 }
 0x8b8   : > { %v5466_v60 = vpop.f32.mrf.mxu3 }
 0x8b9   : > { %v5648_v35 = vmax.f32 %v5584_v48, 0.0  ;;  %v5467_v23 = vadd.f32 %v5466_v60, %v5378_v20  ;;  %6072 = vmatmul.bf16.vlgmr.msra.gmra.mxu2 %v17206_v27  ;;  %6543 = vmatpush.bf16.msrb.mxu0 %v9626_v1  ;;  %v17208_v20 = vld [vmem:[#allocation41_spill] sm:$0xff]  ;;  %v17209_v27 = vld [vmem:[#allocation58_spill] sm:$0xff] }
 0x8ba   : > { %v15443_v22 = vpop.f32.mrf.mxu0  ;;  %v5381_v48 = vadd.f32 %v15376_v28, %v17208_v20 }
 0x8bb   : > { %v5549_v49 = vadd.f32 %v15247_v17, %v5467_v23  ;;  %v15446_v43 = vpack.c.bf16 %v5648_v35, %v5646_v9 }
 0x8bc   : > { %v5336_v51 = vpop.f32.mrf.mxu1  ;;  %v15448_v13 = vpop.f32.mrf.mxu2 }
 0x8bd   : > { %17207 = vst [vmem:[#allocation56_spill] sm:$0xff] %v15446_v43  ;;  %v5613_v2 = vmax.f32 %v5549_v49, 0.0  ;;  %5508 = vmatmul.bf16.gmra.mxu3 %v14891_v46  ;;  %5964 = vmatmul.bf16.gmra.mxu0 %v15446_v43  ;;  %v5337_v11 = vadd.f32 %v5336_v51, %v15124_v41  ;;  %v5383_v49 = vadd.f32 %v15402_v5, %v17209_v27 }
 0x8bf   : > { %v15458_v4 = vpack.c.bf16 %v5613_v2, %v5611_v19  ;;  %v5586_v53 = vadd.f32 %v14940_v10, %v5337_v11 }
 0x8c0   : > { %v5469_v29 = vpop.f32.mrf.mxu3 }
 0x8c1   : > { %6008 = vmatmul.bf16.gmra.mxu1 %v15458_v4  ;;  %v5470_v35 = vadd.f32 %v5469_v29, %v5381_v48  ;;  %v5650_v19 = vmax.f32 %v5586_v53, 0.0  ;;  %v17212_v48 = vld [vmem:[#allocation42_spill] sm:$0xff] }
 0x8c2   : > { %v15462_v46 = vpop.f32.mrf.mxu0 }
 0x8c3   : > { %v5551_v2 = vadd.f32 %v15247_v17, %v5470_v35 }
 0x8c4   : > { %v5338_v60 = vpop.f32.mrf.mxu1  ;;  %v5392_v9 = vpop.f32.mrf.mxu2 }
 0x8c5   : > { %v5339_v23 = vadd.f32 %v5338_v60, %v5250_v14  ;;  %v5615_v11 = vmax.f32 %v5551_v2, 0.0  ;;  %v5386_v60 = vadd.f32 %v15415_v62, %v17212_v48  ;;  %v17214_v62 = vld [vmem:[#allocation49_spill] sm:$0xff] }
 0x8c6   : > { %v17215_v48 = vld [vmem:[#allocation5_spill] sm:$0xff] }
 0x8c7   : > { %v5588_v41 = vadd.f32 %v14940_v10, %v5339_v23  ;;  %v9713_v23 = vld [vmem:[%s16854_s5 + $0xb0] sm:$0xf] }
 0x8c8   : > { %v5471_v51 = vpop.f32.mrf.mxu3 }
 0x8c9   : > { %v5652_v6 = vmax.f32 %v5588_v41, 0.0  ;;  %v5472_v42 = vadd.f32 %v5471_v51, %v5383_v49  ;;  %6077 = vmatmul.bf16.gmra.mxu2 %v17210_v0  ;;  %v17213_v49 = vld [vmem:[#allocation11_spill] sm:$0xff] }
 0x8ca   : > { %v15474_v28 = vpop.f32.mrf.mxu0  ;;  %v5388_v41 = vadd.f32 %v15429_v18, %v17213_v49 }
 0x8cb   : > { %v5553_v38 = vadd.f32 %v15247_v17, %v5472_v42  ;;  %v15477_v1 = vpack.c.bf16 %v5652_v6, %v5650_v19 }
 0x8cc   : > { %v5395_v29 = vpop.f32.mrf.mxu2 }
 0x8cd   : > { %17211 = vst [vmem:[#allocation19_spill] sm:$0xff] %v15477_v1  ;;  %v5617_v14 = vmax.f32 %v5553_v38, 0.0  ;;  %5513 = vmatmul.bf16.gmra.mxu3 %v14923_v37  ;;  %5969 = vmatmul.bf16.gmra.mxu0 %v15477_v1  ;;  %v10144_v37 = vld [vmem:[%s16854_s5 + $0xb4] sm:$0xf0] }
 0x8ce   : > { %v9714_v27 = vor.u32 %v10144_v37, %v9713_v23 }
 0x8cf   : > { %v15481_v10 = vpack.c.bf16 %v5617_v14, %v5615_v11 }
 0x8d0   : > { %v5474_v5 = vpop.f32.mrf.mxu3  ;;  %6629 = vmatpush.bf16.msrb.mxu1 %v9714_v27  ;;  %v17216_v27 = vld [vmem:[#allocation43_spill] sm:$0xff] }
 0x8d1   : > { %6013 = vmatmul.bf16.gmra.mxu1 %v15481_v10  ;;  %v5475_v35 = vadd.f32 %v5474_v5, %v5386_v60  ;;  %v10160_v5 = vld [vmem:[%s16856_s7 + $0x38] sm:$0xff]  ;;  %v5391_v60 = vadd.f32 %v15448_v13, %v17215_v48  ;;  %v5393_v49 = vadd.f32 %v5392_v9, %v17216_v27  ;;  %v17217_v48 = vld [vmem:[#allocation8_spill] sm:$0xff] }
 0x8d2   : > { %v15484_v20 = vpop.f32.mrf.mxu0  ;;  %7104 = vmatpush.bf16.msra.mxu0 %v10160_v5 }
 0x8d3   : > { %v5555_v19 = vadd.f32 %v15247_v17, %v5475_v35 }
 0x8d4   : > { %v5397_v53 = vpop.f32.mrf.mxu2 }
 0x8d5   : > { %v5619_v38 = vmax.f32 %v5555_v19, 0.0 }
 0x8d8   : > { %v5476_v51 = vpop.f32.mrf.mxu3 }
 0x8d9   : > { %v5477_v2 = vadd.f32 %v5476_v51, %v5388_v41  ;;  %6082 = vmatmul.bf16.gmra.mxu2 %v17214_v62 }
 0x8da   : > { %v15499_v42 = vpop.f32.mrf.mxu0 }
 0x8db   : > { %v5557_v6 = vadd.f32 %v15247_v17, %v5477_v2  ;;  %v15521_v2 = vld [vmem:[%s16853_s4 + $0x7] ss:$8 sm:$0x3] }
 0x8dc   : > { %v15501_v0 = vpop.f32.mrf.mxu2 }
 0x8dd   : > { %v5621_v11 = vmax.f32 %v5557_v6, 0.0  ;;  %6161 = vmatmul.bf16.vlgmr.msrb.gmra.mxu3 %v15263_v34 }
 0x8df   : > { %v15504_v14 = vpack.c.bf16 %v5621_v11, %v5619_v38  ;;  %v15527_v38 = vperm.slane %v15521_v2, 0 }
 0x8e0   : > { %v5479_v18 = vpop.f32.mrf.mxu3 }
 0x8e1   : > { %6018 = vmatmul.bf16.gmra.mxu1 %v15504_v14  ;;  %v5480_v23 = vadd.f32 %v5479_v18, %v5391_v60  ;;  %v5896_v5 = vadd.f32 %v15210_v31, %v15527_v38  ;;  %v5396_v60 = vadd.f32 %v5395_v29, %v17217_v48  ;;  %v17218_v31 = vld [vmem:[#allocation7_spill] sm:$0xff] }
 0x8e2   : > { %v15512_v37 = vpop.f32.mrf.mxu0 }
 0x8e3   : > { %v5559_v41 = vadd.f32 %v15247_v17, %v5480_v23 }
 0x8e4   : > { %v5402_v35 = vpop.f32.mrf.mxu2 }
 0x8e5   : > { %v5623_v62 = vmax.f32 %v5559_v41, 0.0  ;;  %v10142_v41 = vld [vmem:[%s16854_s5 + $0xa4] sm:$0xf0] }
 0x8e8   : > { %v5481_v34 = vpop.f32.mrf.mxu3 }
 0x8e9   : > { %v5482_v51 = vadd.f32 %v5481_v34, %v5393_v49  ;;  %6087 = vmatmul.bf16.gmra.mxu2 %v15056_v24  ;;  %v9705_v34 = vld [vmem:[%s16854_s5 + $0xa0] sm:$0xf] }
 0x8ea   : > { %v15531_v24 = vpop.f32.mrf.mxu0 }
 0x8eb   : > { %v5561_v19 = vadd.f32 %v15247_v17, %v5482_v51 }
 0x8ec   : > { %v15523_v13 = vpop.f32.mrf.mxu2 }
 0x8ed   : > { %v5625_v6 = vmax.f32 %v5561_v19, 0.0  ;;  %6166 = vmatmul.bf16.gmra.mxu3 %v15296_v58  ;;  %v5898_v58 = vadd.f32 %v15225_v25, %v15527_v38  ;;  %v9706_v19 = vor.u32 %v10142_v41, %v9705_v34  ;;  %v5901_v41 = vadd.f32 %v15254_v54, %v15527_v38 }
 0x8ee   : > { %v5984_v9 = vpop.f32.mrf.mxu1 }
 0x8ef   : > { %v15529_v11 = vpack.c.bf16 %v5625_v6, %v5623_v62  ;;  %v5985_v27 = vadd.f32 %v5984_v9, %v5896_v5  ;;  %v5398_v62 = vadd.f32 %v5397_v53, %v17218_v31  ;;  %6630 = vmatpush.bf16.msrb.mxu1 %v9706_v19  ;;  %v5903_v31 = vadd.f32 %v15267_v32, %v15527_v38 }
 0x8f0   : > { %v5484_v18 = vpop.f32.mrf.mxu3 }
 0x8f1   : > { %6023 = vmatmul.bf16.gmra.mxu1 %v15529_v11  ;;  %v5485_v49 = vadd.f32 %v5484_v18, %v5396_v60  ;;  %v6242_v48 = vmax.f32 %v5985_v27, 0.0 }
 0x8f2   : > { %v15550_v5 = vpop.f32.mrf.mxu0 }
 0x8f3   : > { %v5563_v25 = vadd.f32 %v15247_v17, %v5485_v49 }
 0x8f4   : > { %v15537_v23 = vpop.f32.mrf.mxu2 }
 0x8f5   : > { %v5627_v34 = vmax.f32 %v5563_v25, 0.0 }
 0x8f6   : > { %v5986_v51 = vpop.f32.mrf.mxu1 }
 0x8f7   : > { %v5987_v29 = vadd.f32 %v5986_v51, %v5898_v58  ;;  %v17220_v51 = vld [vmem:[#allocation31_spill] sm:$0xff] }
 0x8f8   : > { %v5486_v6 = vpop.f32.mrf.mxu3 }
 0x8f9   : > { %v6244_v9 = vmax.f32 %v5987_v29, 0.0  ;;  %v5487_v18 = vadd.f32 %v5486_v6, %v5398_v62  ;;  %6092 = vmatmul.bf16.gmra.mxu2 %v15083_v21  ;;  %v10159_v21 = vld [vmem:[%s16856_s7 + $0x30] sm:$0xff] }
 0x8fa   : > { %7105 = vmatpush.bf16.msra.mxu0 %v10159_v21 }
 0x8fb   : > { %v15552_v60 = vpack.c.bf16 %v6244_v9, %v6242_v48  ;;  %v5565_v1 = vadd.f32 %v15247_v17, %v5487_v18  ;;  %v17221_v48 = vld [vmem:[#allocation29_spill] sm:$0xff] }
 0x8fc   : > { %v15555_v43 = vpop.f32.mrf.mxu2  ;;  %v5403_v25 = vadd.f32 %v5402_v35, %v17221_v48 }
 0x8fd   : > { %17219 = vst [vmem:[#allocation59_spill] sm:$0xff] %v15552_v60  ;;  %v5629_v53 = vmax.f32 %v5565_v1, 0.0  ;;  %6171 = vmatmul.bf16.gmra.mxu3 %v15341_v61  ;;  %6544 = vmatmul.bf16.vlgmr.msrb.gmra.mxu0 %v15552_v60  ;;  %v5401_v1 = vadd.f32 %v15501_v0, %v17220_v51  ;;  %v15569_v61 = vpop.f32.mrf.mxu0 }
 0x8fe   : > { %v5989_v58 = vpop.f32.mrf.mxu1 }
 0x8ff   : > { %v15559_v27 = vpack.c.bf16 %v5629_v53, %v5627_v34  ;;  %v5990_v62 = vadd.f32 %v5989_v58, %v5901_v41 }
 0x900   : > { %v5489_v49 = vpop.f32.mrf.mxu3 }
 0x901   : > { %6028 = vmatmul.bf16.gmra.mxu1 %v15559_v27  ;;  %v5490_v29 = vadd.f32 %v5489_v49, %v5401_v1  ;;  %v6246_v34 = vmax.f32 %v5990_v62, 0.0 }
 0x903   : > { %v5567_v54 = vadd.f32 %v15247_v17, %v5490_v29 }
 0x904   : > { %v15571_v19 = vpop.f32.mrf.mxu2 }
 0x905   : > { %v5631_v32 = vmax.f32 %v5567_v54, 0.0  ;;  %v15585_v35 = vpop.f32.mrf.mxu0 }
 0x906   : > { %v5991_v6 = vpop.f32.mrf.mxu1 }
 0x907   : > { %v5992_v9 = vadd.f32 %v5991_v6, %v5903_v31  ;;  %v17222_v31 = vld [vmem:[#allocation51_spill] sm:$0xff] }
 0x908   : > { %v5491_v18 = vpop.f32.mrf.mxu3  ;;  %v5406_v62 = vadd.f32 %v15523_v13, %v17222_v31 }
 0x909   : > { %v6248_v53 = vmax.f32 %v5992_v9, 0.0  ;;  %v5492_v0 = vadd.f32 %v5491_v18, %v5403_v25  ;;  %6097 = vmatmul.bf16.gmra.mxu2 %v15122_v3  ;;  %v5906_v3 = vadd.f32 %v15287_v45, %v15527_v38  ;;  %v9697_v25 = vld [vmem:[%s16854_s5 + $0x90] sm:$0xf]  ;;  %v10140_v9 = vld [vmem:[%s16854_s5 + $0x94] sm:$0xf0] }
 0x90a   : > { %v9698_v45 = vor.u32 %v10140_v9, %v9697_v25  ;;  %v5911_v25 = vadd.f32 %v15332_v15, %v15527_v38  ;;  %v17224_v9 = vld [vmem:[#allocation53_spill] sm:$0xff] }
 0x90b   : > { %v5569_v21 = vadd.f32 %v15247_v17, %v5492_v0  ;;  %v15579_v51 = vpack.c.bf16 %v6248_v53, %v6246_v34  ;;  %v17223_v34 = vld [vmem:[#allocation61_spill] sm:$0xff] }
 0x90c   : > { %v15581_v60 = vpop.f32.mrf.mxu2  ;;  %v5408_v13 = vadd.f32 %v15537_v23, %v17223_v34  ;;  %6631 = vmatpush.bf16.msrb.mxu1 %v9698_v45  ;;  %v5913_v45 = vadd.f32 %v15345_v39, %v15527_v38 }
 0x90d   : > { %v5633_v58 = vmax.f32 %v5569_v21, 0.0  ;;  %6176 = vmatmul.bf16.gmra.mxu3 %v15380_v33  ;;  %6549 = vmatmul.bf16.gmra.mxu0 %v15579_v51  ;;  %v5908_v33 = vadd.f32 %v15306_v40, %v15527_v38  ;;  %v15606_v53 = vpop.f32.mrf.mxu0 }
 0x90e   : > { %v5994_v49 = vpop.f32.mrf.mxu1 }
 0x90f   : > { %v15587_v41 = vpack.c.bf16 %v5633_v58, %v5631_v32  ;;  %v5995_v6 = vadd.f32 %v5994_v49, %v5906_v3 }
 0x910   : > { %v5494_v1 = vpop.f32.mrf.mxu3 }
 0x911   : > { %6033 = vmatmul.bf16.gmra.mxu1 %v15587_v41  ;;  %v5495_v48 = vadd.f32 %v5494_v1, %v5406_v62  ;;  %v6250_v40 = vmax.f32 %v5995_v6, 0.0 }
 0x913   : > { %v5571_v21 = vadd.f32 %v15247_v17, %v5495_v48 }
 0x914   : > { %v15594_v29 = vpop.f32.mrf.mxu2 }
 0x915   : > { %v5635_v31 = vmax.f32 %v5571_v21, 0.0  ;;  %v15623_v48 = vpop.f32.mrf.mxu0 }
 0x916   : > { %v5996_v18 = vpop.f32.mrf.mxu1 }
 0x917   : > { %v5997_v54 = vadd.f32 %v5996_v18, %v5908_v33 }
 0x918   : > { %v5496_v0 = vpop.f32.mrf.mxu3 }
 0x919   : > { %v6252_v32 = vmax.f32 %v5997_v54, 0.0  ;;  %v5497_v58 = vadd.f32 %v5496_v0, %v5408_v13  ;;  %6102 = vmatmul.bf16.gmra.mxu2 %v15147_v7  ;;  %v10158_v7 = vld [vmem:[%s16856_s7 + $0x28] sm:$0xff]  ;;  %v5413_v0 = vadd.f32 %v15571_v19, %v15119_v26 }
 0x91a   : > { %7106 = vmatpush.bf16.msra.mxu0 %v10158_v7 }
 0x91b   : > { %v5573_v49 = vadd.f32 %v15247_v17, %v5497_v58  ;;  %v15611_v1 = vpack.c.bf16 %v6252_v32, %v6250_v40 }
 0x91c   : > { %v15613_v3 = vpop.f32.mrf.mxu2 }
 0x91d   : > { %v5637_v23 = vmax.f32 %v5573_v49, 0.0  ;;  %6181 = vmatmul.bf16.gmra.mxu3 %v15419_v8  ;;  %6554 = vmatmul.bf16.gmra.mxu0 %v15611_v1  ;;  %v5411_v8 = vadd.f32 %v15555_v43, %v17224_v9  ;;  %v15640_v39 = vpop.f32.mrf.mxu0 }
 0x91e   : > { %v5999_v62 = vpop.f32.mrf.mxu1 }
 0x91f   : > { %v15617_v33 = vpack.c.bf16 %v5637_v23, %v5635_v31  ;;  %v6000_v34 = vadd.f32 %v5999_v62, %v5911_v25  ;;  %v5416_v25 = vadd.f32 %v15581_v60, %v15129_v36  ;;  %v5418_v36 = vadd.f32 %v15594_v29, %v15144_v59 }
 0x920   : > { %v5499_v6 = vpop.f32.mrf.mxu3 }
 0x921   : > { %6038 = vmatmul.bf16.gmra.mxu1 %v15617_v33  ;;  %v5500_v13 = vadd.f32 %v5499_v6, %v5411_v8  ;;  %v6254_v32 = vmax.f32 %v6000_v34, 0.0  ;;  %v5918_v8 = vadd.f32 %v15390_v50, %v15527_v38  ;;  %v9689_v34 = vld [vmem:[%s16854_s5 + $0x80] sm:$0xf] }
 0x923   : > { %v5575_v15 = vadd.f32 %v15247_v17, %v5500_v13  ;;  %v10138_v13 = vld [vmem:[%s16854_s5 + $0x84] sm:$0xf0] }
 0x924   : > { %v15629_v18 = vpop.f32.mrf.mxu2 }
 0x925   : > { %v5639_v62 = vmax.f32 %v5575_v15, 0.0 }
 0x926   : > { %v6001_v54 = vpop.f32.mrf.mxu1 }
 0x927   : > { %v6002_v40 = vadd.f32 %v6001_v54, %v5913_v45  ;;  %v15663_v54 = vpop.f32.mrf.mxu0 }
 0x928   : > { %v5501_v21 = vpop.f32.mrf.mxu3 }
 0x929   : > { %v6256_v58 = vmax.f32 %v6002_v40, 0.0  ;;  %v5502_v49 = vadd.f32 %v5501_v21, %v5413_v0  ;;  %6107 = vmatmul.bf16.gmra.mxu2 %v15184_v56  ;;  %v5916_v56 = vadd.f32 %v15371_v52, %v15527_v38  ;;  %v9690_v0 = vor.u32 %v10138_v13, %v9689_v34 }
 0x92b   : > { %v5577_v43 = vadd.f32 %v15247_v17, %v5502_v49  ;;  %v15638_v31 = vpack.c.bf16 %v6256_v58, %v6254_v32  ;;  %6632 = vmatpush.bf16.msrb.mxu1 %v9690_v0 }
 0x92c   : > { %v15642_v23 = vpop.f32.mrf.mxu2 }
 0x92d   : > { %v5641_v6 = vmax.f32 %v5577_v43, 0.0  ;;  %6186 = vmatmul.bf16.gmra.mxu3 %v15458_v4  ;;  %6559 = vmatmul.bf16.gmra.mxu0 %v15638_v31 }
 0x92e   : > { %v6004_v26 = vpop.f32.mrf.mxu1 }
 0x92f   : > { %v15646_v19 = vpack.c.bf16 %v5641_v6, %v5639_v62  ;;  %v6005_v4 = vadd.f32 %v6004_v26, %v5916_v56  ;;  %v15678_v26 = vpop.f32.mrf.mxu0  ;;  %v5921_v56 = vadd.f32 %v15410_v12, %v15527_v38 }
 0x930   : > { %v5504_v7 = vpop.f32.mrf.mxu3 }
 0x931   : > { %6043 = vmatmul.bf16.gmra.mxu1 %v15646_v19  ;;  %v5505_v45 = vadd.f32 %v5504_v7, %v5416_v25  ;;  %v6258_v50 = vmax.f32 %v6005_v4, 0.0  ;;  %v17225_v25 = vld [vmem:[#allocation22_spill] sm:$0xff]  ;;  %v5923_v4 = vadd.f32 %v15423_v57, %v15527_v38 }
 0x933   : > { %v5579_v21 = vadd.f32 %v15247_v17, %v5505_v45 }
 0x934   : > { %v15653_v9 = vpop.f32.mrf.mxu2 }
 0x935   : > { %v5643_v62 = vmax.f32 %v5579_v21, 0.0 }
 0x936   : > { %v6006_v52 = vpop.f32.mrf.mxu1 }
 0x937   : > { %v6007_v60 = vadd.f32 %v6006_v52, %v5918_v8  ;;  %v17226_v52 = vld [vmem:[#allocation35_spill] sm:$0xff] }
 0x938   : > { %v5506_v40 = vpop.f32.mrf.mxu3  ;;  %v5423_v0 = vadd.f32 %v15629_v18, %v17226_v52 }
 0x939   : > { %v6260_v32 = vmax.f32 %v6007_v60, 0.0  ;;  %v5507_v15 = vadd.f32 %v5506_v40, %v5418_v36  ;;  %6112 = vmatmul.bf16.gmra.mxu2 %v15212_v30  ;;  %v10157_v30 = vld [vmem:[%s16856_s7 + $0x20] sm:$0xff] }
 0x93a   : > { %7107 = vmatpush.bf16.msra.mxu0 %v10157_v30 }
 0x93b   : > { %v5581_v58 = vadd.f32 %v15247_v17, %v5507_v15  ;;  %v15670_v49 = vpack.c.bf16 %v6260_v32, %v6258_v50 }
 0x93c   : > { %v15672_v43 = vpop.f32.mrf.mxu2 }
 0x93d   : > { %v5645_v6 = vmax.f32 %v5581_v58, 0.0  ;;  %6191 = vmatmul.bf16.gmra.mxu3 %v15481_v10  ;;  %6564 = vmatmul.bf16.gmra.mxu0 %v15670_v49  ;;  %v5421_v10 = vadd.f32 %v15613_v3, %v17225_v25  ;;  %v15694_v3 = vpop.f32.mrf.mxu0 }
 0x93e   : > { %v6009_v59 = vpop.f32.mrf.mxu1 }
 0x93f   : > { %v15676_v29 = vpack.c.bf16 %v5645_v6, %v5643_v62  ;;  %v6010_v45 = vadd.f32 %v6009_v59, %v5921_v56 }
 0x940   : > { %v5509_v7 = vpop.f32.mrf.mxu3 }
 0x941   : > { %6048 = vmatmul.bf16.gmra.mxu1 %v15676_v29  ;;  %v5510_v34 = vadd.f32 %v5509_v7, %v5421_v10  ;;  %v6262_v40 = vmax.f32 %v6010_v45, 0.0  ;;  %v17227_v7 = vld [vmem:[#allocation33_spill] sm:$0xff] }
 0x942   : > { %v5426_v30 = vadd.f32 %v15642_v23, %v17227_v7 }
 0x943   : > { %v5583_v50 = vadd.f32 %v15247_v17, %v5510_v34  ;;  %v17228_v34 = vld [vmem:[#allocation54_spill] sm:$0xff] }
 0x944   : > { %v6075_v8 = vpop.f32.mrf.mxu2 }
 0x945   : > { %v5647_v58 = vmax.f32 %v5583_v50, 0.0  ;;  %v15710_v56 = vpop.f32.mrf.mxu0 }
 0x946   : > { %v6011_v13 = vpop.f32.mrf.mxu1 }
 0x947   : > { %v6012_v36 = vadd.f32 %v6011_v13, %v5923_v4  ;;  %v5428_v13 = vadd.f32 %v15653_v9, %v17228_v34 }
 0x948   : > { %v5511_v60 = vpop.f32.mrf.mxu3 }
 0x949   : > { %v6264_v12 = vmax.f32 %v6012_v36, 0.0  ;;  %v5512_v21 = vadd.f32 %v5511_v60, %v5423_v0  ;;  %6117 = vmatmul.bf16.gmra.mxu2 %v15257_v44  ;;  %v5926_v44 = vadd.f32 %v15443_v22, %v15527_v38 }
 0x94b   : > { %v5585_v32 = vadd.f32 %v15247_v17, %v5512_v21  ;;  %v15697_v57 = vpack.c.bf16 %v6264_v12, %v6262_v40 }
 0x94c   : > { %v15699_v15 = vpop.f32.mrf.mxu2 }
 0x94d   : > { %v5649_v62 = vmax.f32 %v5585_v32, 0.0  ;;  %6196 = vmatmul.bf16.gmra.mxu3 %v15504_v14  ;;  %6569 = vmatmul.bf16.gmra.mxu0 %v15697_v57  ;;  %v5928_v14 = vadd.f32 %v15462_v46, %v15527_v38  ;;  %v15725_v9 = vpop.f32.mrf.mxu0 }
 0x94e   : > { %v6014_v18 = vpop.f32.mrf.mxu1 }
 0x94f   : > { %v15703_v6 = vpack.c.bf16 %v5649_v62, %v5647_v58  ;;  %v6015_v10 = vadd.f32 %v6014_v18, %v5926_v44  ;;  %v15736_v18 = vperm.slane %v15521_v2, 1 }
 0x950   : > { %v5514_v59 = vpop.f32.mrf.mxu3 }
 0x951   : > { %6053 = vmatmul.bf16.gmra.mxu1 %v15703_v6  ;;  %v5515_v4 = vadd.f32 %v5514_v59, %v5426_v30  ;;  %v6266_v36 = vmax.f32 %v6015_v10, 0.0  ;;  %v5933_v59 = vadd.f32 %v15484_v20, %v15527_v38  ;;  %v6074_v30 = vadd.f32 %v15672_v43, %v15736_v18  ;;  %v10168_v20 = vld [vmem:[%s16858_s9 + $0x38] sm:$0xff] }
 0x952   : > { %7309 = vmatpush.bf16.msra.mxu1 %v10168_v20 }
 0x953   : > { %v5587_v22 = vadd.f32 %v15247_v17, %v5515_v4 }
 0x954   : > { %v6080_v25 = vpop.f32.mrf.mxu2 }
 0x955   : > { %v5651_v12 = vmax.f32 %v5587_v22, 0.0  ;;  %v15745_v4 = vpop.f32.mrf.mxu0 }
 0x956   : > { %v6016_v45 = vpop.f32.mrf.mxu1 }
 0x957   : > { %v6017_v52 = vadd.f32 %v6016_v45, %v5928_v14  ;;  %v6076_v14 = vadd.f32 %v6075_v8, %v15736_v18 }
 0x958   : > { %v5516_v0 = vpop.f32.mrf.mxu3 }
 0x959   : > { %v6268_v60 = vmax.f32 %v6017_v52, 0.0  ;;  %v5517_v40 = vadd.f32 %v5516_v0, %v5428_v13  ;;  %6122 = vmatmul.bf16.gmra.mxu2 %v15290_v47  ;;  %v5931_v47 = vadd.f32 %v15474_v28, %v15527_v38 }
 0x95b   : > { %v5589_v23 = vadd.f32 %v15247_v17, %v5517_v40  ;;  %v15719_v50 = vpack.c.bf16 %v6268_v60, %v6266_v36  ;;  %v10156_v17 = vld [vmem:[%s16856_s7 + $0x18] sm:$0xff] }
 0x95c   : > { %v15721_v46 = vpop.f32.mrf.mxu2  ;;  %7108 = vmatpush.bf16.msra.mxu0 %v10156_v17 }
 0x95d   : > { %v5653_v21 = vmax.f32 %v5589_v23, 0.0  ;;  %6201 = vmatmul.bf16.gmra.mxu3 %v15529_v11  ;;  %6574 = vmatmul.bf16.gmra.mxu0 %v15719_v50  ;;  %v15762_v40 = vpop.f32.mrf.mxu0 }
 0x95e   : > { %v6019_v32 = vpop.f32.mrf.mxu1 }
 0x95f   : > { %v15727_v58 = vpack.c.bf16 %v5653_v21, %v5651_v12  ;;  %v6020_v44 = vadd.f32 %v6019_v32, %v5931_v47  ;;  %v6079_v32 = vadd.f32 %v15699_v15, %v15736_v18 }
 0x960   : > { %v6162_v62 = vpop.f32.mrf.mxu3 }
 0x961   : > { %6058 = vmatmul.bf16.gmra.mxu1 %v15727_v58  ;;  %v6270_v45 = vmax.f32 %v6020_v44, 0.0  ;;  %v6163_v2 = vadd.f32 %v6162_v62, %v6074_v30  ;;  %v6081_v62 = vadd.f32 %v6080_v25, %v15736_v18  ;;  %v9683_v44 = vld [vmem:[%s16854_s5 + $0x78] sm:$0xf0] }
 0x963   : > { %v6243_v8 = vmax.f32 %v6163_v2, 0.0  ;;  %v9675_v2 = vld [vmem:[%s16854_s5 + $0x68] sm:$0xf0] }
 0x964   : > { %v15738_v11 = vpop.f32.mrf.mxu2 }
 0x966   : > { %v6021_v7 = vpop.f32.mrf.mxu1 }
 0x967   : > { %v6022_v10 = vadd.f32 %v6021_v7, %v5933_v59 }
 0x968   : > { %v6164_v28 = vpop.f32.mrf.mxu3 }
 0x969   : > { %v6272_v34 = vmax.f32 %v6022_v10, 0.0  ;;  %v6165_v13 = vadd.f32 %v6164_v28, %v6076_v14  ;;  %6127 = vmatmul.bf16.gmra.mxu2 %v15335_v16  ;;  %v5936_v16 = vadd.f32 %v15499_v42, %v15527_v38  ;;  %v10135_v42 = vld [vmem:[%s16854_s5 + $0x74] sm:$0xf] }
 0x96a   : > { %v9686_v14 = vor.u32 %v10135_v42, %v9683_v44 }
 0x96b   : > { %v6245_v52 = vmax.f32 %v6165_v13, 0.0  ;;  %v15748_v0 = vpack.c.bf16 %v6272_v34, %v6270_v45  ;;  %v10133_v45 = vld [vmem:[%s16854_s5 + $0x64] sm:$0xf] }
 0x96c   : > { %v15753_v43 = vpop.f32.mrf.mxu2  ;;  %6714 = vmatpush.bf16.msrb.mxu2 %v9686_v14 }
 0x96d   : > { %6206 = vmatmul.bf16.gmra.mxu3 %v15559_v27  ;;  %6579 = vmatmul.bf16.gmra.mxu0 %v15748_v0  ;;  %v15757_v22 = vpack.c.bf16 %v6245_v52, %v6243_v8  ;;  %v5938_v27 = vadd.f32 %v15512_v37, %v15527_v38  ;;  %v10131_v8 = vld [vmem:[%s16854_s5 + $0x54] sm:$0xf] }
 0x96e   : > { %v6024_v36 = vpop.f32.mrf.mxu1 }
 0x96f   : > { %v6025_v23 = vadd.f32 %v6024_v36, %v5936_v16  ;;  %v9667_v36 = vld [vmem:[%s16854_s5 + $0x58] sm:$0xf0]  ;;  %v5941_v16 = vadd.f32 %v15531_v24, %v15527_v38  ;;  %v10129_v24 = vld [vmem:[%s16854_s5 + $0x44] sm:$0xf] }
 0x970   : > { %v6167_v60 = vpop.f32.mrf.mxu3 }
 0x971   : > { %6633 = vmatmul.bf16.vlgmr.msrb.gmra.mxu1 %v15757_v22  ;;  %v6274_v47 = vmax.f32 %v6025_v23, 0.0  ;;  %v6168_v7 = vadd.f32 %v6167_v60, %v6079_v32  ;;  %v9670_v60 = vor.u32 %v10131_v8, %v9667_v36  ;;  %v10167_v36 = vld [vmem:[%s16858_s9 + $0x30] sm:$0xff] }
 0x972   : > { %7310 = vmatpush.bf16.msra.mxu1 %v10167_v36  ;;  %v17229_v36 = vld [vmem:[#allocation56_spill] sm:$0xff] }
 0x973   : > { %v6247_v34 = vmax.f32 %v6168_v7, 0.0  ;;  %v6084_v7 = vadd.f32 %v15721_v46, %v15736_v18 }
 0x974   : > { %v15764_v12 = vpop.f32.mrf.mxu2 }
 0x976   : > { %v6026_v21 = vpop.f32.mrf.mxu1 }
 0x977   : > { %v6027_v17 = vadd.f32 %v6026_v21, %v5938_v27  ;;  %v10151_v27 = vld [vmem:[%s16854_s5 + $0xf4] sm:$0xf]  ;;  %v9747_v21 = vld [vmem:[%s16854_s5 + $0xf8] sm:$0xf0] }
 0x978   : > { %v6169_v59 = vpop.f32.mrf.mxu3 }
 0x979   : > { %v6276_v30 = vmax.f32 %v6027_v17, 0.0  ;;  %v6170_v37 = vadd.f32 %v6169_v59, %v6081_v62  ;;  %6132 = vmatmul.bf16.gmra.mxu2 %v15374_v63  ;;  %v9678_v63 = vor.u32 %v10133_v45, %v9675_v2  ;;  %v9750_v17 = vor.u32 %v10151_v27, %v9747_v21  ;;  %v10127_v45 = vld [vmem:[%s16854_s5 + $0x34] sm:$0xf] }
 0x97a   : > { %v15778_v15 = vpop.f32.mrf.mxu0  ;;  %v5943_v59 = vadd.f32 %v15550_v5, %v15527_v38  ;;  %v9651_v5 = vld [vmem:[%s16854_s5 + $0x38] sm:$0xf0] }
 0x97b   : > { %v6249_v25 = vmax.f32 %v6170_v37, 0.0  ;;  %v15780_v10 = vpack.c.bf16 %v6276_v30, %v6274_v47  ;;  %6715 = vmatpush.bf16.msrb.mxu2 %v9678_v63  ;;  %v9659_v47 = vld [vmem:[%s16854_s5 + $0x48] sm:$0xf0]  ;;  %6803 = vmatpush.bf16.msra.mxu3 %v9750_v17  ;;  %v6086_v30 = vadd.f32 %v15738_v11, %v15736_v18  ;;  %v9654_v46 = vor.u32 %v10127_v45, %v9651_v5  ;;  %v10123_v17 = vld [vmem:[%s16854_s5 + $0x14] sm:$0xf] }
 0x97c   : > { %v15782_v28 = vpop.f32.mrf.mxu2  ;;  %v9662_v42 = vor.u32 %v10129_v24, %v9659_v47  ;;  %v9635_v24 = vld [vmem:[%s16854_s5 + $0x18] sm:$0xf0]  ;;  %v6091_v45 = vadd.f32 %v15764_v12, %v15736_v18 }
 0x97d   : > { %6211 = vmatmul.bf16.gmra.mxu3 %v15587_v41  ;;  %6584 = vmatmul.bf16.gmra.mxu0 %v15780_v10  ;;  %v15792_v52 = vpack.c.bf16 %v6249_v25, %v6247_v34  ;;  %v10155_v41 = vld [vmem:[%s16856_s7 + $0x10] sm:$0xff] }
 0x97e   : > { %v6029_v13 = vpop.f32.mrf.mxu1  ;;  %7109 = vmatpush.bf16.msra.mxu0 %v10155_v41 }
 0x97f   : > { %6716 = vmatpush.bf16.msrb.mxu2 %v9670_v60  ;;  %v6030_v32 = vadd.f32 %v6029_v13, %v5941_v16 }
 0x980   : > { %v6172_v20 = vpop.f32.mrf.mxu3 }
 0x981   : > { %6638 = vmatmul.bf16.gmra.mxu1 %v15792_v52  ;;  %v6278_v14 = vmax.f32 %v6030_v32, 0.0  ;;  %v6173_v2 = vadd.f32 %v6172_v20, %v6084_v7  ;;  %v10125_v20 = vld [vmem:[%s16854_s5 + $0x24] sm:$0xf]  ;;  %v9627_v7 = vld [vmem:[%s16854_s5 + $0x8] sm:$0xf0] }
 0x982   : > { %v15806_v23 = vpop.f32.mrf.mxu0 }
 0x983   : > { %6717 = vmatpush.bf16.msrb.mxu2 %v9662_v42  ;;  %v6251_v60 = vmax.f32 %v6173_v2, 0.0 }
 0x984   : > { %v15814_v62 = vpop.f32.mrf.mxu2 }
 0x986   : > { %v6031_v44 = vpop.f32.mrf.mxu1 }
 0x987   : > { %v6032_v37 = vadd.f32 %v6031_v44, %v5943_v59  ;;  %6718 = vmatpush.bf16.msrb.mxu2 %v9654_v46  ;;  %v5946_v59 = vadd.f32 %v15569_v61, %v15527_v38  ;;  %v10121_v44 = vld [vmem:[%s16854_s5 + $0x4] sm:$0xf]  ;;  %v6089_v61 = vadd.f32 %v15753_v43, %v15736_v18 }
 0x988   : > { %v6174_v25 = vpop.f32.mrf.mxu3 }
 0x989   : > { %v6280_v34 = vmax.f32 %v6032_v37, 0.0  ;;  %v6175_v63 = vadd.f32 %v6174_v25, %v6086_v30  ;;  %6137 = vmatmul.bf16.gmra.mxu2 %v15413_v55  ;;  %v9643_v55 = vld [vmem:[%s16854_s5 + $0x28] sm:$0xf0]  ;;  %v5948_v30 = vadd.f32 %v15585_v35, %v15527_v38 }
 0x98a   : > { %v15835_v13 = vpop.f32.mrf.mxu0  ;;  %v9646_v16 = vor.u32 %v10125_v20, %v9643_v55 }
 0x98b   : > { %v6253_v11 = vmax.f32 %v6175_v63, 0.0  ;;  %v15837_v8 = vpack.c.bf16 %v6280_v34, %v6278_v14  ;;  %v9630_v14 = vor.u32 %v10121_v44, %v9627_v7 }
 0x98c   : > { %v15842_v41 = vpop.f32.mrf.mxu2  ;;  %6719 = vmatpush.bf16.msrb.mxu2 %v9646_v16 }
 0x98d   : > { %6216 = vmatmul.bf16.gmra.mxu3 %v15617_v33  ;;  %6589 = vmatmul.bf16.gmra.mxu0 %v15837_v8  ;;  %v15852_v21 = vpack.c.bf16 %v6253_v11, %v6251_v60  ;;  %v9638_v33 = vor.u32 %v10123_v17, %v9635_v24  ;;  %v9739_v17 = vld [vmem:[%s16854_s5 + $0xe8] sm:$0xf0] }
 0x98e   : > { %v6034_v27 = vpop.f32.mrf.mxu1 }
 0x98f   : > { %v6035_v37 = vadd.f32 %v6034_v27, %v5946_v59 }
 0x990   : > { %v6177_v32 = vpop.f32.mrf.mxu3  ;;  %6720 = vmatpush.bf16.msrb.mxu2 %v9638_v33  ;;  %v5951_v33 = vadd.f32 %v15606_v53, %v15527_v38 }
 0x991   : > { %6643 = vmatmul.bf16.gmra.mxu1 %v15852_v21  ;;  %v6282_v34 = vmax.f32 %v6035_v37, 0.0  ;;  %v6178_v63 = vadd.f32 %v6177_v32, %v6089_v61  ;;  %v10149_v32 = vld [vmem:[%s16854_s5 + $0xe4] sm:$0xf]  ;;  %v9731_v37 = vld [vmem:[%s16854_s5 + $0xd8] sm:$0xf0]  ;;  %v6094_v61 = vadd.f32 %v15782_v28, %v15736_v18 }
 0x992   : > { %v15861_v47 = vpop.f32.mrf.mxu0  ;;  %v9742_v24 = vor.u32 %v10149_v32, %v9739_v17  ;;  %v10166_v32 = vld [vmem:[%s16858_s9 + $0x28] sm:$0xff] }
 0x993   : > { %v6255_v43 = vmax.f32 %v6178_v63, 0.0  ;;  %v10145_v63 = vld [vmem:[%s16854_s5 + $0xc4] sm:$0xf]  ;;  %7311 = vmatpush.bf16.msra.mxu1 %v10166_v32 }
 0x994   : > { %v15865_v42 = vpop.f32.mrf.mxu2  ;;  %6721 = vmatpush.bf16.msrb.mxu2 %v9630_v14  ;;  %6804 = vmatpush.bf16.msra.mxu3 %v9742_v24  ;;  %v5953_v14 = vadd.f32 %v15623_v48, %v15527_v38  ;;  %v9723_v48 = vld [vmem:[%s16854_s5 + $0xc8] sm:$0xf0] }
 0x995   : > { %v9726_v28 = vor.u32 %v10145_v63, %v9723_v48  ;;  %v5958_v63 = vadd.f32 %v15663_v54, %v15527_v38  ;;  %v9691_v54 = vld [vmem:[%s16854_s5 + $0x88] sm:$0xf0] }
 0x996   : > { %v6036_v25 = vpop.f32.mrf.mxu1 }
 0x997   : > { %v6037_v5 = vadd.f32 %v6036_v25, %v5948_v30  ;;  %v10147_v30 = vld [vmem:[%s16854_s5 + $0xd4] sm:$0xf] }
 0x998   : > { %v6179_v2 = vpop.f32.mrf.mxu3  ;;  %v9734_v25 = vor.u32 %v10147_v30, %v9731_v37 }
 0x999   : > { %v6284_v46 = vmax.f32 %v6037_v5, 0.0  ;;  %v6180_v11 = vadd.f32 %v6179_v2, %v6091_v45  ;;  %6142 = vmatmul.bf16.gmra.mxu2 %v17229_v36  ;;  %v6096_v45 = vadd.f32 %v15814_v62, %v15736_v18 }
 0x99a   : > { %v15880_v20 = vpop.f32.mrf.mxu0  ;;  %6805 = vmatpush.bf16.msra.mxu3 %v9734_v25  ;;  %v9707_v25 = vld [vmem:[%s16854_s5 + $0xa8] sm:$0xf0] }
 0x99b   : > { %v6257_v35 = vmax.f32 %v6180_v11, 0.0  ;;  %v15882_v55 = vpack.c.bf16 %v6284_v46, %v6282_v34 }
 0x99c   : > { %v15884_v60 = vpop.f32.mrf.mxu2 }
 0x99d   : > { %6221 = vmatmul.bf16.gmra.mxu3 %v15646_v19  ;;  %6594 = vmatmul.bf16.gmra.mxu0 %v15882_v55  ;;  %v15888_v16 = vpack.c.bf16 %v6257_v35, %v6255_v43  ;;  %v10154_v19 = vld [vmem:[%s16856_s7 + $0x8] sm:$0xff] }
 0x99e   : > { %v6039_v12 = vpop.f32.mrf.mxu1  ;;  %7110 = vmatpush.bf16.msra.mxu0 %v10154_v19  ;;  %v17230_v35 = vld [vmem:[#allocation19_spill] sm:$0xff]  ;;  %6806 = vmatpush.bf16.msra.mxu3 %v9726_v28  ;;  %v9715_v19 = vld [vmem:[%s16854_s5 + $0xb8] sm:$0xf0] }
 0x99f   : > { %v6040_v44 = vadd.f32 %v6039_v12, %v5951_v33 }
 0x9a0   : > { %v6182_v27 = vpop.f32.mrf.mxu3 }
 0x9a1   : > { %6648 = vmatmul.bf16.gmra.mxu1 %v15888_v16  ;;  %v6286_v2 = vmax.f32 %v6040_v44, 0.0  ;;  %v6183_v46 = vadd.f32 %v6182_v27, %v6094_v61  ;;  %v10143_v27 = vld [vmem:[%s16854_s5 + $0xb4] sm:$0xf] }
 0x9a2   : > { %v15902_v59 = vpop.f32.mrf.mxu0  ;;  %v9718_v33 = vor.u32 %v10143_v27, %v9715_v19 }
 0x9a3   : > { %v6259_v24 = vmax.f32 %v6183_v46, 0.0 }
 0x9a4   : > { %v15904_v7 = vpop.f32.mrf.mxu2  ;;  %6807 = vmatpush.bf16.msra.mxu3 %v9718_v33 }
 0x9a6   : > { %v6041_v53 = vpop.f32.mrf.mxu1 }
 0x9a7   : > { %v6042_v5 = vadd.f32 %v6041_v53, %v5953_v14  ;;  %v10141_v14 = vld [vmem:[%s16854_s5 + $0xa4] sm:$0xf]  ;;  %v5956_v53 = vadd.f32 %v15640_v39, %v15527_v38  ;;  %v6099_v39 = vadd.f32 %v15842_v41, %v15736_v18 }
 0x9a8   : > { %v6184_v34 = vpop.f32.mrf.mxu3 }
 0x9a9   : > { %v6288_v11 = vmax.f32 %v6042_v5, 0.0  ;;  %v6185_v36 = vadd.f32 %v6184_v34, %v6096_v45  ;;  %6147 = vmatmul.bf16.gmra.mxu2 %v17230_v35  ;;  %v9699_v34 = vld [vmem:[%s16854_s5 + $0x98] sm:$0xf0] }
 0x9aa   : > { %v15925_v43 = vpop.f32.mrf.mxu0 }
 0x9ab   : > { %v6261_v62 = vmax.f32 %v6185_v36, 0.0  ;;  %v15927_v12 = vpack.c.bf16 %v6288_v11, %v6286_v2  ;;  %v10139_v2 = vld [vmem:[%s16854_s5 + $0x94] sm:$0xf]  ;;  %v6101_v11 = vadd.f32 %v15865_v42, %v15736_v18 }
 0x9ac   : > { %v15932_v17 = vpop.f32.mrf.mxu2  ;;  %v9702_v48 = vor.u32 %v10139_v2, %v9699_v34  ;;  %v5961_v34 = vadd.f32 %v15678_v26, %v15527_v38 }
 0x9ad   : > { %6226 = vmatmul.bf16.gmra.mxu3 %v15676_v29  ;;  %6599 = vmatmul.bf16.gmra.mxu0 %v15927_v12  ;;  %v15942_v30 = vpack.c.bf16 %v6261_v62, %v6259_v24  ;;  %v9710_v29 = vor.u32 %v10141_v14, %v9707_v25  ;;  %v10137_v62 = vld [vmem:[%s16854_s5 + $0x84] sm:$0xf]  ;;  %v17231_v24 = vld [vmem:[#allocation59_spill] sm:$0xff] }
 0x9ae   : > { %v6044_v44 = vpop.f32.mrf.mxu1  ;;  %v9694_v41 = vor.u32 %v10137_v62, %v9691_v54 }
 0x9af   : > { %6808 = vmatpush.bf16.msra.mxu3 %v9710_v29  ;;  %v6045_v45 = vadd.f32 %v6044_v44, %v5956_v53 }
 0x9b0   : > { %v6187_v37 = vpop.f32.mrf.mxu3 }
 0x9b1   : > { %6653 = vmatmul.bf16.gmra.mxu1 %v15942_v30  ;;  %v6290_v35 = vmax.f32 %v6045_v45, 0.0  ;;  %v6188_v32 = vadd.f32 %v6187_v37, %v6099_v39  ;;  %v10153_v45 = vld [vmem:[%s16856_s7] sm:$0xff]  ;;  %v6104_v39 = vadd.f32 %v15884_v60, %v15736_v18 }
 0x9b2   : > { %v15953_v61 = vpop.f32.mrf.mxu0  ;;  %7111 = vmatpush.bf16.msra.mxu0 %v10153_v45  ;;  %v10165_v60 = vld [vmem:[%s16858_s9 + $0x20] sm:$0xff] }
 0x9b3   : > { %6809 = vmatpush.bf16.msra.mxu3 %v9702_v48  ;;  %v6263_v25 = vmax.f32 %v6188_v32, 0.0  ;;  %7312 = vmatpush.bf16.msra.mxu1 %v10165_v60 }
 0x9b4   : > { %v15955_v5 = vpop.f32.mrf.mxu2 }
 0x9b6   : > { %v6046_v46 = vpop.f32.mrf.mxu1 }
 0x9b7   : > { %v6047_v36 = vadd.f32 %v6046_v46, %v5958_v63  ;;  %6810 = vmatpush.bf16.msra.mxu3 %v9694_v41 }
 0x9b8   : > { %v6189_v28 = vpop.f32.mrf.mxu3 }
 0x9b9   : > { %v6292_v27 = vmax.f32 %v6047_v36, 0.0  ;;  %v6190_v19 = vadd.f32 %v6189_v28, %v6101_v11  ;;  %6722 = vmatmul.bf16.vlgmr.msrb.gmra.mxu2 %v17231_v24  ;;  %v6106_v11 = vadd.f32 %v15904_v7, %v15736_v18 }
 0x9ba   : > { %v15976_v33 = vpop.f32.mrf.mxu0 }
 0x9bb   : > { %v6265_v42 = vmax.f32 %v6190_v19, 0.0  ;;  %v15978_v44 = vpack.c.bf16 %v6292_v27, %v6290_v35 }
 0x9bc   : > { %v15980_v14 = vpop.f32.mrf.mxu2 }
 0x9bd   : > { %6231 = vmatmul.bf16.gmra.mxu3 %v15703_v6  ;;  %6604 = vmatmul.bf16.gmra.mxu0 %v15978_v44  ;;  %v15984_v37 = vpack.c.bf16 %v6265_v42, %v6263_v25  ;;  %v5963_v6 = vadd.f32 %v15694_v3, %v15527_v38  ;;  %v5966_v25 = vadd.f32 %v15710_v56, %v15527_v38 }
 0x9be   : > { %v6049_v29 = vpop.f32.mrf.mxu1 }
 0x9bf   : > { %v6050_v48 = vadd.f32 %v6049_v29, %v5961_v34  ;;  %v6109_v34 = vadd.f32 %v15932_v17, %v15736_v18 }
 0x9c0   : > { %v6192_v53 = vpop.f32.mrf.mxu3 }
 0x9c1   : > { %6658 = vmatmul.bf16.gmra.mxu1 %v15984_v37  ;;  %v6294_v28 = vmax.f32 %v6050_v48, 0.0  ;;  %v6193_v62 = vadd.f32 %v6192_v53, %v6104_v39  ;;  %v5968_v53 = vadd.f32 %v15725_v9, %v15527_v38 }
 0x9c2   : > { %v15990_v2 = vpop.f32.mrf.mxu0 }
 0x9c3   : > { %v6267_v7 = vmax.f32 %v6193_v62, 0.0 }
 0x9c4   : > { %v6115_v63 = vpop.f32.mrf.mxu2 }
 0x9c6   : > { %v6051_v46 = vpop.f32.mrf.mxu1 }
 0x9c7   : > { %v6052_v36 = vadd.f32 %v6051_v46, %v5963_v6  ;;  %v6111_v6 = vadd.f32 %v15955_v5, %v15736_v18 }
 0x9c8   : > { %v6194_v35 = vpop.f32.mrf.mxu3 }
 0x9c9   : > { %v6296_v54 = vmax.f32 %v6052_v36, 0.0  ;;  %v6195_v32 = vadd.f32 %v6194_v35, %v6106_v11  ;;  %6727 = vmatmul.bf16.gmra.mxu2 %v15579_v51 }
 0x9ca   : > { %v16001_v26 = vpop.f32.mrf.mxu0 }
 0x9cb   : > { %v6269_v27 = vmax.f32 %v6195_v32, 0.0  ;;  %v16003_v3 = vpack.c.bf16 %v6296_v54, %v6294_v28 }
 0x9cc   : > { %v16008_v19 = vpop.f32.mrf.mxu2 }
 0x9cd   : > { %6236 = vmatmul.bf16.gmra.mxu3 %v15727_v58  ;;  %6609 = vmatmul.bf16.gmra.mxu0 %v16003_v3  ;;  %v16012_v41 = vpack.c.bf16 %v6269_v27, %v6267_v7  ;;  %v5973_v7 = vadd.f32 %v15762_v40, %v15527_v38 }
 0x9ce   : > { %v6054_v24 = vpop.f32.mrf.mxu1 }
 0x9cf   : > { %v6055_v58 = vadd.f32 %v6054_v24, %v5966_v25  ;;  %v6116_v25 = vadd.f32 %v6115_v63, %v15736_v18  ;;  %v10164_v63 = vld [vmem:[%s16858_s9 + $0x18] sm:$0xff] }
 0x9d0   : > { %v6197_v51 = vpop.f32.mrf.mxu3  ;;  %7313 = vmatpush.bf16.msra.mxu1 %v10164_v63 }
 0x9d1   : > { %6663 = vmatmul.bf16.gmra.mxu1 %v16012_v41  ;;  %v6298_v39 = vmax.f32 %v6055_v58, 0.0  ;;  %v6198_v11 = vadd.f32 %v6197_v51, %v6109_v34 }
 0x9d2   : > { %v16015_v42 = vpop.f32.mrf.mxu0 }
 0x9d3   : > { %v6271_v54 = vmax.f32 %v6198_v11, 0.0 }
 0x9d4   : > { %v16019_v29 = vpop.f32.mrf.mxu2 }
 0x9d6   : > { %v6056_v45 = vpop.f32.mrf.mxu1 }
 0x9d7   : > { %v6057_v48 = vadd.f32 %v6056_v45, %v5968_v53 }
 0x9d8   : > { %v6199_v46 = vpop.f32.mrf.mxu3 }
 0x9d9   : > { %v6300_v36 = vmax.f32 %v6057_v48, 0.0  ;;  %v6200_v35 = vadd.f32 %v6199_v46, %v6111_v6  ;;  %6732 = vmatmul.bf16.gmra.mxu2 %v15611_v1  ;;  %v5971_v1 = vadd.f32 %v15745_v4, %v15527_v38  ;;  %v16054_v38 = vld [vmem:[%s16855_s6] sm:$0x3] }
 0x9da   : > { %v16028_v56 = vpop.f32.mrf.mxu0 }
 0x9db   : > { %v6273_v28 = vmax.f32 %v6200_v35, 0.0  ;;  %v16030_v9 = vpack.c.bf16 %v6300_v36, %v6298_v39  ;;  %v16066_v39 = vperm.slane %v16054_v38, 0  ;;  %v10170_v35 = vld [vmem:[%s16074_s16] sm:$0xff]  }
 0x9dc   : > { %v16032_v62 = vpop.f32.mrf.mxu2 }
 0x9dd   : > { %6614 = vmatmul.bf16.gmra.mxu0 %v16030_v9  ;;  %6811 = vmatmul.bf16.vlgmr.msra.gmra.mxu3 %v15757_v22  ;;  %v16036_v5 = vpack.c.bf16 %v6273_v28, %v6271_v54  ;;  %v6114_v22 = vadd.f32 %v15980_v14, %v15736_v18  ;;  %v6546_v54 = vadd.f32 %v15778_v15, %v16066_v39 }
 0x9de   : > { %v6059_v17 = vpop.f32.mrf.mxu1 }
 0x9df   : > { %v6060_v24 = vadd.f32 %v6059_v17, %v5971_v1 }
 0x9e0   : > { %v6202_v32 = vpop.f32.mrf.mxu3 }
 0x9e1   : > { %6668 = vmatmul.bf16.gmra.mxu1 %v16036_v5  ;;  %v6302_v45 = vmax.f32 %v6060_v24, 0.0  ;;  %v6203_v34 = vadd.f32 %v6202_v32, %v6114_v22  ;;  %v10171_v32 = vunpack.c.l.bf16 %v10170_v35  ;;  %v10172_v24 = vunpack.c.h.bf16 %v10170_v35 }
 0x9e2   : > { %v16039_v27 = vpop.f32.mrf.mxu0  ;;  %v6119_v22 = vadd.f32 %v16008_v19, %v15736_v18 }
 0x9e4   : > { %v16043_v60 = vpop.f32.mrf.mxu2 }
 0x9e6   : > { %v6061_v51 = vpop.f32.mrf.mxu1 }
 0x9e7   : > { %v6062_v53 = vadd.f32 %v6061_v51, %v5973_v7  ;;  %v6548_v7 = vadd.f32 %v15806_v23, %v16066_v39 }
 0x9e8   : > { %v6204_v58 = vpop.f32.mrf.mxu3 }
 0x9e9   : > { %v6304_v6 = vmax.f32 %v6062_v53, 0.0  ;;  %v6205_v48 = vadd.f32 %v6204_v58, %v6116_v25  ;;  %6737 = vmatmul.bf16.gmra.mxu2 %v15638_v31  ;;  %v6275_v31 = vmax.f32 %v6203_v34, 0.0  ;;  %v6121_v25 = vadd.f32 %v16019_v29, %v15736_v18 }
 0x9ea   : > { %v16056_v4 = vpop.f32.mrf.mxu0 }
 0x9eb   : > { %v6277_v40 = vmax.f32 %v6205_v48, 0.0  ;;  %v16058_v14 = vpack.c.bf16 %v6304_v6, %v6302_v45 }
 0x9ec   : > { %v16063_v46 = vpop.f32.mrf.mxu2 }
 0x9ed   : > { %6619 = vmatmul.bf16.gmra.mxu0 %v16058_v14  ;;  %6816 = vmatmul.bf16.gmra.mxu3 %v15792_v52  ;;  %v16076_v36 = vpack.c.bf16 %v6277_v40, %v6275_v31 }
 0x9ee   : > { %v6634_v11 = vpop.f32.mrf.mxu1 }
 0x9ef   : > { %v6635_v52 = vadd.f32 %v6634_v11, %v6546_v54 }
 0x9f0   : > { %v6207_v28 = vpop.f32.mrf.mxu3 }
 0x9f1   : > { %6673 = vmatmul.bf16.gmra.mxu1 %v16076_v36  ;;  %v6956_v15 = vadd.f32 %v10171_v32, %v6635_v52  ;;  %v6208_v45 = vadd.f32 %v6207_v28, %v6119_v22  ;;  %v10313_v28 = vld [vmem:[%s16074_s16 + $0x8] sm:$0xff]   ;;  %v6124_v22 = vadd.f32 %v16032_v62, %v15736_v18  ;;  %v10163_v62 = vld [vmem:[%s16858_s9 + $0x10] sm:$0xff] }
 0x9f2   : > { %v16082_v17 = vpop.f32.mrf.mxu0  ;;  %7314 = vmatpush.bf16.msra.mxu1 %v10163_v62 }
 0x9f3   : > { %v6988_v23 = vmax.f32 %v6956_v15, 0.0  ;;  %v6279_v31 = vmax.f32 %v6208_v45, 0.0 }
 0x9f4   : > { %v16084_v1 = vpop.f32.mrf.mxu2 }
 0x9f6   : > { %v6636_v51 = vpop.f32.mrf.mxu1 }
 0x9f7   : > { %v6637_v53 = vadd.f32 %v6636_v51, %v6548_v7  ;;  %v10175_v7 = vunpack.c.l.bf16 %v10313_v28  ;;  %v10176_v51 = vunpack.c.h.bf16 %v10313_v28  ;;  %v10314_v28 = vld [vmem:[%s16074_s16 + $0x10] sm:$0xff]  }
 0x9f8   : > { %v6209_v58 = vpop.f32.mrf.mxu3 }
 0x9f9   : > { %v6957_v34 = vadd.f32 %v10172_v24, %v6637_v53  ;;  %v6210_v6 = vadd.f32 %v6209_v58, %v6121_v25  ;;  %6742 = vmatmul.bf16.gmra.mxu2 %v15670_v49  ;;  %v6551_v49 = vadd.f32 %v15835_v13, %v16066_v39  ;;  %v6553_v24 = vadd.f32 %v15861_v47, %v16066_v39 }
 0x9fa   : > { %v16093_v48 = vpop.f32.mrf.mxu0  ;;  %v6126_v25 = vadd.f32 %v16043_v60, %v15736_v18 }
 0x9fb   : > { %v6989_v40 = vmax.f32 %v6957_v34, 0.0  ;;  %v6281_v63 = vmax.f32 %v6210_v6, 0.0 }
 0x9fc   : > { %v16095_v19 = vpop.f32.mrf.mxu2 }
 0x9fd   : > { %v7020_v11 = vpack.c.bf16 %v6989_v40, %v6988_v23  ;;  %6821 = vmatmul.bf16.gmra.mxu3 %v15852_v21  ;;  %v16098_v35 = vpack.c.bf16 %v6281_v63, %v6279_v31 }
 0x9fe   : > { %v6639_v29 = vpop.f32.mrf.mxu1 }
 0x9ff   : > { %7112 = vmatmul.bf16.vlgmr.msra.gmra.mxu0 %v7020_v11  ;;  %v6640_v32 = vadd.f32 %v6639_v29, %v6551_v49 }
 0xa00   : > { %v6212_v54 = vpop.f32.mrf.mxu3 }
 0xa01   : > { %6678 = vmatmul.bf16.gmra.mxu1 %v16098_v35  ;;  %v6958_v15 = vadd.f32 %v10175_v7, %v6640_v32  ;;  %v6213_v45 = vadd.f32 %v6212_v54, %v6124_v22  ;;  %v6556_v54 = vadd.f32 %v15880_v20, %v16066_v39  ;;  %v6129_v22 = vadd.f32 %v16063_v46, %v15736_v18 }
 0xa02   : > { %v16104_v52 = vpop.f32.mrf.mxu0 }
 0xa03   : > { %v6990_v47 = vmax.f32 %v6958_v15, 0.0  ;;  %v6283_v60 = vmax.f32 %v6213_v45, 0.0 }
 0xa04   : > { %v6135_v53 = vpop.f32.mrf.mxu2 }
 0xa06   : > { %v6641_v21 = vpop.f32.mrf.mxu1 }
 0xa07   : > { %v6642_v13 = vadd.f32 %v6641_v21, %v6553_v24  ;;  %v10179_v24 = vunpack.c.l.bf16 %v10314_v28 }
 0xa08   : > { %v6214_v58 = vpop.f32.mrf.mxu3 }
 0xa09   : > { %v6959_v34 = vadd.f32 %v10176_v51, %v6642_v13  ;;  %v6215_v6 = vadd.f32 %v6214_v58, %v6126_v25  ;;  %6747 = vmatmul.bf16.gmra.mxu2 %v15697_v57  ;;  %v10180_v51 = vunpack.c.h.bf16 %v10314_v28  ;;  %v6131_v25 = vadd.f32 %v16084_v1, %v15736_v18 }
 0xa0a   : > { %v16113_v23 = vpop.f32.mrf.mxu0  ;;  %v6561_v28 = vadd.f32 %v15925_v43, %v16066_v39 }
 0xa0b   : > { %v6991_v40 = vmax.f32 %v6959_v34, 0.0  ;;  %v6285_v63 = vmax.f32 %v6215_v6, 0.0 }
 0xa0c   : > { %v16124_v49 = vpop.f32.mrf.mxu2 }
 0xa0d   : > { %6826 = vmatmul.bf16.gmra.mxu3 %v15888_v16  ;;  %v7021_v31 = vpack.c.bf16 %v6991_v40, %v6990_v47  ;;  %v16119_v29 = vpack.c.bf16 %v6285_v63, %v6283_v60  ;;  %v6558_v16 = vadd.f32 %v15902_v59, %v16066_v39 }
 0xa0e   : > { %v6644_v11 = vpop.f32.mrf.mxu1 }
 0xa0f   : > { %7117 = vmatmul.bf16.gmra.mxu0 %v7021_v31  ;;  %v6645_v7 = vadd.f32 %v6644_v11, %v6556_v54  ;;  %v10315_v31 = vld [vmem:[%s16074_s16 + $0x18] sm:$0xff]  }
 0xa10   : > { %v6217_v57 = vpop.f32.mrf.mxu3  ;;  %v10183_v54 = vunpack.c.l.bf16 %v10315_v31 }
 0xa11   : > { %6683 = vmatmul.bf16.gmra.mxu1 %v16119_v29  ;;  %v6960_v20 = vadd.f32 %v10179_v24, %v6645_v7  ;;  %v6218_v58 = vadd.f32 %v6217_v57, %v6129_v22  ;;  %v6563_v7 = vadd.f32 %v15953_v61, %v16066_v39  ;;  %v10184_v24 = vunpack.c.h.bf16 %v10315_v31 }
 0xa12   : > { %v16127_v32 = vpop.f32.mrf.mxu0 }
 0xa13   : > { %v6992_v59 = vmax.f32 %v6960_v20, 0.0  ;;  %v6287_v62 = vmax.f32 %v6218_v58, 0.0 }
 0xa14   : > { %v6140_v47 = vpop.f32.mrf.mxu2 }
 0xa16   : > { %v6646_v21 = vpop.f32.mrf.mxu1 }
 0xa17   : > { %v6647_v15 = vadd.f32 %v6646_v21, %v6558_v16  ;;  %v6136_v21 = vadd.f32 %v6135_v53, %v15736_v18 }
 0xa18   : > { %v6219_v13 = vpop.f32.mrf.mxu3 }
 0xa19   : > { %v6961_v45 = vadd.f32 %v10180_v51, %v6647_v15  ;;  %v6220_v34 = vadd.f32 %v6219_v13, %v6131_v25  ;;  %6752 = vmatmul.bf16.gmra.mxu2 %v15719_v50  ;;  %v6134_v51 = vadd.f32 %v16095_v19, %v15736_v18  ;;  %v10162_v19 = vld [vmem:[%s16858_s9 + $0x8] sm:$0xff] }
 0xa1a   : > { %v16136_v6 = vpop.f32.mrf.mxu0  ;;  %7315 = vmatpush.bf16.msra.mxu1 %v10162_v19 }
 0xa1b   : > { %v6993_v40 = vmax.f32 %v6961_v45, 0.0  ;;  %v6289_v63 = vmax.f32 %v6220_v34, 0.0 }
 0xa1d   : > { %6831 = vmatmul.bf16.gmra.mxu3 %v15942_v30  ;;  %v7022_v46 = vpack.c.bf16 %v6993_v40, %v6992_v59  ;;  %v16139_v60 = vpack.c.bf16 %v6289_v63, %v6287_v62  ;;  %v16149_v30 = vpop.f32.mrf.mxu2 }
 0xa1e   : > { %v6649_v1 = vpop.f32.mrf.mxu1 }
 0xa1f   : > { %7122 = vmatmul.bf16.gmra.mxu0 %v7022_v46  ;;  %v6650_v57 = vadd.f32 %v6649_v1, %v6561_v28  ;;  %v6566_v1 = vadd.f32 %v15976_v33, %v16066_v39 }
 0xa20   : > { %v6222_v11 = vpop.f32.mrf.mxu3 }
 0xa21   : > { %6688 = vmatmul.bf16.gmra.mxu1 %v16139_v60  ;;  %v6962_v22 = vadd.f32 %v10183_v54, %v6650_v57  ;;  %v6223_v20 = vadd.f32 %v6222_v11, %v6134_v51 }
 0xa22   : > { %v16145_v50 = vpop.f32.mrf.mxu0 }
 0xa23   : > { %v6994_v61 = vmax.f32 %v6962_v22, 0.0  ;;  %v6291_v59 = vmax.f32 %v6223_v20, 0.0 }
 0xa25   : > { %v6145_v63 = vpop.f32.mrf.mxu2 }
 0xa26   : > { %v6651_v16 = vpop.f32.mrf.mxu1 }
 0xa27   : > { %v6652_v43 = vadd.f32 %v6651_v16, %v6563_v7  ;;  %v6139_v7 = vadd.f32 %v16124_v49, %v15736_v18 }
 0xa28   : > { %v6224_v25 = vpop.f32.mrf.mxu3 }
 0xa29   : > { %v6963_v15 = vadd.f32 %v10184_v24, %v6652_v43  ;;  %v6225_v13 = vadd.f32 %v6224_v25, %v6136_v21  ;;  %6757 = vmatmul.bf16.gmra.mxu2 %v15748_v0  ;;  %v10316_v0 = vld [vmem:[%s16074_s16 + $0x20] sm:$0xff]   ;;  %v6141_v24 = vadd.f32 %v6140_v47, %v15736_v18 }
 0xa2a   : > { %v16155_v58 = vpop.f32.mrf.mxu0  ;;  %v10187_v28 = vunpack.c.l.bf16 %v10316_v0  ;;  %v10188_v57 = vunpack.c.h.bf16 %v10316_v0 }
 0xa2b   : > { %v6995_v45 = vmax.f32 %v6963_v15, 0.0  ;;  %v6293_v34 = vmax.f32 %v6225_v13, 0.0 }
 0xa2d   : > { %6836 = vmatmul.bf16.gmra.mxu3 %v15984_v37  ;;  %v7023_v53 = vpack.c.bf16 %v6995_v45, %v6994_v61  ;;  %v16161_v62 = vpack.c.bf16 %v6293_v34, %v6291_v59  ;;  %v6568_v37 = vadd.f32 %v15990_v2, %v16066_v39  ;;  %v6148_v33 = vpop.f32.mrf.mxu2  ;;  %v10317_v34 = vld [vmem:[%s16074_s16 + $0x28] sm:$0xff]   ;;  %v6571_v59 = vadd.f32 %v16001_v26, %v16066_v39 }
 0xa2e   : > { %v6654_v40 = vpop.f32.mrf.mxu1  ;;  %v10191_v0 = vunpack.c.l.bf16 %v10317_v34 }
 0xa2f   : > { %7127 = vmatmul.bf16.gmra.mxu0 %v7023_v53  ;;  %v6655_v11 = vadd.f32 %v6654_v40, %v6566_v1 }
 0xa30   : > { %v6227_v46 = vpop.f32.mrf.mxu3 }
 0xa31   : > { %6693 = vmatmul.bf16.gmra.mxu1 %v16161_v62  ;;  %v6964_v16 = vadd.f32 %v10187_v28, %v6655_v11  ;;  %v6228_v22 = vadd.f32 %v6227_v46, %v6139_v7  ;;  %v10192_v46 = vunpack.c.h.bf16 %v10317_v34  ;;  %v6144_v11 = vadd.f32 %v16149_v30, %v15736_v18  ;;  %v10161_v30 = vld [vmem:[%s16858_s9] sm:$0xff] }
 0xa32   : > { %v16167_v31 = vpop.f32.mrf.mxu0  ;;  %v6146_v28 = vadd.f32 %v6145_v63, %v15736_v18  ;;  %7316 = vmatpush.bf16.msra.mxu1 %v10161_v30 }
 0xa33   : > { %v6996_v2 = vmax.f32 %v6964_v16, 0.0  ;;  %v6295_v61 = vmax.f32 %v6228_v22, 0.0 }
 0xa35   : > { %v6150_v53 = vpop.f32.mrf.mxu2 }
 0xa36   : > { %v6656_v54 = vpop.f32.mrf.mxu1 }
 0xa37   : > { %v6657_v51 = vadd.f32 %v6656_v54, %v6568_v37 }
 0xa38   : > { %v6229_v21 = vpop.f32.mrf.mxu3 }
 0xa39   : > { %v6965_v43 = vadd.f32 %v10188_v57, %v6657_v51  ;;  %v6230_v25 = vadd.f32 %v6229_v21, %v6141_v24  ;;  %6762 = vmatmul.bf16.gmra.mxu2 %v15780_v10 }
 0xa3a   : > { %v16175_v20 = vpop.f32.mrf.mxu0 }
 0xa3b   : > { %v6997_v15 = vmax.f32 %v6965_v43, 0.0  ;;  %v6297_v13 = vmax.f32 %v6230_v25, 0.0 }
 0xa3d   : > { %6841 = vmatmul.bf16.gmra.mxu3 %v16012_v41  ;;  %v7024_v49 = vpack.c.bf16 %v6997_v15, %v6996_v2  ;;  %v16178_v45 = vpack.c.bf16 %v6297_v13, %v6295_v61  ;;  %v6573_v41 = vadd.f32 %v16015_v42, %v16066_v39  ;;  %v6723_v22 = vpop.f32.mrf.mxu2  ;;  %v6576_v13 = vadd.f32 %v16028_v56, %v16066_v39 }
 0xa3e   : > { %v6659_v47 = vpop.f32.mrf.mxu1 }
 0xa3f   : > { %7132 = vmatmul.bf16.gmra.mxu0 %v7024_v49  ;;  %v6660_v40 = vadd.f32 %v6659_v47, %v6571_v59  ;;  %v6149_v59 = vadd.f32 %v6148_v33, %v15736_v18 }
 0xa40   : > { %v6232_v19 = vpop.f32.mrf.mxu3 }
 0xa41   : > { %6698 = vmatmul.bf16.gmra.mxu1 %v16178_v45  ;;  %v6966_v37 = vadd.f32 %v10191_v0, %v6660_v40  ;;  %v6233_v54 = vadd.f32 %v6232_v19, %v6144_v11  ;;  %v6151_v40 = vadd.f32 %v6150_v53, %v15736_v18 }
 0xa42   : > { %v16184_v10 = vpop.f32.mrf.mxu0 }
 0xa43   : > { %v6998_v51 = vmax.f32 %v6966_v37, 0.0  ;;  %v6299_v63 = vmax.f32 %v6233_v54, 0.0 }
 0xa45   : > { %v6725_v0 = vpop.f32.mrf.mxu2 }
 0xa46   : > { %v6661_v1 = vpop.f32.mrf.mxu1 }
 0xa47   : > { %v6662_v57 = vadd.f32 %v6661_v1, %v6573_v41 }
 0xa48   : > { %v6234_v26 = vpop.f32.mrf.mxu3 }
 0xa49   : > { %v6967_v7 = vadd.f32 %v10192_v46, %v6662_v57  ;;  %v6235_v24 = vadd.f32 %v6234_v26, %v6146_v28  ;;  %6767 = vmatmul.bf16.gmra.mxu2 %v15837_v8  ;;  %v10318_v8 = vld [vmem:[%s16074_s16 + $0x30] sm:$0xff]  }
 0xa4a   : > { %v16192_v16 = vpop.f32.mrf.mxu0  ;;  %v10195_v47 = vunpack.c.l.bf16 %v10318_v8  ;;  %v10196_v34 = vunpack.c.h.bf16 %v10318_v8 }
 0xa4b   : > { %v6999_v42 = vmax.f32 %v6967_v7, 0.0  ;;  %v6301_v21 = vmax.f32 %v6235_v24, 0.0 }
 0xa4d   : > { %6846 = vmatmul.bf16.gmra.mxu3 %v16036_v5  ;;  %v7025_v43 = vpack.c.bf16 %v6999_v42, %v6998_v51  ;;  %v16198_v2 = vpack.c.bf16 %v6301_v21, %v6299_v63  ;;  %v6578_v5 = vadd.f32 %v16039_v27, %v16066_v39  ;;  %v16214_v27 = vperm.slane %v16054_v38, 1  ;;  %v10319_v51 = vld [vmem:[%s16074_s16 + $0x38] sm:$0xff]   ;;  %v6728_v38 = vpop.f32.mrf.mxu2 }
 0xa4e   : > { %v6664_v25 = vpop.f32.mrf.mxu1  ;;  %v6581_v42 = vadd.f32 %v16056_v4, %v16066_v39  ;;  %v10199_v63 = vunpack.c.l.bf16 %v10319_v51 }
 0xa4f   : > { %7137 = vmatmul.bf16.gmra.mxu0 %v7025_v43  ;;  %v6665_v49 = vadd.f32 %v6664_v25, %v6576_v13  ;;  %v6724_v7 = vadd.f32 %v6723_v22, %v16214_v27  ;;  %v6583_v22 = vadd.f32 %v16082_v17, %v16066_v39  ;;  %v10200_v43 = vunpack.c.h.bf16 %v10319_v51 }
 0xa50   : > { %v6237_v15 = vpop.f32.mrf.mxu3  ;;  %v6726_v8 = vadd.f32 %v6725_v0, %v16214_v27  ;;  %v6729_v0 = vadd.f32 %v6728_v38, %v16214_v27 }
 0xa51   : > { %6703 = vmatmul.bf16.gmra.mxu1 %v16198_v2  ;;  %v6968_v41 = vadd.f32 %v10195_v47, %v6665_v49  ;;  %v6238_v56 = vadd.f32 %v6237_v15, %v6149_v59 }
 0xa52   : > { %v16204_v61 = vpop.f32.mrf.mxu0 }
 0xa53   : > { %v7000_v57 = vmax.f32 %v6968_v41, 0.0  ;;  %v6303_v54 = vmax.f32 %v6238_v56, 0.0  ;;  %v10320_v41 = vld [vmem:[%s16074_s16 + $0x40] sm:$0xff]  }
 0xa56   : > { %v6666_v19 = vpop.f32.mrf.mxu1 }
 0xa57   : > { %v6667_v46 = vadd.f32 %v6666_v19, %v6578_v5 }
 0xa58   : > { %v6239_v1 = vpop.f32.mrf.mxu3 }
 0xa59   : > { %v6969_v11 = vadd.f32 %v10196_v34, %v6667_v46  ;;  %v6240_v28 = vadd.f32 %v6239_v1, %v6151_v40  ;;  %6772 = vmatmul.bf16.gmra.mxu2 %v15882_v55  ;;  %v6730_v34 = vpop.f32.mrf.mxu2  ;;  %v6586_v1 = vadd.f32 %v16093_v48, %v16066_v39 }
 0xa5a   : > { %v16211_v37 = vpop.f32.mrf.mxu0 }
 0xa5b   : > { %v7001_v26 = vmax.f32 %v6969_v11, 0.0  ;;  %v6305_v33 = vmax.f32 %v6240_v28, 0.0  ;;  %v10203_v11 = vunpack.c.l.bf16 %v10320_v41 }
 0xa5d   : > { %6851 = vmatmul.bf16.gmra.mxu3 %v16076_v36  ;;  %v7026_v18 = vpack.c.bf16 %v7001_v26, %v7000_v57  ;;  %v16218_v24 = vpack.c.bf16 %v6305_v33, %v6303_v54  ;;  %v6588_v57 = vadd.f32 %v16104_v52, %v16066_v39  ;;  %v10204_v26 = vunpack.c.h.bf16 %v10320_v41 }
 0xa5e   : > { %v6669_v53 = vpop.f32.mrf.mxu1  ;;  %v6731_v54 = vadd.f32 %v6730_v34, %v16214_v27  ;;  %v6593_v34 = vadd.f32 %v16127_v32, %v16066_v39 }
 0xa5f   : > { %7142 = vmatmul.bf16.gmra.mxu0 %v7026_v18  ;;  %v6670_v36 = vadd.f32 %v6669_v53, %v6581_v42 }
 0xa60   : > { %v6812_v55 = vpop.f32.mrf.mxu3 }
 0xa61   : > { %v16223_v21 = vadd.f32 %v6812_v55, %v6724_v7  ;;  %6708 = vmatmul.bf16.gmra.mxu1 %v16218_v24  ;;  %v6970_v15 = vadd.f32 %v10199_v63, %v6670_v36 }
 0xa62   : > { %v16226_v30 = vpop.f32.mrf.mxu0 }
 0xa63   : > { %v7002_v19 = vmax.f32 %v6970_v15, 0.0 }
 0xa66   : > { %v6671_v25 = vpop.f32.mrf.mxu1 }
 0xa67   : > { %v6672_v13 = vadd.f32 %v6671_v25, %v6583_v22  ;;  %v10321_v25 = vld [vmem:[%s16074_s16 + $0x48] sm:$0xff]  }
 0xa68   : > { %v6814_v4 = vpop.f32.mrf.mxu3 }
 0xa69   : > { %v6971_v49 = vadd.f32 %v10200_v43, %v6672_v13  ;;  %v16231_v47 = vadd.f32 %v6814_v4, %v6726_v8  ;;  %6777 = vmatmul.bf16.gmra.mxu2 %v15927_v12  ;;  %v16256_v43 = vld [vmem:[%s16857_s8] ss:$0 sm:$0xff]  ;;  %v10207_v4 = vunpack.c.l.bf16 %v10321_v25 }
 0xa6a   : > { %v16234_v5 = vpop.f32.mrf.mxu0 }
 0xa6b   : > { %v7003_v59 = vmax.f32 %v6971_v49, 0.0 }
 0xa6d   : > { %6856 = vmatmul.bf16.gmra.mxu3 %v16098_v35  ;;  %v7027_v17 = vpack.c.bf16 %v7003_v59, %v7002_v19  ;;  %v6733_v35 = vpop.f32.mrf.mxu2  ;;  %v10208_v59 = vunpack.c.h.bf16 %v10321_v25 }
 0xa6e   : > { %v6674_v40 = vpop.f32.mrf.mxu1  ;;  %v6734_v63 = vadd.f32 %v6733_v35, %v16214_v27 }
 0xa6f   : > { %7147 = vmatmul.bf16.gmra.mxu0 %v7027_v17  ;;  %v6675_v12 = vadd.f32 %v6674_v40, %v6586_v1 }
 0xa70   : > { %v6817_v46 = vpop.f32.mrf.mxu3 }
 0xa71   : > { %v16241_v56 = vadd.f32 %v6817_v46, %v6729_v0  ;;  %v6972_v18 = vadd.f32 %v10203_v11, %v6675_v12 }
 0xa72   : > { %v16243_v28 = vpop.f32.mrf.mxu0 }
 0xa73   : > { %v7004_v55 = vmax.f32 %v6972_v18, 0.0 }
 0xa75   : > { %v6735_v22 = vpop.f32.mrf.mxu2 }
 0xa76   : > { %v6676_v33 = vpop.f32.mrf.mxu1  ;;  %v6736_v17 = vadd.f32 %v6735_v22, %v16214_v27 }
 0xa77   : > { %v6677_v53 = vadd.f32 %v6676_v33, %v6588_v57 }
 0xa78   : > { %v6819_v7 = vpop.f32.mrf.mxu3 }
 0xa79   : > { %v6973_v51 = vadd.f32 %v10204_v26, %v6677_v53  ;;  %v16248_v48 = vadd.f32 %v6819_v7, %v6731_v54  ;;  %6782 = vmatmul.bf16.gmra.mxu2 %v15978_v44  ;;  %v6591_v44 = vadd.f32 %v16113_v23, %v16066_v39  ;;  %v10322_v7 = vld [vmem:[%s16074_s16 + $0x50] sm:$0xff]  }
 0xa7a   : > { %v10212_v25 = vunpack.c.h.bf16 %v10322_v7 }
 0xa7b   : > { %v7005_v42 = vmax.f32 %v6973_v51, 0.0 }
 0xa7c   : > { %v7113_v38 = vpop.f32.mrf.mxu0 }
 0xa7d   : > { %6861 = vmatmul.bf16.gmra.mxu3 %v16119_v29  ;;  %v7028_v52 = vpack.c.bf16 %v7005_v42, %v7004_v55  ;;  %v7114_v29 = vadd.f32 %v16256_v43, %v7113_v38  ;;  %v6738_v12 = vpop.f32.mrf.mxu2  ;;  %v6596_v55 = vadd.f32 %v16136_v6, %v16066_v39 }
 0xa7e   : > { %v6679_v36 = vpop.f32.mrf.mxu1  ;;  %v6739_v53 = vadd.f32 %v6738_v12, %v16214_v27 }
 0xa7f   : > { %7152 = vmatmul.bf16.gmra.mxu0 %v7028_v52  ;;  %v6680_v13 = vadd.f32 %v6679_v36, %v6591_v44  ;;  %v7193_v0 = vmax.f32 %v7114_v29, 0.0  ;;  %v10211_v36 = vunpack.c.l.bf16 %v10322_v7 }
 0xa80   : > { %v6822_v8 = vpop.f32.mrf.mxu3 }
 0xa81   : > { %v16261_v15 = vadd.f32 %v6822_v8, %v6734_v63  ;;  %v6974_v41 = vadd.f32 %v10207_v4, %v6680_v13 }
 0xa83   : > { %v7006_v32 = vmax.f32 %v6974_v41, 0.0 }
 0xa84   : > { %v7115_v49 = vpop.f32.mrf.mxu0 }
 0xa85   : > { %v7116_v19 = vadd.f32 %v16256_v43, %v7115_v49  ;;  %v6740_v38 = vpop.f32.mrf.mxu2 }
 0xa86   : > { %v6681_v40 = vpop.f32.mrf.mxu1  ;;  %v6741_v8 = vadd.f32 %v6740_v38, %v16214_v27 }
 0xa87   : > { %v7194_v46 = vmax.f32 %v7116_v19, 0.0  ;;  %v6682_v23 = vadd.f32 %v6681_v40, %v6593_v34 }
 0xa88   : > { %v6824_v1 = vpop.f32.mrf.mxu3 }
 0xa89   : > { %v7225_v11 = vpack.c.bf16 %v7194_v46, %v7193_v0  ;;  %v6975_v57 = vadd.f32 %v10208_v59, %v6682_v23  ;;  %v16268_v35 = vadd.f32 %v6824_v1, %v6736_v17  ;;  %6787 = vmatmul.bf16.gmra.mxu2 %v16003_v3  ;;  %v10323_v46 = vld [vmem:[%s16074_s16 + $0x58] sm:$0xff]   ;;  %v6601_v23 = vadd.f32 %v16155_v58, %v16066_v39 }
 0xa8b   : > { %v7007_v26 = vmax.f32 %v6975_v57, 0.0  ;;  %7317 = vmatmul.bf16.vlgmr.msra.gmra.mxu1 %v7225_v11  ;;  %v10215_v11 = vunpack.c.l.bf16 %v10323_v46 }
 0xa8c   : > { %v7118_v33 = vpop.f32.mrf.mxu0 }
 0xa8d   : > { %6866 = vmatmul.bf16.gmra.mxu3 %v16139_v60  ;;  %v7029_v54 = vpack.c.bf16 %v7007_v26, %v7006_v32  ;;  %v7119_v3 = vadd.f32 %v16256_v43, %v7118_v33  ;;  %v6598_v60 = vadd.f32 %v16145_v50, %v16066_v39  ;;  %v10216_v26 = vunpack.c.h.bf16 %v10323_v46 }
 0xa8e   : > { %v6684_v18 = vpop.f32.mrf.mxu1 }
 0xa8f   : > { %7157 = vmatmul.bf16.gmra.mxu0 %v7029_v54  ;;  %v6685_v52 = vadd.f32 %v6684_v18, %v6596_v55  ;;  %v7195_v29 = vmax.f32 %v7119_v3, 0.0 }
 0xa90   : > { %v6827_v51 = vpop.f32.mrf.mxu3 }
 0xa91   : > { %v16276_v42 = vadd.f32 %v6827_v51, %v6739_v53  ;;  %v6976_v13 = vadd.f32 %v10211_v36, %v6685_v52  ;;  %v10324_v52 = vld [vmem:[%s16074_s16 + $0x60] sm:$0xff]   ;;  %v6606_v36 = vadd.f32 %v16175_v20, %v16066_v39 }
 0xa93   : > { %v7008_v17 = vmax.f32 %v6976_v13, 0.0 }
 0xa94   : > { %v7120_v63 = vpop.f32.mrf.mxu0 }
 0xa95   : > { %v7121_v22 = vadd.f32 %v16256_v43, %v7120_v63 }
 0xa96   : > { %v6686_v44 = vpop.f32.mrf.mxu1 }
 0xa97   : > { %v7196_v6 = vmax.f32 %v7121_v22, 0.0  ;;  %v6687_v4 = vadd.f32 %v6686_v44, %v6598_v60  ;;  %v10219_v22 = vunpack.c.l.bf16 %v10324_v52  ;;  %v10220_v44 = vunpack.c.h.bf16 %v10324_v52 }
 0xa98   : > { %v6829_v49 = vpop.f32.mrf.mxu3  ;;  %v6618_v52 = vadd.f32 %v16226_v30, %v16066_v39  ;;  %v6621_v30 = vadd.f32 %v16234_v5, %v16066_v39 }
 0xa99   : > { %v6977_v34 = vadd.f32 %v10212_v25, %v6687_v4  ;;  %v16283_v19 = vadd.f32 %v6829_v49, %v6741_v8  ;;  %6792 = vmatmul.bf16.gmra.mxu2 %v16030_v9  ;;  %v7226_v59 = vpack.c.bf16 %v7196_v6, %v7195_v29  ;;  %v6603_v9 = vadd.f32 %v16167_v31, %v16066_v39 }
 0xa9b   : > { %v7009_v50 = vmax.f32 %v6977_v34, 0.0  ;;  %7322 = vmatmul.bf16.gmra.mxu1 %v7226_v59 }
 0xa9c   : > { %v7123_v40 = vpop.f32.mrf.mxu0 }
 0xa9d   : > { %6871 = vmatmul.bf16.gmra.mxu3 %v16161_v62  ;;  %v7030_v0 = vpack.c.bf16 %v7009_v50, %v7008_v17  ;;  %v7124_v1 = vadd.f32 %v16256_v43, %v7123_v40 }
 0xa9e   : > { %v6689_v41 = vpop.f32.mrf.mxu1 }
 0xa9f   : > { %7162 = vmatmul.bf16.gmra.mxu0 %v7030_v0  ;;  %v6690_v12 = vadd.f32 %v6689_v41, %v6601_v23  ;;  %v7197_v62 = vmax.f32 %v7124_v1, 0.0  ;;  %v6611_v0 = vadd.f32 %v16192_v16, %v16066_v39 }
 0xaa1   : > { %v6978_v54 = vadd.f32 %v10215_v11, %v6690_v12  ;;  %v6613_v12 = vadd.f32 %v16204_v61, %v16066_v39  ;;  %v10326_v61 = vld [vmem:[%s16074_s16 + $0x70] sm:$0xff]  }
 0xaa3   : > { %v7010_v51 = vmax.f32 %v6978_v54, 0.0 }
 0xaa4   : > { %v7125_v57 = vpop.f32.mrf.mxu0 }
 0xaa5   : > { %v7126_v32 = vadd.f32 %v16256_v43, %v7125_v57 }
 0xaa6   : > { %v6691_v33 = vpop.f32.mrf.mxu1 }
 0xaa7   : > { %v7198_v18 = vmax.f32 %v7126_v32, 0.0  ;;  %v6692_v53 = vadd.f32 %v6691_v33, %v6603_v9 }
 0xaa9   : > { %v6979_v7 = vadd.f32 %v10216_v26, %v6692_v53  ;;  %6797 = vmatmul.bf16.gmra.mxu2 %v16058_v14  ;;  %v7227_v58 = vpack.c.bf16 %v7198_v18, %v7197_v62  ;;  %v6608_v14 = vadd.f32 %v16184_v10, %v16066_v39  ;;  %v10325_v10 = vld [vmem:[%s16074_s16 + $0x68] sm:$0xff]  }
 0xaaa   : > { %v10223_v23 = vunpack.c.l.bf16 %v10325_v10  ;;  %v10224_v57 = vunpack.c.h.bf16 %v10325_v10 }
 0xaab   : > { %v7011_v55 = vmax.f32 %v6979_v7, 0.0  ;;  %7327 = vmatmul.bf16.gmra.mxu1 %v7227_v58 }
 0xaac   : > { %v7128_v38 = vpop.f32.mrf.mxu0 }
 0xaad   : > { %6876 = vmatmul.bf16.gmra.mxu3 %v16178_v45  ;;  %v7031_v31 = vpack.c.bf16 %v7011_v55, %v7010_v51  ;;  %v7129_v63 = vadd.f32 %v16256_v43, %v7128_v38  ;;  %v6616_v51 = vadd.f32 %v16211_v37, %v16066_v39 }
 0xaae   : > { %v6694_v3 = vpop.f32.mrf.mxu1 }
 0xaaf   : > { %7167 = vmatmul.bf16.gmra.mxu0 %v7031_v31  ;;  %v6695_v60 = vadd.f32 %v6694_v3, %v6606_v36  ;;  %v7199_v29 = vmax.f32 %v7129_v63, 0.0  ;;  %v10227_v31 = vunpack.c.l.bf16 %v10326_v61  ;;  %v10228_v63 = vunpack.c.h.bf16 %v10326_v61 }
 0xab1   : > { %v6980_v13 = vadd.f32 %v10219_v22, %v6695_v60 }
 0xab3   : > { %v7012_v20 = vmax.f32 %v6980_v13, 0.0 }
 0xab4   : > { %v7130_v25 = vpop.f32.mrf.mxu0 }
 0xab5   : > { %v7131_v8 = vadd.f32 %v16256_v43, %v7130_v25 }
 0xab6   : > { %v6696_v45 = vpop.f32.mrf.mxu1 }
 0xab7   : > { %v7200_v6 = vmax.f32 %v7131_v8, 0.0  ;;  %v6697_v4 = vadd.f32 %v6696_v45, %v6608_v14 }
 0xab9   : > { %v6981_v49 = vadd.f32 %v10220_v44, %v6697_v4  ;;  %v7228_v34 = vpack.c.bf16 %v7200_v6, %v7199_v29  ;;  %v10327_v4 = vld [vmem:[%s16074_s16 + $0x78] sm:$0xff]  }
 0xabb   : > { %v7013_v59 = vmax.f32 %v6981_v49, 0.0  ;;  %7332 = vmatmul.bf16.gmra.mxu1 %v7228_v34 }
 0xabc   : > { %v7133_v17 = vpop.f32.mrf.mxu0 }
 0xabd   : > { %6881 = vmatmul.bf16.gmra.mxu3 %v16198_v2  ;;  %v7032_v50 = vpack.c.bf16 %v7013_v59, %v7012_v20  ;;  %v7134_v41 = vadd.f32 %v16256_v43, %v7133_v17  ;;  %v10231_v20 = vunpack.c.l.bf16 %v10327_v4  ;;  %v6623_v17 = vadd.f32 %v16243_v28, %v16066_v39 }
 0xabe   : > { %v6699_v40 = vpop.f32.mrf.mxu1 }
 0xabf   : > { %7172 = vmatmul.bf16.gmra.mxu0 %v7032_v50  ;;  %v6700_v46 = vadd.f32 %v6699_v40, %v6611_v0  ;;  %v7201_v9 = vmax.f32 %v7134_v41, 0.0  ;;  %v10232_v40 = vunpack.c.h.bf16 %v10327_v4 }
 0xac1   : > { %v6982_v32 = vadd.f32 %v10223_v23, %v6700_v46 }
 0xac3   : > { %v7014_v16 = vmax.f32 %v6982_v32, 0.0 }
 0xac4   : > { %v7135_v1 = vpop.f32.mrf.mxu0 }
 0xac5   : > { %v7136_v11 = vadd.f32 %v16256_v43, %v7135_v1 }
 0xac6   : > { %v6701_v2 = vpop.f32.mrf.mxu1 }
 0xac7   : > { %v7202_v26 = vmax.f32 %v7136_v11, 0.0  ;;  %v6702_v33 = vadd.f32 %v6701_v2, %v6613_v12 }
 0xac9   : > { %v7229_v62 = vpack.c.bf16 %v7202_v26, %v7201_v9  ;;  %v6983_v54 = vadd.f32 %v10224_v57, %v6702_v33 }
 0xacb   : > { %v7015_v18 = vmax.f32 %v6983_v54, 0.0  ;;  %7337 = vmatmul.bf16.gmra.mxu1 %v7229_v62 }
 0xacc   : > { %v7138_v53 = vpop.f32.mrf.mxu0 }
 0xacd   : > { %6886 = vmatmul.bf16.gmra.mxu3 %v16218_v24  ;;  %v7033_v7 = vpack.c.bf16 %v7015_v18, %v7014_v16  ;;  %v7139_v55 = vadd.f32 %v16256_v43, %v7138_v53  ;;  %v16333_v53 = vld [vmem:[%s16859_s10] ss:$0 sm:$0xff] }
 0xace   : > { %v6704_v58 = vpop.f32.mrf.mxu1 }
 0xacf   : > { %7177 = vmatmul.bf16.gmra.mxu0 %v7033_v7  ;;  %v6705_v38 = vadd.f32 %v6704_v58, %v6616_v51  ;;  %v7203_v60 = vmax.f32 %v7139_v55, 0.0 }
 0xad1   : > { %v6984_v22 = vadd.f32 %v10227_v31, %v6705_v38 }
 0xad3   : > { %v7016_v37 = vmax.f32 %v6984_v22, 0.0 }
 0xad4   : > { %v7140_v3 = vpop.f32.mrf.mxu0 }
 0xad5   : > { %v7141_v36 = vadd.f32 %v16256_v43, %v7140_v3 }
 0xad6   : > { %v6706_v24 = vpop.f32.mrf.mxu1 }
 0xad7   : > { %v7204_v25 = vmax.f32 %v7141_v36, 0.0  ;;  %v6707_v14 = vadd.f32 %v6706_v24, %v6618_v52 }
 0xad9   : > { %v7230_v8 = vpack.c.bf16 %v7204_v25, %v7203_v60  ;;  %v6985_v44 = vadd.f32 %v10228_v63, %v6707_v14 }
 0xadb   : > { %v7017_v45 = vmax.f32 %v6985_v44, 0.0  ;;  %7342 = vmatmul.bf16.gmra.mxu1 %v7230_v8 }
 0xadc   : > { %v7143_v29 = vpop.f32.mrf.mxu0 }
 0xadd   : > { %v7034_v13 = vpack.c.bf16 %v7017_v45, %v7016_v37  ;;  %v7144_v49 = vadd.f32 %v16256_v43, %v7143_v29 }
 0xade   : > { %v6709_v6 = vpop.f32.mrf.mxu1 }
 0xadf   : > { %7182 = vmatmul.bf16.gmra.mxu0 %v7034_v13  ;;  %v6710_v34 = vadd.f32 %v6709_v6, %v6621_v30  ;;  %v7205_v0 = vmax.f32 %v7144_v49, 0.0 }
 0xae1   : > { %v6986_v41 = vadd.f32 %v10231_v20, %v6710_v34 }
 0xae3   : > { %v7018_v11 = vmax.f32 %v6986_v41, 0.0 }
 0xae4   : > { %v7145_v59 = vpop.f32.mrf.mxu0 }
 0xae5   : > { %v7146_v50 = vadd.f32 %v16256_v43, %v7145_v59 }
 0xae6   : > { %v6711_v10 = vpop.f32.mrf.mxu1 }
 0xae7   : > { %v7206_v46 = vmax.f32 %v7146_v50, 0.0  ;;  %v6712_v23 = vadd.f32 %v6711_v10, %v6623_v17  ;;  %v8006_v50 = vlaneseq }
 0xae9   : > { %v7231_v1 = vpack.c.bf16 %v7206_v46, %v7205_v0  ;;  %v6987_v12 = vadd.f32 %v10232_v40, %v6712_v23 }
 0xaeb   : > { %v7019_v5 = vmax.f32 %v6987_v12, 0.0  ;;  %7347 = vmatmul.bf16.gmra.mxu1 %v7231_v1 }
 0xaec   : > { %v7148_v57 = vpop.f32.mrf.mxu0 }
 0xaed   : > { %v7035_v2 = vpack.c.bf16 %v7019_v5, %v7018_v11  ;;  %v7149_v9 = vadd.f32 %v16256_v43, %v7148_v57  ;;  %v16343_v11 = vand.u32 127, %v8006_v50 }
 0xaef   : > { %7187 = vmatmul.bf16.gmra.mxu0 %v7035_v2  ;;  %v7207_v28 = vmax.f32 %v7149_v9, 0.0  ;;  %vm8008_vm5 = vcmp.lt.s32.totalorder %v16343_v11, 3 }
 0xaf4   : > { %v7150_v32 = vpop.f32.mrf.mxu0 }
 0xaf5   : > { %v7151_v39 = vadd.f32 %v16256_v43, %v7150_v32 }
 0xaf7   : > { %v7208_v26 = vmax.f32 %v7151_v39, 0.0 }
 0xaf9   : > { %v7232_v33 = vpack.c.bf16 %v7208_v26, %v7207_v28 }
 0xafb   : > { %7352 = vmatmul.bf16.gmra.mxu1 %v7232_v33 }
 0xafc   : > { %v7153_v62 = vpop.f32.mrf.mxu0 }
 0xafd   : > { %v7154_v54 = vadd.f32 %v16256_v43, %v7153_v62 }
 0xaff   : > { %v7209_v7 = vmax.f32 %v7154_v54, 0.0 }
 0xb04   : > { %v7155_v16 = vpop.f32.mrf.mxu0 }
 0xb05   : > { %v7156_v18 = vadd.f32 %v16256_v43, %v7155_v16 }
 0xb07   : > { %v7210_v58 = vmax.f32 %v7156_v18, 0.0 }
 0xb08   : > { %v7318_v61 = vpop.f32.mrf.mxu1 }
 0xb09   : > { %v7233_v51 = vpack.c.bf16 %v7210_v58, %v7209_v7  ;;  %v7319_v55 = vadd.f32 %v16333_v53, %v7318_v61 }
 0xb0b   : > { %v9815_v38 = vmul.f32 -1.442695, %v7319_v55  ;;  %7357 = vmatmul.bf16.gmra.mxu1 %v7233_v51 }
 0xb0c   : > { %v7158_v31 = vpop.f32.mrf.mxu0 }
 0xb0d   : > { %10369 = vpow2.f32 %v9815_v38  ;;  %v7159_v63 = vadd.f32 %v16256_v43, %v7158_v31 }
 0xb0f   : > { %v7211_v14 = vmax.f32 %v7159_v63, 0.0 }
 0xb10   : > { %v7320_v3 = vpop.f32.mrf.mxu1 }
 0xb11   : > { %v7321_v52 = vadd.f32 %v16333_v53, %v7320_v3 }
 0xb13   : > { %v10370_v36 = vpop.eup %10369  ;;  %v9816_v24 = vmul.f32 -1.442695, %v7321_v52 }
 0xb14   : > { %v7494_v60 = vadd.f32 1.0, %v10370_v36  ;;  %v7160_v22 = vpop.f32.mrf.mxu0 }
 0xb15   : > { %10371 = vpow2.f32 %v9816_v24  ;;  %v7161_v25 = vadd.f32 %v16256_v43, %v7160_v22 }
 0xb16   : > { %10373 = vrcp.f32 %v7494_v60  ;;  %v7537_v12 = vand.u32 2147483648, %v7494_v60  ;;  %vm7531_vm2 = vweird.f32 %v7494_v60  ;;  %v7535_v57 = vand.u32 2147483647, %v7494_v60 }
 0xb17   : > { %v7212_v8 = vmax.f32 %v7161_v25, 0.0 }
 0xb18   : > { %v7323_v44 = vpop.f32.mrf.mxu1  ;;  %v7538_v16 = vor.u32 1.1754944e-38, %v7537_v12  ;;  %vm7536_vm6 = vcmp.eq.f32.partialorder %v7535_v57, 8.507059e+37 }
 0xb19   : > { %v7234_v37 = vpack.c.bf16 %v7212_v8, %v7211_v14  ;;  %v7324_v45 = vadd.f32 %v16333_v53, %v7323_v44 }
 0xb1b   : > { %v10372_v29 = vpop.eup %10371  ;;  %v9817_v13 = vmul.f32 -1.442695, %v7324_v45  ;;  %7362 = vmatmul.bf16.gmra.mxu1 %v7234_v37 }
 0xb1c   : > { %v10374_v6 = vpop.eup %10373  ;;  %v7495_v4 = vadd.f32 1.0, %v10372_v29  ;;  %v7163_v30 = vpop.f32.mrf.mxu0 }
 0xb1d   : > { %v7527_v49 = vmul.f32 %v10374_v6, %v7494_v60  ;;  %10375 = vpow2.f32 %v9817_v13  ;;  %vm7532_vm1 = vweird.f32 %v10374_v6  ;;  %v7164_v5 = vadd.f32 %v16256_v43, %v7163_v30  ;;  %v16373_v30 = vpop.f32.mrf.mxu2 }
 0xb1e   : > { %10377 = vrcp.f32 %v7495_v4  ;;  %vm16347_vm3 = vmor %vm7531_vm2, %vm7532_vm1  ;;  %v7550_v32 = vand.u32 2147483647, %v7495_v4  ;;  %v7552_v39 = vand.u32 2147483648, %v7495_v4  ;;  %vm7546_vm7 = vweird.f32 %v7495_v4 }
 0xb1f   : > { %v7528_v34 = vsub.f32 1.0, %v7527_v49  ;;  %v7213_v18 = vmax.f32 %v7164_v5, 0.0 }
 0xb20   : > { %v7325_v20 = vpop.f32.mrf.mxu1  ;;  %v7553_v31 = vor.u32 1.1754944e-38, %v7552_v39  ;;  %vm7551_vm9 = vcmp.eq.f32.partialorder %v7550_v32, 8.507059e+37 }
 0xb21   : > { %v7529_v59 = vmul.f32 %v10374_v6, %v7528_v34  ;;  %v7326_v17 = vadd.f32 %v16333_v53, %v7325_v20 }
 0xb23   : > { %v10376_v40 = vpop.eup %10375  ;;  %v9818_v10 = vmul.f32 -1.442695, %v7326_v17  ;;  %v7530_v23 = vadd.f32 %v10374_v6, %v7529_v59  ;;  %v16378_v59 = vpop.f32.mrf.mxu3 }
 0xb24   : > { %v10378_v0 = vpop.eup %10377  ;;  %v16341_v41 = vadd.f32 1.0, %v10376_v40  ;;  %v7165_v46 = vpop.f32.mrf.mxu0 }
 0xb25   : > { %v7542_v1 = vmul.f32 %v10378_v0, %v7495_v4  ;;  %10379 = vpow2.f32 %v9818_v10  ;;  %v7166_v28 = vadd.f32 %v16256_v43, %v7165_v46  ;;  %v7534_v33 = vsel %vm16347_vm3, %v10374_v6, %v7530_v23 }
 0xb26   : > { %10381 = vrcp.f32 %v16341_v41  ;;  %vm7547_vm4 = vweird.f32 %v10378_v0  ;;  %v7539_v38 = vsel %vm7536_vm6, %v7538_v16, %v7534_v33  ;;  %vm7561_vm11 = vweird.f32 %v16341_v41 }
 0xb27   : > { %v7543_v2 = vsub.f32 1.0, %v7542_v1  ;;  %v7214_v7 = vmax.f32 %v7166_v28, 0.0  ;;  %vm7548_vm8 = vmor %vm7546_vm7, %vm7547_vm4  ;;  %v8009_v22 = vsel %vm8008_vm5, %v7539_v38, %v16223_v21  ;;  %v7565_v17 = vand.u32 2147483647, %v16341_v41 }
 0xb28   : > { %v7328_v26 = vpop.f32.mrf.mxu1 }
 0xb29   : > { %v7544_v62 = vmul.f32 %v10378_v0, %v7543_v2  ;;  %v7329_v54 = vadd.f32 %v16333_v53, %v7328_v26  ;;  %v7235_v52 = vpack.c.bf16 %v7214_v7, %v7213_v18  ;;  %vm7566_vm14 = vcmp.eq.f32.partialorder %v7565_v17, 8.507059e+37 }
 0xb2b   : > { %v10380_v58 = vpop.eup %10379  ;;  %v7545_v61 = vadd.f32 %v10378_v0, %v7544_v62  ;;  %v9819_v51 = vmul.f32 -1.442695, %v7329_v54  ;;  %7367 = vmatmul.bf16.gmra.mxu1 %v7235_v52  ;;  %v16399_v52 = vpop.f32.mrf.mxu3 }
 0xb2c   : > { %v10382_v55 = vpop.eup %10381  ;;  %v7497_v3 = vadd.f32 1.0, %v10380_v58  ;;  %v7168_v36 = vpop.f32.mrf.mxu0 }
 0xb2d   : > { %v7549_v63 = vsel %vm7548_vm8, %v10378_v0, %v7545_v61  ;;  %v7557_v24 = vmul.f32 %v10382_v55, %v16341_v41  ;;  %10383 = vpow2.f32 %v9819_v51  ;;  %vm7562_vm10 = vweird.f32 %v10382_v55  ;;  %v16391_v61 = vpop.f32.mrf.mxu2 }
 0xb2e   : > { %v7554_v60 = vsel %vm7551_vm9, %v7553_v31, %v7549_v63  ;;  %10385 = vrcp.f32 %v7497_v3  ;;  %v7169_v20 = vadd.f32 %v16256_v43, %v7168_v36  ;;  %vm16382_vm12 = vmor %vm7561_vm11, %vm7562_vm10  ;;  %v7580_v10 = vand.u32 2147483647, %v7497_v3 }
 0xb2f   : > { %v8010_v25 = vsel %vm8008_vm5, %v7554_v60, %v16231_v47  ;;  %v7558_v14 = vsub.f32 1.0, %v7557_v24  ;;  %v7567_v47 = vand.u32 2147483648, %v16341_v41  ;;  %v7582_v0 = vand.u32 2147483648, %v7497_v3 }
 0xb30   : > { %v10236_v8 = vpack.c.bf16 %v8010_v25, %v8009_v22  ;;  %v7330_v44 = vpop.f32.mrf.mxu1  ;;  %v7215_v2 = vmax.f32 %v7169_v20, 0.0  ;;  %vm7576_vm15 = vweird.f32 %v7497_v3  ;;  %vm7581_vm1 = vcmp.eq.f32.partialorder %v7580_v10, 8.507059e+37 }
 0xb31   : > { %v7559_v37 = vmul.f32 %v10382_v55, %v7558_v14  ;;  %v7331_v45 = vadd.f32 %v16333_v53, %v7330_v44  ;;  %v7568_v57 = vor.u32 1.1754944e-38, %v7567_v47  ;;  %v7583_v33 = vor.u32 1.1754944e-38, %v7582_v0 }
 0xb32   : > { %10237 = vst [vmem:[%s16364_s13] sm:$0xff] %v10236_v8  }
 0xb33   : > { %v10384_v29 = vpop.eup %10383  ;;  %v9820_v13 = vmul.f32 -1.442695, %v7331_v45  ;;  %v7560_v49 = vadd.f32 %v10382_v55, %v7559_v37  ;;  %v16420_v0 = vpop.f32.mrf.mxu3 }
 0xb34   : > { %v10386_v21 = vpop.eup %10385  ;;  %v16371_v6 = vadd.f32 1.0, %v10384_v29  ;;  %v7170_v4 = vpop.f32.mrf.mxu0 }
 0xb35   : > { %v7572_v34 = vmul.f32 %v10386_v21, %v7497_v3  ;;  %10387 = vpow2.f32 %v9820_v13  ;;  %v7171_v46 = vadd.f32 %v16256_v43, %v7170_v4  ;;  %v7564_v1 = vsel %vm16382_vm12, %v10382_v55, %v7560_v49  ;;  %v16415_v20 = vpop.f32.mrf.mxu2 }
 0xb36   : > { %10389 = vrcp.f32 %v16371_v6  ;;  %vm7577_vm13 = vweird.f32 %v10386_v21  ;;  %v7569_v26 = vsel %vm7566_vm14, %v7568_v57, %v7564_v1  ;;  %v7597_v37 = vand.u32 2147483648, %v16371_v6 }
 0xb37   : > { %v7573_v50 = vsub.f32 1.0, %v7572_v34  ;;  %v7216_v41 = vmax.f32 %v7171_v46, 0.0  ;;  %vm7578_vm0 = vmor %vm7576_vm15, %vm7577_vm13  ;;  %v8011_v51 = vsel %vm8008_vm5, %v7569_v26, %v16241_v56  ;;  %vm7591_vm3 = vweird.f32 %v16371_v6 }
 0xb38   : > { %v7333_v23 = vpop.f32.mrf.mxu1  ;;  %v7595_v45 = vand.u32 2147483647, %v16371_v6  ;;  %v7598_v40 = vor.u32 1.1754944e-38, %v7597_v37 }
 0xb39   : > { %v7574_v12 = vmul.f32 %v10386_v21, %v7573_v50  ;;  %v7334_v5 = vadd.f32 %v16333_v53, %v7333_v23  ;;  %v7236_v54 = vpack.c.bf16 %v7216_v41, %v7215_v2 }
 0xb3a   : > { %vm7596_vm7 = vcmp.eq.f32.partialorder %v7595_v45, 8.507059e+37 }
 0xb3b   : > { %v10388_v9 = vpop.eup %10387  ;;  %v7575_v32 = vadd.f32 %v10386_v21, %v7574_v12  ;;  %v9821_v39 = vmul.f32 -1.442695, %v7334_v5  ;;  %7372 = vmatmul.bf16.gmra.mxu1 %v7236_v54 }
 0xb3c   : > { %v10390_v28 = vpop.eup %10389  ;;  %v7499_v62 = vadd.f32 1.0, %v10388_v9  ;;  %v7173_v16 = vpop.f32.mrf.mxu0 }
 0xb3d   : > { %v7579_v18 = vsel %vm7578_vm0, %v10386_v21, %v7575_v32  ;;  %v7587_v7 = vmul.f32 %v10390_v28, %v16371_v6  ;;  %10391 = vpow2.f32 %v9821_v39  ;;  %v7174_v25 = vadd.f32 %v16256_v43, %v7173_v16 }
 0xb3e   : > { %v7584_v58 = vsel %vm7581_vm1, %v7583_v33, %v7579_v18  ;;  %10393 = vrcp.f32 %v7499_v62  ;;  %vm7592_vm2 = vweird.f32 %v10390_v28  ;;  %v7610_v21 = vand.u32 2147483647, %v7499_v62 }
 0xb3f   : > { %v8012_v55 = vsel %vm8008_vm5, %v7584_v58, %v16248_v48  ;;  %v7588_v38 = vsub.f32 1.0, %v7587_v7  ;;  %vm16411_vm4 = vmor %vm7591_vm3, %vm7592_vm2  ;;  %v7612_v4 = vand.u32 2147483648, %v7499_v62  ;;  %v7217_v49 = vmax.f32 %v7174_v25, 0.0  ;;  %v16434_v7 = vpop.f32.mrf.mxu2 }
 0xb40   : > { %v10241_v31 = vpack.c.bf16 %v8012_v55, %v8011_v51  ;;  %v7335_v3 = vpop.f32.mrf.mxu1  ;;  %vm7606_vm8 = vweird.f32 %v7499_v62  ;;  %vm7611_vm10 = vcmp.eq.f32.partialorder %v7610_v21, 8.507059e+37 }
 0xb41   : > { %v7589_v36 = vmul.f32 %v10390_v28, %v7588_v38  ;;  %v7336_v63 = vadd.f32 %v16333_v53, %v7335_v3  ;;  %v7613_v5 = vor.u32 1.1754944e-38, %v7612_v4 }
 0xb42   : > { %10328 = vst [vmem:[%s16364_s13 + $0x8] sm:$0xff] %v10241_v31   ;;  %v16440_v31 = vpop.f32.mrf.mxu3 }
 0xb43   : > { %v10392_v24 = vpop.eup %10391  ;;  %v9822_v56 = vmul.f32 -1.442695, %v7336_v63  ;;  %v7590_v8 = vadd.f32 %v10390_v28, %v7589_v36 }
 0xb44   : > { %v10394_v60 = vpop.eup %10393  ;;  %v16403_v22 = vadd.f32 1.0, %v10392_v24  ;;  %v7175_v14 = vpop.f32.mrf.mxu0 }
 0xb45   : > { %v7602_v48 = vmul.f32 %v10394_v60, %v7499_v62  ;;  %v7176_v44 = vadd.f32 %v16256_v43, %v7175_v14  ;;  %v7594_v17 = vsel %vm16411_vm4, %v10390_v28, %v7590_v8  ;;  %vm7607_vm6 = vweird.f32 %v10394_v60 }
 0xb46   : > { %10395 = vrcp.f32 %v16403_v22  ;;  %v7599_v12 = vsel %vm7596_vm7, %v7598_v40, %v7594_v17  ;;  %vm7608_vm9 = vmor %vm7606_vm8, %vm7607_vm6  ;;  %v7625_v63 = vand.u32 2147483647, %v16403_v22  ;;  %vm7621_vm12 = vweird.f32 %v16403_v22 }
 0xb47   : > { %v7603_v29 = vsub.f32 1.0, %v7602_v48  ;;  %10397 = vpow2.f32 %v9822_v56  ;;  %v7218_v34 = vmax.f32 %v7176_v44, 0.0  ;;  %v8013_v28 = vsel %vm8008_vm5, %v7599_v12, %v16261_v15 }
 0xb48   : > { %v7338_v47 = vpop.f32.mrf.mxu1  ;;  %vm7626_vm15 = vcmp.eq.f32.partialorder %v7625_v63, 8.507059e+37 }
 0xb49   : > { %v7604_v50 = vmul.f32 %v10394_v60, %v7603_v29  ;;  %v7339_v6 = vadd.f32 %v16333_v53, %v7338_v47  ;;  %v7237_v10 = vpack.c.bf16 %v7218_v34, %v7217_v49  ;;  %v16459_v47 = vpop.f32.mrf.mxu2 }
 0xb4b   : > { %v7605_v46 = vadd.f32 %v10394_v60, %v7604_v50  ;;  %v9823_v23 = vmul.f32 -1.442695, %v7339_v6  ;;  %7377 = vmatmul.bf16.gmra.mxu1 %v7237_v10 }
 0xb4c   : > { %v16422_v1 = vpop.eup %10395  ;;  %v7178_v57 = vpop.f32.mrf.mxu0 }
 0xb4d   : > { %v10398_v2 = vpop.eup %10397  ;;  %v7609_v41 = vsel %vm7608_vm9, %v10394_v60, %v7605_v46  ;;  %v7617_v9 = vmul.f32 %v16422_v1, %v16403_v22  ;;  %10399 = vpow2.f32 %v9823_v23  ;;  %v7179_v15 = vadd.f32 %v16256_v43, %v7178_v57  ;;  %v16463_v46 = vpop.f32.mrf.mxu3 }
 0xb4e   : > { %v7614_v32 = vsel %vm7611_vm10, %v7613_v5, %v7609_v41  ;;  %v7501_v39 = vadd.f32 1.0, %v10398_v2  ;;  %vm7622_vm11 = vweird.f32 %v16422_v1  ;;  %v7627_v60 = vand.u32 2147483648, %v16403_v22 }
 0xb4f   : > { %v8014_v26 = vsel %vm8008_vm5, %v7614_v32, %v16268_v35  ;;  %v7618_v33 = vsub.f32 1.0, %v7617_v9  ;;  %v7219_v25 = vmax.f32 %v7179_v15, 0.0  ;;  %vm16450_vm13 = vmor %vm7621_vm12, %vm7622_vm11 }
 0xb50   : > { %v10246_v62 = vpack.c.bf16 %v8014_v26, %v8013_v28  ;;  %10401 = vrcp.f32 %v7501_v39  ;;  %v7340_v54 = vpop.f32.mrf.mxu1  ;;  %v7640_v37 = vand.u32 2147483647, %v7501_v39  ;;  %v7642_v45 = vand.u32 2147483648, %v7501_v39 }
 0xb51   : > { %v7341_v16 = vadd.f32 %v16333_v53, %v7340_v54  ;;  %v7619_v58 = vmul.f32 %v16422_v1, %v7618_v33  ;;  %v7628_v22 = vor.u32 1.1754944e-38, %v7627_v60  ;;  %vm7636_vm0 = vweird.f32 %v7501_v39 }
 0xb52   : > { %10329 = vst [vmem:[%s16364_s13 + $0x10] sm:$0xff] %v10246_v62   ;;  %v7643_v10 = vor.u32 1.1754944e-38, %v7642_v45  ;;  %vm7641_vm2 = vcmp.eq.f32.partialorder %v7640_v37, 8.507059e+37  ;;  %v6744_v60 = vadd.f32 %v16373_v30, %v16214_v27  ;;  %v6746_v30 = vadd.f32 %v16391_v61, %v16214_v27 }
 0xb53   : > { %v10400_v18 = vpop.eup %10399  ;;  %v9824_v55 = vmul.f32 -1.442695, %v7341_v16  ;;  %v7620_v36 = vadd.f32 %v16422_v1, %v7619_v58 }
 0xb54   : > { %v16437_v51 = vadd.f32 1.0, %v10400_v18  ;;  %v7180_v38 = vpop.f32.mrf.mxu0  ;;  %v6835_v61 = vadd.f32 %v16399_v52, %v6746_v30 }
 0xb55   : > { %v7181_v35 = vadd.f32 %v16256_v43, %v7180_v38  ;;  %v7624_v13 = vsel %vm16450_vm13, %v16422_v1, %v7620_v36 }
 0xb56   : > { %v10402_v3 = vpop.eup %10401  ;;  %10403 = vrcp.f32 %v16437_v51  ;;  %v7629_v40 = vsel %vm7626_vm15, %v7628_v22, %v7624_v13  ;;  %vm7651_vm4 = vweird.f32 %v16437_v51  ;;  %v7655_v36 = vand.u32 2147483647, %v16437_v51 }
 0xb57   : > { %v7632_v24 = vmul.f32 %v10402_v3, %v7501_v39  ;;  %10405 = vpow2.f32 %v9824_v55  ;;  %v7220_v56 = vmax.f32 %v7181_v35, 0.0  ;;  %vm7637_vm14 = vweird.f32 %v10402_v3  ;;  %v16483_v35 = vpop.f32.mrf.mxu3 }
 0xb58   : > { %v7343_v14 = vpop.f32.mrf.mxu1  ;;  %vm7638_vm1 = vmor %vm7636_vm0, %vm7637_vm14  ;;  %v8015_v2 = vsel %vm8008_vm5, %v7629_v40, %v16276_v42  ;;  %vm7656_vm8 = vcmp.eq.f32.partialorder %v7655_v36, 8.507059e+37 }
 0xb59   : > { %v7633_v8 = vsub.f32 1.0, %v7632_v24  ;;  %v7344_v48 = vadd.f32 %v16333_v53, %v7343_v14  ;;  %v7238_v29 = vpack.c.bf16 %v7220_v56, %v7219_v25 }
 0xb5b   : > { %v7634_v21 = vmul.f32 %v10402_v3, %v7633_v8  ;;  %v9825_v4 = vmul.f32 -1.442695, %v7344_v48  ;;  %7382 = vmatmul.bf16.gmra.mxu1 %v7238_v29 }
 0xb5c   : > { %v16457_v49 = vpop.eup %10403  ;;  %v7183_v34 = vpop.f32.mrf.mxu0 }
 0xb5d   : > { %v7635_v17 = vadd.f32 %v10402_v3, %v7634_v21  ;;  %v7647_v50 = vmul.f32 %v16457_v49, %v16437_v51  ;;  %10407 = vpow2.f32 %v9825_v4  ;;  %v10406_v6 = vpop.eup %10405  ;;  %v7184_v33 = vadd.f32 %v16256_v43, %v7183_v34 }
 0xb5e   : > { %v7503_v1 = vadd.f32 1.0, %v10406_v6  ;;  %vm7652_vm3 = vweird.f32 %v16457_v49 }
 0xb5f   : > { %v7639_v23 = vsel %vm7638_vm1, %v10402_v3, %v7635_v17  ;;  %v7648_v5 = vsub.f32 1.0, %v7647_v50  ;;  %v7221_v55 = vmax.f32 %v7184_v33, 0.0  ;;  %v7657_v3 = vand.u32 2147483648, %v16437_v51  ;;  %vm16491_vm6 = vmor %vm7651_vm4, %vm7652_vm3 }
 0xb60   : > { %v7644_v12 = vsel %vm7641_vm2, %v7643_v10, %v7639_v23  ;;  %v7345_v57 = vpop.f32.mrf.mxu1  ;;  %10409 = vrcp.f32 %v7503_v1  ;;  %v7672_v56 = vand.u32 2147483648, %v7503_v1  ;;  %v7670_v51 = vand.u32 2147483647, %v7503_v1 }
 0xb61   : > { %v8016_v41 = vsel %vm8008_vm5, %v7644_v12, %v16283_v19  ;;  %v7346_v32 = vadd.f32 %v16333_v53, %v7345_v57  ;;  %v7649_v28 = vmul.f32 %v16457_v49, %v7648_v5  ;;  %v16479_v19 = vpop.f32.mrf.mxu2  ;;  %v7658_v29 = vor.u32 1.1754944e-38, %v7657_v3  ;;  %v16517_v5 = vpop.f32.mrf.mxu3 }
 0xb62   : > { %v10251_v9 = vpack.c.bf16 %v8016_v41, %v8015_v2  ;;  %vm7666_vm9 = vweird.f32 %v7503_v1  ;;  %v7673_v34 = vor.u32 1.1754944e-38, %v7672_v56  ;;  %vm7671_vm11 = vcmp.eq.f32.partialorder %v7670_v51, 8.507059e+37 }
 0xb63   : > { %v10408_v39 = vpop.eup %10407  ;;  %v9826_v62 = vmul.f32 -1.442695, %v7346_v32  ;;  %v7650_v58 = vadd.f32 %v16457_v49, %v7649_v28  ;;  %v6749_v3 = vadd.f32 %v16415_v20, %v16214_v27 }
 0xb64   : > { %10330 = vst [vmem:[%s16364_s13 + $0x18] sm:$0xff] %v10251_v9   ;;  %v16474_v26 = vadd.f32 1.0, %v10408_v39  ;;  %v7185_v54 = vpop.f32.mrf.mxu0  ;;  %v10545_v9 = vld [vmem:[%s16857_s8] ss:$0 sm:$0xff] }
 0xb65   : > { %v7186_v42 = vadd.f32 %v16256_v43, %v7185_v54  ;;  %v7654_v48 = vsel %vm16491_vm6, %v16457_v49, %v7650_v58  ;;  %v6833_v49 = vadd.f32 %v16378_v59, %v6744_v60  ;;  %v6838_v30 = vadd.f32 %v16420_v0, %v6749_v3 }
 0xb66   : > { %10411 = vrcp.f32 %v16474_v26  ;;  %v10410_v16 = vpop.eup %10409  ;;  %v7659_v22 = vsel %vm7656_vm8, %v7658_v29, %v7654_v48  ;;  %vm7681_vm13 = vweird.f32 %v16474_v26  ;;  %v6751_v48 = vadd.f32 %v16434_v7, %v16214_v27 }
 0xb67   : > { %10413 = vpow2.f32 %v9826_v62  ;;  %v7222_v18 = vmax.f32 %v7186_v42, 0.0  ;;  %v7662_v15 = vmul.f32 %v10410_v16, %v7503_v1  ;;  %vm7667_vm7 = vweird.f32 %v10410_v16 }
 0xb68   : > { %v7348_v38 = vpop.f32.mrf.mxu1  ;;  %vm7668_vm10 = vmor %vm7666_vm9, %vm7667_vm7  ;;  %v8017_v59 = vsel %vm8008_vm5, %v7659_v22, %v6833_v49  ;;  %v7685_v42 = vand.u32 2147483647, %v16474_v26  ;;  %v6840_v7 = vadd.f32 %v16440_v31, %v6751_v48 }
 0xb69   : > { %v7349_v43 = vadd.f32 %v16333_v53, %v7348_v38  ;;  %v7663_v63 = vsub.f32 1.0, %v7662_v15  ;;  %v7239_v24 = vpack.c.bf16 %v7222_v18, %v7221_v55  ;;  %v16510_v40 = vpop.f32.mrf.mxu2 }
 0xb6a   : > { %vm7686_vm0 = vcmp.eq.f32.partialorder %v7685_v42, 8.507059e+37 }
 0xb6b   : > { %v9827_v14 = vmul.f32 -1.442695, %v7349_v43  ;;  %v7664_v44 = vmul.f32 %v10410_v16, %v7663_v63  ;;  %7387 = vmatmul.bf16.gmra.mxu1 %v7239_v24 }
 0xb6c   : > { %v16495_v8 = vpop.eup %10411  ;;  %v7188_v37 = vpop.f32.mrf.mxu0 }
 0xb6d   : > { %v10414_v45 = vpop.eup %10413  ;;  %v7677_v13 = vmul.f32 %v16495_v8, %v16474_v26  ;;  %10415 = vpow2.f32 %v9827_v14  ;;  %v7665_v21 = vadd.f32 %v10410_v16, %v7664_v44  ;;  %v7189_v32 = vadd.f32 %v10545_v9, %v7188_v37  ;;  %v16553_v37 = vpop.f32.mrf.mxu3 }
 0xb6e   : > { %v16504_v4 = vadd.f32 1.0, %v10414_v45  ;;  %vm7682_vm12 = vweird.f32 %v16495_v8 }
 0xb6f   : > { %v7678_v17 = vsub.f32 1.0, %v7677_v13  ;;  %v7669_v50 = vsel %vm7668_vm10, %v10410_v16, %v7665_v21  ;;  %v7687_v16 = vand.u32 2147483648, %v16474_v26  ;;  %v7223_v18 = vmax.f32 %v7189_v32, 0.0  ;;  %vm16536_vm14 = vmor %vm7681_vm13, %vm7682_vm12 }
 0xb70   : > { %10417 = vrcp.f32 %v16504_v4  ;;  %v7350_v6 = vpop.f32.mrf.mxu1  ;;  %v7674_v10 = vsel %vm7671_vm11, %v7673_v34, %v7669_v50  ;;  %v7700_v36 = vand.u32 2147483647, %v16504_v4  ;;  %v7702_v63 = vand.u32 2147483648, %v16504_v4 }
 0xb71   : > { %v7351_v23 = vadd.f32 %v16333_v53, %v7350_v6  ;;  %v8018_v1 = vsel %vm8008_vm5, %v7674_v10, %v6835_v61  ;;  %v7679_v57 = vmul.f32 %v16495_v8, %v7678_v17  ;;  %v16542_v25 = vpop.f32.mrf.mxu2  ;;  %v7688_v44 = vor.u32 1.1754944e-38, %v7687_v16 }
 0xb72   : > { %v10256_v52 = vpack.c.bf16 %v8018_v1, %v8017_v59  ;;  %vm7696_vm1 = vweird.f32 %v16504_v4  ;;  %v7703_v13 = vor.u32 1.1754944e-38, %v7702_v63  ;;  %vm7701_vm3 = vcmp.eq.f32.partialorder %v7700_v36, 8.507059e+37 }
 0xb73   : > { %v10416_v12 = vpop.eup %10415  ;;  %v9828_v2 = vmul.f32 -1.442695, %v7351_v23  ;;  %v7680_v62 = vadd.f32 %v16495_v8, %v7679_v57  ;;  %v6754_v32 = vadd.f32 %v16459_v47, %v16214_v27  ;;  %v6756_v47 = vadd.f32 %v16479_v19, %v16214_v27 }
 0xb74   : > { %v16520_v41 = vadd.f32 1.0, %v10416_v12  ;;  %v7190_v39 = vpop.f32.mrf.mxu0  ;;  %10331 = vst [vmem:[%s16364_s13 + $0x20] sm:$0xff] %v10256_v52  }
 0xb75   : > { %10419 = vpow2.f32 %v9828_v2  ;;  %v7191_v28 = vadd.f32 %v10545_v9, %v7190_v39  ;;  %v7684_v26 = vsel %vm16536_vm14, %v16495_v8, %v7680_v62  ;;  %v16577_v57 = vpop.f32.mrf.mxu3  ;;  %v6843_v16 = vadd.f32 %v16463_v46, %v6754_v32 }
 0xb76   : > { %v10418_v33 = vpop.eup %10417  ;;  %10421 = vrcp.f32 %v16520_v41  ;;  %v7689_v29 = vsel %vm7686_vm0, %v7688_v44, %v7684_v26  ;;  %v7717_v52 = vand.u32 2147483648, %v16520_v41  ;;  %vm7711_vm6 = vweird.f32 %v16520_v41 }
 0xb77   : > { %v7692_v54 = vmul.f32 %v10418_v33, %v16504_v4  ;;  %v7224_v58 = vmax.f32 %v7191_v28, 0.0  ;;  %vm7697_vm15 = vweird.f32 %v10418_v33  ;;  %v8019_v34 = vsel %vm8008_vm5, %v7689_v29, %v6838_v30 }
 0xb78   : > { %v7353_v15 = vpop.f32.mrf.mxu1  ;;  %vm7698_vm2 = vmor %vm7696_vm1, %vm7697_vm15  ;;  %v7715_v2 = vand.u32 2147483647, %v16520_v41  ;;  %v6845_v3 = vadd.f32 %v16483_v35, %v6756_v47 }
 0xb79   : > { %v7693_v55 = vsub.f32 1.0, %v7692_v54  ;;  %v7354_v38 = vadd.f32 %v16333_v53, %v7353_v15  ;;  %v7240_v24 = vpack.c.bf16 %v7224_v58, %v7223_v18  ;;  %v16570_v59 = vpop.f32.mrf.mxu2  ;;  %v7718_v18 = vor.u32 1.1754944e-38, %v7717_v52 }
 0xb7a   : > { %vm7716_vm9 = vcmp.eq.f32.partialorder %v7715_v2, 8.507059e+37 }
 0xb7b   : > { %v10420_v60 = vpop.eup %10419  ;;  %v7694_v56 = vmul.f32 %v10418_v33, %v7693_v55  ;;  %v9829_v14 = vmul.f32 -1.442695, %v7354_v38  ;;  %7392 = vmatmul.bf16.gmra.mxu1 %v7240_v24 }
 0xb7c   : > { %v16547_v20 = vpop.eup %10421  ;;  %v16551_v51 = vadd.f32 1.0, %v10420_v60 }
 0xb7d   : > { %v7695_v45 = vadd.f32 %v10418_v33, %v7694_v56  ;;  %v7707_v8 = vmul.f32 %v16547_v20, %v16520_v41  ;;  %10423 = vpow2.f32 %v9829_v14  ;;  %vm7712_vm4 = vweird.f32 %v16547_v20  ;;  %v16605_v48 = vpop.f32.mrf.mxu3 }
 0xb7e   : > { %10425 = vrcp.f32 %v16551_v51  ;;  %vm16583_vm7 = vmor %vm7711_vm6, %vm7712_vm4  ;;  %v7730_v28 = vand.u32 2147483647, %v16551_v51  ;;  %vm7726_vm10 = vweird.f32 %v16551_v51 }
 0xb7f   : > { %v7699_v21 = vsel %vm7698_vm2, %v10418_v33, %v7695_v45  ;;  %v7708_v49 = vsub.f32 1.0, %v7707_v8  ;;  %v7732_v33 = vand.u32 2147483648, %v16551_v51 }
 0xb80   : > { %v7704_v22 = vsel %vm7701_vm3, %v7703_v13, %v7699_v21  ;;  %v7355_v4 = vpop.f32.mrf.mxu1  ;;  %vm7731_vm12 = vcmp.eq.f32.partialorder %v7730_v28, 8.507059e+37 }
 0xb81   : > { %v8020_v0 = vsel %vm8008_vm5, %v7704_v22, %v6840_v7  ;;  %v7709_v17 = vmul.f32 %v16547_v20, %v7708_v49  ;;  %v7356_v61 = vadd.f32 %v16333_v53, %v7355_v4  ;;  %v7733_v36 = vor.u32 1.1754944e-38, %v7732_v33  ;;  %v16599_v60 = vpop.f32.mrf.mxu2 }
 0xb82   : > { %v10261_v50 = vpack.c.bf16 %v8020_v0, %v8019_v34  ;;  %v6759_v4 = vadd.f32 %v16510_v40, %v16214_v27 }
 0xb83   : > { %v10424_v6 = vpop.eup %10423  ;;  %v9830_v10 = vmul.f32 -1.442695, %v7356_v61  ;;  %v7710_v1 = vadd.f32 %v16547_v20, %v7709_v17 }
 0xb84   : > { %v10426_v23 = vpop.eup %10425  ;;  %10332 = vst [vmem:[%s16364_s13 + $0x28] sm:$0xff] %v10261_v50   ;;  %v16568_v31 = vadd.f32 1.0, %v10424_v6  ;;  %v6848_v40 = vadd.f32 %v16517_v5, %v6759_v4 }
 0xb85   : > { %v7722_v12 = vmul.f32 %v10426_v23, %v16551_v51  ;;  %10427 = vpow2.f32 %v9830_v10  ;;  %v7714_v54 = vsel %vm16583_vm7, %v16547_v20, %v7710_v1  ;;  %vm7727_vm8 = vweird.f32 %v10426_v23  ;;  %v16629_v52 = vpop.f32.mrf.mxu3 }
 0xb86   : > { %10429 = vrcp.f32 %v16568_v31  ;;  %v7719_v43 = vsel %vm7716_vm9, %v7718_v18, %v7714_v54  ;;  %vm7728_vm11 = vmor %vm7726_vm10, %vm7727_vm8  ;;  %v7747_v21 = vand.u32 2147483648, %v16568_v31  ;;  %vm7741_vm14 = vweird.f32 %v16568_v31 }
 0xb87   : > { %v7723_v9 = vsub.f32 1.0, %v7722_v12  ;;  %v8021_v26 = vsel %vm8008_vm5, %v7719_v43, %v6843_v16  ;;  %v7745_v49 = vand.u32 2147483647, %v16568_v31 }
 0xb88   : > { %v7358_v62 = vpop.f32.mrf.mxu1  ;;  %v7748_v1 = vor.u32 1.1754944e-38, %v7747_v21 }
 0xb89   : > { %v7724_v42 = vmul.f32 %v10426_v23, %v7723_v9  ;;  %v7359_v41 = vadd.f32 %v16333_v53, %v7358_v62  ;;  %v16621_v50 = vpop.f32.mrf.mxu2  ;;  %vm7746_vm1 = vcmp.eq.f32.partialorder %v7745_v49, 8.507059e+37 }
 0xb8b   : > { %v10428_v58 = vpop.eup %10427  ;;  %v7725_v15 = vadd.f32 %v10426_v23, %v7724_v42  ;;  %v9831_v55 = vmul.f32 -1.442695, %v7359_v41 }
 0xb8c   : > { %v10430_v38 = vpop.eup %10429  ;;  %v7509_v63 = vadd.f32 1.0, %v10428_v58 }
 0xb8d   : > { %v7729_v24 = vsel %vm7728_vm11, %v10426_v23, %v7725_v15  ;;  %v7737_v19 = vmul.f32 %v10430_v38, %v16568_v31  ;;  %10431 = vpow2.f32 %v9831_v55  ;;  %vm7742_vm13 = vweird.f32 %v10430_v38 }
 0xb8e   : > { %v7734_v46 = vsel %vm7731_vm12, %v7733_v36, %v7729_v24  ;;  %10433 = vrcp.f32 %v7509_v63  ;;  %vm16617_vm15 = vmor %vm7741_vm14, %vm7742_vm13  ;;  %v7760_v0 = vand.u32 2147483647, %v7509_v63  ;;  %v7762_v17 = vand.u32 2147483648, %v7509_v63  ;;  %v16643_v36 = vpop.f32.mrf.mxu3 }
 0xb8f   : > { %v8022_v35 = vsel %vm8008_vm5, %v7734_v46, %v6845_v3  ;;  %v7738_v56 = vsub.f32 1.0, %v7737_v19  ;;  %v6761_v31 = vadd.f32 %v16542_v25, %v16214_v27  ;;  %vm7756_vm2 = vweird.f32 %v7509_v63 }
 0xb90   : > { %v10266_v14 = vpack.c.bf16 %v8022_v35, %v8021_v26  ;;  %v7360_v20 = vpop.f32.mrf.mxu1  ;;  %v7763_v33 = vor.u32 1.1754944e-38, %v7762_v17  ;;  %vm7761_vm4 = vcmp.eq.f32.partialorder %v7760_v0, 8.507059e+37  ;;  %v6764_v26 = vadd.f32 %v16570_v59, %v16214_v27 }
 0xb91   : > { %v7739_v44 = vmul.f32 %v10430_v38, %v7738_v56  ;;  %v7361_v51 = vadd.f32 %v16333_v53, %v7360_v20  ;;  %v6850_v39 = vadd.f32 %v16553_v37, %v6761_v31  ;;  %v16639_v55 = vpop.f32.mrf.mxu2 }
 0xb92   : > { %10333 = vst [vmem:[%s16364_s13 + $0x30] sm:$0xff] %v10266_v14  }
 0xb93   : > { %v10432_v45 = vpop.eup %10431  ;;  %v9832_v8 = vmul.f32 -1.442695, %v7361_v51  ;;  %v7740_v13 = vadd.f32 %v10430_v38, %v7739_v44  ;;  %v6766_v51 = vadd.f32 %v16599_v60, %v16214_v27 }
 0xb94   : > { %v10434_v30 = vpop.eup %10433  ;;  %v16609_v29 = vadd.f32 1.0, %v10432_v45 }
 0xb95   : > { %v7752_v7 = vmul.f32 %v10434_v30, %v7509_v63  ;;  %10435 = vpow2.f32 %v9832_v8  ;;  %v7744_v6 = vsel %vm16617_vm15, %v10430_v38, %v7740_v13  ;;  %vm7757_vm0 = vweird.f32 %v10434_v30 }
 0xb96   : > { %10437 = vrcp.f32 %v16609_v29  ;;  %v7749_v28 = vsel %vm7746_vm1, %v7748_v1, %v7744_v6  ;;  %vm7758_vm3 = vmor %vm7756_vm2, %vm7757_vm0  ;;  %v7777_v19 = vand.u32 2147483648, %v16609_v29  ;;  %vm7771_vm7 = vweird.f32 %v16609_v29 }
 0xb97   : > { %v7753_v22 = vsub.f32 1.0, %v7752_v7  ;;  %v8023_v42 = vsel %vm8008_vm5, %v7749_v28, %v6848_v40 }
 0xb98   : > { %v7363_v61 = vpop.f32.mrf.mxu1  ;;  %v7778_v45 = vor.u32 1.1754944e-38, %v7777_v19 }
 0xb99   : > { %v7754_v10 = vmul.f32 %v10434_v30, %v7753_v22  ;;  %v7364_v23 = vadd.f32 %v16333_v53, %v7363_v61  ;;  %v16663_v22 = vld [vmem:[%s16859_s10] ss:$0 sm:$0xff]  ;;  %v16666_v4 = vpop.f32.mrf.mxu2  ;;  %v16670_v61 = vpop.f32.mrf.mxu3 }
 0xb9b   : > { %v10436_v12 = vpop.eup %10435  ;;  %v7755_v2 = vadd.f32 %v10434_v30, %v7754_v10  ;;  %v9833_v9 = vmul.f32 -1.442695, %v7364_v23 }
 0xb9c   : > { %v10438_v32 = vpop.eup %10437  ;;  %v7511_v62 = vadd.f32 1.0, %v10436_v12 }
 0xb9d   : > { %v7759_v54 = vsel %vm7758_vm3, %v10434_v30, %v7755_v2  ;;  %v7767_v5 = vmul.f32 %v10438_v32, %v16609_v29  ;;  %10439 = vpow2.f32 %v9833_v9  ;;  %vm7772_vm6 = vweird.f32 %v10438_v32 }
 0xb9e   : > { %v7764_v25 = vsel %vm7761_vm4, %v7763_v33, %v7759_v54  ;;  %10441 = vrcp.f32 %v7511_v62  ;;  %vm16651_vm8 = vmor %vm7771_vm7, %vm7772_vm6  ;;  %v7792_v56 = vand.u32 2147483648, %v7511_v62  ;;  %v7790_v44 = vand.u32 2147483647, %v7511_v62 }
 0xb9f   : > { %v8024_v41 = vsel %vm8008_vm5, %v7764_v25, %v6850_v39  ;;  %v7768_v47 = vsub.f32 1.0, %v7767_v5  ;;  %v6853_v30 = vadd.f32 %v16577_v57, %v6764_v26  ;;  %vm7786_vm11 = vweird.f32 %v7511_v62 }
 0xba0   : > { %v10271_v37 = vpack.c.bf16 %v8024_v41, %v8023_v42  ;;  %v7365_v16 = vpop.f32.mrf.mxu1  ;;  %v7793_v21 = vor.u32 1.1754944e-38, %v7792_v56  ;;  %v6855_v57 = vadd.f32 %v16605_v48, %v6766_v51  ;;  %vm7791_vm13 = vcmp.eq.f32.partialorder %v7790_v44, 8.507059e+37 }
 0xba1   : > { %v7769_v18 = vmul.f32 %v10438_v32, %v7768_v47  ;;  %v7366_v58 = vadd.f32 %v16333_v53, %v7365_v16  ;;  %v7775_v53 = vand.u32 2147483647, %v16609_v29  ;;  %v16689_v47 = vpop.f32.mrf.mxu3 }
 0xba2   : > { %10334 = vst [vmem:[%s16364_s13 + $0x38] sm:$0xff] %v10271_v37  }
 0xba3   : > { %v10440_v15 = vpop.eup %10439  ;;  %v9834_v38 = vmul.f32 -1.442695, %v7366_v58  ;;  %v7770_v63 = vadd.f32 %v10438_v32, %v7769_v18  ;;  %vm7776_vm10 = vcmp.eq.f32.partialorder %v7775_v53, 8.507059e+37  ;;  %v6769_v58 = vadd.f32 %v16621_v50, %v16214_v27 }
 0xba4   : > { %v10442_v3 = vpop.eup %10441  ;;  %v16641_v43 = vadd.f32 1.0, %v10440_v15 }
 0xba5   : > { %v7782_v24 = vmul.f32 %v10442_v3, %v7511_v62  ;;  %10443 = vpow2.f32 %v9834_v38  ;;  %v7774_v14 = vsel %vm16651_vm8, %v10438_v32, %v7770_v63  ;;  %vm7787_vm9 = vweird.f32 %v10442_v3  ;;  %v16679_v62 = vpop.f32.mrf.mxu2 }
 0xba6   : > { %10445 = vrcp.f32 %v16641_v43  ;;  %v7779_v7 = vsel %vm7776_vm10, %v7778_v45, %v7774_v14  ;;  %vm7788_vm12 = vmor %vm7786_vm11, %vm7787_vm9  ;;  %v7807_v39 = vand.u32 2147483648, %v16641_v43  ;;  %vm7801_vm15 = vweird.f32 %v16641_v43 }
 0xba7   : > { %v7783_v46 = vsub.f32 1.0, %v7782_v24  ;;  %v8025_v6 = vsel %vm8008_vm5, %v7779_v7, %v6853_v30  ;;  %v7805_v54 = vand.u32 2147483647, %v16641_v43  ;;  %v6771_v38 = vadd.f32 %v16639_v55, %v16214_v27 }
 0xba8   : > { %v7368_v29 = vpop.f32.mrf.mxu1  ;;  %v7808_v15 = vor.u32 1.1754944e-38, %v7807_v39  ;;  %v6858_v53 = vadd.f32 %v16629_v52, %v6769_v58 }
 0xba9   : > { %v7784_v20 = vmul.f32 %v10442_v3, %v7783_v46  ;;  %v7369_v60 = vadd.f32 %v16663_v22, %v7368_v29  ;;  %vm7806_vm2 = vcmp.eq.f32.partialorder %v7805_v54, 8.507059e+37  ;;  %v6860_v50 = vadd.f32 %v16643_v36, %v6771_v38  ;;  %v16709_v36 = vpop.f32.mrf.mxu3 }
 0xbab   : > { %v10444_v8 = vpop.eup %10443  ;;  %v7785_v59 = vadd.f32 %v10442_v3, %v7784_v20  ;;  %v9835_v31 = vmul.f32 -1.442695, %v7369_v60 }
 0xbac   : > { %v10446_v13 = vpop.eup %10445  ;;  %v7513_v49 = vadd.f32 1.0, %v10444_v8 }
 0xbad   : > { %v7789_v34 = vsel %vm7788_vm12, %v10442_v3, %v7785_v59  ;;  %v7797_v0 = vmul.f32 %v10446_v13, %v16641_v43  ;;  %vm7802_vm14 = vweird.f32 %v10446_v13  ;;  %v16705_v45 = vpop.f32.mrf.mxu2 }
 0xbae   : > { %v7794_v17 = vsel %vm7791_vm13, %v7793_v21, %v7789_v34  ;;  %10447 = vrcp.f32 %v7513_v49  ;;  %vm16683_vm0 = vmor %vm7801_vm15, %vm7802_vm14  ;;  %v7822_v42 = vand.u32 2147483648, %v7513_v49  ;;  %v7820_v18 = vand.u32 2147483647, %v7513_v49 }
 0xbaf   : > { %v8026_v10 = vsel %vm8008_vm5, %v7794_v17, %v6855_v57  ;;  %v7798_v23 = vsub.f32 1.0, %v7797_v0  ;;  %10449 = vpow2.f32 %v9835_v31  ;;  %vm7816_vm3 = vweird.f32 %v7513_v49 }
 0xbb0   : > { %v10276_v40 = vpack.c.bf16 %v8026_v10, %v8025_v6  ;;  %v7370_v48 = vpop.f32.mrf.mxu1  ;;  %v7823_v24 = vor.u32 1.1754944e-38, %v7822_v42  ;;  %vm7821_vm6 = vcmp.eq.f32.partialorder %v7820_v18, 8.507059e+37  ;;  %v6774_v6 = vadd.f32 %v16666_v4, %v16214_v27 }
 0xbb1   : > { %v7799_v1 = vmul.f32 %v10446_v13, %v7798_v23  ;;  %v7371_v2 = vadd.f32 %v16663_v22, %v7370_v48 }
 0xbb2   : > { %10335 = vst [vmem:[%s16364_s13 + $0x40] sm:$0xff] %v10276_v40   ;;  %v6863_v4 = vadd.f32 %v16670_v61, %v6774_v6 }
 0xbb3   : > { %v7800_v9 = vadd.f32 %v10446_v13, %v7799_v1  ;;  %v9836_v28 = vmul.f32 -1.442695, %v7371_v2 }
 0xbb4   : > { %v10448_v12 = vpop.eup %10447 }
 0xbb5   : > { %v7812_v32 = vmul.f32 %v10448_v12, %v7513_v49  ;;  %v10450_v33 = vpop.eup %10449  ;;  %10451 = vpow2.f32 %v9836_v28  ;;  %v7804_v37 = vsel %vm16683_vm0, %v10446_v13, %v7800_v9  ;;  %vm7817_vm1 = vweird.f32 %v10448_v12  ;;  %v6780_v10 = vpop.f32.mrf.mxu2 }
 0xbb6   : > { %v16687_v41 = vadd.f32 1.0, %v10450_v33  ;;  %v7809_v63 = vsel %vm7806_vm2, %v7808_v15, %v7804_v37  ;;  %vm7818_vm4 = vmor %vm7816_vm3, %vm7817_vm1  ;;  %v6776_v9 = vadd.f32 %v16679_v62, %v16214_v27 }
 0xbb7   : > { %v7813_v5 = vsub.f32 1.0, %v7812_v32  ;;  %v8027_v55 = vsel %vm8008_vm5, %v7809_v63, %v6858_v53  ;;  %v6869_v32 = vpop.f32.mrf.mxu3 }
 0xbb8   : > { %10453 = vrcp.f32 %v16687_v41  ;;  %v7373_v43 = vpop.f32.mrf.mxu1  ;;  %v7837_v34 = vand.u32 2147483648, %v16687_v41  ;;  %vm7831_vm8 = vweird.f32 %v16687_v41  ;;  %v7835_v0 = vand.u32 2147483647, %v16687_v41 }
 0xbb9   : > { %v7814_v16 = vmul.f32 %v10448_v12, %v7813_v5  ;;  %v7374_v19 = vadd.f32 %v16663_v22, %v7373_v43  ;;  %v6865_v25 = vadd.f32 %v16689_v47, %v6776_v9 }
 0xbba   : > { %v7838_v39 = vor.u32 1.1754944e-38, %v7837_v34  ;;  %vm7836_vm11 = vcmp.eq.f32.partialorder %v7835_v0, 8.507059e+37 }
 0xbbb   : > { %v7815_v3 = vadd.f32 %v10448_v12, %v7814_v16  ;;  %v10452_v26 = vpop.eup %10451  ;;  %v9837_v56 = vmul.f32 -1.442695, %v7374_v19 }
 0xbbc   : > { %v7515_v20 = vadd.f32 1.0, %v10452_v26 }
 0xbbd   : > { %v7819_v46 = vsel %vm7818_vm4, %v10448_v12, %v7815_v3  ;;  %10455 = vpow2.f32 %v9837_v56  ;;  %v16737_v63 = vpop.f32.mrf.mxu2 }
 0xbbe   : > { %v7824_v35 = vsel %vm7821_vm6, %v7823_v24, %v7819_v46  ;;  %v10454_v44 = vpop.eup %10453  ;;  %10457 = vrcp.f32 %v7515_v20  ;;  %v7850_v31 = vand.u32 2147483647, %v7515_v20  ;;  %v7852_v40 = vand.u32 2147483648, %v7515_v20 }
 0xbbf   : > { %v8028_v14 = vsel %vm8008_vm5, %v7824_v35, %v6860_v50  ;;  %v7827_v52 = vmul.f32 %v10454_v44, %v16687_v41  ;;  %vm7832_vm7 = vweird.f32 %v10454_v44  ;;  %vm7846_vm12 = vweird.f32 %v7515_v20  ;;  %v16740_v50 = vpop.f32.mrf.mxu3 }
 0xbc0   : > { %v10281_v51 = vpack.c.bf16 %v8028_v14, %v8027_v55  ;;  %v7375_v30 = vpop.f32.mrf.mxu1  ;;  %vm16720_vm9 = vmor %vm7831_vm8, %vm7832_vm7  ;;  %v7853_v41 = vor.u32 1.1754944e-38, %v7852_v40  ;;  %vm7851_vm14 = vcmp.eq.f32.partialorder %v7850_v31, 8.507059e+37 }
 0xbc1   : > { %v7828_v8 = vsub.f32 1.0, %v7827_v52  ;;  %v7376_v59 = vadd.f32 %v16663_v22, %v7375_v30 }
 0xbc2   : > { %10336 = vst [vmem:[%s16364_s13 + $0x48] sm:$0xff] %v10281_v51  }
 0xbc3   : > { %v7829_v29 = vmul.f32 %v10454_v44, %v7828_v8  ;;  %v10456_v13 = vpop.eup %10455  ;;  %v9838_v7 = vmul.f32 -1.442695, %v7376_v59 }
 0xbc4   : > { %v10458_v21 = vpop.eup %10457  ;;  %v16712_v49 = vadd.f32 1.0, %v10456_v13  ;;  %v6781_v13 = vadd.f32 %v6780_v10, %v16214_v27 }
 0xbc5   : > { %v7830_v60 = vadd.f32 %v10454_v44, %v7829_v29  ;;  %v7842_v57 = vmul.f32 %v10458_v21, %v7515_v20  ;;  %10459 = vpow2.f32 %v9838_v7  ;;  %vm7847_vm10 = vweird.f32 %v10458_v21  ;;  %v6785_v34 = vpop.f32.mrf.mxu2 }
 0xbc6   : > { %10461 = vrcp.f32 %v16712_v49  ;;  %vm7848_vm13 = vmor %vm7846_vm12, %vm7847_vm10  ;;  %v7867_v56 = vand.u32 2147483648, %v16712_v49  ;;  %vm7861_vm0 = vweird.f32 %v16712_v49  ;;  %v7865_v55 = vand.u32 2147483647, %v16712_v49 }
 0xbc7   : > { %v7843_v17 = vsub.f32 1.0, %v7842_v57  ;;  %v7834_v48 = vsel %vm16720_vm9, %v10454_v44, %v7830_v60  ;;  %v6779_v20 = vadd.f32 %v16705_v45, %v16214_v27  ;;  %v6870_v0 = vadd.f32 %v6869_v32, %v6781_v13 }
 0xbc8   : > { %v7378_v1 = vpop.f32.mrf.mxu1  ;;  %v7839_v42 = vsel %vm7836_vm11, %v7838_v39, %v7834_v48  ;;  %vm7866_vm3 = vcmp.eq.f32.partialorder %v7865_v55, 8.507059e+37 }
 0xbc9   : > { %v7844_v12 = vmul.f32 %v10458_v21, %v7843_v17  ;;  %v7379_v2 = vadd.f32 %v16663_v22, %v7378_v1  ;;  %v8029_v18 = vsel %vm8008_vm5, %v7839_v42, %v6863_v4  ;;  %v6868_v7 = vadd.f32 %v16709_v36, %v6779_v20  ;;  %v6874_v36 = vpop.f32.mrf.mxu3 }
 0xbcb   : > { %v10460_v28 = vpop.eup %10459  ;;  %v7845_v33 = vadd.f32 %v10458_v21, %v7844_v12  ;;  %v9839_v54 = vmul.f32 -1.442695, %v7379_v2 }
 0xbcc   : > { %v10462_v5 = vpop.eup %10461  ;;  %v7517_v37 = vadd.f32 1.0, %v10460_v28 }
 0xbcd   : > { %v7849_v16 = vsel %vm7848_vm13, %v10458_v21, %v7845_v33  ;;  %v7857_v62 = vmul.f32 %v10462_v5, %v16712_v49  ;;  %10463 = vpow2.f32 %v9839_v54  ;;  %vm7862_vm15 = vweird.f32 %v10462_v5  ;;  %v6788_v42 = vpop.f32.mrf.mxu2 }
 0xbce   : > { %v7854_v61 = vsel %vm7851_vm14, %v7853_v41, %v7849_v16  ;;  %10465 = vrcp.f32 %v7517_v37  ;;  %vm16750_vm1 = vmor %vm7861_vm0, %vm7862_vm15  ;;  %v7880_v51 = vand.u32 2147483647, %v7517_v37  ;;  %v7882_v52 = vand.u32 2147483648, %v7517_v37 }
 0xbcf   : > { %v8030_v58 = vsel %vm8008_vm5, %v7854_v61, %v6865_v25  ;;  %v7858_v15 = vsub.f32 1.0, %v7857_v62  ;;  %v7868_v21 = vor.u32 1.1754944e-38, %v7867_v56  ;;  %vm7876_vm4 = vweird.f32 %v7517_v37 }
 0xbd0   : > { %v10286_v47 = vpack.c.bf16 %v8030_v58, %v8029_v18  ;;  %v7380_v38 = vpop.f32.mrf.mxu1  ;;  %v7883_v6 = vor.u32 1.1754944e-38, %v7882_v52  ;;  %vm7881_vm7 = vcmp.eq.f32.partialorder %v7880_v51, 8.507059e+37  ;;  %v6784_v62 = vadd.f32 %v16737_v63, %v16214_v27 }
 0xbd1   : > { %v7859_v3 = vmul.f32 %v10462_v5, %v7858_v15  ;;  %v7381_v43 = vadd.f32 %v16663_v22, %v7380_v38  ;;  %v16774_v61 = vpop.f32.mrf.mxu3 }
 0xbd2   : > { %10337 = vst [vmem:[%s16364_s13 + $0x50] sm:$0xff] %v10286_v47   ;;  %v6873_v63 = vadd.f32 %v16740_v50, %v6784_v62 }
 0xbd3   : > { %v10464_v24 = vpop.eup %10463  ;;  %v9840_v19 = vmul.f32 -1.442695, %v7381_v43  ;;  %v7860_v26 = vadd.f32 %v10462_v5, %v7859_v3 }
 0xbd4   : > { %v10466_v53 = vpop.eup %10465  ;;  %v16742_v46 = vadd.f32 1.0, %v10464_v24  ;;  %v6786_v24 = vadd.f32 %v6785_v34, %v16214_v27 }
 0xbd5   : > { %v7872_v35 = vmul.f32 %v10466_v53, %v7517_v37  ;;  %10467 = vpow2.f32 %v9840_v19  ;;  %v7864_v30 = vsel %vm16750_vm1, %v10462_v5, %v7860_v26  ;;  %vm7877_vm2 = vweird.f32 %v10466_v53 }
 0xbd6   : > { %10469 = vrcp.f32 %v16742_v46  ;;  %v7869_v17 = vsel %vm7866_vm3, %v7868_v21, %v7864_v30  ;;  %vm7878_vm6 = vmor %vm7876_vm4, %vm7877_vm2  ;;  %v7897_v41 = vand.u32 2147483648, %v16742_v46  ;;  %vm7891_vm9 = vweird.f32 %v16742_v46 }
 0xbd7   : > { %v7873_v14 = vsub.f32 1.0, %v7872_v35  ;;  %v8031_v1 = vsel %vm8008_vm5, %v7869_v17, %v6868_v7  ;;  %v7895_v37 = vand.u32 2147483647, %v16742_v46  ;;  %v6875_v56 = vadd.f32 %v6874_v36, %v6786_v24 }
 0xbd8   : > { %v7383_v8 = vpop.f32.mrf.mxu1  ;;  %v7898_v19 = vor.u32 1.1754944e-38, %v7897_v41 }
 0xbd9   : > { %v7874_v59 = vmul.f32 %v10466_v53, %v7873_v14  ;;  %v7384_v29 = vadd.f32 %v16663_v22, %v7383_v8  ;;  %vm7896_vm12 = vcmp.eq.f32.partialorder %v7895_v37, 8.507059e+37 }
 0xbdb   : > { %v10468_v45 = vpop.eup %10467  ;;  %v7875_v49 = vadd.f32 %v10466_v53, %v7874_v59  ;;  %v9841_v60 = vmul.f32 -1.442695, %v7384_v29  ;;  %v6790_v59 = vpop.f32.mrf.mxu2 }
 0xbdc   : > { %v10470_v57 = vpop.eup %10469  ;;  %v7519_v23 = vadd.f32 1.0, %v10468_v45  ;;  %v6879_v45 = vpop.f32.mrf.mxu3 }
 0xbdd   : > { %v7879_v31 = vsel %vm7878_vm6, %v10466_v53, %v7875_v49  ;;  %v7887_v10 = vmul.f32 %v10470_v57, %v16742_v46  ;;  %10471 = vpow2.f32 %v9841_v60  ;;  %vm7892_vm8 = vweird.f32 %v10470_v57 }
 0xbde   : > { %v7884_v40 = vsel %vm7881_vm7, %v7883_v6, %v7879_v31  ;;  %10473 = vrcp.f32 %v7519_v23  ;;  %vm16776_vm10 = vmor %vm7891_vm9, %vm7892_vm8  ;;  %v7910_v58 = vand.u32 2147483647, %v7519_v23  ;;  %v7912_v15 = vand.u32 2147483648, %v7519_v23 }
 0xbdf   : > { %v8032_v48 = vsel %vm8008_vm5, %v7884_v40, %v6870_v0  ;;  %v7888_v12 = vsub.f32 1.0, %v7887_v10  ;;  %vm7906_vm13 = vweird.f32 %v7519_v23  ;;  %v6789_v10 = vadd.f32 %v6788_v42, %v16214_v27 }
 0xbe0   : > { %v10291_v2 = vpack.c.bf16 %v8032_v48, %v8031_v1  ;;  %v7385_v9 = vpop.f32.mrf.mxu1  ;;  %v7913_v14 = vor.u32 1.1754944e-38, %v7912_v15  ;;  %vm7911_vm15 = vcmp.eq.f32.partialorder %v7910_v58, 8.507059e+37 }
 0xbe1   : > { %v7889_v4 = vmul.f32 %v10470_v57, %v7888_v12  ;;  %v7386_v32 = vadd.f32 %v16663_v22, %v7385_v9 }
 0xbe2   : > { %10338 = vst [vmem:[%s16364_s13 + $0x58] sm:$0xff] %v10291_v2  }
 0xbe3   : > { %v10472_v39 = vpop.eup %10471  ;;  %v9842_v28 = vmul.f32 -1.442695, %v7386_v32  ;;  %v7890_v5 = vadd.f32 %v10470_v57, %v7889_v4  ;;  %v6791_v4 = vadd.f32 %v6790_v59, %v16214_v27  ;;  %v6793_v32 = vpop.f32.mrf.mxu2 }
 0xbe4   : > { %v10474_v33 = vpop.eup %10473  ;;  %v16766_v54 = vadd.f32 1.0, %v10472_v39  ;;  %v6878_v39 = vadd.f32 %v16774_v61, %v6789_v10  ;;  %v6882_v41 = vpop.f32.mrf.mxu3  ;;  %v6794_v59 = vadd.f32 %v6793_v32, %v16214_v27 }
 0xbe5   : > { %v7902_v25 = vmul.f32 %v10474_v33, %v7519_v23  ;;  %10475 = vpow2.f32 %v9842_v28  ;;  %v7894_v38 = vsel %vm16776_vm10, %v10470_v57, %v7890_v5  ;;  %vm7907_vm11 = vweird.f32 %v10474_v33 }
 0xbe6   : > { %10477 = vrcp.f32 %v16766_v54  ;;  %v7899_v55 = vsel %vm7896_vm12, %v7898_v19, %v7894_v38  ;;  %vm7908_vm14 = vmor %vm7906_vm13, %vm7907_vm11  ;;  %v7927_v6 = vand.u32 2147483648, %v16766_v54  ;;  %vm7921_vm1 = vweird.f32 %v16766_v54 }
 0xbe7   : > { %v7903_v16 = vsub.f32 1.0, %v7902_v25  ;;  %v8033_v50 = vsel %vm8008_vm5, %v7899_v55, %v6873_v63  ;;  %v7925_v23 = vand.u32 2147483647, %v16766_v54  ;;  %v6880_v42 = vadd.f32 %v6879_v45, %v6791_v4 }
 0xbe8   : > { %v7388_v47 = vpop.f32.mrf.mxu1  ;;  %v7928_v28 = vor.u32 1.1754944e-38, %v7927_v6 }
 0xbe9   : > { %v7904_v3 = vmul.f32 %v10474_v33, %v7903_v16  ;;  %v7389_v43 = vadd.f32 %v16663_v22, %v7388_v47  ;;  %vm7926_vm4 = vcmp.eq.f32.partialorder %v7925_v23, 8.507059e+37 }
 0xbeb   : > { %v10476_v53 = vpop.eup %10475  ;;  %v7905_v46 = vadd.f32 %v10474_v33, %v7904_v3  ;;  %v9843_v26 = vmul.f32 -1.442695, %v7389_v43 }
 0xbec   : > { %v10478_v35 = vpop.eup %10477  ;;  %v7521_v20 = vadd.f32 1.0, %v10476_v53 }
 0xbed   : > { %v7909_v44 = vsel %vm7908_vm14, %v10474_v33, %v7905_v46  ;;  %v7917_v51 = vmul.f32 %v10478_v35, %v16766_v54  ;;  %10479 = vpow2.f32 %v9843_v26  ;;  %vm7922_vm0 = vweird.f32 %v10478_v35  ;;  %v6795_v26 = vpop.f32.mrf.mxu2 }
 0xbee   : > { %v7914_v52 = vsel %vm7911_vm15, %v7913_v14, %v7909_v44  ;;  %10481 = vrcp.f32 %v7521_v20  ;;  %vm16799_vm2 = vmor %vm7921_vm1, %vm7922_vm0  ;;  %v7940_v40 = vand.u32 2147483647, %v7521_v20  ;;  %v7942_v1 = vand.u32 2147483648, %v7521_v20  ;;  %v6884_v14 = vpop.f32.mrf.mxu3 }
 0xbef   : > { %v8034_v8 = vsel %vm8008_vm5, %v7914_v52, %v6875_v56  ;;  %v7918_v30 = vsub.f32 1.0, %v7917_v51  ;;  %vm7936_vm6 = vweird.f32 %v7521_v20 }
 0xbf0   : > { %v10296_v29 = vpack.c.bf16 %v8034_v8, %v8033_v50  ;;  %v7390_v13 = vpop.f32.mrf.mxu1  ;;  %v7943_v16 = vor.u32 1.1754944e-38, %v7942_v1  ;;  %vm7941_vm8 = vcmp.eq.f32.partialorder %v7940_v40, 8.507059e+37 }
 0xbf1   : > { %v7919_v7 = vmul.f32 %v10478_v35, %v7918_v30  ;;  %v7391_v21 = vadd.f32 %v16663_v22, %v7390_v13 }
 0xbf2   : > { %10339 = vst [vmem:[%s16364_s13 + $0x60] sm:$0xff] %v10296_v29  }
 0xbf3   : > { %v10480_v49 = vpop.eup %10479  ;;  %v9844_v60 = vmul.f32 -1.442695, %v7391_v21  ;;  %v7920_v0 = vadd.f32 %v10478_v35, %v7919_v7  ;;  %v6796_v7 = vadd.f32 %v6795_v26, %v16214_v27 }
 0xbf4   : > { %v10482_v57 = vpop.eup %10481  ;;  %v16792_v34 = vadd.f32 1.0, %v10480_v49  ;;  %v6883_v49 = vadd.f32 %v6882_v41, %v6794_v59 }
 0xbf5   : > { %v7932_v17 = vmul.f32 %v10482_v57, %v7521_v20  ;;  %10483 = vpow2.f32 %v9844_v60  ;;  %v7924_v12 = vsel %vm16799_vm2, %v10478_v35, %v7920_v0  ;;  %vm7937_vm3 = vweird.f32 %v10482_v57  ;;  %v6798_v23 = vpop.f32.mrf.mxu2 }
 0xbf6   : > { %10485 = vrcp.f32 %v16792_v34  ;;  %v7929_v37 = vsel %vm7926_vm4, %v7928_v28, %v7924_v12  ;;  %vm7938_vm7 = vmor %vm7936_vm6, %vm7937_vm3  ;;  %v7957_v20 = vand.u32 2147483648, %v16792_v34  ;;  %vm7951_vm10 = vweird.f32 %v16792_v34  ;;  %v6887_v1 = vpop.f32.mrf.mxu3 }
 0xbf7   : > { %v7933_v31 = vsub.f32 1.0, %v7932_v17  ;;  %v8035_v15 = vsel %vm8008_vm5, %v7929_v37, %v6878_v39  ;;  %v6885_v0 = vadd.f32 %v6884_v14, %v6796_v7  ;;  %v6799_v41 = vadd.f32 %v6798_v23, %v16214_v27 }
 0xbf8   : > { %v7393_v48 = vpop.f32.mrf.mxu1  ;;  %v7958_v29 = vor.u32 1.1754944e-38, %v7957_v20 }
 0xbf9   : > { %v7934_v2 = vmul.f32 %v10482_v57, %v7933_v31  ;;  %v7394_v9 = vadd.f32 %v16663_v22, %v7393_v48 }
 0xbfb   : > { %v10484_v33 = vpop.eup %10483  ;;  %v7935_v54 = vadd.f32 %v10482_v57, %v7934_v2  ;;  %v9845_v5 = vmul.f32 -1.442695, %v7394_v9 }
 0xbfc   : > { %v10486_v25 = vpop.eup %10485  ;;  %v7523_v62 = vadd.f32 1.0, %v10484_v33 }
 0xbfd   : > { %v7939_v18 = vsel %vm7938_vm7, %v10482_v57, %v7935_v54  ;;  %v7947_v58 = vmul.f32 %v10486_v25, %v16792_v34  ;;  %10487 = vpow2.f32 %v9845_v5  ;;  %vm7952_vm9 = vweird.f32 %v10486_v25  ;;  %v6800_v33 = vpop.f32.mrf.mxu2 }
 0xbfe   : > { %v7944_v61 = vsel %vm7941_vm8, %v7943_v16, %v7939_v18  ;;  %10489 = vrcp.f32 %v7523_v62  ;;  %vm16822_vm11 = vmor %vm7951_vm10, %vm7952_vm9  ;;  %v7972_v52 = vand.u32 2147483648, %v7523_v62  ;;  %v7970_v30 = vand.u32 2147483647, %v7523_v62  ;;  %v6889_v37 = vpop.f32.mrf.mxu3 }
 0xbff   : > { %v8036_v47 = vsel %vm8008_vm5, %v7944_v61, %v6880_v42  ;;  %v7948_v38 = vsub.f32 1.0, %v7947_v58  ;;  %vm7966_vm14 = vweird.f32 %v7523_v62 }
 0xc00   : > { %v10301_v3 = vpack.c.bf16 %v8036_v47, %v8035_v15  ;;  %v7395_v43 = vpop.f32.mrf.mxu1  ;;  %v7973_v57 = vor.u32 1.1754944e-38, %v7972_v52  ;;  %vm7971_vm0 = vcmp.eq.f32.partialorder %v7970_v30, 8.507059e+37  ;;  %v6888_v15 = vadd.f32 %v6887_v1, %v6799_v41 }
 0xc01   : > { %v7949_v24 = vmul.f32 %v10486_v25, %v7948_v38  ;;  %v7396_v63 = vadd.f32 %v16663_v22, %v7395_v43  ;;  %v7955_v22 = vand.u32 2147483647, %v16792_v34 }
 0xc02   : > { %10340 = vst [vmem:[%s16364_s13 + $0x68] sm:$0xff] %v10301_v3  }
 0xc03   : > { %v10488_v19 = vpop.eup %10487  ;;  %v9846_v53 = vmul.f32 -1.442695, %v7396_v63  ;;  %v7950_v56 = vadd.f32 %v10486_v25, %v7949_v24  ;;  %vm7956_vm13 = vcmp.eq.f32.partialorder %v7955_v22, 8.507059e+37 }
 0xc04   : > { %v10490_v46 = vpop.eup %10489  ;;  %v16816_v35 = vadd.f32 1.0, %v10488_v19 }
 0xc05   : > { %v7962_v55 = vmul.f32 %v10490_v46, %v7523_v62  ;;  %10491 = vpow2.f32 %v9846_v53  ;;  %v7954_v50 = vsel %vm16822_vm11, %v10486_v25, %v7950_v56  ;;  %vm7967_vm12 = vweird.f32 %v10490_v46 }
 0xc06   : > { %10493 = vrcp.f32 %v16816_v35  ;;  %v7959_v60 = vsel %vm7956_vm13, %v7958_v29, %v7954_v50  ;;  %vm7968_vm15 = vmor %vm7966_vm14, %vm7967_vm12  ;;  %v7987_v32 = vand.u32 2147483648, %v16816_v35  ;;  %vm7981_vm2 = vweird.f32 %v16816_v35 }
 0xc07   : > { %v7963_v44 = vsub.f32 1.0, %v7962_v55  ;;  %v8037_v10 = vsel %vm8008_vm5, %v7959_v60, %v6883_v49  ;;  %v7985_v39 = vand.u32 2147483647, %v16816_v35  ;;  %v6801_v62 = vadd.f32 %v6800_v33, %v16214_v27 }
 0xc08   : > { %v7988_v16 = vor.u32 1.1754944e-38, %v7987_v32 }
 0xc09   : > { %v7964_v8 = vmul.f32 %v10490_v46, %v7963_v44  ;;  %vm7986_vm6 = vcmp.eq.f32.partialorder %v7985_v39, 8.507059e+37  ;;  %v6890_v47 = vadd.f32 %v6889_v37, %v6801_v62 }
 0xc0b   : > { %v10492_v13 = vpop.eup %10491  ;;  %v7965_v21 = vadd.f32 %v10490_v46, %v7964_v8 }
 0xc0c   : > { %v10494_v45 = vpop.eup %10493  ;;  %v7525_v34 = vadd.f32 1.0, %v10492_v13 }
 0xc0d   : > { %v7969_v17 = vsel %vm7968_vm15, %v10490_v46, %v7965_v21  ;;  %v7977_v6 = vmul.f32 %v10494_v45, %v16816_v35  ;;  %vm7982_vm1 = vweird.f32 %v10494_v45 }
 0xc0e   : > { %v7974_v31 = vsel %vm7971_vm0, %v7973_v57, %v7969_v17  ;;  %10495 = vrcp.f32 %v7525_v34  ;;  %vm7983_vm3 = vmor %vm7981_vm2, %vm7982_vm1  ;;  %v8002_v54 = vand.u32 2147483648, %v7525_v34  ;;  %v8000_v42 = vand.u32 2147483647, %v7525_v34 }
 0xc0f   : > { %v8038_v36 = vsel %vm8008_vm5, %v7974_v31, %v6885_v0  ;;  %v7978_v40 = vsub.f32 1.0, %v7977_v6  ;;  %vm7996_vm7 = vweird.f32 %v7525_v34 }
 0xc10   : > { %v10306_v48 = vpack.c.bf16 %v8038_v36, %v8037_v10  ;;  %v8003_v61 = vor.u32 1.1754944e-38, %v8002_v54  ;;  %vm8001_vm9 = vcmp.eq.f32.partialorder %v8000_v42, 8.507059e+37 }
 0xc11   : > { %v7979_v12 = vmul.f32 %v10494_v45, %v7978_v40 }
 0xc12   : > { %10341 = vst [vmem:[%s16364_s13 + $0x70] sm:$0xff] %v10306_v48  }
 0xc13   : > { %v7980_v9 = vadd.f32 %v10494_v45, %v7979_v12 }
 0xc14   : > { %v10496_v2 = vpop.eup %10495 }
 0xc15   : > { %v7992_v4 = vmul.f32 %v10496_v2, %v7525_v34  ;;  %v7984_v5 = vsel %vm7983_vm3, %v10494_v45, %v7980_v9  ;;  %vm7997_vm4 = vweird.f32 %v10496_v2 }
 0xc16   : > { %v7989_v58 = vsel %vm7986_vm6, %v7988_v16, %v7984_v5  ;;  %vm7998_vm8 = vmor %vm7996_vm7, %vm7997_vm4 }
 0xc17   : > { %v7993_v28 = vsub.f32 1.0, %v7992_v4  ;;  %v8039_v43 = vsel %vm8008_vm5, %v7989_v58, %v6888_v15 }
 0xc19   : > { %v7994_v25 = vmul.f32 %v10496_v2, %v7993_v28 }
 0xc1b   : > { %v7995_v18 = vadd.f32 %v10496_v2, %v7994_v25 }
 0xc1d   : > { %v7999_v38 = vsel %vm7998_vm8, %v10496_v2, %v7995_v18 }
 0xc1e   : > { %v8004_v3 = vsel %vm8001_vm9, %v8003_v61, %v7999_v38 }
 0xc1f   : > { %v8040_v24 = vsel %vm8008_vm5, %v8004_v3, %v6890_v47 }
 0xc20   : > { %v10311_v63 = vpack.c.bf16 %v8040_v24, %v8039_v43 }
 0xc22   : > { %10342 = vst [vmem:[%s16364_s13 + $0x78] sm:$0xff] %v10311_v63  }
 0xc23 PF: > { %s21_s17 = sadd.s32 1, %s10553_s17  }
 0xc24   : > { %p18_p4 = scmp.ge.s32.totalorder %s21_s17, 4  }
 0xc26   :  { %20 = sbr.rel (!%p18_p4) target bundleno = 1 (0x1), region = 113 }

</bundles_post_ra>
